<compile_context>
chip_gen: v6e
topology: v6e:2x2x1
jax: 0.10.0
libtpu: 0.0.40
codegen_flags: <defaults>
</compile_context>

<pallas_src>
import functools

import jax
import jax.numpy as jnp
from jax.experimental import pallas as pl
from jax.experimental.pallas import tpu as pltpu


_VMEM_LIMIT_BYTES = 48 * 1024 * 1024   # explicit; fits v7x (64 MiB) with headroom
_CONV_TILE_ROWS = 16                   # conv output rows per grid step
_POOL_TILE_ROWS = 64                   # rows per grid step for the W-pool kernel


def _largest_divisor_leq(n, cap, multiple_of=1):
    cap = max(multiple_of, min(n, cap))
    for d in range(cap, 0, -1):
        if n % d == 0 and d % multiple_of == 0:
            return d
    return 1


# -----------------------------------------------------------------------------
# Pallas kernels
# -----------------------------------------------------------------------------
def _conv3x3_bias_relu_kernel(x_ref, w_ref, b_ref, o_ref, *, tile_h, pool_h):
    """Fused 3x3 conv + bias + ReLU (+ optional H-pair max) for one row tile.

    x_ref: (H+2, W+2, Cin)  spatially padded bf16 image, resident across the
                            row-tile grid axis (index-invariant block).
    w_ref: (9*Cin, Cout)    bf16 weights, [dy, dx, cin] row ordering.
    b_ref: (1, Cout)        f32 bias.
    o_ref: (tile_h, W, Cout)        if not pool_h
           (tile_h//2, W, Cout)     if pool_h (H-direction 2:1 max fused here)
    """
    w = o_ref.shape[1]
    cout = o_ref.shape[2]
    cin = x_ref.shape[-1]
    t = pl.program_id(1)
    row0 = pl.multiple_of(t * tile_h, tile_h)

    # In-VMEM im2col: one (tile_h*W, 9*Cin) patch -> ONE deep MXU contraction.
    taps = []
    for dy in range(3):
        rows = x_ref[pl.ds(row0 + dy, tile_h), :, :]      # (tile_h, W+2, Cin)
        for dx in range(3):
            taps.append(rows[:, dx:dx + w, :])            # (tile_h, W, Cin)
    patch = jnp.concatenate(taps, axis=-1)                # (tile_h, W, 9*Cin)
    patch = patch.reshape(tile_h * w, 9 * cin)

    y = jnp.dot(patch, w_ref[...], preferred_element_type=jnp.float32)
    y = jnp.maximum(y + b_ref[...], 0.0)                  # (tile_h*W, Cout) f32

    if pool_h:
        # H-direction half of MaxPool(2,2): pure leading-dim reshape + max.
        y = y.reshape(tile_h // 2, 2, w, cout)
        y = jnp.maximum(y[:, 0], y[:, 1])                 # (tile_h//2, W, Cout)
        o_ref[...] = y.astype(o_ref.dtype)
    else:
        o_ref[...] = y.reshape(tile_h, w, cout).astype(o_ref.dtype)


def _maxpool_w_kernel(x_ref, o_ref):
    """W-direction half of MaxPool(2,2).

    x_ref: (TILE_R, WO, 2*C) -- the wrapper's *free* row-major reshape of
           (rows, W, C), so the W-pair lives in the (lane-dense, 128-wide)
           last dim.  o_ref: (TILE_R, WO, C).
    """
    c = o_ref.shape[-1]
    x = x_ref[...]
    o_ref[...] = jnp.maximum(x[..., :c], x[..., c:])


# -----------------------------------------------------------------------------
# Wrappers (glue only: spatial pad / free reshapes; all compute is in Pallas)
# -----------------------------------------------------------------------------
def conv3x3_relu(x_nhwc, w_hwio, b, out_dtype=jnp.bfloat16, pool_h=False):
    """3x3 conv (stride 1, SAME) + bias + ReLU (+ fused H-pair max if pool_h).

    x: (N, H, W, Cin), w: HWIO (3, 3, Cin, Cout), b: (Cout,).
    Returns (N, H, W, Cout), or (N, H//2, W, Cout) when pool_h=True.
    """
    n, h, w, cin = x_nhwc.shape
    cout = w_hwio.shape[-1]

    # Pad tiny input-channel counts (conv0: 3) so the folded K is 9*8=72.
    if cin % 8 != 0:
        pad_c = (-cin) % 8
        x_nhwc = jnp.pad(x_nhwc, ((0, 0), (0, 0), (0, 0), (0, pad_c)))
        w_hwio = jnp.pad(w_hwio, ((0, 0), (0, 0), (0, pad_c), (0, 0)))
        cin += pad_c

    if pool_h:
        assert h % 2 == 0, "pool_h requires even H"
        tile_h = _largest_divisor_leq(h, _CONV_TILE_ROWS, multiple_of=2)
    else:
        tile_h = _largest_divisor_leq(h, _CONV_TILE_ROWS)
    num_t = h // tile_h
    hp, wp = h + 2, w + 2
    h_out = h // 2 if pool_h else h
    th_out = tile_h // 2 if pool_h else tile_h

    xp = jnp.pad(x_nhwc.astype(jnp.bfloat16), ((0, 0), (1, 1), (1, 1), (0, 0)))
    wk = w_hwio.astype(jnp.bfloat16).reshape(9 * cin, cout)   # [dy,dx,cin] rows
    bk = b.reshape(1, cout).astype(jnp.float32)

    kernel = functools.partial(_conv3x3_bias_relu_kernel,
                               tile_h=tile_h, pool_h=pool_h)

    return pl.pallas_call(
        kernel,
        out_shape=jax.ShapeDtypeStruct((n, h_out, w, cout), out_dtype),
        grid_spec=pltpu.PrefetchScalarGridSpec(
            num_scalar_prefetch=0,
            grid=(n, num_t),
            in_specs=[
                # whole padded image stays resident across the row-tile axis
                pl.BlockSpec((None, hp, wp, cin), lambda i, t: (i, 0, 0, 0)),
                pl.BlockSpec((9 * cin, cout), lambda i, t: (0, 0)),
                pl.BlockSpec((1, cout), lambda i, t: (0, 0)),
            ],
            out_specs=pl.BlockSpec((None, th_out, w, cout),
                                   lambda i, t: (i, t, 0, 0)),
        ),
        compiler_params=pltpu.CompilerParams(
            dimension_semantics=("parallel", "parallel"),
            vmem_limit_bytes=_VMEM_LIMIT_BYTES,
        ),
    )(xp, wk, bk)


def maxpool_w(x_nhwc):
    """1x2 max pool along W (stride 2); with the H-pair max fused into the
    preceding conv's epilogue this completes MaxPool2d(2, 2)."""
    n, h, w, c = x_nhwc.shape
    assert w % 2 == 0, "maxpool_w requires even W"
    wo = w // 2
    tile_r = _largest_divisor_leq(h, _POOL_TILE_ROWS)

    # Free row-major reshape (no transpose): (N,H,W,C) -> (N,H,WO,2*C).
    xr = x_nhwc.reshape(n, h, wo, 2 * c)

    return pl.pallas_call(
        _maxpool_w_kernel,
        out_shape=jax.ShapeDtypeStruct((n, h, wo, c), x_nhwc.dtype),
        grid_spec=pltpu.PrefetchScalarGridSpec(
            num_scalar_prefetch=0,
            grid=(n, h // tile_r),
            in_specs=[pl.BlockSpec((None, tile_r, wo, 2 * c),
                                   lambda i, t: (i, t, 0, 0))],
            out_specs=pl.BlockSpec((None, tile_r, wo, c),
                                   lambda i, t: (i, t, 0, 0)),
        ),
        compiler_params=pltpu.CompilerParams(
            dimension_semantics=("parallel", "parallel"),
            vmem_limit_bytes=_VMEM_LIMIT_BYTES,
        ),
    )(xr)


# -----------------------------------------------------------------------------
# VGGNet forward (returns the list of selected feature maps, as in PyTorch)
# -----------------------------------------------------------------------------
def vggnet_forward(x_nchw, params):
    """x_nchw: (N, 3, H, W) float32 (PyTorch layout). Returns [feature_nchw]."""
    x = jnp.transpose(x_nchw, (0, 2, 3, 1))                       # NCHW -> NHWC
    x = conv3x3_relu(x, params["w0"], params["b0"])               # layers 0,1
    x = conv3x3_relu(x, params["w1"], params["b1"], pool_h=True)  # layers 2,3 + pool(H)
    x = maxpool_w(x)                                              # layer 4 pool(W)
    x = conv3x3_relu(x, params["w2"], params["b2"])               # layers 5,6
    x = conv3x3_relu(x, params["w3"], params["b3"],
                     out_dtype=jnp.float32)                       # layers 7,8
    # Kept for PyTorch parity (NCHW, f32); drop if the consumer is layout-agnostic.
    feat = jnp.transpose(x, (0, 3, 1, 2))                         # NHWC -> NCHW
    return [feat]


def _init_params(key):
    """Deterministic synthetic stand-ins for the pretrained VGG16 conv weights
    (HWIO layout; real PyTorch OIHW weights need .transpose(2,3,1,0))."""
    shapes = [
        ("w0", (3, 3, 3, 64)), ("b0", (64,)),
        ("w1", (3, 3, 64, 64)), ("b1", (64,)),
        ("w2", (3, 3, 64, 128)), ("b2", (128,)),
        ("w3", (3, 3, 128, 128)), ("b3", (128,)),
    ]
    params = {}
    for name, shape in shapes:
        key, sub = jax.random.split(key)
        scale = 0.05 if name.startswith("w") else 0.01
        params[name] = (scale * jax.random.normal(sub, shape)).astype(jnp.float32)
    return params


# -----------------------------------------------------------------------------
# Pure-JAX reference with matching bf16 numerics (correctness sanity check)
# -----------------------------------------------------------------------------
def _ref_forward(x_nchw, params):
    x = jnp.transpose(x_nchw, (0, 2, 3, 1))

    def conv(x, w, b, out_dtype):
        y = jax.lax.conv_general_dilated(
            x.astype(jnp.bfloat16), w.astype(jnp.bfloat16),
            window_strides=(1, 1), padding="SAME",
            dimension_numbers=("NHWC", "HWIO", "NHWC"),
            preferred_element_type=jnp.float32)
        return jnp.maximum(y + b.astype(jnp.float32), 0.0).astype(out_dtype)

    x = conv(x, params["w0"], params["b0"], jnp.bfloat16)
    x = conv(x, params["w1"], params["b1"], jnp.bfloat16)
    x = jax.lax.reduce_window(x, jnp.array(-jnp.inf, dtype=x.dtype), jax.lax.max,
                              (1, 2, 2, 1), (1, 2, 2, 1), "VALID")
    x = conv(x, params["w2"], params["b2"], jnp.bfloat16)
    x = conv(x, params["w3"], params["b3"], jnp.float32)
    return jnp.transpose(x, (0, 3, 1, 2))


if __name__ == "__main__":
    key = jax.random.PRNGKey(0)
    key, kx = jax.random.split(key)

    # small VGG-style input: batch=2, channels=3 (RGB), 16x16 spatial, NCHW
    x = jax.random.normal(kx, (2, 3, 16, 16), dtype=jnp.float32)
    params = _init_params(key)

    features = jax.jit(vggnet_forward)(x, params)
    feat = jax.block_until_ready(features[0])
    assert feat.shape == (2, 128, 8, 8), feat.shape

    ref = jax.block_until_ready(jax.jit(_ref_forward)(x, params))
    assert jnp.allclose(feat, ref, atol=2e-2, rtol=2e-2), (
        float(jnp.max(jnp.abs(feat - ref))))

    print("KERNEL_OK")
</pallas_src>

<mosaic_0001>
module attributes {stable_mosaic.version = 11 : i64} {
  func.func @_conv3x3_bias_relu_kernel(%arg0: i32, %arg1: i32, %arg2: memref<1x18x18x8xbf16, #tpu.memory_space<vmem>>, %arg3: memref<72x64xbf16, #tpu.memory_space<vmem>>, %arg4: memref<1x64xf32, #tpu.memory_space<vmem>>, %arg5: memref<1x16x16x64xbf16, #tpu.memory_space<vmem>>) attributes {dimension_semantics = [#tpu.dimension_semantics<parallel>, #tpu.dimension_semantics<parallel>], iteration_bounds = array<i64: 2, 1>, scalar_prefetch = 0 : i64, scratch_operands = 0 : i64, tpu.core_type = #tpu.core_type<tc>, window_params = [{transform_indices = @transform_0, window_bounds = array<i64: 1, 18, 18, 8>}, {pipeline_mode = #tpu.pipeline_mode<synchronous>, transform_indices = @transform_1, window_bounds = array<i64: 72, 64>}, {pipeline_mode = #tpu.pipeline_mode<synchronous>, transform_indices = @transform_2, window_bounds = array<i64: 1, 64>}, {transform_indices = @transform_3, window_bounds = array<i64: 1, 16, 16, 64>}]} {
    %c16_i32 = arith.constant 16 : i32
    %0 = arith.muli %arg1, %c16_i32 : i32
    %1 = tpu.assume_multiple %0, 16 : i32
    %c0_i32 = arith.constant 0 : i32
    %2 = arith.addi %1, %c0_i32 : i32
    %c0 = arith.constant 0 : index
    %3 = arith.index_cast %2 : i32 to index
    %c0_0 = arith.constant 0 : index
    %c0_1 = arith.constant 0 : index
    %4 = vector.load %arg2[%c0, %3, %c0_0, %c0_1] : memref<1x18x18x8xbf16, #tpu.memory_space<vmem>>, vector<1x16x18x8xbf16>
    %5 = vector.shape_cast %4 : vector<1x16x18x8xbf16> to vector<16x18x8xbf16>
    %6 = vector.extract_strided_slice %5 {offsets = [0, 0, 0], sizes = [16, 16, 8], strides = [1, 1, 1]} : vector<16x18x8xbf16> to vector<16x16x8xbf16>
    %7 = vector.extract_strided_slice %5 {offsets = [0, 1, 0], sizes = [16, 16, 8], strides = [1, 1, 1]} : vector<16x18x8xbf16> to vector<16x16x8xbf16>
    %8 = vector.extract_strided_slice %5 {offsets = [0, 2, 0], sizes = [16, 16, 8], strides = [1, 1, 1]} : vector<16x18x8xbf16> to vector<16x16x8xbf16>
    %c1_i32 = arith.constant 1 : i32
    %9 = arith.addi %1, %c1_i32 : i32
    %c0_2 = arith.constant 0 : index
    %10 = arith.index_cast %9 : i32 to index
    %c0_3 = arith.constant 0 : index
    %c0_4 = arith.constant 0 : index
    %11 = vector.load %arg2[%c0_2, %10, %c0_3, %c0_4] : memref<1x18x18x8xbf16, #tpu.memory_space<vmem>>, vector<1x16x18x8xbf16>
    %12 = vector.shape_cast %11 : vector<1x16x18x8xbf16> to vector<16x18x8xbf16>
    %13 = vector.extract_strided_slice %12 {offsets = [0, 0, 0], sizes = [16, 16, 8], strides = [1, 1, 1]} : vector<16x18x8xbf16> to vector<16x16x8xbf16>
    %14 = vector.extract_strided_slice %12 {offsets = [0, 1, 0], sizes = [16, 16, 8], strides = [1, 1, 1]} : vector<16x18x8xbf16> to vector<16x16x8xbf16>
    %15 = vector.extract_strided_slice %12 {offsets = [0, 2, 0], sizes = [16, 16, 8], strides = [1, 1, 1]} : vector<16x18x8xbf16> to vector<16x16x8xbf16>
    %c2_i32 = arith.constant 2 : i32
    %16 = arith.addi %1, %c2_i32 : i32
    %c0_5 = arith.constant 0 : index
    %17 = arith.index_cast %16 : i32 to index
    %c0_6 = arith.constant 0 : index
    %c0_7 = arith.constant 0 : index
    %18 = vector.load %arg2[%c0_5, %17, %c0_6, %c0_7] : memref<1x18x18x8xbf16, #tpu.memory_space<vmem>>, vector<1x16x18x8xbf16>
    %19 = vector.shape_cast %18 : vector<1x16x18x8xbf16> to vector<16x18x8xbf16>
    %20 = vector.extract_strided_slice %19 {offsets = [0, 0, 0], sizes = [16, 16, 8], strides = [1, 1, 1]} : vector<16x18x8xbf16> to vector<16x16x8xbf16>
    %21 = vector.extract_strided_slice %19 {offsets = [0, 1, 0], sizes = [16, 16, 8], strides = [1, 1, 1]} : vector<16x18x8xbf16> to vector<16x16x8xbf16>
    %22 = vector.extract_strided_slice %19 {offsets = [0, 2, 0], sizes = [16, 16, 8], strides = [1, 1, 1]} : vector<16x18x8xbf16> to vector<16x16x8xbf16>
    %23 = tpu.concatenate %6, %7, %8, %13, %14, %15, %20, %21, %22 in 2 : vector<16x16x8xbf16>, vector<16x16x8xbf16>, vector<16x16x8xbf16>, vector<16x16x8xbf16>, vector<16x16x8xbf16>, vector<16x16x8xbf16>, vector<16x16x8xbf16>, vector<16x16x8xbf16>, vector<16x16x8xbf16> -> vector<16x16x72xbf16>
    %24 = vector.shape_cast %23 : vector<16x16x72xbf16> to vector<256x72xbf16>
    %c0_8 = arith.constant 0 : index
    %c0_9 = arith.constant 0 : index
    %25 = vector.load %arg3[%c0_8, %c0_9] : memref<72x64xbf16, #tpu.memory_space<vmem>>, vector<72x64xbf16>
    %cst = arith.constant dense<0.000000e+00> : vector<256x64xf32>
    %26 = tpu.matmul %24, %25, %cst {dimension_numbers = #tpu.dot_dimension_numbers<[1], [0], [0], [1], [0, 0, 1, 1], [], []>} : vector<256x72xbf16>, vector<72x64xbf16>, vector<256x64xf32> -> vector<256x64xf32>
    %c0_10 = arith.constant 0 : index
    %c0_11 = arith.constant 0 : index
    %27 = vector.load %arg4[%c0_10, %c0_11] : memref<1x64xf32, #tpu.memory_space<vmem>>, vector<1x64xf32>
    %28 = vector.broadcast %27 : vector<1x64xf32> to vector<256x64xf32>
    %29 = arith.addf %26, %28 : vector<256x64xf32>
    %cst_12 = arith.constant 0.000000e+00 : f32
    %30 = vector.broadcast %cst_12 : f32 to vector<256x64xf32>
    %31 = arith.maximumf %29, %30 : vector<256x64xf32>
    %32 = vector.shape_cast %31 : vector<256x64xf32> to vector<16x16x64xf32>
    %33 = arith.truncf %32 : vector<16x16x64xf32> to vector<16x16x64xbf16>
    %c0_13 = arith.constant 0 : index
    %c0_14 = arith.constant 0 : index
    %c0_15 = arith.constant 0 : index
    %c0_16 = arith.constant 0 : index
    %34 = vector.load %arg5[%c0_13, %c0_14, %c0_15, %c0_16] : memref<1x16x16x64xbf16, #tpu.memory_space<vmem>>, vector<1x16x16x64xbf16>
    %35 = vector.shape_cast %34 : vector<1x16x16x64xbf16> to vector<16x16x64xbf16>
    %36 = vector.shape_cast %33 : vector<16x16x64xbf16> to vector<1x16x16x64xbf16>
    tpu.vector_store %arg5[%c0_13, %c0_14, %c0_15, %c0_16], %36 {strides = array<i32>} : memref<1x16x16x64xbf16, #tpu.memory_space<vmem>>, vector<1x16x16x64xbf16>,
    return
  }
  func.func @transform_0(%arg0: i32, %arg1: i32) -> (i32, i32, i32, i32) {
    %c0_i32 = arith.constant 0 : i32
    %c0_i32_0 = arith.constant 0 : i32
    %c0_i32_1 = arith.constant 0 : i32
    %c0_i32_2 = arith.constant 0 : i32
    return %arg0, %c0_i32, %c0_i32_0, %c0_i32_1 : i32, i32, i32, i32
  }
  func.func @transform_1(%arg0: i32, %arg1: i32) -> (i32, i32) {
    %c0_i32 = arith.constant 0 : i32
    %c0_i32_0 = arith.constant 0 : i32
    %c0_i32_1 = arith.constant 0 : i32
    return %c0_i32, %c0_i32_0 : i32, i32
  }
  func.func @transform_2(%arg0: i32, %arg1: i32) -> (i32, i32) {
    %c0_i32 = arith.constant 0 : i32
    %c0_i32_0 = arith.constant 0 : i32
    %c0_i32_1 = arith.constant 0 : i32
    return %c0_i32, %c0_i32_0 : i32, i32
  }
  func.func @transform_3(%arg0: i32, %arg1: i32) -> (i32, i32, i32, i32) {
    %c0_i32 = arith.constant 0 : i32
    %c0_i32_0 = arith.constant 0 : i32
    %c0_i32_1 = arith.constant 0 : i32
    return %arg0, %arg1, %c0_i32, %c0_i32_0 : i32, i32, i32, i32
  }
}

module attributes {stable_mosaic.version = 11 : i64} {
  func.func @_conv3x3_bias_relu_kernel(%arg0: i32, %arg1: i32, %arg2: memref<1x18x18x64xbf16, #tpu.memory_space<vmem>>, %arg3: memref<576x64xbf16, #tpu.memory_space<vmem>>, %arg4: memref<1x64xf32, #tpu.memory_space<vmem>>, %arg5: memref<1x8x16x64xbf16, #tpu.memory_space<vmem>>) attributes {dimension_semantics = [#tpu.dimension_semantics<parallel>, #tpu.dimension_semantics<parallel>], iteration_bounds = array<i64: 2, 1>, scalar_prefetch = 0 : i64, scratch_operands = 0 : i64, tpu.core_type = #tpu.core_type<tc>, window_params = [{transform_indices = @transform_0, window_bounds = array<i64: 1, 18, 18, 64>}, {pipeline_mode = #tpu.pipeline_mode<synchronous>, transform_indices = @transform_1, window_bounds = array<i64: 576, 64>}, {pipeline_mode = #tpu.pipeline_mode<synchronous>, transform_indices = @transform_2, window_bounds = array<i64: 1, 64>}, {transform_indices = @transform_3, window_bounds = array<i64: 1, 8, 16, 64>}]} {
    %c16_i32 = arith.constant 16 : i32
    %0 = arith.muli %arg1, %c16_i32 : i32
    %1 = tpu.assume_multiple %0, 16 : i32
    %c0_i32 = arith.constant 0 : i32
    %2 = arith.addi %1, %c0_i32 : i32
    %c0 = arith.constant 0 : index
    %3 = arith.index_cast %2 : i32 to index
    %c0_0 = arith.constant 0 : index
    %c0_1 = arith.constant 0 : index
    %4 = vector.load %arg2[%c0, %3, %c0_0, %c0_1] : memref<1x18x18x64xbf16, #tpu.memory_space<vmem>>, vector<1x16x18x64xbf16>
    %5 = vector.shape_cast %4 : vector<1x16x18x64xbf16> to vector<16x18x64xbf16>
    %6 = vector.extract_strided_slice %5 {offsets = [0, 0, 0], sizes = [16, 16, 64], strides = [1, 1, 1]} : vector<16x18x64xbf16> to vector<16x16x64xbf16>
    %7 = vector.extract_strided_slice %5 {offsets = [0, 1, 0], sizes = [16, 16, 64], strides = [1, 1, 1]} : vector<16x18x64xbf16> to vector<16x16x64xbf16>
    %8 = vector.extract_strided_slice %5 {offsets = [0, 2, 0], sizes = [16, 16, 64], strides = [1, 1, 1]} : vector<16x18x64xbf16> to vector<16x16x64xbf16>
    %c1_i32 = arith.constant 1 : i32
    %9 = arith.addi %1, %c1_i32 : i32
    %c0_2 = arith.constant 0 : index
    %10 = arith.index_cast %9 : i32 to index
    %c0_3 = arith.constant 0 : index
    %c0_4 = arith.constant 0 : index
    %11 = vector.load %arg2[%c0_2, %10, %c0_3, %c0_4] : memref<1x18x18x64xbf16, #tpu.memory_space<vmem>>, vector<1x16x18x64xbf16>
    %12 = vector.shape_cast %11 : vector<1x16x18x64xbf16> to vector<16x18x64xbf16>
    %13 = vector.extract_strided_slice %12 {offsets = [0, 0, 0], sizes = [16, 16, 64], strides = [1, 1, 1]} : vector<16x18x64xbf16> to vector<16x16x64xbf16>
    %14 = vector.extract_strided_slice %12 {offsets = [0, 1, 0], sizes = [16, 16, 64], strides = [1, 1, 1]} : vector<16x18x64xbf16> to vector<16x16x64xbf16>
    %15 = vector.extract_strided_slice %12 {offsets = [0, 2, 0], sizes = [16, 16, 64], strides = [1, 1, 1]} : vector<16x18x64xbf16> to vector<16x16x64xbf16>
    %c2_i32 = arith.constant 2 : i32
    %16 = arith.addi %1, %c2_i32 : i32
    %c0_5 = arith.constant 0 : index
    %17 = arith.index_cast %16 : i32 to index
    %c0_6 = arith.constant 0 : index
    %c0_7 = arith.constant 0 : index
    %18 = vector.load %arg2[%c0_5, %17, %c0_6, %c0_7] : memref<1x18x18x64xbf16, #tpu.memory_space<vmem>>, vector<1x16x18x64xbf16>
    %19 = vector.shape_cast %18 : vector<1x16x18x64xbf16> to vector<16x18x64xbf16>
    %20 = vector.extract_strided_slice %19 {offsets = [0, 0, 0], sizes = [16, 16, 64], strides = [1, 1, 1]} : vector<16x18x64xbf16> to vector<16x16x64xbf16>
    %21 = vector.extract_strided_slice %19 {offsets = [0, 1, 0], sizes = [16, 16, 64], strides = [1, 1, 1]} : vector<16x18x64xbf16> to vector<16x16x64xbf16>
    %22 = vector.extract_strided_slice %19 {offsets = [0, 2, 0], sizes = [16, 16, 64], strides = [1, 1, 1]} : vector<16x18x64xbf16> to vector<16x16x64xbf16>
    %23 = tpu.concatenate %6, %7, %8, %13, %14, %15, %20, %21, %22 in 2 : vector<16x16x64xbf16>, vector<16x16x64xbf16>, vector<16x16x64xbf16>, vector<16x16x64xbf16>, vector<16x16x64xbf16>, vector<16x16x64xbf16>, vector<16x16x64xbf16>, vector<16x16x64xbf16>, vector<16x16x64xbf16> -> vector<16x16x576xbf16>
    %24 = vector.shape_cast %23 : vector<16x16x576xbf16> to vector<256x576xbf16>
    %c0_8 = arith.constant 0 : index
    %c0_9 = arith.constant 0 : index
    %25 = vector.load %arg3[%c0_8, %c0_9] : memref<576x64xbf16, #tpu.memory_space<vmem>>, vector<576x64xbf16>
    %cst = arith.constant dense<0.000000e+00> : vector<256x64xf32>
    %26 = tpu.matmul %24, %25, %cst {dimension_numbers = #tpu.dot_dimension_numbers<[1], [0], [0], [1], [0, 0, 1, 1], [], []>} : vector<256x576xbf16>, vector<576x64xbf16>, vector<256x64xf32> -> vector<256x64xf32>
    %c0_10 = arith.constant 0 : index
    %c0_11 = arith.constant 0 : index
    %27 = vector.load %arg4[%c0_10, %c0_11] : memref<1x64xf32, #tpu.memory_space<vmem>>, vector<1x64xf32>
    %28 = vector.broadcast %27 : vector<1x64xf32> to vector<256x64xf32>
    %29 = arith.addf %26, %28 : vector<256x64xf32>
    %cst_12 = arith.constant 0.000000e+00 : f32
    %30 = vector.broadcast %cst_12 : f32 to vector<256x64xf32>
    %31 = arith.maximumf %29, %30 : vector<256x64xf32>
    %32 = vector.shape_cast %31 : vector<256x64xf32> to vector<8x2x16x64xf32>
    %33 = vector.extract_strided_slice %32 {offsets = [0, 0, 0, 0], sizes = [8, 1, 16, 64], strides = [1, 1, 1, 1]} : vector<8x2x16x64xf32> to vector<8x1x16x64xf32>
    %34 = vector.shape_cast %33 : vector<8x1x16x64xf32> to vector<8x16x64xf32>
    %35 = vector.extract_strided_slice %32 {offsets = [0, 1, 0, 0], sizes = [8, 1, 16, 64], strides = [1, 1, 1, 1]} : vector<8x2x16x64xf32> to vector<8x1x16x64xf32>
    %36 = vector.shape_cast %35 : vector<8x1x16x64xf32> to vector<8x16x64xf32>
    %37 = arith.maximumf %34, %36 : vector<8x16x64xf32>
    %38 = arith.truncf %37 : vector<8x16x64xf32> to vector<8x16x64xbf16>
    %c0_13 = arith.constant 0 : index
    %c0_14 = arith.constant 0 : index
    %c0_15 = arith.constant 0 : index
    %c0_16 = arith.constant 0 : index
    %39 = vector.load %arg5[%c0_13, %c0_14, %c0_15, %c0_16] : memref<1x8x16x64xbf16, #tpu.memory_space<vmem>>, vector<1x8x16x64xbf16>
    %40 = vector.shape_cast %39 : vector<1x8x16x64xbf16> to vector<8x16x64xbf16>
    %41 = vector.shape_cast %38 : vector<8x16x64xbf16> to vector<1x8x16x64xbf16>
    tpu.vector_store %arg5[%c0_13, %c0_14, %c0_15, %c0_16], %41 {strides = array<i32>} : memref<1x8x16x64xbf16, #tpu.memory_space<vmem>>, vector<1x8x16x64xbf16>,
    return
  }
  func.func @transform_0(%arg0: i32, %arg1: i32) -> (i32, i32, i32, i32) {
    %c0_i32 = arith.constant 0 : i32
    %c0_i32_0 = arith.constant 0 : i32
    %c0_i32_1 = arith.constant 0 : i32
    %c0_i32_2 = arith.constant 0 : i32
    return %arg0, %c0_i32, %c0_i32_0, %c0_i32_1 : i32, i32, i32, i32
  }
  func.func @transform_1(%arg0: i32, %arg1: i32) -> (i32, i32) {
    %c0_i32 = arith.constant 0 : i32
    %c0_i32_0 = arith.constant 0 : i32
    %c0_i32_1 = arith.constant 0 : i32
    return %c0_i32, %c0_i32_0 : i32, i32
  }
  func.func @transform_2(%arg0: i32, %arg1: i32) -> (i32, i32) {
    %c0_i32 = arith.constant 0 : i32
    %c0_i32_0 = arith.constant 0 : i32
    %c0_i32_1 = arith.constant 0 : i32
    return %c0_i32, %c0_i32_0 : i32, i32
  }
  func.func @transform_3(%arg0: i32, %arg1: i32) -> (i32, i32, i32, i32) {
    %c0_i32 = arith.constant 0 : i32
    %c0_i32_0 = arith.constant 0 : i32
    %c0_i32_1 = arith.constant 0 : i32
    return %arg0, %arg1, %c0_i32, %c0_i32_0 : i32, i32, i32, i32
  }
}

module attributes {stable_mosaic.version = 11 : i64} {
  func.func @_maxpool_w_kernel(%arg0: i32, %arg1: i32, %arg2: memref<1x8x8x128xbf16, #tpu.memory_space<vmem>>, %arg3: memref<1x8x8x64xbf16, #tpu.memory_space<vmem>>) attributes {dimension_semantics = [#tpu.dimension_semantics<parallel>, #tpu.dimension_semantics<parallel>], iteration_bounds = array<i64: 2, 1>, scalar_prefetch = 0 : i64, scratch_operands = 0 : i64, tpu.core_type = #tpu.core_type<tc>, window_params = [{transform_indices = @transform_0, window_bounds = array<i64: 1, 8, 8, 128>}, {transform_indices = @transform_1, window_bounds = array<i64: 1, 8, 8, 64>}]} {
    %c0 = arith.constant 0 : index
    %c0_0 = arith.constant 0 : index
    %c0_1 = arith.constant 0 : index
    %c0_2 = arith.constant 0 : index
    %0 = vector.load %arg2[%c0, %c0_0, %c0_1, %c0_2] : memref<1x8x8x128xbf16, #tpu.memory_space<vmem>>, vector<1x8x8x128xbf16>
    %1 = vector.shape_cast %0 : vector<1x8x8x128xbf16> to vector<8x8x128xbf16>
    %2 = vector.extract_strided_slice %1 {offsets = [0, 0, 0], sizes = [8, 8, 64], strides = [1, 1, 1]} : vector<8x8x128xbf16> to vector<8x8x64xbf16>
    %3 = vector.extract_strided_slice %1 {offsets = [0, 0, 64], sizes = [8, 8, 64], strides = [1, 1, 1]} : vector<8x8x128xbf16> to vector<8x8x64xbf16>
    %4 = arith.maximumf %2, %3 : vector<8x8x64xbf16>
    %c0_3 = arith.constant 0 : index
    %c0_4 = arith.constant 0 : index
    %c0_5 = arith.constant 0 : index
    %c0_6 = arith.constant 0 : index
    %5 = vector.load %arg3[%c0_3, %c0_4, %c0_5, %c0_6] : memref<1x8x8x64xbf16, #tpu.memory_space<vmem>>, vector<1x8x8x64xbf16>
    %6 = vector.shape_cast %5 : vector<1x8x8x64xbf16> to vector<8x8x64xbf16>
    %7 = vector.shape_cast %4 : vector<8x8x64xbf16> to vector<1x8x8x64xbf16>
    tpu.vector_store %arg3[%c0_3, %c0_4, %c0_5, %c0_6], %7 {strides = array<i32>} : memref<1x8x8x64xbf16, #tpu.memory_space<vmem>>, vector<1x8x8x64xbf16>,
    return
  }
  func.func @transform_0(%arg0: i32, %arg1: i32) -> (i32, i32, i32, i32) {
    %c0_i32 = arith.constant 0 : i32
    %c0_i32_0 = arith.constant 0 : i32
    %c0_i32_1 = arith.constant 0 : i32
    return %arg0, %arg1, %c0_i32, %c0_i32_0 : i32, i32, i32, i32
  }
  func.func @transform_1(%arg0: i32, %arg1: i32) -> (i32, i32, i32, i32) {
    %c0_i32 = arith.constant 0 : i32
    %c0_i32_0 = arith.constant 0 : i32
    %c0_i32_1 = arith.constant 0 : i32
    return %arg0, %arg1, %c0_i32, %c0_i32_0 : i32, i32, i32, i32
  }
}

module attributes {stable_mosaic.version = 11 : i64} {
  func.func @_conv3x3_bias_relu_kernel(%arg0: i32, %arg1: i32, %arg2: memref<1x10x10x64xbf16, #tpu.memory_space<vmem>>, %arg3: memref<576x128xbf16, #tpu.memory_space<vmem>>, %arg4: memref<1x128xf32, #tpu.memory_space<vmem>>, %arg5: memref<1x8x8x128xbf16, #tpu.memory_space<vmem>>) attributes {dimension_semantics = [#tpu.dimension_semantics<parallel>, #tpu.dimension_semantics<parallel>], iteration_bounds = array<i64: 2, 1>, scalar_prefetch = 0 : i64, scratch_operands = 0 : i64, tpu.core_type = #tpu.core_type<tc>, window_params = [{transform_indices = @transform_0, window_bounds = array<i64: 1, 10, 10, 64>}, {pipeline_mode = #tpu.pipeline_mode<synchronous>, transform_indices = @transform_1, window_bounds = array<i64: 576, 128>}, {pipeline_mode = #tpu.pipeline_mode<synchronous>, transform_indices = @transform_2, window_bounds = array<i64: 1, 128>}, {transform_indices = @transform_3, window_bounds = array<i64: 1, 8, 8, 128>}]} {
    %c8_i32 = arith.constant 8 : i32
    %0 = arith.muli %arg1, %c8_i32 : i32
    %1 = tpu.assume_multiple %0, 8 : i32
    %c0_i32 = arith.constant 0 : i32
    %2 = arith.addi %1, %c0_i32 : i32
    %c0 = arith.constant 0 : index
    %3 = arith.index_cast %2 : i32 to index
    %c0_0 = arith.constant 0 : index
    %c0_1 = arith.constant 0 : index
    %4 = vector.load %arg2[%c0, %3, %c0_0, %c0_1] : memref<1x10x10x64xbf16, #tpu.memory_space<vmem>>, vector<1x8x10x64xbf16>
    %5 = vector.shape_cast %4 : vector<1x8x10x64xbf16> to vector<8x10x64xbf16>
    %6 = vector.extract_strided_slice %5 {offsets = [0, 0, 0], sizes = [8, 8, 64], strides = [1, 1, 1]} : vector<8x10x64xbf16> to vector<8x8x64xbf16>
    %7 = vector.extract_strided_slice %5 {offsets = [0, 1, 0], sizes = [8, 8, 64], strides = [1, 1, 1]} : vector<8x10x64xbf16> to vector<8x8x64xbf16>
    %8 = vector.extract_strided_slice %5 {offsets = [0, 2, 0], sizes = [8, 8, 64], strides = [1, 1, 1]} : vector<8x10x64xbf16> to vector<8x8x64xbf16>
    %c1_i32 = arith.constant 1 : i32
    %9 = arith.addi %1, %c1_i32 : i32
    %c0_2 = arith.constant 0 : index
    %10 = arith.index_cast %9 : i32 to index
    %c0_3 = arith.constant 0 : index
    %c0_4 = arith.constant 0 : index
    %11 = vector.load %arg2[%c0_2, %10, %c0_3, %c0_4] : memref<1x10x10x64xbf16, #tpu.memory_space<vmem>>, vector<1x8x10x64xbf16>
    %12 = vector.shape_cast %11 : vector<1x8x10x64xbf16> to vector<8x10x64xbf16>
    %13 = vector.extract_strided_slice %12 {offsets = [0, 0, 0], sizes = [8, 8, 64], strides = [1, 1, 1]} : vector<8x10x64xbf16> to vector<8x8x64xbf16>
    %14 = vector.extract_strided_slice %12 {offsets = [0, 1, 0], sizes = [8, 8, 64], strides = [1, 1, 1]} : vector<8x10x64xbf16> to vector<8x8x64xbf16>
    %15 = vector.extract_strided_slice %12 {offsets = [0, 2, 0], sizes = [8, 8, 64], strides = [1, 1, 1]} : vector<8x10x64xbf16> to vector<8x8x64xbf16>
    %c2_i32 = arith.constant 2 : i32
    %16 = arith.addi %1, %c2_i32 : i32
    %c0_5 = arith.constant 0 : index
    %17 = arith.index_cast %16 : i32 to index
    %c0_6 = arith.constant 0 : index
    %c0_7 = arith.constant 0 : index
    %18 = vector.load %arg2[%c0_5, %17, %c0_6, %c0_7] : memref<1x10x10x64xbf16, #tpu.memory_space<vmem>>, vector<1x8x10x64xbf16>
    %19 = vector.shape_cast %18 : vector<1x8x10x64xbf16> to vector<8x10x64xbf16>
    %20 = vector.extract_strided_slice %19 {offsets = [0, 0, 0], sizes = [8, 8, 64], strides = [1, 1, 1]} : vector<8x10x64xbf16> to vector<8x8x64xbf16>
    %21 = vector.extract_strided_slice %19 {offsets = [0, 1, 0], sizes = [8, 8, 64], strides = [1, 1, 1]} : vector<8x10x64xbf16> to vector<8x8x64xbf16>
    %22 = vector.extract_strided_slice %19 {offsets = [0, 2, 0], sizes = [8, 8, 64], strides = [1, 1, 1]} : vector<8x10x64xbf16> to vector<8x8x64xbf16>
    %23 = tpu.concatenate %6, %7, %8, %13, %14, %15, %20, %21, %22 in 2 : vector<8x8x64xbf16>, vector<8x8x64xbf16>, vector<8x8x64xbf16>, vector<8x8x64xbf16>, vector<8x8x64xbf16>, vector<8x8x64xbf16>, vector<8x8x64xbf16>, vector<8x8x64xbf16>, vector<8x8x64xbf16> -> vector<8x8x576xbf16>
    %24 = vector.shape_cast %23 : vector<8x8x576xbf16> to vector<64x576xbf16>
    %c0_8 = arith.constant 0 : index
    %c0_9 = arith.constant 0 : index
    %25 = vector.load %arg3[%c0_8, %c0_9] : memref<576x128xbf16, #tpu.memory_space<vmem>>, vector<576x128xbf16>
    %cst = arith.constant dense<0.000000e+00> : vector<64x128xf32>
    %26 = tpu.matmul %24, %25, %cst {dimension_numbers = #tpu.dot_dimension_numbers<[1], [0], [0], [1], [0, 0, 1, 1], [], []>} : vector<64x576xbf16>, vector<576x128xbf16>, vector<64x128xf32> -> vector<64x128xf32>
    %c0_10 = arith.constant 0 : index
    %c0_11 = arith.constant 0 : index
    %27 = vector.load %arg4[%c0_10, %c0_11] : memref<1x128xf32, #tpu.memory_space<vmem>>, vector<1x128xf32>
    %28 = vector.broadcast %27 : vector<1x128xf32> to vector<64x128xf32>
    %29 = arith.addf %26, %28 : vector<64x128xf32>
    %cst_12 = arith.constant 0.000000e+00 : f32
    %30 = vector.broadcast %cst_12 : f32 to vector<64x128xf32>
    %31 = arith.maximumf %29, %30 : vector<64x128xf32>
    %32 = vector.shape_cast %31 : vector<64x128xf32> to vector<8x8x128xf32>
    %33 = arith.truncf %32 : vector<8x8x128xf32> to vector<8x8x128xbf16>
    %c0_13 = arith.constant 0 : index
    %c0_14 = arith.constant 0 : index
    %c0_15 = arith.constant 0 : index
    %c0_16 = arith.constant 0 : index
    %34 = vector.load %arg5[%c0_13, %c0_14, %c0_15, %c0_16] : memref<1x8x8x128xbf16, #tpu.memory_space<vmem>>, vector<1x8x8x128xbf16>
    %35 = vector.shape_cast %34 : vector<1x8x8x128xbf16> to vector<8x8x128xbf16>
    %36 = vector.shape_cast %33 : vector<8x8x128xbf16> to vector<1x8x8x128xbf16>
    tpu.vector_store %arg5[%c0_13, %c0_14, %c0_15, %c0_16], %36 {strides = array<i32>} : memref<1x8x8x128xbf16, #tpu.memory_space<vmem>>, vector<1x8x8x128xbf16>,
    return
  }
  func.func @transform_0(%arg0: i32, %arg1: i32) -> (i32, i32, i32, i32) {
    %c0_i32 = arith.constant 0 : i32
    %c0_i32_0 = arith.constant 0 : i32
    %c0_i32_1 = arith.constant 0 : i32
    %c0_i32_2 = arith.constant 0 : i32
    return %arg0, %c0_i32, %c0_i32_0, %c0_i32_1 : i32, i32, i32, i32
  }
  func.func @transform_1(%arg0: i32, %arg1: i32) -> (i32, i32) {
    %c0_i32 = arith.constant 0 : i32
    %c0_i32_0 = arith.constant 0 : i32
    %c0_i32_1 = arith.constant 0 : i32
    return %c0_i32, %c0_i32_0 : i32, i32
  }
  func.func @transform_2(%arg0: i32, %arg1: i32) -> (i32, i32) {
    %c0_i32 = arith.constant 0 : i32
    %c0_i32_0 = arith.constant 0 : i32
    %c0_i32_1 = arith.constant 0 : i32
    return %c0_i32, %c0_i32_0 : i32, i32
  }
  func.func @transform_3(%arg0: i32, %arg1: i32) -> (i32, i32, i32, i32) {
    %c0_i32 = arith.constant 0 : i32
    %c0_i32_0 = arith.constant 0 : i32
    %c0_i32_1 = arith.constant 0 : i32
    return %arg0, %arg1, %c0_i32, %c0_i32_0 : i32, i32, i32, i32
  }
}

module attributes {stable_mosaic.version = 11 : i64} {
  func.func @_conv3x3_bias_relu_kernel(%arg0: i32, %arg1: i32, %arg2: memref<1x10x10x128xbf16, #tpu.memory_space<vmem>>, %arg3: memref<1152x128xbf16, #tpu.memory_space<vmem>>, %arg4: memref<1x128xf32, #tpu.memory_space<vmem>>, %arg5: memref<1x8x8x128xf32, #tpu.memory_space<vmem>>) attributes {dimension_semantics = [#tpu.dimension_semantics<parallel>, #tpu.dimension_semantics<parallel>], iteration_bounds = array<i64: 2, 1>, scalar_prefetch = 0 : i64, scratch_operands = 0 : i64, tpu.core_type = #tpu.core_type<tc>, window_params = [{transform_indices = @transform_0, window_bounds = array<i64: 1, 10, 10, 128>}, {pipeline_mode = #tpu.pipeline_mode<synchronous>, transform_indices = @transform_1, window_bounds = array<i64: 1152, 128>}, {pipeline_mode = #tpu.pipeline_mode<synchronous>, transform_indices = @transform_2, window_bounds = array<i64: 1, 128>}, {transform_indices = @transform_3, window_bounds = array<i64: 1, 8, 8, 128>}]} {
    %c8_i32 = arith.constant 8 : i32
    %0 = arith.muli %arg1, %c8_i32 : i32
    %1 = tpu.assume_multiple %0, 8 : i32
    %c0_i32 = arith.constant 0 : i32
    %2 = arith.addi %1, %c0_i32 : i32
    %c0 = arith.constant 0 : index
    %3 = arith.index_cast %2 : i32 to index
    %c0_0 = arith.constant 0 : index
    %c0_1 = arith.constant 0 : index
    %4 = vector.load %arg2[%c0, %3, %c0_0, %c0_1] : memref<1x10x10x128xbf16, #tpu.memory_space<vmem>>, vector<1x8x10x128xbf16>
    %5 = vector.shape_cast %4 : vector<1x8x10x128xbf16> to vector<8x10x128xbf16>
    %6 = vector.extract_strided_slice %5 {offsets = [0, 0, 0], sizes = [8, 8, 128], strides = [1, 1, 1]} : vector<8x10x128xbf16> to vector<8x8x128xbf16>
    %7 = vector.extract_strided_slice %5 {offsets = [0, 1, 0], sizes = [8, 8, 128], strides = [1, 1, 1]} : vector<8x10x128xbf16> to vector<8x8x128xbf16>
    %8 = vector.extract_strided_slice %5 {offsets = [0, 2, 0], sizes = [8, 8, 128], strides = [1, 1, 1]} : vector<8x10x128xbf16> to vector<8x8x128xbf16>
    %c1_i32 = arith.constant 1 : i32
    %9 = arith.addi %1, %c1_i32 : i32
    %c0_2 = arith.constant 0 : index
    %10 = arith.index_cast %9 : i32 to index
    %c0_3 = arith.constant 0 : index
    %c0_4 = arith.constant 0 : index
    %11 = vector.load %arg2[%c0_2, %10, %c0_3, %c0_4] : memref<1x10x10x128xbf16, #tpu.memory_space<vmem>>, vector<1x8x10x128xbf16>
    %12 = vector.shape_cast %11 : vector<1x8x10x128xbf16> to vector<8x10x128xbf16>
    %13 = vector.extract_strided_slice %12 {offsets = [0, 0, 0], sizes = [8, 8, 128], strides = [1, 1, 1]} : vector<8x10x128xbf16> to vector<8x8x128xbf16>
    %14 = vector.extract_strided_slice %12 {offsets = [0, 1, 0], sizes = [8, 8, 128], strides = [1, 1, 1]} : vector<8x10x128xbf16> to vector<8x8x128xbf16>
    %15 = vector.extract_strided_slice %12 {offsets = [0, 2, 0], sizes = [8, 8, 128], strides = [1, 1, 1]} : vector<8x10x128xbf16> to vector<8x8x128xbf16>
    %c2_i32 = arith.constant 2 : i32
    %16 = arith.addi %1, %c2_i32 : i32
    %c0_5 = arith.constant 0 : index
    %17 = arith.index_cast %16 : i32 to index
    %c0_6 = arith.constant 0 : index
    %c0_7 = arith.constant 0 : index
    %18 = vector.load %arg2[%c0_5, %17, %c0_6, %c0_7] : memref<1x10x10x128xbf16, #tpu.memory_space<vmem>>, vector<1x8x10x128xbf16>
    %19 = vector.shape_cast %18 : vector<1x8x10x128xbf16> to vector<8x10x128xbf16>
    %20 = vector.extract_strided_slice %19 {offsets = [0, 0, 0], sizes = [8, 8, 128], strides = [1, 1, 1]} : vector<8x10x128xbf16> to vector<8x8x128xbf16>
    %21 = vector.extract_strided_slice %19 {offsets = [0, 1, 0], sizes = [8, 8, 128], strides = [1, 1, 1]} : vector<8x10x128xbf16> to vector<8x8x128xbf16>
    %22 = vector.extract_strided_slice %19 {offsets = [0, 2, 0], sizes = [8, 8, 128], strides = [1, 1, 1]} : vector<8x10x128xbf16> to vector<8x8x128xbf16>
    %23 = tpu.concatenate %6, %7, %8, %13, %14, %15, %20, %21, %22 in 2 : vector<8x8x128xbf16>, vector<8x8x128xbf16>, vector<8x8x128xbf16>, vector<8x8x128xbf16>, vector<8x8x128xbf16>, vector<8x8x128xbf16>, vector<8x8x128xbf16>, vector<8x8x128xbf16>, vector<8x8x128xbf16> -> vector<8x8x1152xbf16>
    %24 = vector.shape_cast %23 : vector<8x8x1152xbf16> to vector<64x1152xbf16>
    %c0_8 = arith.constant 0 : index
    %c0_9 = arith.constant 0 : index
    %25 = vector.load %arg3[%c0_8, %c0_9] : memref<1152x128xbf16, #tpu.memory_space<vmem>>, vector<1152x128xbf16>
    %cst = arith.constant dense<0.000000e+00> : vector<64x128xf32>
    %26 = tpu.matmul %24, %25, %cst {dimension_numbers = #tpu.dot_dimension_numbers<[1], [0], [0], [1], [0, 0, 1, 1], [], []>} : vector<64x1152xbf16>, vector<1152x128xbf16>, vector<64x128xf32> -> vector<64x128xf32>
    %c0_10 = arith.constant 0 : index
    %c0_11 = arith.constant 0 : index
    %27 = vector.load %arg4[%c0_10, %c0_11] : memref<1x128xf32, #tpu.memory_space<vmem>>, vector<1x128xf32>
    %28 = vector.broadcast %27 : vector<1x128xf32> to vector<64x128xf32>
    %29 = arith.addf %26, %28 : vector<64x128xf32>
    %cst_12 = arith.constant 0.000000e+00 : f32
    %30 = vector.broadcast %cst_12 : f32 to vector<64x128xf32>
    %31 = arith.maximumf %29, %30 : vector<64x128xf32>
    %32 = vector.shape_cast %31 : vector<64x128xf32> to vector<8x8x128xf32>
    %c0_13 = arith.constant 0 : index
    %c0_14 = arith.constant 0 : index
    %c0_15 = arith.constant 0 : index
    %c0_16 = arith.constant 0 : index
    %33 = vector.load %arg5[%c0_13, %c0_14, %c0_15, %c0_16] : memref<1x8x8x128xf32, #tpu.memory_space<vmem>>, vector<1x8x8x128xf32>
    %34 = vector.shape_cast %33 : vector<1x8x8x128xf32> to vector<8x8x128xf32>
    %35 = vector.shape_cast %32 : vector<8x8x128xf32> to vector<1x8x8x128xf32>
    tpu.vector_store %arg5[%c0_13, %c0_14, %c0_15, %c0_16], %35 {strides = array<i32>} : memref<1x8x8x128xf32, #tpu.memory_space<vmem>>, vector<1x8x8x128xf32>,
    return
  }
  func.func @transform_0(%arg0: i32, %arg1: i32) -> (i32, i32, i32, i32) {
    %c0_i32 = arith.constant 0 : i32
    %c0_i32_0 = arith.constant 0 : i32
    %c0_i32_1 = arith.constant 0 : i32
    %c0_i32_2 = arith.constant 0 : i32
    return %arg0, %c0_i32, %c0_i32_0, %c0_i32_1 : i32, i32, i32, i32
  }
  func.func @transform_1(%arg0: i32, %arg1: i32) -> (i32, i32) {
    %c0_i32 = arith.constant 0 : i32
    %c0_i32_0 = arith.constant 0 : i32
    %c0_i32_1 = arith.constant 0 : i32
    return %c0_i32, %c0_i32_0 : i32, i32
  }
  func.func @transform_2(%arg0: i32, %arg1: i32) -> (i32, i32) {
    %c0_i32 = arith.constant 0 : i32
    %c0_i32_0 = arith.constant 0 : i32
    %c0_i32_1 = arith.constant 0 : i32
    return %c0_i32, %c0_i32_0 : i32, i32
  }
  func.func @transform_3(%arg0: i32, %arg1: i32) -> (i32, i32, i32, i32) {
    %c0_i32 = arith.constant 0 : i32
    %c0_i32_0 = arith.constant 0 : i32
    %c0_i32_1 = arith.constant 0 : i32
    return %arg0, %arg1, %c0_i32, %c0_i32_0 : i32, i32, i32, i32
  }
}

</mosaic_0001>

<bundles_post_ra>
// kernel: vggnet_forward.7
= control target key start
LH: loop header
LB: loop body
LE: loop exit
PB: predicated region body
PF: predicated region fallthrough
CT: control target
= control target key end

     0   :  { %s373_s6 = smov 0   ;;  %s375_s7 = smov 0   ;;  %s414_s0 = inlined_call_operand.vmem [shape: bf16[2,8,8,128], index: 0, kind: input, shape index: {}]   ;;  %s415_s1 = inlined_call_operand.vmem [shape: bf16[2,8,8,64], index: 1, kind: output, shape index: {}]  }
   0x1   :  { %s377_s8 = smov 0  }
   0x2 LB: > { %s23_s9 = sadd.s32 1, %s356_s7  ;;  %p304_p0 = scmp.ge.s32.totalorder %s360_s8, 1  ;;  %s360_s8 = sphi %s377_s8, %s11_s8   ;;  %s356_s7 = sphi %s375_s7, %s417_s7   ;;  %s352_s6 = sphi %s373_s6, %s416_s6  }
   0x3   : > { %p25_p1 = scmp.ge.s32.totalorder %s23_s9, 2  ;;  %p108_p2 = scmp.lt.s32.totalorder %s360_s8, 3 }
   0x5   : > { %s419_s9 = smov (%p25_p1, %s23_s9), 0  ;;  %p109_p3 = pnand %p304_p0, %p108_p2 }
   0x6   : > { %p137_p4 = scmp.lt.s32.totalorder (!%p109_p3), %s352_s6, 1  ;;  %s362_s14 = smov (!%p109_p3), 64  }
   0x7   : > { %112 = sbr.rel (%p109_p3) target bundleno = 146 (0x92), region = 24 }
   0xc   : > { %s421_s6 = smov (!%p137_p4, %s352_s6), 1  ;;  %vm204_vm0 = vcmask 519168  }
   0xd   : > { %s311_s10 = sshll.u32 %s421_s6, 5 }
   0xe   : > { %s144_s13 = scalar_lea.vmem %s414_s0, %s311_s10  ;;  %s154_s17 = scalar_lea.vmem %s415_s1, %s311_s10 }
   0xf   : > { %v158_v0 = vld [vmem:[%s144_s13 + $0x8] sm:$0xf]  ;;  %v156_v1 = vld [vmem:[%s144_s13] sm:$0xf]  ;;  %v159_v2 = vld [vmem:[%s144_s13 + $0xc] sm:$0xf] }
  0x10   : > { %176 = vrot.lane.b32.xlu1 %v158_v0, %s362_s14  ;;  %172 = vrot.lane.b32.xlu0 %v156_v1, %s362_s14  ;;  %v157_v3 = vld [vmem:[%s144_s13 + $0x4] sm:$0xf]  ;;  %v161_v4 = vld [vmem:[%s144_s13 + $0x14] sm:$0xf] }
  0x11   : > { %v160_v5 = vld [vmem:[%s144_s13 + $0x10] sm:$0xf]  ;;  %v163_v6 = vld [vmem:[%s144_s13 + $0x1c] sm:$0xf]  ;;  %v162_v7 = vld [vmem:[%s144_s13 + $0x18] sm:$0xf] }
  0x14   : > { %178 = vrot.lane.b32.xlu1 %v159_v2, %s362_s14  ;;  %174 = vrot.lane.b32.xlu0 %v157_v3, %s362_s14 }
  0x18   : > { %182 = vrot.lane.b32.xlu1 %v161_v4, %s362_s14  ;;  %180 = vrot.lane.b32.xlu0 %v160_v5, %s362_s14 }
  0x1c   : > { %186 = vrot.lane.b32.xlu1 %v163_v6, %s362_s14  ;;  %184 = vrot.lane.b32.xlu0 %v162_v7, %s362_s14 }
  0x82   : > { %v177_v8 = vpop.permute.xlu1 %176  ;;  %v173_v9 = vpop.permute.xlu0 %172 }
  0x83   : > { %v198_v10 = vmax.bf16 %v177_v8, %v158_v0  ;;  %v196_v11 = vmax.bf16 %v173_v9, %v156_v1 }
  0x85   : > { %207 = vst.msk [vmem:[%s154_s17 + $0x8] sm:$0xf] %vm204_vm0, %v198_v10  ;;  %205 = vst.msk [vmem:[%s154_s17] sm:$0xf] %vm204_vm0, %v196_v11 }
  0x86   : > { %v179_v12 = vpop.permute.xlu1 %178  ;;  %v175_v13 = vpop.permute.xlu0 %174 }
  0x87   : > { %v199_v14 = vmax.bf16 %v179_v12, %v159_v2  ;;  %v197_v15 = vmax.bf16 %v175_v13, %v157_v3 }
  0x89   : > { %208 = vst.msk [vmem:[%s154_s17 + $0xc] sm:$0xf] %vm204_vm0, %v199_v14  ;;  %206 = vst.msk [vmem:[%s154_s17 + $0x4] sm:$0xf] %vm204_vm0, %v197_v15 }
  0x8a   : > { %v183_v16 = vpop.permute.xlu1 %182  ;;  %v181_v17 = vpop.permute.xlu0 %180 }
  0x8b   : > { %v201_v18 = vmax.bf16 %v183_v16, %v161_v4  ;;  %v200_v19 = vmax.bf16 %v181_v17, %v160_v5 }
  0x8d   : > { %210 = vst.msk [vmem:[%s154_s17 + $0x14] sm:$0xf] %vm204_vm0, %v201_v18  ;;  %209 = vst.msk [vmem:[%s154_s17 + $0x10] sm:$0xf] %vm204_vm0, %v200_v19 }
  0x8e   : > { %v187_v20 = vpop.permute.xlu1 %186  ;;  %v185_v21 = vpop.permute.xlu0 %184 }
  0x8f   : > { %v203_v22 = vmax.bf16 %v187_v20, %v163_v6  ;;  %v202_v23 = vmax.bf16 %v185_v21, %v162_v7 }
  0x91   : > { %212 = vst.msk [vmem:[%s154_s17 + $0x1c] sm:$0xf] %vm204_vm0, %v203_v22  ;;  %211 = vst.msk [vmem:[%s154_s17 + $0x18] sm:$0xf] %vm204_vm0, %v202_v23 }
  0x92 PF: > { %s11_s8 = sadd.s32 1, %s360_s8   ;;  %s416_s6 = smov %s356_s7 }
  0x93   : > { %p8_p5 = scmp.ge.s32.totalorder %s11_s8, 4   ;;  %s417_s7 = smov %s419_s9 }
  0x95   :  { %10 = sbr.rel (!%p8_p5) target bundleno = 2 (0x2), region = 54 }

// kernel: vggnet_forward.5
= control target key start
LH: loop header
LB: loop body
LE: loop exit
PB: predicated region body
PF: predicated region fallthrough
CT: control target
= control target key end

     0   :  { %s3072_s12 = smov 0   ;;  %s3074_s13 = smov 0   ;;  %s4244_s0 = inlined_call_operand.vmem [shape: bf16[2,18,18,8], index: 0, kind: input, shape index: {}]   ;;  %s4245_s1 = inlined_call_operand.vmem [shape: bf16[72,64], index: 1, kind: input, shape index: {}]   ;;  %s4246_s2 = inlined_call_operand.vmem [shape: f32[1,64], index: 2, kind: input, shape index: {}]   ;;  %s4247_s3 = inlined_call_operand.vmem [shape: bf16[2,16,16,64], index: 3, kind: output, shape index: {}]  }
   0x1   :  { %s3076_s14 = smov 0  }
   0x2 LB: > { %s25_s15 = sadd.s32 1, %s3038_s13  ;;  %p2514_p0 = scmp.ge.s32.totalorder %s3042_s14, 1  ;;  %s3042_s14 = sphi %s3076_s14, %s13_s14   ;;  %s3038_s13 = sphi %s3074_s13, %s4249_s13   ;;  %s3034_s12 = sphi %s3072_s12, %s4248_s12  }
   0x3   : > { %p27_p1 = scmp.ge.s32.totalorder %s25_s15, 2  ;;  %p151_p2 = scmp.lt.s32.totalorder %s3042_s14, 3 }
   0x5   : > { %s4251_s15 = smov (%p27_p1, %s25_s15), 0  ;;  %p152_p3 = pnand %p2514_p0, %p151_p2 }
   0x6   : > { %p180_p4 = scmp.lt.s32.totalorder (!%p152_p3), %s3034_s12, 1  ;;  %s3044_s20 = smov (!%p152_p3), 24  }
   0x7   : > { %155 = sbr.rel (%p152_p3) target bundleno = 592 (0x250), region = 32  ;;  %s3045_s21 = smov (!%p152_p3), 16  }
   0x8   : > { %s3046_s22 = smov (!%p152_p3), 8   ;;  %s3047_s23 = smov (!%p152_p3), 32  }
   0x9   : > { %s3048_s24 = smov (!%p152_p3), 40   ;;  %s3049_s25 = smov (!%p152_p3), 48  }
   0xa   : > { %s3050_s26 = smov (!%p152_p3), 56   ;;  %s3051_s27 = smov (!%p152_p3), 64  }
   0xc   : > { %s4253_s12 = smov (!%p180_p4, %s3034_s12), 1  ;;  %vm706_vm0 = vcmask 1046528   ;;  %vm481_vm1 = vsmask.f32 7424  ;;  %vm2055_vm2 = vcmask 1043456   ;;  %vm1715_vm3 = vcmask 64512  }
   0xd   : > { %s2874_s16 = smul.u32 216, %s4253_s12  ;;  %vm1748_vm4 = vcmask 130048   ;;  %vm1781_vm5 = vcmask 195584   ;;  %vm1814_vm6 = vcmask 261120   ;;  %vm1847_vm7 = vcmask 326656   ;;  %s2766_s17 = sshll.u32 %s4253_s12, 7 }
   0xe   : > { %vm1880_vm8 = vcmask 392192   ;;  %vm1913_vm9 = vcmask 457728   ;;  %vm1946_vm10 = vcmask 523264   ;;  %vm2022_vm11 = vcmask 588800  }
   0xf   : > { %s3096_s19 = scalar_lea.vmem %s4244_s0, %s2874_s16  ;;  %vm2380_vm12 = vcmask 519168  }
  0x10   : > { %v3099_v0 = vld [vmem:[%s3096_s19 + $0x6c] sm:$0xff]   ;;  %v3109_v2 = vld [vmem:[%s3096_s19 + $0x60] sm:$0xff]   ;;  %v2910_v3 = vld [vmem:[%s3096_s19 + $0x68] ss:$0 sps:$4 sm:$0x11]  }
  0x11   : > { %v3102_v1 = vld [vmem:[%s3096_s19 + $0xc] sm:$0xff]   ;;  %883 = vrot.lane.b32.xlu1 %v3099_v0, %s3044_s20  ;;  %v2911_v4 = vld [vmem:[%s3096_s19] sm:$0xff]   ;;  %v1044_v5 = vshrl.u32 %v3099_v0, 16  ;;  %v731_v6 = vrot.slane %v3109_v2, 1  ;;  %v732_v7 = vrot.slane %v2910_v3, 1  ;;  %v3128_v36 = vld [vmem:[%s3096_s19 + $0x78] sm:$0xff]  }
  0x12   : > { %867 = vrot.lane.b32.xlu0 %v3102_v1, %s3044_s20  ;;  %v2912_v8 = vld [vmem:[%s3096_s19 + $0x8] ss:$0 sps:$4 sm:$0x11]   ;;  %v2913_v9 = vld [vmem:[%s3096_s19 + $0x6c] sm:$0xff]   ;;  %v707_v10 = vrot.slane %v2911_v4, 1  ;;  %v483_v22 = vshrl.u32 %v2911_v4, 16 }
  0x13   : > { %v2915_v11 = vld [vmem:[%s3096_s19 + $0xc] sm:$0xff]   ;;  %v733_v12 = vsel %vm706_vm0, %v731_v6, %v732_v7  ;;  %v708_v13 = vrot.slane %v2912_v8, 1  ;;  %v2914_v14 = vld [vmem:[%s3096_s19 + $0x74] ss:$0 sps:$4 sm:$0x11]   ;;  %v734_v15 = vrot.slane %v2913_v9, 1 }
  0x14   : > { %v710_v16 = vrot.slane %v2915_v11, 1  ;;  %v735_v18 = vrot.slane %v2914_v14, 1  ;;  %v2916_v19 = vld [vmem:[%s3096_s19 + $0x14] ss:$0 sps:$4 sm:$0x11]   ;;  %v495_v20 = vshrl.u32 %v2915_v11, 16 }
  0x15   : > { %771 = vrot.lane.b32.xlu1 %v733_v12, %s3045_s21  ;;  %v709_v17 = vsel %vm706_vm0, %v707_v10, %v708_v13  ;;  %v497_v21 = vshll.u32 %v2915_v11, 16  ;;  %v485_v23 = vshll.u32 %v2911_v4, 16  ;;  %v711_v25 = vrot.slane %v2916_v19, 1  ;;  %v2919_v44 = vld [vmem:[%s3096_s19 + $0x74] ss:$0 sps:$4 sm:$0x11]  }
  0x16   : > { %755 = vrot.lane.b32.xlu0 %v709_v17, %s3045_s21  ;;  %v736_v24 = vsel %vm706_vm0, %v734_v15, %v735_v18  ;;  %v502_v26 = vshll.u32 %v2916_v19, 16  ;;  %v490_v27 = vshll.u32 %v2912_v8, 16  ;;  %v591_v30 = vshrl.u32 %v2913_v9, 16  ;;  %v2920_v49 = vld [vmem:[%s3096_s19 + $0x14] ss:$0 sps:$4 sm:$0x11]  }
  0x17   : > { %v499_v28 = vrot.slane %v497_v21, 1  ;;  %v487_v29 = vrot.slane %v485_v23, 1  ;;  %v593_v31 = vshll.u32 %v2913_v9, 16  ;;  %v712_v32 = vsel %vm706_vm0, %v710_v16, %v711_v25  ;;  %v3140_v52 = vld [vmem:[%s3096_s19 + $0x18] sm:$0xff]  }
  0x18   : > { %v504_v33 = vrot.slane %v502_v26, 1  ;;  %v492_v34 = vrot.slane %v490_v27, 1  ;;  %v598_v35 = vshll.u32 %v2914_v14, 16  ;;  %v579_v40 = vshrl.u32 %v3109_v2, 16  ;;  %v3170_v26 = vld [vmem:[%s3096_s19 + $0x78] sm:$0xff]  }
  0x19   : > { %773 = vrot.lane.b32.xlu1 %v736_v24, %s3045_s21  ;;  %v500_v37 = vor.u32 %v499_v28, %v495_v20  ;;  %v488_v38 = vor.u32 %v487_v29, %v483_v22  ;;  %v595_v39 = vrot.slane %v593_v31, 1  ;;  %v581_v42 = vshll.u32 %v3109_v2, 16  ;;  %v2921_v58 = vld [vmem:[%s3096_s19 + $0x80] ss:$0 sps:$4 sm:$0x11]  }
  0x1a   : > { %757 = vrot.lane.b32.xlu0 %v712_v32, %s3045_s21  ;;  %v600_v41 = vrot.slane %v598_v35, 1  ;;  %v586_v43 = vshll.u32 %v2910_v3, 16  ;;  %v1046_v48 = vshll.u32 %v3099_v0, 16  ;;  %v1051_v53 = vshll.u32 %v2919_v44, 16  ;;  %v3190_v35 = vld [vmem:[%s3096_s19 + $0x24] sm:$0xff]  }
  0x1b   : > { %v505_v45 = vsel %vm481_vm1, %v500_v37, %v504_v33  ;;  %v493_v46 = vsel %vm481_vm1, %v488_v38, %v492_v34  ;;  %v596_v47 = vor.u32 %v595_v39, %v591_v30  ;;  %v583_v50 = vrot.slane %v581_v42, 1  ;;  %v2922_v62 = vld [vmem:[%s3096_s19 + $0x20] ss:$0 sps:$4 sm:$0x11]   ;;  %v3185_v33 = vld [vmem:[%s3096_s19 + $0x84] sm:$0xff]  }
  0x1c   : > { %v588_v51 = vrot.slane %v586_v43, 1  ;;  %v1048_v55 = vrot.slane %v1046_v48, 1  ;;  %v950_v56 = vshll.u32 %v3102_v1, 16  ;;  %v955_v57 = vshll.u32 %v2920_v49, 16 }
  0x1d   : > { %676 = vrot.lane.b32.xlu1 %v505_v45, %s3046_s22  ;;  %v601_v54 = vsel %vm481_vm1, %v596_v47, %v600_v41  ;;  %v584_v59 = vor.u32 %v583_v50, %v579_v40  ;;  %v948_v60 = vshrl.u32 %v3102_v1, 16  ;;  %v1058_v61 = vshll.u32 %v3128_v36, 16  ;;  %v3182_v32 = vld [vmem:[%s3096_s19 + $0x80] ss:$0 sps:$4 sm:$0x11]   ;;  %v3214_v50 = vld [vmem:[%s3096_s19 + $0x78] sm:$0xff]  }
  0x1e   : > { %674 = vrot.lane.b32.xlu0 %v493_v46, %s3046_s22  ;;  %v1053_v63 = vrot.slane %v1051_v53, 1  ;;  %v952_v2 = vrot.slane %v950_v56, 1  ;;  %v957_v4 = vrot.slane %v955_v57, 1  ;;  %v1056_v6 = vshrl.u32 %v3128_v36, 16 }
  0x1f   : > { %v589_v3 = vsel %vm481_vm1, %v584_v59, %v588_v51  ;;  %v962_v7 = vshll.u32 %v3140_v52, 16  ;;  %v1049_v8 = vor.u32 %v1048_v55, %v1044_v5  ;;  %v1060_v9 = vrot.slane %v1058_v61, 1  ;;  %v3221_v55 = vld [vmem:[%s3096_s19 + $0x18] sm:$0xff]  }
  0x20   : > { %v1063_v10 = vshll.u32 %v2921_v58, 16  ;;  %v953_v11 = vor.u32 %v952_v2, %v948_v60  ;;  %v960_v12 = vshrl.u32 %v3140_v52, 16  ;;  %v967_v14 = vshll.u32 %v2922_v62, 16 }
  0x21   : > { %692 = vrot.lane.b32.xlu1 %v601_v54, %s3046_s22  ;;  %v964_v13 = vrot.slane %v962_v7, 1  ;;  %v1054_v15 = vsel %vm481_vm1, %v1049_v8, %v1053_v63  ;;  %v1061_v16 = vor.u32 %v1060_v9, %v1056_v6  ;;  %v1195_v21 = vrot.slane %v3099_v0, 1  ;;  %v3231_v63 = vld [vmem:[%s3096_s19 + $0x20] ss:$0 sps:$4 sm:$0x11]  }
  0x22   : > { %690 = vrot.lane.b32.xlu0 %v589_v3, %s3046_s22  ;;  %v1065_v17 = vrot.slane %v1063_v10, 1  ;;  %v958_v5 = vsel %vm481_vm1, %v953_v11, %v957_v4  ;;  %v969_v19 = vrot.slane %v967_v14, 1  ;;  %v1196_v22 = vrot.slane %v2919_v44, 1  ;;  %v3204_v44 = vld [vmem:[%s3096_s19 + $0x8c] ss:$0 sps:$4 sm:$0x11]  }
  0x23   : > { %v965_v18 = vor.u32 %v964_v13, %v960_v12  ;;  %v1171_v24 = vrot.slane %v3102_v1, 1  ;;  %v1172_v25 = vrot.slane %v2920_v49, 1  ;;  %v1198_v28 = vrot.slane %v3128_v36, 1  ;;  %v3179_v1 = vld [vmem:[%s3096_s19 + $0x18] sm:$0xff]  }
  0x24   : > { %v1066_v20 = vsel %vm481_vm1, %v1061_v16, %v1065_v17  ;;  %v1197_v27 = vsel %vm706_vm0, %v1195_v21, %v1196_v22  ;;  %v1199_v0 = vrot.slane %v2921_v58, 1  ;;  %v1174_v30 = vrot.slane %v3140_v52, 1  ;;  %v3211_v49 = vld [vmem:[%s3096_s19 + $0x2c] ss:$0 sps:$4 sm:$0x11]  }
  0x25   : > { %885 = vrot.lane.b32.xlu1 %v3128_v36, %s3044_s20  ;;  %v970_v23 = vsel %vm481_vm1, %v965_v18, %v969_v19  ;;  %v1173_v29 = vsel %vm706_vm0, %v1171_v24, %v1172_v25  ;;  %v1175_v31 = vrot.slane %v2922_v62, 1  ;;  %v1510_v34 = vshll.u32 %v3170_v26, 16  ;;  %v3193_v36 = vld [vmem:[%s3096_s19 + $0x20] ss:$0 sps:$4 sm:$0x11]   ;;  %v3251_v18 = vld [vmem:[%s3096_s19 + $0x84] sm:$0xff]  }
  0x26   : > { %869 = vrot.lane.b32.xlu0 %v3140_v52, %s3044_s20  ;;  %v1200_v37 = vsel %vm706_vm0, %v1198_v28, %v1199_v0  ;;  %v1414_v39 = vshll.u32 %v3179_v1, 16  ;;  %v1508_v40 = vshrl.u32 %v3170_v26, 16  ;;  %v1515_v42 = vshll.u32 %v3182_v32, 16  ;;  %v3228_v62 = vld [vmem:[%s3096_s19 + $0x80] ss:$0 sps:$4 sm:$0x11]  }
  0x27   : > { %v1176_v38 = vsel %vm706_vm0, %v1174_v30, %v1175_v31  ;;  %v1512_v41 = vrot.slane %v1510_v34, 1  ;;  %v1419_v43 = vshll.u32 %v3193_v36, 16  ;;  %v1522_v45 = vshll.u32 %v3185_v33, 16  ;;  %v2936_v28 = vld [vmem:[%s3096_s19 + $0x8c] ss:$0 sps:$4 sm:$0x11]  }
  0x28   : > { %v1426_v46 = vshll.u32 %v3190_v35, 16  ;;  %v1412_v47 = vshrl.u32 %v3179_v1, 16  ;;  %v1416_v48 = vrot.slane %v1414_v39, 1  ;;  %v1517_v52 = vrot.slane %v1515_v42, 1 }
  0x29   : > { %1155 = vrot.lane.b32.xlu1 %v1054_v15, %s3047_s23  ;;  %v1513_v51 = vor.u32 %v1512_v41, %v1508_v40  ;;  %v1520_v53 = vshrl.u32 %v3185_v33, 16  ;;  %v1424_v54 = vshrl.u32 %v3190_v35, 16  ;;  %v1421_v56 = vrot.slane %v1419_v43, 1  ;;  %v2938_v31 = vld [vmem:[%s3096_s19 + $0x2c] ss:$0 sps:$4 sm:$0x11]  }
  0x2a   : > { %1139 = vrot.lane.b32.xlu0 %v958_v5, %s3047_s23  ;;  %v1524_v57 = vrot.slane %v1522_v45, 1  ;;  %v1527_v58 = vshll.u32 %v3204_v44, 16  ;;  %v1428_v59 = vrot.slane %v1426_v46, 1  ;;  %v1417_v60 = vor.u32 %v1416_v48, %v1412_v47 }
  0x2b   : > { %v1431_v61 = vshll.u32 %v3211_v49, 16  ;;  %v1518_v2 = vsel %vm481_vm1, %v1513_v51, %v1517_v52  ;;  %v605_v6 = vshll.u32 %v3214_v50, 16  ;;  %v509_v10 = vshll.u32 %v3221_v55, 16 }
  0x2c   : > { %v1525_v3 = vor.u32 %v1524_v57, %v1520_v53  ;;  %v1529_v4 = vrot.slane %v1527_v58, 1  ;;  %v1422_v7 = vsel %vm481_vm1, %v1417_v60, %v1421_v56  ;;  %v1429_v8 = vor.u32 %v1428_v59, %v1424_v54  ;;  %v3290_v58 = vld [vmem:[%s3096_s19 + $0x84] sm:$0xff]  }
  0x2d   : > { %1157 = vrot.lane.b32.xlu1 %v1066_v20, %s3047_s23  ;;  %v1433_v9 = vrot.slane %v1431_v61, 1  ;;  %v1659_v11 = vrot.slane %v3170_v26, 1  ;;  %v1660_v12 = vrot.slane %v3182_v32, 1  ;;  %v610_v13 = vshll.u32 %v3228_v62, 16 }
  0x2e   : > { %1141 = vrot.lane.b32.xlu0 %v970_v23, %s3047_s23  ;;  %v514_v14 = vshll.u32 %v3231_v63, 16  ;;  %v1530_v15 = vsel %vm481_vm1, %v1525_v3, %v1529_v4  ;;  %v1635_v16 = vrot.slane %v3179_v1, 1  ;;  %v603_v17 = vshrl.u32 %v3214_v50, 16  ;;  %v3257_v23 = vld [vmem:[%s3096_s19 + $0x24] sm:$0xff]   ;;  %v3307_v4 = vld [vmem:[%s3096_s19 + $0x90] sm:$0xff]  }
  0x2f   : > { %v607_v5 = vrot.slane %v605_v6, 1  ;;  %v1434_v19 = vsel %vm481_vm1, %v1429_v8, %v1433_v9  ;;  %v1636_v20 = vrot.slane %v3193_v36, 1  ;;  %v507_v21 = vshrl.u32 %v3221_v55, 16 }
  0x30   : > { %v511_v22 = vrot.slane %v509_v10, 1  ;;  %v612_v24 = vrot.slane %v610_v13, 1  ;;  %v516_v25 = vrot.slane %v514_v14, 1  ;;  %v617_v0 = vshll.u32 %v3251_v18, 16  ;;  %v3317_v10 = vld [vmem:[%s3096_s19 + $0x30] sm:$0xff]  }
  0x31   : > { %1235 = vrot.lane.b32.xlu1 %v1197_v27, %s3048_s24  ;;  %v608_v27 = vor.u32 %v607_v5, %v603_v17  ;;  %v1662_v32 = vrot.slane %v3185_v33, 1  ;;  %v1663_v34 = vrot.slane %v3204_v44, 1  ;;  %v1638_v36 = vrot.slane %v3190_v35, 1 }
  0x32   : > { %1219 = vrot.lane.b32.xlu0 %v1173_v29, %s3048_s24  ;;  %v1637_v29 = vsel %vm706_vm0, %v1635_v16, %v1636_v20  ;;  %v512_v30 = vor.u32 %v511_v22, %v507_v21  ;;  %v615_v39 = vshrl.u32 %v3251_v18, 16  ;;  %v619_v40 = vrot.slane %v617_v0, 1 }
  0x33   : > { %v622_v41 = vshll.u32 %v2936_v28, 16  ;;  %v519_v43 = vshrl.u32 %v3257_v23, 16  ;;  %v737_v52 = vrot.slane %v3214_v50, 1  ;;  %v738_v53 = vrot.slane %v3228_v62, 1  ;;  %v3298_v62 = vld [vmem:[%s3096_s19 + $0x24] sm:$0xff]  }
  0x34   : > { %v517_v42 = vsel %vm481_vm1, %v512_v30, %v516_v25  ;;  %v620_v44 = vor.u32 %v619_v40, %v615_v39  ;;  %v713_v56 = vrot.slane %v3221_v55, 1  ;;  %v714_v57 = vrot.slane %v3231_v63, 1 }
  0x35   : > { %1237 = vrot.lane.b32.xlu1 %v1200_v37, %s3048_s24  ;;  %v1639_v37 = vrot.slane %v3211_v49, 1  ;;  %v624_v46 = vrot.slane %v622_v41, 1  ;;  %v739_v59 = vsel %vm706_vm0, %v737_v52, %v738_v53  ;;  %v740_v50 = vrot.slane %v3251_v18, 1  ;;  %v3330_v18 = vld [vmem:[%s3096_s19 + $0x38] ss:$0 sps:$4 sm:$0x11]  }
  0x36   : > { %1221 = vrot.lane.b32.xlu0 %v1176_v38, %s3048_s24  ;;  %v613_v38 = vsel %vm481_vm1, %v608_v27, %v612_v24  ;;  %v741_v60 = vrot.slane %v2936_v28, 1  ;;  %v716_v61 = vrot.slane %v3257_v23, 1  ;;  %v715_v55 = vsel %vm706_vm0, %v713_v56, %v714_v57  ;;  %v3376_v52 = vld [vmem:[%s3096_s19 + $0x30] sm:$0xff]   ;;  %v2976_v53 = vld [vmem:[%s4245_s1 + $0x8] sm:$0xff]  }
  0x37   : > { %v1640_v47 = vsel %vm706_vm0, %v1638_v36, %v1639_v37  ;;  %v625_v51 = vsel %vm481_vm1, %v620_v44, %v624_v46  ;;  %v717_v63 = vrot.slane %v2938_v31, 1  ;;  %v1070_v3 = vshll.u32 %v3290_v58, 16  ;;  %v2972_v37 = vld [vmem:[%s4245_s1 + $0x18] sm:$0xff]  }
  0x38   : > { %v742_v6 = vsel %vm706_vm0, %v740_v50, %v741_v60  ;;  %v974_v8 = vshll.u32 %v3298_v62, 16  ;;  %v972_v14 = vshrl.u32 %v3298_v62, 16  ;;  %v1082_v16 = vshll.u32 %v3307_v4, 16  ;;  %v3396_v60 = vld [vmem:[%s3096_s19 + $0x3c] sm:$0xff]  }
  0x39   : > { %1347 = vrot.lane.b32.xlu1 %v3170_v26, %s3049_s25  ;;  %v1661_v26 = vsel %vm706_vm0, %v1659_v11, %v1660_v12  ;;  %v718_v9 = vsel %vm706_vm0, %v716_v61, %v717_v63  ;;  %v1068_v11 = vshrl.u32 %v3290_v58, 16  ;;  %v1072_v12 = vrot.slane %v1070_v3, 1  ;;  %v2979_v63 = vld [vmem:[%s4245_s1] sm:$0xff]  }
  0x3a   : > { %1331 = vrot.lane.b32.xlu0 %v3179_v1, %s3049_s25  ;;  %v521_v1 = vshll.u32 %v3257_v23, 16  ;;  %v976_v17 = vrot.slane %v974_v8, 1  ;;  %v1080_v20 = vshrl.u32 %v3307_v4, 16  ;;  %v984_v21 = vshrl.u32 %v3317_v10, 16 }
  0x3b   : > { %v1073_v22 = vor.u32 %v1072_v12, %v1068_v11  ;;  %v1084_v24 = vrot.slane %v1082_v16, 1  ;;  %v991_v0 = vshll.u32 %v3330_v18, 16  ;;  %v1201_v39 = vrot.slane %v3290_v58, 1  ;;  %v3413_v8 = vld [vmem:[%s3096_s19 + $0x44] ss:$0 sps:$4 sm:$0x11]  }
  0x3c   : > { %v523_v45 = vrot.slane %v521_v1, 1  ;;  %v2971_v1 = vld [vmem:[%s4245_s1 + $0x20] ss:$0 sps:$4 sm:$0xff]   ;;  %v1204_v46 = vrot.slane %v3307_v4, 1  ;;  %v1438_v61 = vshll.u32 %v3376_v52, 16 }
  0x3d   : > { %1349 = vrot.lane.b32.xlu1 %v3185_v33, %s3049_s25  ;;  %v526_v33 = vshll.u32 %v2938_v31, 16  ;;  %v1085_v30 = vor.u32 %v1084_v24, %v1080_v20  ;;  %v993_v36 = vrot.slane %v991_v0, 1  ;;  %2872 = vmatprep.subr.msk.bf16.mxu0 %vm2055_vm2, %v2971_v1  ;;  %v2057_v41 = vsel %vm2055_vm2, %v2971_v1, 0 }
  0x3e   : > { %1333 = vrot.lane.b32.xlu0 %v3190_v35, %s3049_s25  ;;  %v1664_v35 = vsel %vm706_vm0, %v1662_v32, %v1663_v34  ;;  %v524_v48 = vor.u32 %v523_v45, %v519_v43  ;;  %2873 = vmatprep.subr.msk.bf16.mxu1 %vm2055_vm2, %v2971_v1  ;;  %v1177_v43 = vrot.slane %v3298_v62, 1 }
  0x3f   : > { %v528_v49 = vrot.slane %v526_v33, 1  ;;  %2821 = vmatpush3.bf16.msra.mxu0 %v2057_v41  ;;  %2867 = vmatpush3.bf16.msra.mxu1 %v2057_v41  ;;  %v2973_v33 = vld [vmem:[%s4245_s1 + $0x10] sm:$0xff]  }
  0x40   : > { %2822 = vmatprep.subr.bf16.mxu0 %v2972_v37  ;;  %2863 = vmatprep.subr.bf16.mxu1 %v2972_v37 }
  0x41   : > { %1619 = vrot.lane.b32.xlu1 %v1518_v2, %s3050_s26  ;;  %v529_v54 = vsel %vm481_vm1, %v524_v48, %v528_v49  ;;  %v3302_v2 = vld [vmem:[%s3096_s19 + $0x8c] ss:$0 sps:$4 sm:$0x11]   ;;  %v1180_v49 = vrot.slane %v3317_v10, 1 }
  0x42   : > { %1603 = vrot.lane.b32.xlu0 %v1422_v7, %s3050_s26  ;;  %v3312_v7 = vld [vmem:[%s3096_s19 + $0x2c] ss:$0 sps:$4 sm:$0x11]   ;;  %v1075_v13 = vshll.u32 %v3302_v2, 16  ;;  %v1202_v40 = vrot.slane %v3302_v2, 1 }
  0x43   : > { %v979_v5 = vshll.u32 %v3312_v7, 16  ;;  %v1178_v45 = vrot.slane %v3312_v7, 1  ;;  %2823 = vmatpush3.bf16.msra.mxu0 %v2972_v37  ;;  %2868 = vmatpush3.bf16.msra.mxu1 %v2972_v37  ;;  %v3451_v37 = vld [vmem:[%s3096_s19 + $0x9c] sm:$0xff]  }
  0x44   : > { %v1077_v23 = vrot.slane %v1075_v13, 1  ;;  %v1203_v44 = vsel %vm706_vm0, %v1201_v39, %v1202_v40  ;;  %2824 = vmatprep.subr.bf16.mxu0 %v2973_v33  ;;  %2864 = vmatprep.subr.bf16.mxu1 %v2973_v33  ;;  %v3419_v13 = vld [vmem:[%s3096_s19 + $0x90] sm:$0xff]   ;;  %v3457_v40 = vld [vmem:[%s3096_s19 + $0x3c] sm:$0xff]  }
  0x45   : > { %1621 = vrot.lane.b32.xlu1 %v1530_v15, %s3050_s26  ;;  %v3324_v15 = vld [vmem:[%s3096_s19 + $0x98] ss:$0 sps:$4 sm:$0x11]   ;;  %v981_v27 = vrot.slane %v979_v5, 1  ;;  %v1179_v48 = vsel %vm706_vm0, %v1177_v43, %v1178_v45 }
  0x46   : > { %1605 = vrot.lane.b32.xlu0 %v1434_v19, %s3050_s26  ;;  %v986_v19 = vshll.u32 %v3317_v10, 16  ;;  %v1087_v25 = vshll.u32 %v3324_v15, 16 }
  0x47   : > { %2825 = vmatpush3.bf16.msra.mxu0 %v2973_v33  ;;  %2869 = vmatpush3.bf16.msra.mxu1 %v2973_v33 }
  0x48   : > { %v988_v28 = vrot.slane %v986_v19, 1  ;;  %v1089_v31 = vrot.slane %v1087_v25, 1  ;;  %2826 = vmatprep.subr.bf16.mxu0 %v2976_v53  ;;  %2865 = vmatprep.subr.bf16.mxu1 %v2976_v53  ;;  %v1448_v19 = vshrl.u32 %v3396_v60, 16 }
  0x49   : > { %1699 = vrot.lane.b32.xlu1 %v1661_v26, %s3051_s27  ;;  %v977_v26 = vor.u32 %v976_v17, %v972_v14  ;;  %v1455_v17 = vshll.u32 %v3413_v8, 16 }
  0x4a   : > { %1683 = vrot.lane.b32.xlu0 %v1637_v29, %s3051_s27  ;;  %v1078_v29 = vsel %vm481_vm1, %v1073_v22, %v1077_v23  ;;  %v989_v34 = vor.u32 %v988_v28, %v984_v21  ;;  %v3428_v21 = vld [vmem:[%s3096_s19 + $0x30] sm:$0xff]   ;;  %v3434_v23 = vld [vmem:[%s3096_s19 + $0x98] ss:$0 sps:$4 sm:$0x11]  }
  0x4b   : > { %v982_v32 = vsel %vm481_vm1, %v977_v26, %v981_v27  ;;  %2827 = vmatpush3.bf16.msra.mxu0 %v2976_v53  ;;  %2870 = vmatpush3.bf16.msra.mxu1 %v2976_v53  ;;  %v1457_v26 = vrot.slane %v1455_v17, 1  ;;  %v629_v27 = vshll.u32 %v3419_v13, 16  ;;  %v634_v39 = vshll.u32 %v3434_v23, 16 }
  0x4c   : > { %2828 = vmatprep.subr.bf16.mxu0 %v2979_v63  ;;  %2866 = vmatprep.subr.bf16.mxu1 %v2979_v63  ;;  %v531_v45 = vshrl.u32 %v3428_v21, 16 }
  0x4d   : > { %694 = vrot.lane.b32.xlu1 %v613_v38, %s3046_s22  ;;  %v1090_v38 = vsel %vm481_vm1, %v1085_v30, %v1089_v31  ;;  %v533_v30 = vshll.u32 %v3428_v21, 16  ;;  %v631_v43 = vrot.slane %v629_v27, 1 }
  0x4e   : > { %678 = vrot.lane.b32.xlu0 %v517_v42, %s3046_s22  ;;  %v994_v42 = vsel %vm481_vm1, %v989_v34, %v993_v36  ;;  %v1641_v34 = vrot.slane %v3376_v52, 1 }
  0x4f   : > { %2829 = vmatpush3.bf16.msra.mxu0 %v2979_v63  ;;  %2871 = vmatpush3.bf16.msra.mxu1 %v2979_v63  ;;  %v1644_v63 = vrot.slane %v3396_v60, 1 }
  0x51   : > { %1701 = vrot.lane.b32.xlu1 %v1664_v35, %s3051_s27  ;;  %v3366_v35 = vld [vmem:[%s3096_s19 + $0x90] sm:$0xff]  }
  0x52   : > { %1685 = vrot.lane.b32.xlu0 %v1640_v47, %s3051_s27  ;;  %v1205_v47 = vrot.slane %v3324_v15, 1  ;;  %v1534_v56 = vshll.u32 %v3366_v35, 16  ;;  %v1665_v1 = vrot.slane %v3366_v35, 1 }
  0x54   : > { %v1206_v57 = vsel %vm706_vm0, %v1204_v46, %v1205_v47  ;;  %v1536_v2 = vrot.slane %v1534_v56, 1  ;;  %v636_v46 = vrot.slane %v634_v39, 1  ;;  %v3533_v39 = vld [vmem:[%s3096_s19 + $0xa8] sm:$0xff]  }
  0x55   : > { %696 = vrot.lane.b32.xlu1 %v625_v51, %s3046_s22  ;;  %v1181_v51 = vrot.slane %v3330_v18, 1 }
  0x56   : > { %680 = vrot.lane.b32.xlu0 %v529_v54, %s3046_s22  ;;  %v3383_v54 = vld [vmem:[%s3096_s19 + $0x98] ss:$0 sps:$4 sm:$0x11]  }
  0x57   : > { %v1182_v50 = vsel %vm706_vm0, %v1180_v49, %v1181_v51  ;;  %v1539_v3 = vshll.u32 %v3383_v54, 16  ;;  %v2960_v51 = vld [vmem:[%s3096_s19 + $0xa4] ss:$0 sps:$4 sm:$0x11]  }
  0x59   : > { %775 = vrot.lane.b32.xlu1 %v739_v59, %s3045_s21  ;;  %v3392_v59 = vld [vmem:[%s3096_s19 + $0x38] ss:$0 sps:$4 sm:$0x11]   ;;  %v1541_v12 = vrot.slane %v1539_v3, 1  ;;  %v639_v3 = vshrl.u32 %v3451_v37, 16 }
  0x5a   : > { %759 = vrot.lane.b32.xlu0 %v715_v55, %s3045_s21  ;;  %v3401_v55 = vld [vmem:[%s3096_s19 + $0xa4] ss:$0 sps:$4 sm:$0x11]   ;;  %v1642_v36 = vrot.slane %v3392_v59, 1 }
  0x5b   : > { %v1551_v16 = vshll.u32 %v3401_v55, 16 }
  0x5c   : > { %v1643_v53 = vsel %vm706_vm0, %v1641_v34, %v1642_v36 }
  0x5d   : > { %777 = vrot.lane.b32.xlu1 %v742_v6, %s3045_s21  ;;  %v1443_v6 = vshll.u32 %v3392_v59, 16  ;;  %v1553_v25 = vrot.slane %v1551_v16, 1  ;;  %v545_v59 = vshll.u32 %v3457_v40, 16 }
  0x5e   : > { %761 = vrot.lane.b32.xlu0 %v718_v9, %s3045_s21  ;;  %v1440_v9 = vrot.slane %v1438_v61, 1 }
  0x5f   : > { %v1445_v18 = vrot.slane %v1443_v6, 1 }
  0x61   : > { %887 = vrot.lane.b32.xlu1 %v3290_v58, %s3044_s20  ;;  %v3389_v58 = vld [vmem:[%s3096_s19 + $0x9c] sm:$0xff]  }
  0x62   : > { %871 = vrot.lane.b32.xlu0 %v3298_v62, %s3044_s20  ;;  %v1532_v62 = vshrl.u32 %v3366_v35, 16  ;;  %v1546_v7 = vshll.u32 %v3389_v58, 16  ;;  %v1544_v14 = vshrl.u32 %v3389_v58, 16  ;;  %v1668_v61 = vrot.slane %v3389_v58, 1 }
  0x64   : > { %v1537_v11 = vor.u32 %v1536_v2, %v1532_v62  ;;  %v1548_v15 = vrot.slane %v1546_v7, 1  ;;  %v1669_v62 = vrot.slane %v3401_v55, 1  ;;  %v1645_v2 = vrot.slane %v3413_v8, 1 }
  0x65   : > { %889 = vrot.lane.b32.xlu1 %v3307_v4, %s3044_s20  ;;  %v1436_v4 = vshrl.u32 %v3376_v52, 16 }
  0x66   : > { %873 = vrot.lane.b32.xlu0 %v3317_v10, %s3044_s20  ;;  %v1450_v10 = vshll.u32 %v3396_v60, 16  ;;  %v1542_v22 = vsel %vm481_vm1, %v1537_v11, %v1541_v12  ;;  %v1549_v24 = vor.u32 %v1548_v15, %v1544_v14  ;;  %v547_v11 = vrot.slane %v545_v59, 1  ;;  %v3563_v59 = vld [vmem:[%s3096_s19 + $0x50] ss:$0 sps:$4 sm:$0x11]  }
  0x67   : > { %v1441_v5 = vor.u32 %v1440_v9, %v1436_v4  ;;  %v646_v9 = vshll.u32 %v2960_v51, 16  ;;  %v1646_v16 = vsel %vm706_vm0, %v1644_v63, %v1645_v2  ;;  %v1104_v2 = vshrl.u32 %v3533_v39, 16 }
  0x68   : > { %v1452_v20 = vrot.slane %v1450_v10, 1  ;;  %v543_v10 = vshrl.u32 %v3457_v40, 16 }
  0x69   : > { %1159 = vrot.lane.b32.xlu1 %v1078_v29, %s3047_s23  ;;  %v1446_v28 = vsel %vm481_vm1, %v1441_v5, %v1445_v18  ;;  %v3441_v29 = vld [vmem:[%s3096_s19 + $0x38] ss:$0 sps:$4 sm:$0x11]   ;;  %v648_v14 = vrot.slane %v646_v9, 1 }
  0x6a   : > { %1143 = vrot.lane.b32.xlu0 %v982_v32, %s3047_s23  ;;  %v1453_v0 = vor.u32 %v1452_v20, %v1448_v19  ;;  %v1666_v32 = vrot.slane %v3383_v54, 1  ;;  %v548_v17 = vor.u32 %v547_v11, %v543_v10  ;;  %v743_v20 = vrot.slane %v3419_v13, 1 }
  0x6b   : > { %v720_v27 = vrot.slane %v3441_v29, 1 }
  0x6c   : > { %v1458_v33 = vsel %vm481_vm1, %v1453_v0, %v1457_v26  ;;  %v719_v26 = vrot.slane %v3428_v21, 1  ;;  %v3514_v0 = vld [vmem:[%s3096_s19 + $0x9c] sm:$0xff]  }
  0x6d   : > { %1161 = vrot.lane.b32.xlu1 %v1090_v38, %s3047_s23  ;;  %v627_v38 = vshrl.u32 %v3419_v13, 16 }
  0x6e   : > { %1145 = vrot.lane.b32.xlu0 %v994_v42, %s3047_s23  ;;  %v1554_v42 = vsel %vm481_vm1, %v1549_v24, %v1553_v25 }
  0x6f   : > { %v632_v49 = vor.u32 %v631_v43, %v627_v38  ;;  %v1094_v38 = vshll.u32 %v3514_v0, 16 }
  0x71   : > { %1239 = vrot.lane.b32.xlu1 %v1203_v44, %s3048_s24  ;;  %v538_v44 = vshll.u32 %v3441_v29, 16  ;;  %v637_v6 = vsel %vm481_vm1, %v632_v49, %v636_v46  ;;  %v721_v29 = vsel %vm706_vm0, %v719_v26, %v720_v27  ;;  %v1092_v46 = vshrl.u32 %v3514_v0, 16 }
  0x72   : > { %1223 = vrot.lane.b32.xlu0 %v1179_v48, %s3048_s24  ;;  %v1667_v48 = vsel %vm706_vm0, %v1665_v1, %v1666_v32  ;;  %v3520_v1 = vld [vmem:[%s3096_s19 + $0x3c] sm:$0xff]   ;;  %v722_v32 = vrot.slane %v3457_v40, 1  ;;  %v1207_v27 = vrot.slane %v3514_v0, 1 }
  0x73   : > { %v540_v56 = vrot.slane %v538_v44, 1  ;;  %v998_v43 = vshll.u32 %v3520_v1, 16  ;;  %v996_v49 = vshrl.u32 %v3520_v1, 16 }
  0x75   : > { %1241 = vrot.lane.b32.xlu1 %v1206_v57, %s3048_s24  ;;  %v2962_v57 = vld [vmem:[%s3096_s19 + $0x44] ss:$0 sps:$4 sm:$0x11]  }
  0x76   : > { %1225 = vrot.lane.b32.xlu0 %v1182_v50, %s3048_s24  ;;  %v550_v55 = vshll.u32 %v2962_v57, 16  ;;  %v723_v34 = vrot.slane %v2962_v57, 1 }
  0x78   : > { %v552_v5 = vrot.slane %v550_v55, 1  ;;  %v724_v40 = vsel %vm706_vm0, %v722_v32, %v723_v34  ;;  %v1183_v32 = vrot.slane %v3520_v1, 1 }
  0x79   : > { %1351 = vrot.lane.b32.xlu1 %v3366_v35, %s3049_s25  ;;  %v535_v35 = vrot.slane %v533_v30, 1  ;;  %v747_v30 = vrot.slane %v2960_v51, 1 }
  0x7a   : > { %1335 = vrot.lane.b32.xlu0 %v3376_v52, %s3049_s25  ;;  %v641_v52 = vshll.u32 %v3451_v37, 16  ;;  %v553_v25 = vsel %vm481_vm1, %v548_v17, %v552_v5 }
  0x7b   : > { %v536_v54 = vor.u32 %v535_v35, %v531_v45  ;;  %v3546_v35 = vld [vmem:[%s3096_s19 + $0x44] ss:$0 sps:$4 sm:$0x11]  }
  0x7c   : > { %v643_v7 = vrot.slane %v641_v52, 1  ;;  %v1000_v52 = vrot.slane %v998_v43, 1  ;;  %v1003_v57 = vshll.u32 %v3546_v35, 16  ;;  %v1184_v34 = vrot.slane %v3546_v35, 1 }
  0x7d   : > { %1353 = vrot.lane.b32.xlu1 %v3389_v58, %s3049_s25  ;;  %v541_v58 = vsel %vm481_vm1, %v536_v54, %v540_v56  ;;  %v1106_v54 = vshll.u32 %v3533_v39, 16 }
  0x7e   : > { %1337 = vrot.lane.b32.xlu0 %v3396_v60, %s3049_s25  ;;  %v1670_v60 = vsel %vm706_vm0, %v1668_v61, %v1669_v62  ;;  %v644_v8 = vor.u32 %v643_v7, %v639_v3  ;;  %v1005_v10 = vrot.slane %v1003_v57, 1 }
  0x7f   : > { %v1108_v7 = vrot.slane %v1106_v54, 1 }
  0x80   : > { %v649_v19 = vsel %vm481_vm1, %v644_v8, %v648_v14 }
  0x81   : > { %1623 = vrot.lane.b32.xlu1 %v1542_v22, %s3050_s26  ;;  %v744_v22 = vrot.slane %v3434_v23, 1  ;;  %v746_v23 = vrot.slane %v3451_v37, 1 }
  0x82   : > { %1607 = vrot.lane.b32.xlu0 %v1446_v28, %s3050_s26 }
  0x83   : > { %v3444_v31 = vpop.permute.xlu1 %883  ;;  %v745_v13 = vsel %vm706_vm0, %v743_v20, %v744_v22  ;;  %v748_v37 = vsel %vm706_vm0, %v746_v23, %v747_v30  ;;  %v3596_v23 = vld [vmem:[%s3096_s19 + $0xa8] sm:$0xff]  }
  0x84   : > { %v3460_v41 = vpop.permute.xlu0 %867 }
  0x85   : > { %1625 = vrot.lane.b32.xlu1 %v1554_v42, %s3050_s26  ;;  %v3536_v42 = vld [vmem:[%s3096_s19 + $0xa4] ss:$0 sps:$4 sm:$0x11]  }
  0x86   : > { %1609 = vrot.lane.b32.xlu0 %v1458_v33, %s3050_s26  ;;  %v3543_v33 = vld [vmem:[%s3096_s19 + $0x48] sm:$0xff]   ;;  %v1099_v51 = vshll.u32 %v3536_v42, 16 }
  0x87   : > { %v3468_v47 = vpop.permute.xlu1 %771  ;;  %v1010_v61 = vshll.u32 %v3543_v33, 16  ;;  %v1008_v11 = vshrl.u32 %v3543_v33, 16 }
  0x88   : > { %v3476_v50 = vpop.permute.xlu0 %755  ;;  %v1101_v3 = vrot.slane %v1099_v51, 1 }
  0x89   : > { %1703 = vrot.lane.b32.xlu1 %v1667_v48, %s3051_s27  ;;  %v1096_v48 = vrot.slane %v1094_v38, 1  ;;  %v1012_v55 = vrot.slane %v1010_v61, 1  ;;  %v3009_v61 = vld [vmem:[%s3096_s19] sm:$0xff]  }
  0x8a   : > { %1687 = vrot.lane.b32.xlu0 %v1643_v53, %s3051_s27  ;;  %v3556_v53 = vld [vmem:[%s3096_s19 + $0xb0] ss:$0 sps:$4 sm:$0x11]  }
  0x8b   : > { %v3485_v4 = vpop.permute.xlu1 %773  ;;  %v1097_v63 = vor.u32 %v1096_v48, %v1092_v46  ;;  %v1111_v9 = vshll.u32 %v3556_v53, 16  ;;  %v1013_v20 = vor.u32 %v1012_v55, %v1008_v11  ;;  %v1185_v46 = vsel %vm706_vm0, %v1183_v32, %v1184_v34 }
  0x8c   : > { %v3490_v12 = vpop.permute.xlu0 %757  ;;  %v1187_v48 = vrot.slane %v3563_v59, 1 }
  0x8d   : > { %698 = vrot.lane.b32.xlu1 %v637_v6, %s3046_s22  ;;  %v1001_v6 = vor.u32 %v1000_v52, %v996_v49  ;;  %v1102_v14 = vsel %vm481_vm1, %v1097_v63, %v1101_v3  ;;  %v1113_v17 = vrot.slane %v1111_v9, 1  ;;  %v3623_v49 = vld [vmem:[%s3096_s19 + $0xb4] sm:$0xff]  }
  0x8e   : > { %682 = vrot.lane.b32.xlu0 %v541_v58, %s3046_s22  ;;  %v1570_v9 = vshll.u32 %v3623_v49, 16 }
  0x8f   : > { %v3495_v15 = vpop.permute.xlu1 %676 }
  0x90   : > { %v3498_v18 = vpop.permute.xlu0 %674 }
  0x91   : > { %1705 = vrot.lane.b32.xlu1 %v1670_v60, %s3051_s27  ;;  %v1015_v60 = vshll.u32 %v3563_v59, 16  ;;  %v3637_v59 = vld [vmem:[%s3096_s19 + $0x50] ss:$0 sps:$4 sm:$0x11]   ;;  %v1717_v63 = vsel %vm1715_vm3, %v3009_v61, %v3498_v18 }
  0x92   : > { %1689 = vrot.lane.b32.xlu0 %v1646_v16, %s3051_s27  ;;  %v1109_v16 = vor.u32 %v1108_v7, %v1104_v2  ;;  %v1556_v2 = vshrl.u32 %v3596_v23, 16 }
  0x93   : > { %v3505_v24 = vpop.permute.xlu1 %692  ;;  %v1017_v22 = vrot.slane %v1015_v60, 1  ;;  %v3651_v60 = vld [vmem:[%s3096_s19 + $0xbc] ss:$0 sps:$4 sm:$0x11]  }
  0x94   : > { %v3510_v28 = vpop.permute.xlu0 %690  ;;  %v1114_v26 = vsel %vm481_vm1, %v1109_v16, %v1113_v17  ;;  %v1467_v16 = vshll.u32 %v3637_v59, 16 }
  0x95   : > { %700 = vrot.lane.b32.xlu1 %v649_v19, %s3046_s22  ;;  %v1006_v19 = vsel %vm481_vm1, %v1001_v6, %v1005_v10 }
  0x96   : > { %684 = vrot.lane.b32.xlu0 %v553_v25, %s3046_s22 }
  0x97   : > { %v3522_v21 = vpop.permute.xlu1 %885 }
  0x98   : > { %v3526_v36 = vpop.permute.xlu0 %869 }
  0x99   : > { %779 = vrot.lane.b32.xlu1 %v745_v13, %s3045_s21  ;;  %v1208_v13 = vrot.slane %v3536_v42, 1  ;;  %v1211_v42 = vrot.slane %v3556_v53, 1  ;;  %v3008_v53 = vld [vmem:[%s3096_s19 + $0x60] sm:$0xff]  }
  0x9a   : > { %763 = vrot.lane.b32.xlu0 %v721_v29, %s3045_s21  ;;  %v1018_v29 = vsel %vm481_vm1, %v1013_v20, %v1017_v22  ;;  %v1733_v54 = vsel %vm1715_vm3, %v3008_v53, %v3510_v28  ;;  %v1568_v20 = vshrl.u32 %v3623_v49, 16  ;;  %v3661_v22 = vld [vmem:[%s3096_s19 + $0x5c] ss:$0 sps:$4 sm:$0x11]  }
  0x9b   : > { %v3539_v45 = vpop.permute.xlu1 %1155  ;;  %v1209_v43 = vsel %vm706_vm0, %v1207_v27, %v1208_v13  ;;  %v1766_v10 = vsel %vm1748_vm4, %v1733_v54, %v3468_v47  ;;  %v1572_v27 = vrot.slane %v1570_v9, 1 }
  0x9c   : > { %v3548_v44 = vpop.permute.xlu0 %1139 }
  0x9d   : > { %781 = vrot.lane.b32.xlu1 %v748_v37, %s3045_s21  ;;  %v3606_v37 = vld [vmem:[%s3096_s19 + $0x48] sm:$0xff]   ;;  %v1573_v61 = vor.u32 %v1572_v27, %v1568_v20 }
  0x9e   : > { %765 = vrot.lane.b32.xlu0 %v724_v40, %s3045_s21  ;;  %v3614_v40 = vld [vmem:[%s3096_s19 + $0xb0] ss:$0 sps:$4 sm:$0x11]   ;;  %v1462_v52 = vshll.u32 %v3606_v37, 16  ;;  %v1460_v11 = vshrl.u32 %v3606_v37, 16  ;;  %v1647_v9 = vrot.slane %v3606_v37, 1 }
  0x9f   : > { %v3559_v56 = vpop.permute.xlu1 %1157  ;;  %v1563_v3 = vshll.u32 %v3614_v40, 16 }
  0xa0   : > { %v3566_v62 = vpop.permute.xlu0 %1141  ;;  %v1464_v55 = vrot.slane %v1462_v52, 1  ;;  %v3010_v52 = vld [vmem:[%s3096_s19 + $0x6c] sm:$0xff]  }
  0xa1   : > { %891 = vrot.lane.b32.xlu1 %v3514_v0, %s3044_s20  ;;  %v1210_v0 = vrot.slane %v3533_v39, 1  ;;  %v1735_v53 = vsel %vm1715_vm3, %v3010_v52, %v3505_v24 }
  0xa2   : > { %875 = vrot.lane.b32.xlu0 %v3520_v1, %s3044_s20  ;;  %v1558_v1 = vshll.u32 %v3596_v23, 16 }
  0xa3   : > { %v3574_v58 = vpop.permute.xlu1 %1235  ;;  %v1212_v57 = vsel %vm706_vm0, %v1210_v0, %v1211_v42  ;;  %v1465_v42 = vor.u32 %v1464_v55, %v1460_v11 }
  0xa4   : > { %v3578_v8 = vpop.permute.xlu0 %1219  ;;  %v1560_v28 = vrot.slane %v1558_v1, 1 }
  0xa5   : > { %893 = vrot.lane.b32.xlu1 %v3533_v39, %s3044_s20  ;;  %v1186_v39 = vrot.slane %v3543_v33, 1 }
  0xa6   : > { %877 = vrot.lane.b32.xlu0 %v3543_v33, %s3044_s20  ;;  %v3634_v33 = vld [vmem:[%s3096_s19 + $0x54] sm:$0xff]   ;;  %v1561_v47 = vor.u32 %v1560_v28, %v1556_v2 }
  0xa7   : > { %v3585_v5 = vpop.permute.xlu1 %1237  ;;  %v1188_v7 = vsel %vm706_vm0, %v1186_v39, %v1187_v48  ;;  %v1474_v17 = vshll.u32 %v3634_v33, 16  ;;  %v1472_v13 = vshrl.u32 %v3634_v33, 16  ;;  %v3683_v39 = vld [vmem:[%s3096_s19 + $0xa8] sm:$0xff]  }
  0xa8   : > { %v3588_v25 = vpop.permute.xlu0 %1221 }
  0xa9   : > { %1163 = vrot.lane.b32.xlu1 %v1102_v14, %s3047_s23  ;;  %v1750_v14 = vsel %vm1748_vm4, %v1717_v63, %v3476_v50  ;;  %v1799_v50 = vsel %vm1781_vm5, %v1766_v10, %v3444_v31  ;;  %v3700_v63 = vld [vmem:[%s3096_s19 + $0x48] sm:$0xff]   ;;  %v1768_v10 = vsel %vm1748_vm4, %v1735_v53, %v3485_v4  ;;  %v1648_v4 = vrot.slane %v3637_v59, 1 }
  0xaa   : > { %1147 = vrot.lane.b32.xlu0 %v1006_v19, %s3047_s23  ;;  %v1565_v19 = vrot.slane %v1563_v3, 1  ;;  %v1832_v32 = vsel %vm1814_vm6, %v1799_v50, %v3539_v45  ;;  %v1783_v34 = vsel %vm1781_vm5, %v1750_v14, %v3460_v41  ;;  %v1469_v45 = vrot.slane %v1467_v16, 1  ;;  %v3721_v14 = vld [vmem:[%s3096_s19 + $0xb0] ss:$0 sps:$4 sm:$0x11]  }
  0xab   : > { %v3598_v30 = vpop.permute.xlu1 %1347  ;;  %v1816_v31 = vsel %vm1814_vm6, %v1783_v34, %v3548_v44  ;;  %v1865_v1 = vsel %vm1847_vm7, %v1832_v32, %v3574_v58  ;;  %v1479_v58 = vshll.u32 %v3661_v22, 16  ;;  %v1649_v53 = vsel %vm706_vm0, %v1647_v9, %v1648_v4 }
  0xac   : > { %v3603_v38 = vpop.permute.xlu0 %1331  ;;  %v1849_v41 = vsel %vm1847_vm7, %v1816_v31, %v3578_v8  ;;  %v1898_v48 = vsel %vm1880_vm8, %v1865_v1, %v3598_v30  ;;  %v1566_v44 = vsel %vm481_vm1, %v1561_v47, %v1565_v19  ;;  %v3011_v30 = vld [vmem:[%s3096_s19 + $0xc] sm:$0xff]   ;;  %v557_v47 = vshll.u32 %v3700_v63, 16 }
  0xad   : > { %1165 = vrot.lane.b32.xlu1 %v1114_v26, %s3047_s23  ;;  %v1882_v54 = vsel %vm1880_vm8, %v1849_v41, %v3603_v38  ;;  %v1719_v2 = vsel %vm1715_vm3, %v3011_v30, %v3495_v15  ;;  %v653_v15 = vshll.u32 %v3683_v39, 16  ;;  %v1481_v55 = vrot.slane %v1479_v58, 1 }
  0xae   : > { %1149 = vrot.lane.b32.xlu0 %v1018_v29, %s3047_s23  ;;  %v1671_v29 = vrot.slane %v3596_v23, 1 }
  0xaf   : > { %v3617_v35 = vpop.permute.xlu1 %1349 }
  0xb0   : > { %v3625_v51 = vpop.permute.xlu0 %1333 }
  0xb1   : > { %1243 = vrot.lane.b32.xlu1 %v1209_v43, %s3048_s24  ;;  %v1575_v43 = vshll.u32 %v3651_v60, 16 }
  0xb2   : > { %1227 = vrot.lane.b32.xlu0 %v1185_v46, %s3048_s24  ;;  %v1476_v46 = vrot.slane %v1474_v17, 1  ;;  %v3731_v17 = vld [vmem:[%s3096_s19 + $0x50] ss:$0 sps:$4 sm:$0x11]  }
  0xb3   : > { %v1620_v6 = vpop.permute.xlu1 %1619  ;;  %v1577_v24 = vrot.slane %v1575_v43, 1  ;;  %v562_v1 = vshll.u32 %v3731_v17, 16 }
  0xb4   : > { %v1604_v18 = vpop.permute.xlu0 %1603  ;;  %v1477_v11 = vor.u32 %v1476_v46, %v1472_v13  ;;  %v655_v13 = vrot.slane %v653_v15, 1 }
  0xb5   : > { %1245 = vrot.lane.b32.xlu1 %v1212_v57, %s3048_s24  ;;  %v1931_v57 = vsel %vm1913_vm9, %v1898_v48, %v1620_v6  ;;  %v1915_v28 = vsel %vm1913_vm9, %v1882_v54, %v1604_v18  ;;  %v1672_v6 = vrot.slane %v3614_v40, 1  ;;  %v1470_v18 = vsel %vm481_vm1, %v1465_v42, %v1469_v45  ;;  %v3756_v42 = vld [vmem:[%s3096_s19 + $0xb4] sm:$0xff]  }
  0xb6   : > { %1229 = vrot.lane.b32.xlu0 %v1188_v7, %s3048_s24  ;;  %v1801_v40 = vsel %vm1781_vm5, %v1768_v10, %v3522_v21  ;;  %v1578_v21 = vsel %vm481_vm1, %v1573_v61, %v1577_v24  ;;  %v1482_v34 = vsel %vm481_vm1, %v1477_v11, %v1481_v55  ;;  %v665_v58 = vshll.u32 %v3756_v42, 16 }
  0xb7   : > { %v3665_v26 = vpop.permute.xlu1 %1621  ;;  %v1834_v20 = vsel %vm1814_vm6, %v1801_v40, %v3559_v56 }
  0xb8   : > { %v3673_v0 = vpop.permute.xlu0 %1605  ;;  %v1867_v27 = vsel %vm1847_vm7, %v1834_v20, %v3585_v5  ;;  %v667_v24 = vrot.slane %v665_v58, 1  ;;  %v750_v20 = vrot.slane %v3721_v14, 1 }
  0xb9   : > { %1355 = vrot.lane.b32.xlu1 %v3596_v23, %s3049_s25  ;;  %v1900_v32 = vsel %vm1880_vm8, %v1867_v27, %v3617_v35  ;;  %v3764_v35 = vld [vmem:[%s3096_s19 + $0x54] sm:$0xff]   ;;  %v1674_v23 = vrot.slane %v3623_v49, 1  ;;  %v726_v27 = vrot.slane %v3731_v17, 1 }
  0xba   : > { %1339 = vrot.lane.b32.xlu0 %v3606_v37, %s3049_s25  ;;  %v1752_v37 = vsel %vm1748_vm4, %v1719_v2, %v3490_v12  ;;  %v651_v12 = vshrl.u32 %v3683_v39, 16  ;;  %v1933_v43 = vsel %vm1913_vm9, %v1900_v32, %v3665_v26  ;;  %v569_v61 = vshll.u32 %v3764_v35, 16  ;;  %v3825_v32 = vld [vmem:[%s3096_s19 + $0xb4] sm:$0xff]  }
  0xbb   : > { %v1700_v8 = vpop.permute.xlu1 %1699  ;;  %v1785_v19 = vsel %vm1781_vm5, %v1752_v37, %v3526_v36  ;;  %v555_v36 = vshrl.u32 %v3700_v63, 16  ;;  %v1650_v2 = vrot.slane %v3634_v33, 1  ;;  %v1116_v58 = vshrl.u32 %v3825_v32, 16 }
  0xbc   : > { %v1684_v3 = vpop.permute.xlu0 %1683  ;;  %v1964_v7 = vsel %vm1946_vm10, %v1931_v57, %v1700_v8  ;;  %v1818_v59 = vsel %vm1814_vm6, %v1785_v19, %v3566_v62  ;;  %v658_v62 = vshll.u32 %v3721_v14, 16  ;;  %v656_v26 = vor.u32 %v655_v13, %v651_v12  ;;  %v2991_v8 = vld [vmem:[%s3096_s19 + $0x5c] ss:$0 sps:$4 sm:$0x11]  }
  0xbd   : > { %1357 = vrot.lane.b32.xlu1 %v3623_v49, %s3049_s25  ;;  %v1948_v38 = vsel %vm1946_vm10, %v1915_v28, %v1684_v3  ;;  %2846 = vmatprep.mubr.msk.bf16.mxu1 %vm2022_vm11, %v1964_v7  ;;  %v1851_v56 = vsel %vm1847_vm7, %v1818_v59, %v3588_v25  ;;  %v559_v25 = vrot.slane %v557_v47, 1  ;;  %v564_v57 = vrot.slane %v562_v1, 1  ;;  %v3840_v1 = vld [vmem:[%s3096_s19 + $0xc0] sm:$0xff]  }
  0xbe   : > { %1341 = vrot.lane.b32.xlu0 %v3634_v33, %s3049_s25  ;;  %2830 = vmatprep.mubr.msk.bf16.mxu0 %vm2022_vm11, %v1948_v38  ;;  %v1884_v5 = vsel %vm1880_vm8, %v1851_v56, %v3625_v51  ;;  %v1673_v51 = vsel %vm706_vm0, %v1671_v29, %v1672_v6  ;;  %v1675_v29 = vrot.slane %v3651_v60, 1  ;;  %v1651_v28 = vrot.slane %v3661_v22, 1 }
  0xbf   : > { %v3727_v16 = vpop.permute.xlu1 %694  ;;  %v1917_v45 = vsel %vm1913_vm9, %v1884_v5, %v3673_v0  ;;  %v660_v0 = vrot.slane %v658_v62, 1  ;;  %v560_v54 = vor.u32 %v559_v25, %v555_v36  ;;  %v663_v7 = vshrl.u32 %v3756_v42, 16 }
  0xc0   : > { %v3738_v50 = vpop.permute.xlu0 %678  ;;  %v567_v49 = vshrl.u32 %v3764_v35, 16  ;;  %v571_v15 = vrot.slane %v569_v61, 1  ;;  %v574_v60 = vshll.u32 %v2991_v8, 16  ;;  %v1676_v33 = vsel %vm706_vm0, %v1674_v23, %v1675_v29 }
  0xc1   : > { %1627 = vrot.lane.b32.xlu1 %v1566_v44, %s3050_s26  ;;  %v2989_v44 = vld [vmem:[%s3096_s19 + $0xbc] ss:$0 sps:$4 sm:$0x11]   ;;  %v661_v3 = vsel %vm481_vm1, %v656_v26, %v660_v0  ;;  %v565_v9 = vsel %vm481_vm1, %v560_v54, %v564_v57  ;;  %v668_v22 = vor.u32 %v667_v24, %v663_v7  ;;  %v1652_v55 = vsel %vm706_vm0, %v1650_v2, %v1651_v28  ;;  %v2999_v28 = vld [vmem:[%s3096_s19 + $0x68] ss:$0 sps:$4 sm:$0x11]  }
  0xc2   : > { %1611 = vrot.lane.b32.xlu0 %v1470_v18, %s3050_s26  ;;  %v670_v38 = vshll.u32 %v2989_v44, 16  ;;  %v572_v40 = vor.u32 %v571_v15, %v567_v49  ;;  %v576_v37 = vrot.slane %v574_v60, 1  ;;  %v749_v19 = vrot.slane %v3683_v39, 1  ;;  %v2997_v26 = vld [vmem:[%s3096_s19 + $0x5c] ss:$0 sps:$4 sm:$0x11]  }
  0xc3   : > { %v1702_v31 = vpop.permute.xlu1 %1701  ;;  %v725_v59 = vrot.slane %v3700_v63, 1  ;;  %v752_v14 = vrot.slane %v3756_v42, 1  ;;  %v753_v56 = vrot.slane %v2989_v44, 1  ;;  %v728_v62 = vrot.slane %v3764_v35, 1 }
  0xc4   : > { %v1966_v46 = vsel %vm1946_vm10, %v1933_v43, %v1702_v31  ;;  %v1686_v41 = vpop.permute.xlu0 %1685  ;;  %v672_v18 = vrot.slane %v670_v38, 1  ;;  %v577_v12 = vsel %vm481_vm1, %v572_v40, %v576_v37  ;;  %v751_v36 = vsel %vm706_vm0, %v749_v19, %v750_v20  ;;  %v3832_v43 = vld [vmem:[%s3096_s19 + $0x54] sm:$0xff]  }
  0xc5   : > { %v1950_v48 = vsel %vm1946_vm10, %v1917_v45, %v1686_v41  ;;  %1629 = vrot.lane.b32.xlu1 %v1578_v21, %s3050_s26  ;;  %2847 = vmatmul.mubr.msk.bf16.vlgmr.msra.gmra.mxu1 %vm2022_vm11, %v1966_v46  ;;  %v727_v17 = vsel %vm706_vm0, %v725_v59, %v726_v27  ;;  %v729_v5 = vrot.slane %v2991_v8, 1  ;;  %v754_v25 = vsel %vm706_vm0, %v752_v14, %v753_v56  ;;  %v2996_v45 = vld [vmem:[%s3096_s19 + $0xbc] ss:$0 sps:$4 sm:$0x11]  }
  0xc6   : > { %1613 = vrot.lane.b32.xlu0 %v1482_v34, %s3050_s26  ;;  %2831 = vmatmul.mubr.msk.bf16.vlgmr.msra.gmra.mxu0 %vm2022_vm11, %v1950_v48  ;;  %v673_v47 = vsel %vm481_vm1, %v668_v22, %v672_v18  ;;  %v1118_v46 = vshll.u32 %v3825_v32, 16  ;;  %v1022_v0 = vshll.u32 %v3832_v43, 16  ;;  %v1123_v57 = vshll.u32 %v2996_v45, 16  ;;  %v3859_v8 = vld [vmem:[%s3096_s19 + $0xc8] ss:$0 sps:$4 sm:$0x11]  }
  0xc7   : > { %v3779_v52 = vpop.permute.xlu1 %696  ;;  %v730_v48 = vsel %vm706_vm0, %v728_v62, %v729_v5  ;;  %v1130_v61 = vshll.u32 %v3840_v1, 16  ;;  %v1027_v2 = vshll.u32 %v2997_v26, 16  ;;  %v1128_v24 = vshrl.u32 %v3840_v1, 16  ;;  %v3894_v5 = vld [vmem:[%s3096_s19 + $0xc0] sm:$0xff]  }
  0xc8   : > { %v3784_v30 = vpop.permute.xlu0 %680  ;;  %v1120_v54 = vrot.slane %v1118_v46, 1  ;;  %v1024_v29 = vrot.slane %v1022_v0, 1  ;;  %v1125_v49 = vrot.slane %v1123_v57, 1  ;;  %v1135_v60 = vshll.u32 %v3859_v8, 16 }
  0xc9   : > { %1707 = vrot.lane.b32.xlu1 %v1673_v51, %s3051_s27  ;;  %v3848_v51 = vld [vmem:[%s3096_s19 + $0x60] sm:$0xff]   ;;  %v1132_v15 = vrot.slane %v1130_v61, 1  ;;  %v1029_v18 = vrot.slane %v1027_v2, 1  ;;  %v1039_v40 = vshll.u32 %v2999_v28, 16  ;;  %v1214_v62 = vrot.slane %v2996_v45, 1 }
  0xca   : > { %1691 = vrot.lane.b32.xlu0 %v1649_v53, %s3051_s27  ;;  %v1020_v53 = vshrl.u32 %v3832_v43, 16  ;;  %v1032_v38 = vshrl.u32 %v3848_v51, 16  ;;  %v1137_v20 = vrot.slane %v1135_v60, 1  ;;  %v1190_v0 = vrot.slane %v2997_v26, 1 }
  0xcb   : > { %v3794_v6 = vpop.permute.xlu1 %775  ;;  %v1133_v19 = vor.u32 %v1132_v15, %v1128_v24  ;;  %v1216_v45 = vrot.slane %v3840_v1, 1  ;;  %v1582_v57 = vshll.u32 %v3894_v5, 16  ;;  %v1192_v26 = vrot.slane %v3848_v51, 1  ;;  %v3912_v2 = vld [vmem:[%s3096_s19 + $0xc8] ss:$0 sps:$4 sm:$0x11]  }
  0xcc   : > { %v3798_v10 = vpop.permute.xlu0 %759  ;;  %v1025_v22 = vor.u32 %v1024_v29, %v1020_v53  ;;  %v3899_v53 = vld [vmem:[%s3096_s19 + $0x60] sm:$0xff]   ;;  %v1193_v29 = vrot.slane %v2999_v28, 1  ;;  %v3929_v15 = vld [vmem:[%s3096_s19 + $0x6c] sm:$0xff]   ;;  %v1587_v60 = vshll.u32 %v3912_v2, 16 }
  0xcd   : > { %702 = vrot.lane.b32.xlu1 %v661_v3, %s3046_s22  ;;  %v1034_v3 = vshll.u32 %v3848_v51, 16  ;;  %v1138_v56 = vsel %vm481_vm1, %v1133_v19, %v1137_v20  ;;  %v1486_v24 = vshll.u32 %v3899_v53, 16  ;;  %v1584_v28 = vrot.slane %v1582_v57, 1 }
  0xce   : > { %686 = vrot.lane.b32.xlu0 %v565_v9, %s3046_s22  ;;  %v1121_v9 = vor.u32 %v1120_v54, %v1116_v58  ;;  %v1030_v59 = vsel %vm481_vm1, %v1025_v22, %v1029_v18  ;;  %v1217_v54 = vrot.slane %v3859_v8, 1  ;;  %v3922_v8 = vld [vmem:[%s3096_s19 + $0x68] ss:$0 sps:$4 sm:$0x11]   ;;  %v1484_v18 = vshrl.u32 %v3899_v53, 16 }
  0xcf   : > { %v3803_v11 = vpop.permute.xlu1 %777  ;;  %v1491_v19 = vshll.u32 %v3922_v8, 16 }
  0xd0   : > { %v3806_v4 = vpop.permute.xlu0 %761 }
  0xd1   : > { %1709 = vrot.lane.b32.xlu1 %v1676_v33, %s3051_s27 }
  0xd2   : > { %1693 = vrot.lane.b32.xlu0 %v1652_v55, %s3051_s27  ;;  %v1036_v55 = vrot.slane %v1034_v3, 1 }
  0xd3   : > { %v3813_v21 = vpop.permute.xlu1 %887 }
  0xd4   : > { %v3818_v13 = vpop.permute.xlu0 %871  ;;  %v1037_v27 = vor.u32 %v1036_v55, %v1032_v38  ;;  %v1218_v38 = vsel %vm706_vm0, %v1216_v45, %v1217_v54  ;;  %v1488_v55 = vrot.slane %v1486_v24, 1 }
  0xd5   : > { %704 = vrot.lane.b32.xlu1 %v673_v47, %s3046_s22  ;;  %v1126_v47 = vsel %vm481_vm1, %v1121_v9, %v1125_v49  ;;  %v1194_v49 = vsel %vm706_vm0, %v1192_v26, %v1193_v29 }
  0xd6   : > { %688 = vrot.lane.b32.xlu0 %v577_v12, %s3046_s22  ;;  %v1489_v54 = vor.u32 %v1488_v55, %v1484_v18  ;;  %v3014_v18 = vld [vmem:[%s3096_s19 + $0x84] sm:$0xff]  }
  0xd7   : > { %v3827_v34 = vpop.permute.xlu1 %889  ;;  %v1739_v55 = vsel %vm1715_vm3, %v3014_v18, %v3779_v52 }
  0xd8   : > { %v3834_v31 = vpop.permute.xlu0 %873 }
  0xd9   : > { %783 = vrot.lane.b32.xlu1 %v751_v36, %s3045_s21  ;;  %v1041_v36 = vrot.slane %v1039_v40, 1  ;;  %v3012_v40 = vld [vmem:[%s3096_s19 + $0x78] sm:$0xff]  }
  0xda   : > { %767 = vrot.lane.b32.xlu0 %v727_v17, %s3045_s21  ;;  %v1213_v17 = vrot.slane %v3825_v32, 1 }
  0xdb   : > { %v3844_v41 = vpop.permute.xlu1 %1159  ;;  %v1042_v46 = vsel %vm481_vm1, %v1037_v27, %v1041_v36 }
  0xdc   : > { %v3852_v44 = vpop.permute.xlu0 %1143 }
  0xdd   : > { %785 = vrot.lane.b32.xlu1 %v754_v25, %s3045_s21 }
  0xde   : > { %769 = vrot.lane.b32.xlu0 %v730_v48, %s3045_s21  ;;  %v1189_v48 = vrot.slane %v3832_v43, 1 }
  0xdf   : > { %v3862_v23 = vpop.permute.xlu1 %1161 }
  0xe0   : > { %v3866_v7 = vpop.permute.xlu0 %1145 }
  0xe1   : > { %895 = vrot.lane.b32.xlu1 %v3825_v32, %s3044_s20  ;;  %v1215_v32 = vsel %vm706_vm0, %v1213_v17, %v1214_v62  ;;  %v3946_v17 = vld [vmem:[%s3096_s19 + $0xd4] ss:$0 sps:$4 sm:$0x11]  }
  0xe2   : > { %879 = vrot.lane.b32.xlu0 %v3832_v43, %s3044_s20  ;;  %v1191_v43 = vsel %vm706_vm0, %v1189_v48, %v1190_v0  ;;  %v1589_v48 = vrot.slane %v1587_v60, 1  ;;  %v3953_v0 = vld [vmem:[%s3096_s19 + $0x74] ss:$0 sps:$4 sm:$0x11]   ;;  %v1599_v29 = vshll.u32 %v3946_v17, 16 }
  0xe3   : > { %v3875_v33 = vpop.permute.xlu1 %1239 }
  0xe4   : > { %v3877_v37 = vpop.permute.xlu0 %1223 }
  0xe5   : > { %897 = vrot.lane.b32.xlu1 %v3840_v1, %s3044_s20  ;;  %v3919_v1 = vld [vmem:[%s3096_s19 + $0xcc] sm:$0xff]  }
  0xe6   : > { %881 = vrot.lane.b32.xlu0 %v3848_v51, %s3044_s20  ;;  %v1580_v51 = vshrl.u32 %v3894_v5, 16  ;;  %v1594_v20 = vshll.u32 %v3919_v1, 16  ;;  %v1592_v57 = vshrl.u32 %v3919_v1, 16  ;;  %s4140_s20 = scalar_lea.vmem %s4247_s3, %s2766_s17 }
  0xe7   : > { %v3884_v12 = vpop.permute.xlu1 %1241 }
  0xe8   : > { %v3887_v14 = vpop.permute.xlu0 %1225  ;;  %v1596_v26 = vrot.slane %v1594_v20, 1 }
  0xe9   : > { %1167 = vrot.lane.b32.xlu1 %v1126_v47, %s3047_s23  ;;  %v1737_v47 = vsel %vm1715_vm3, %v3012_v40, %v3727_v16 }
  0xea   : > { %1151 = vrot.lane.b32.xlu0 %v1030_v59, %s3047_s23  ;;  %v3013_v59 = vld [vmem:[%s3096_s19 + $0x18] sm:$0xff]   ;;  %v1770_v36 = vsel %vm1748_vm4, %v1737_v47, %v3794_v6  ;;  %v1772_v47 = vsel %vm1748_vm4, %v1739_v55, %v3803_v11  ;;  %v1597_v52 = vor.u32 %v1596_v26, %v1592_v57 }
  0xeb   : > { %v1352_v25 = vpop.permute.xlu1 %1351  ;;  %v1721_v27 = vsel %vm1715_vm3, %v3013_v59, %v3738_v50  ;;  %v1803_v62 = vsel %vm1781_vm5, %v1770_v36, %v3813_v21  ;;  %v1498_v50 = vshll.u32 %v3929_v15, 16  ;;  %v1805_v59 = vsel %vm1781_vm5, %v1772_v47, %v3827_v34  ;;  %v3016_v47 = vld [vmem:[%s3096_s19 + $0x90] sm:$0xff]  }
  0xec   : > { %v1336_v58 = vpop.permute.xlu0 %1335  ;;  %v1754_v16 = vsel %vm1748_vm4, %v1721_v27, %v3798_v10  ;;  %v1677_v34 = vrot.slane %v3894_v5, 1 }
  0xed   : > { %1169 = vrot.lane.b32.xlu1 %v1138_v56, %s3047_s23  ;;  %v1585_v56 = vor.u32 %v1584_v28, %v1580_v51  ;;  %v1787_v6 = vsel %vm1781_vm5, %v1754_v16, %v3818_v13  ;;  %v1500_v51 = vrot.slane %v1498_v50, 1  ;;  %v1503_v28 = vshll.u32 %v3953_v0, 16 }
  0xee   : > { %1153 = vrot.lane.b32.xlu0 %v1042_v46, %s3047_s23  ;;  %v1820_v10 = vsel %vm1814_vm6, %v1787_v6, %v3852_v44  ;;  %v1496_v44 = vshrl.u32 %v3929_v15, 16 }
  0xef   : > { %v3907_v61 = vpop.permute.xlu1 %1353  ;;  %v1853_v13 = vsel %vm1847_vm7, %v1820_v10, %v3877_v37  ;;  %v1590_v60 = vsel %vm481_vm1, %v1585_v56, %v1589_v48  ;;  %v1838_v56 = vsel %vm1814_vm6, %v1805_v59, %v3862_v23  ;;  %v1678_v48 = vrot.slane %v3912_v2, 1 }
  0xf0   : > { %v3914_v3 = vpop.permute.xlu0 %1337  ;;  %v1501_v36 = vor.u32 %v1500_v51, %v1496_v44  ;;  %v1656_v10 = vrot.slane %v3929_v15, 1 }
  0xf1   : > { %1247 = vrot.lane.b32.xlu1 %v1215_v32, %s3048_s24  ;;  %v1836_v32 = vsel %vm1814_vm6, %v1803_v62, %v3844_v41 }
  0xf2   : > { %1231 = vrot.lane.b32.xlu0 %v1191_v43, %s3048_s24  ;;  %v1869_v21 = vsel %vm1847_vm7, %v1836_v32, %v3875_v33  ;;  %v1493_v43 = vrot.slane %v1491_v19, 1  ;;  %v1886_v33 = vsel %vm1880_vm8, %v1853_v13, %v1336_v58  ;;  %v1601_v19 = vrot.slane %v1599_v29, 1 }
  0xf3   : > { %v1624_v9 = vpop.permute.xlu1 %1623  ;;  %v1902_v41 = vsel %vm1880_vm8, %v1869_v21, %v1352_v25  ;;  %v1654_v32 = vrot.slane %v3922_v8, 1  ;;  %v1681_v8 = vrot.slane %v3946_v17, 1  ;;  %v1657_v21 = vrot.slane %v3953_v0, 1 }
  0xf4   : > { %v1608_v22 = vpop.permute.xlu0 %1607  ;;  %v1935_v24 = vsel %vm1913_vm9, %v1902_v41, %v1624_v9  ;;  %v1494_v58 = vsel %vm481_vm1, %v1489_v54, %v1493_v43  ;;  %v3015_v9 = vld [vmem:[%s3096_s19 + $0x24] sm:$0xff]   ;;  %v1602_v50 = vsel %vm481_vm1, %v1597_v52, %v1601_v19  ;;  %v3017_v19 = vld [vmem:[%s3096_s19 + $0x30] sm:$0xff]  }
  0xf5   : > { %1249 = vrot.lane.b32.xlu1 %v1218_v38, %s3048_s24  ;;  %v1919_v37 = vsel %vm1913_vm9, %v1886_v33, %v1608_v22  ;;  %v1723_v22 = vsel %vm1715_vm3, %v3015_v9, %v3784_v30  ;;  %v1505_v30 = vrot.slane %v1503_v28, 1  ;;  %v1658_v41 = vsel %vm706_vm0, %v1656_v10, %v1657_v21 }
  0xf6   : > { %1233 = vrot.lane.b32.xlu0 %v1194_v49, %s3048_s24  ;;  %v1756_v20 = vsel %vm1748_vm4, %v1723_v22, %v3806_v4  ;;  %v1871_v4 = vsel %vm1847_vm7, %v1838_v56, %v3884_v12 }
  0xf7   : > { %v1626_v46 = vpop.permute.xlu1 %1625  ;;  %v1789_v11 = vsel %vm1781_vm5, %v1756_v20, %v3834_v31  ;;  %v1904_v23 = vsel %vm1880_vm8, %v1871_v4, %v3907_v61  ;;  %v1506_v2 = vsel %vm481_vm1, %v1501_v36, %v1505_v30 }
  0xf8   : > { %v1610_v45 = vpop.permute.xlu0 %1609  ;;  %v1822_v62 = vsel %vm1814_vm6, %v1789_v11, %v3866_v7  ;;  %v1653_v7 = vrot.slane %v3899_v53, 1  ;;  %v1937_v6 = vsel %vm1913_vm9, %v1904_v23, %v1626_v46 }
  0xf9   : > { %1359 = vrot.lane.b32.xlu1 %v3894_v5, %s3049_s25  ;;  %v1855_v31 = vsel %vm1847_vm7, %v1822_v62, %v3887_v14 }
  0xfa   : > { %1343 = vrot.lane.b32.xlu0 %v3899_v53, %s3049_s25  ;;  %v1888_v12 = vsel %vm1880_vm8, %v1855_v31, %v3914_v3  ;;  %v1679_v53 = vsel %vm706_vm0, %v1677_v34, %v1678_v48  ;;  %v1680_v3 = vrot.slane %v3919_v1, 1 }
  0xfb   : > { %v1704_v38 = vpop.permute.xlu1 %1703  ;;  %v1921_v14 = vsel %vm1913_vm9, %v1888_v12, %v1610_v45  ;;  %v1655_v45 = vsel %vm706_vm0, %v1653_v7, %v1654_v32 }
  0xfc   : > { %v1968_v25 = vsel %vm1946_vm10, %v1935_v24, %v1704_v38  ;;  %v1688_v49 = vpop.permute.xlu0 %1687  ;;  %v1682_v26 = vsel %vm706_vm0, %v1680_v3, %v1681_v8 }
  0xfd   : > { %v1952_v40 = vsel %vm1946_vm10, %v1919_v37, %v1688_v49  ;;  %1361 = vrot.lane.b32.xlu1 %v3919_v1, %s3049_s25  ;;  %2850 = vmatprep.mubr.msk.bf16.mxu1 %vm2022_vm11, %v1968_v25 }
  0xfe   : > { %1345 = vrot.lane.b32.xlu0 %v3929_v15, %s3049_s25  ;;  %2834 = vmatprep.mubr.msk.bf16.mxu0 %vm2022_vm11, %v1952_v40 }
  0xff   : > { %v4000_v27 = vpop.permute.xlu1 %698 }
 0x100   : > { %v4006_v16 = vpop.permute.xlu0 %682  ;;  %v1741_v52 = vsel %vm1715_vm3, %v3016_v47, %v4000_v27 }
 0x101   : > { %1631 = vrot.lane.b32.xlu1 %v1590_v60, %s3050_s26  ;;  %v1725_v20 = vsel %vm1715_vm3, %v3017_v19, %v4006_v16 }
 0x102   : > { %1615 = vrot.lane.b32.xlu0 %v1494_v58, %s3050_s26 }
 0x103   : > { %v1706_v5 = vpop.permute.xlu1 %1705 }
 0x104   : > { %v1970_v61 = vsel %vm1946_vm10, %v1937_v6, %v1706_v5  ;;  %v1690_v54 = vpop.permute.xlu0 %1689  ;;  %v3018_v5 = vld [vmem:[%s3096_s19 + $0x9c] sm:$0xff]  }
 0x105   : > { %v1954_v57 = vsel %vm1946_vm10, %v1921_v14, %v1690_v54  ;;  %1633 = vrot.lane.b32.xlu1 %v1602_v50, %s3050_s26  ;;  %2851 = vmatmul.mubr.msk.bf16.gmra.mxu1 %vm2022_vm11, %v1970_v61  ;;  %v3019_v14 = vld [vmem:[%s3096_s19 + $0x3c] sm:$0xff]  }
 0x106   : > { %1617 = vrot.lane.b32.xlu0 %v1506_v2, %s3050_s26  ;;  %2835 = vmatmul.mubr.msk.bf16.gmra.mxu0 %vm2022_vm11, %v1954_v57 }
 0x107   : > { %v701_v46 = vpop.permute.xlu1 %700 }
 0x108   : > { %v685_v43 = vpop.permute.xlu0 %684  ;;  %v1743_v2 = vsel %vm1715_vm3, %v3018_v5, %v701_v46 }
 0x109   : > { %1711 = vrot.lane.b32.xlu1 %v1679_v53, %s3051_s27  ;;  %v1727_v61 = vsel %vm1715_vm3, %v3019_v14, %v685_v43 }
 0x10a   : > { %1695 = vrot.lane.b32.xlu0 %v1655_v45, %s3051_s27 }
 0x10b   : > { %v780_v13 = vpop.permute.xlu1 %779 }
 0x10c   : > { %v764_v1 = vpop.permute.xlu0 %763  ;;  %v1774_v59 = vsel %vm1748_vm4, %v1741_v52, %v780_v13 }
 0x10d   : > { %1713 = vrot.lane.b32.xlu1 %v1682_v26, %s3051_s27  ;;  %v1758_v36 = vsel %vm1748_vm4, %v1725_v20, %v764_v1 }
 0x10e   : > { %1697 = vrot.lane.b32.xlu0 %v1658_v41, %s3051_s27 }
 0x10f   : > { %v782_v17 = vpop.permute.xlu1 %781 }
 0x110   : > { %v766_v29 = vpop.permute.xlu0 %765  ;;  %v1776_v54 = vsel %vm1748_vm4, %v1743_v2, %v782_v17 }
 0x111   : > { %v1760_v57 = vsel %vm1748_vm4, %v1727_v61, %v766_v29 }
 0x113   : > { %v892_v15 = vpop.permute.xlu1 %891 }
 0x114   : > { %v876_v44 = vpop.permute.xlu0 %875  ;;  %v1807_v30 = vsel %vm1781_vm5, %v1774_v59, %v892_v15 }
 0x115   : > { %v1791_v56 = vsel %vm1781_vm5, %v1758_v36, %v876_v44 }
 0x117   : > { %v894_v0 = vpop.permute.xlu1 %893 }
 0x118   : > { %v878_v33 = vpop.permute.xlu0 %877  ;;  %v1809_v53 = vsel %vm1781_vm5, %v1776_v54, %v894_v0 }
 0x119   : > { %v1793_v8 = vsel %vm1781_vm5, %v1760_v57, %v878_v33 }
 0x11b   : > { %v1164_v24 = vpop.permute.xlu1 %1163 }
 0x11c   : > { %v1148_v38 = vpop.permute.xlu0 %1147  ;;  %v1840_v62 = vsel %vm1814_vm6, %v1807_v30, %v1164_v24 }
 0x11d   : > { %v1824_v27 = vsel %vm1814_vm6, %v1791_v56, %v1148_v38 }
 0x11f   : > { %v1166_v51 = vpop.permute.xlu1 %1165 }
 0x120   : > { %v1150_v28 = vpop.permute.xlu0 %1149  ;;  %v1842_v46 = vsel %vm1814_vm6, %v1809_v53, %v1166_v51 }
 0x121   : > { %v1826_v10 = vsel %vm1814_vm6, %v1793_v8, %v1150_v28 }
 0x123   : > { %v1244_v37 = vpop.permute.xlu1 %1243 }
 0x124   : > { %v1228_v25 = vpop.permute.xlu0 %1227  ;;  %v1873_v34 = vsel %vm1847_vm7, %v1840_v62, %v1244_v37 }
 0x125   : > { %v1857_v16 = vsel %vm1847_vm7, %v1824_v27, %v1228_v25 }
 0x127   : > { %v1246_v49 = vpop.permute.xlu1 %1245 }
 0x128   : > { %v1230_v60 = vpop.permute.xlu0 %1229  ;;  %v1875_v21 = vsel %vm1847_vm7, %v1842_v46, %v1246_v49 }
 0x129   : > { %v1859_v43 = vsel %vm1847_vm7, %v1826_v10, %v1230_v60 }
 0x12b   : > { %v1356_v18 = vpop.permute.xlu1 %1355 }
 0x12c   : > { %v1340_v55 = vpop.permute.xlu0 %1339  ;;  %v1906_v48 = vsel %vm1880_vm8, %v1873_v34, %v1356_v18 }
 0x12d   : > { %v1890_v31 = vsel %vm1880_vm8, %v1857_v16, %v1340_v55 }
 0x12f   : > { %v1358_v40 = vpop.permute.xlu1 %1357 }
 0x130   : > { %v1342_v58 = vpop.permute.xlu0 %1341  ;;  %v1908_v26 = vsel %vm1880_vm8, %v1875_v21, %v1358_v40 }
 0x131   : > { %v1892_v13 = vsel %vm1880_vm8, %v1859_v43, %v1342_v58 }
 0x133   : > { %v1628_v9 = vpop.permute.xlu1 %1627 }
 0x134   : > { %v1612_v22 = vpop.permute.xlu0 %1611  ;;  %v1939_v23 = vsel %vm1913_vm9, %v1906_v48, %v1628_v9 }
 0x135   : > { %v1923_v7 = vsel %vm1913_vm9, %v1890_v31, %v1612_v22 }
 0x137   : > { %v1630_v11 = vpop.permute.xlu1 %1629 }
 0x138   : > { %v1614_v4 = vpop.permute.xlu0 %1613  ;;  %v1941_v41 = vsel %vm1913_vm9, %v1908_v26, %v1630_v11 }
 0x139   : > { %v1925_v17 = vsel %vm1913_vm9, %v1892_v13, %v1614_v4 }
 0x13b   : > { %v1708_v50 = vpop.permute.xlu1 %1707 }
 0x13c   : > { %v1972_v12 = vsel %vm1946_vm10, %v1939_v23, %v1708_v50  ;;  %v1692_v6 = vpop.permute.xlu0 %1691 }
 0x13d   : > { %v1956_v32 = vsel %vm1946_vm10, %v1923_v7, %v1692_v6  ;;  %2854 = vmatprep.mubr.msk.bf16.mxu1 %vm2022_vm11, %v1972_v12 }
 0x13e   : > { %2838 = vmatprep.mubr.msk.bf16.mxu0 %vm2022_vm11, %v1956_v32 }
 0x13f   : > { %v703_v3 = vpop.permute.xlu1 %702 }
 0x140   : > { %v687_v45 = vpop.permute.xlu0 %686  ;;  %v1745_v56 = vsel %vm1715_vm3, %v3683_v39, %v703_v3 }
 0x141   : > { %v1729_v62 = vsel %vm1715_vm3, %v3700_v63, %v687_v45 }
 0x143   : > { %v1710_v1 = vpop.permute.xlu1 %1709 }
 0x144   : > { %v1974_v29 = vsel %vm1946_vm10, %v1941_v41, %v1710_v1  ;;  %v1694_v15 = vpop.permute.xlu0 %1693 }
 0x145   : > { %v1958_v44 = vsel %vm1946_vm10, %v1925_v17, %v1694_v15  ;;  %2855 = vmatmul.mubr.msk.bf16.gmra.mxu1 %vm2022_vm11, %v1974_v29  ;;  %v4131_v15 = vld [vmem:[%s4246_s2] ss:$0 sm:$0xff] }
 0x146   : > { %2839 = vmatmul.mubr.msk.bf16.gmra.mxu0 %vm2022_vm11, %v1958_v44 }
 0x147   : > { %v705_v0 = vpop.permute.xlu1 %704 }
 0x148   : > { %v689_v33 = vpop.permute.xlu0 %688  ;;  %v1747_v50 = vsel %vm1715_vm3, %v3756_v42, %v705_v0 }
 0x149   : > { %v1731_v63 = vsel %vm1715_vm3, %v3764_v35, %v689_v33 }
 0x14b   : > { %v784_v24 = vpop.permute.xlu1 %783 }
 0x14c   : > { %v768_v38 = vpop.permute.xlu0 %767  ;;  %v1778_v4 = vsel %vm1748_vm4, %v1745_v56, %v784_v24 }
 0x14d   : > { %v1762_v27 = vsel %vm1748_vm4, %v1729_v62, %v768_v38 }
 0x14f   : > { %v786_v51 = vpop.permute.xlu1 %785 }
 0x150   : > { %v770_v28 = vpop.permute.xlu0 %769  ;;  %v1780_v12 = vsel %vm1748_vm4, %v1747_v50, %v786_v51 }
 0x151   : > { %v1764_v2 = vsel %vm1748_vm4, %v1731_v63, %v770_v28 }
 0x153   : > { %v896_v37 = vpop.permute.xlu1 %895 }
 0x154   : > { %v880_v25 = vpop.permute.xlu0 %879  ;;  %v1811_v34 = vsel %vm1781_vm5, %v1778_v4, %v896_v37 }
 0x155   : > { %v1795_v48 = vsel %vm1781_vm5, %v1762_v27, %v880_v25 }
 0x157   : > { %v898_v49 = vpop.permute.xlu1 %897 }
 0x158   : > { %v882_v60 = vpop.permute.xlu0 %881  ;;  %v1813_v32 = vsel %vm1781_vm5, %v1780_v12, %v898_v49 }
 0x159   : > { %v1797_v54 = vsel %vm1781_vm5, %v1764_v2, %v882_v60 }
 0x15b   : > { %v1168_v18 = vpop.permute.xlu1 %1167 }
 0x15c   : > { %v1152_v55 = vpop.permute.xlu0 %1151  ;;  %v1844_v31 = vsel %vm1814_vm6, %v1811_v34, %v1168_v18 }
 0x15d   : > { %v1828_v39 = vsel %vm1814_vm6, %v1795_v48, %v1152_v55 }
 0x15f   : > { %v1170_v40 = vpop.permute.xlu1 %1169 }
 0x160   : > { %v1154_v58 = vpop.permute.xlu0 %1153  ;;  %v1846_v57 = vsel %vm1814_vm6, %v1813_v32, %v1170_v40 }
 0x161   : > { %v1830_v8 = vsel %vm1814_vm6, %v1797_v54, %v1154_v58 }
 0x163   : > { %v1248_v9 = vpop.permute.xlu1 %1247 }
 0x164   : > { %v1232_v22 = vpop.permute.xlu0 %1231  ;;  %v1877_v7 = vsel %vm1847_vm7, %v1844_v31, %v1248_v9 }
 0x165   : > { %v1861_v6 = vsel %vm1847_vm7, %v1828_v39, %v1232_v22 }
 0x167   : > { %v1250_v47 = vpop.permute.xlu1 %1249 }
 0x168   : > { %v1234_v52 = vpop.permute.xlu0 %1233  ;;  %v1879_v46 = vsel %vm1847_vm7, %v1846_v57, %v1250_v47 }
 0x169   : > { %v1863_v10 = vsel %vm1847_vm7, %v1830_v8, %v1234_v52 }
 0x16b   : > { %v1360_v19 = vpop.permute.xlu1 %1359 }
 0x16c   : > { %v1344_v20 = vpop.permute.xlu0 %1343  ;;  %v1910_v5 = vsel %vm1880_vm8, %v1877_v7, %v1360_v19 }
 0x16d   : > { %v1894_v14 = vsel %vm1880_vm8, %v1861_v6, %v1344_v20 }
 0x16f   : > { %v1362_v59 = vpop.permute.xlu1 %1361 }
 0x170   : > { %v1346_v36 = vpop.permute.xlu0 %1345  ;;  %v1912_v21 = vsel %vm1880_vm8, %v1879_v46, %v1362_v59 }
 0x171   : > { %v1896_v43 = vsel %vm1880_vm8, %v1863_v10, %v1346_v36 }
 0x173   : > { %v1632_v30 = vpop.permute.xlu1 %1631 }
 0x174   : > { %v1616_v11 = vpop.permute.xlu0 %1615  ;;  %v1943_v42 = vsel %vm1913_vm9, %v1910_v5, %v1632_v30 }
 0x175   : > { %v1927_v35 = vsel %vm1913_vm9, %v1894_v14, %v1616_v11 }
 0x177   : > { %v1634_v16 = vpop.permute.xlu1 %1633 }
 0x178   : > { %v1618_v23 = vpop.permute.xlu0 %1617  ;;  %v1945_v26 = vsel %vm1913_vm9, %v1912_v21, %v1634_v16 }
 0x179   : > { %v1929_v41 = vsel %vm1913_vm9, %v1896_v43, %v1618_v23 }
 0x17b   : > { %v1712_v61 = vpop.permute.xlu1 %1711 }
 0x17c   : > { %v1976_v53 = vsel %vm1946_vm10, %v1943_v42, %v1712_v61  ;;  %v1696_v3 = vpop.permute.xlu0 %1695 }
 0x17d   : > { %v1960_v45 = vsel %vm1946_vm10, %v1927_v35, %v1696_v3  ;;  %2858 = vmatprep.mubr.msk.bf16.mxu1 %vm2022_vm11, %v1976_v53 }
 0x17e   : > { %2842 = vmatprep.mubr.msk.bf16.mxu0 %vm2022_vm11, %v1960_v45 }
 0x17f   : > { %v1714_v13 = vpop.permute.xlu1 %1713 }
 0x180   : > { %v1978_v1 = vsel %vm1946_vm10, %v1945_v26, %v1714_v13  ;;  %v1698_v17 = vpop.permute.xlu0 %1697 }
 0x181   : > { %v1962_v29 = vsel %vm1946_vm10, %v1929_v41, %v1698_v17  ;;  %2859 = vmatmul.mubr.msk.bf16.gmra.mxu1 %vm2022_vm11, %v1978_v1 }
 0x182   : > { %2843 = vmatmul.mubr.msk.bf16.gmra.mxu0 %vm2022_vm11, %v1962_v29 }
 0x185   : > { %v2848_v44 = vpop.f32.mrf.mxu1 }
 0x186   : > { %v2832_v0 = vpop.f32.mrf.mxu0  ;;  %v2166_v33 = vadd.f32 %v2848_v44, %v4131_v15 }
 0x187   : > { %v2102_v24 = vadd.f32 %v2832_v0, %v4131_v15  ;;  %v2157_v38 = vpop.f32.mrf.mxu1 }
 0x188   : > { %v2238_v51 = vmax.f32 %v2166_v33, 0.0  ;;  %v2093_v28 = vpop.f32.mrf.mxu0  ;;  %v2158_v37 = vadd.f32 %v4131_v15, %v2157_v38 }
 0x189   : > { %v2222_v25 = vmax.f32 %v2102_v24, 0.0  ;;  %v2094_v49 = vadd.f32 %v4131_v15, %v2093_v28  ;;  %v2849_v60 = vpop.f32.mrf.mxu1 }
 0x18a   : > { %v2785_v18 = vpack.c.bf16 %v2238_v51, %v2238_v51  ;;  %v2236_v55 = vmax.f32 %v2158_v37, 0.0  ;;  %v2833_v40 = vpop.f32.mrf.mxu0  ;;  %v2169_v58 = vadd.f32 %v2849_v60, %v4131_v15 }
 0x18b   : > { %v2769_v9 = vpack.c.bf16 %v2222_v25, %v2222_v25  ;;  %v2220_v22 = vmax.f32 %v2094_v49, 0.0  ;;  %v2105_v47 = vadd.f32 %v2833_v40, %v4131_v15  ;;  %v2160_v52 = vpop.f32.mrf.mxu1 }
 0x18c   : > { %2399 = vst.msk [vmem:[%s4140_s20 + $0x48] sm:$0xf] %vm2380_vm12, %v2785_v18  ;;  %v2783_v19 = vpack.c.bf16 %v2236_v55, %v2236_v55  ;;  %v2239_v20 = vmax.f32 %v2169_v58, 0.0  ;;  %v2096_v59 = vpop.f32.mrf.mxu0  ;;  %v2161_v36 = vadd.f32 %v4131_v15, %v2160_v52 }
 0x18d   : > { %2383 = vst.msk [vmem:[%s4140_s20 + $0x8] sm:$0xf] %vm2380_vm12, %v2769_v9  ;;  %v2767_v30 = vpack.c.bf16 %v2220_v22, %v2220_v22  ;;  %v2223_v11 = vmax.f32 %v2105_v47, 0.0  ;;  %v2097_v56 = vadd.f32 %v4131_v15, %v2096_v59 }
 0x18e   : > { %2397 = vst.msk [vmem:[%s4140_s20 + $0x40] sm:$0xf] %vm2380_vm12, %v2783_v19  ;;  %v2786_v62 = vpack.c.bf16 %v2239_v20, %v2239_v20  ;;  %v2237_v4 = vmax.f32 %v2161_v36, 0.0 }
 0x18f   : > { %2381 = vst.msk [vmem:[%s4140_s20] sm:$0xf] %vm2380_vm12, %v2767_v30  ;;  %v2770_v27 = vpack.c.bf16 %v2223_v11, %v2223_v11  ;;  %v2221_v34 = vmax.f32 %v2097_v56, 0.0 }
 0x190   : > { %2400 = vst.msk [vmem:[%s4140_s20 + $0x4c] sm:$0xf] %vm2380_vm12, %v2786_v62  ;;  %v2784_v16 = vpack.c.bf16 %v2237_v4, %v2237_v4 }
 0x191   : > { %2384 = vst.msk [vmem:[%s4140_s20 + $0xc] sm:$0xf] %vm2380_vm12, %v2770_v27  ;;  %v2768_v48 = vpack.c.bf16 %v2221_v34, %v2221_v34 }
 0x192   : > { %2398 = vst.msk [vmem:[%s4140_s20 + $0x44] sm:$0xf] %vm2380_vm12, %v2784_v16 }
 0x193   : > { %2382 = vst.msk [vmem:[%s4140_s20 + $0x4] sm:$0xf] %vm2380_vm12, %v2768_v48 }
 0x1c5   : > { %v2852_v31 = vpop.f32.mrf.mxu1 }
 0x1c6   : > { %v2836_v23 = vpop.f32.mrf.mxu0  ;;  %v2182_v50 = vadd.f32 %v2852_v31, %v4131_v15 }
 0x1c7   : > { %v2118_v39 = vadd.f32 %v2836_v23, %v4131_v15  ;;  %v2173_v7 = vpop.f32.mrf.mxu1 }
 0x1c8   : > { %v2242_v63 = vmax.f32 %v2182_v50, 0.0  ;;  %v2109_v12 = vpop.f32.mrf.mxu0  ;;  %v2174_v6 = vadd.f32 %v4131_v15, %v2173_v7 }
 0x1c9   : > { %v2226_v5 = vmax.f32 %v2118_v39, 0.0  ;;  %v2110_v2 = vadd.f32 %v4131_v15, %v2109_v12  ;;  %v2853_v32 = vpop.f32.mrf.mxu1 }
 0x1ca   : > { %v2789_v14 = vpack.c.bf16 %v2242_v63, %v2242_v63  ;;  %v2240_v42 = vmax.f32 %v2174_v6, 0.0  ;;  %v2837_v61 = vpop.f32.mrf.mxu0  ;;  %v2185_v54 = vadd.f32 %v2853_v32, %v4131_v15 }
 0x1cb   : > { %v2773_v57 = vpack.c.bf16 %v2226_v5, %v2226_v5  ;;  %v2224_v35 = vmax.f32 %v2110_v2, 0.0  ;;  %v2121_v53 = vadd.f32 %v2837_v61, %v4131_v15  ;;  %v2176_v3 = vpop.f32.mrf.mxu1 }
 0x1cc   : > { %2403 = vst.msk [vmem:[%s4140_s20 + $0x58] sm:$0xf] %vm2380_vm12, %v2789_v14  ;;  %v2787_v8 = vpack.c.bf16 %v2240_v42, %v2240_v42  ;;  %v2243_v46 = vmax.f32 %v2185_v54, 0.0  ;;  %v2112_v45 = vpop.f32.mrf.mxu0  ;;  %v2177_v10 = vadd.f32 %v4131_v15, %v2176_v3 }
 0x1cd   : > { %2387 = vst.msk [vmem:[%s4140_s20 + $0x18] sm:$0xf] %vm2380_vm12, %v2773_v57  ;;  %v2771_v21 = vpack.c.bf16 %v2224_v35, %v2224_v35  ;;  %v2227_v43 = vmax.f32 %v2121_v53, 0.0  ;;  %v2113_v26 = vadd.f32 %v4131_v15, %v2112_v45 }
 0x1ce   : > { %2401 = vst.msk [vmem:[%s4140_s20 + $0x50] sm:$0xf] %vm2380_vm12, %v2787_v8  ;;  %v2790_v13 = vpack.c.bf16 %v2243_v46, %v2243_v46  ;;  %v2241_v41 = vmax.f32 %v2177_v10, 0.0 }
 0x1cf   : > { %2385 = vst.msk [vmem:[%s4140_s20 + $0x10] sm:$0xf] %vm2380_vm12, %v2771_v21  ;;  %v2774_v1 = vpack.c.bf16 %v2227_v43, %v2227_v43  ;;  %v2225_v17 = vmax.f32 %v2113_v26, 0.0 }
 0x1d0   : > { %2404 = vst.msk [vmem:[%s4140_s20 + $0x5c] sm:$0xf] %vm2380_vm12, %v2790_v13  ;;  %v2788_v29 = vpack.c.bf16 %v2241_v41, %v2241_v41 }
 0x1d1   : > { %2388 = vst.msk [vmem:[%s4140_s20 + $0x1c] sm:$0xf] %vm2380_vm12, %v2774_v1  ;;  %v2772_v44 = vpack.c.bf16 %v2225_v17, %v2225_v17 }
 0x1d2   : > { %2402 = vst.msk [vmem:[%s4140_s20 + $0x54] sm:$0xf] %vm2380_vm12, %v2788_v29 }
 0x1d3   : > { %2386 = vst.msk [vmem:[%s4140_s20 + $0x14] sm:$0xf] %vm2380_vm12, %v2772_v44 }
 0x205   : > { %v2856_v0 = vpop.f32.mrf.mxu1 }
 0x206   : > { %v2840_v33 = vpop.f32.mrf.mxu0  ;;  %v2198_v24 = vadd.f32 %v2856_v0, %v4131_v15 }
 0x207   : > { %v2134_v38 = vadd.f32 %v2840_v33, %v4131_v15  ;;  %v2189_v51 = vpop.f32.mrf.mxu1 }
 0x208   : > { %v2246_v28 = vmax.f32 %v2198_v24, 0.0  ;;  %v2125_v37 = vpop.f32.mrf.mxu0  ;;  %v2190_v25 = vadd.f32 %v4131_v15, %v2189_v51 }
 0x209   : > { %v2230_v49 = vmax.f32 %v2134_v38, 0.0  ;;  %v2126_v60 = vadd.f32 %v4131_v15, %v2125_v37  ;;  %v2857_v18 = vpop.f32.mrf.mxu1 }
 0x20a   : > { %v2793_v55 = vpack.c.bf16 %v2246_v28, %v2246_v28  ;;  %v2244_v40 = vmax.f32 %v2190_v25, 0.0  ;;  %v2841_v58 = vpop.f32.mrf.mxu0  ;;  %v2201_v9 = vadd.f32 %v2857_v18, %v4131_v15 }
 0x20b   : > { %v2777_v22 = vpack.c.bf16 %v2230_v49, %v2230_v49  ;;  %v2228_v47 = vmax.f32 %v2126_v60, 0.0  ;;  %v2137_v52 = vadd.f32 %v2841_v58, %v4131_v15  ;;  %v2192_v19 = vpop.f32.mrf.mxu1 }
 0x20c   : > { %2407 = vst.msk [vmem:[%s4140_s20 + $0x68] sm:$0xf] %vm2380_vm12, %v2793_v55  ;;  %v2791_v20 = vpack.c.bf16 %v2244_v40, %v2244_v40  ;;  %v2247_v59 = vmax.f32 %v2201_v9, 0.0  ;;  %v2128_v36 = vpop.f32.mrf.mxu0  ;;  %v2193_v30 = vadd.f32 %v4131_v15, %v2192_v19 }
 0x20d   : > { %2391 = vst.msk [vmem:[%s4140_s20 + $0x28] sm:$0xf] %vm2380_vm12, %v2777_v22  ;;  %v2775_v11 = vpack.c.bf16 %v2228_v47, %v2228_v47  ;;  %v2231_v56 = vmax.f32 %v2137_v52, 0.0  ;;  %v2129_v62 = vadd.f32 %v4131_v15, %v2128_v36 }
 0x20e   : > { %2405 = vst.msk [vmem:[%s4140_s20 + $0x60] sm:$0xf] %vm2380_vm12, %v2791_v20  ;;  %v2794_v4 = vpack.c.bf16 %v2247_v59, %v2247_v59  ;;  %v2245_v27 = vmax.f32 %v2193_v30, 0.0 }
 0x20f   : > { %2389 = vst.msk [vmem:[%s4140_s20 + $0x20] sm:$0xf] %vm2380_vm12, %v2775_v11  ;;  %v2778_v34 = vpack.c.bf16 %v2231_v56, %v2231_v56  ;;  %v2229_v16 = vmax.f32 %v2129_v62, 0.0 }
 0x210   : > { %2408 = vst.msk [vmem:[%s4140_s20 + $0x6c] sm:$0xf] %vm2380_vm12, %v2794_v4  ;;  %v2792_v48 = vpack.c.bf16 %v2245_v27, %v2245_v27 }
 0x211   : > { %2392 = vst.msk [vmem:[%s4140_s20 + $0x2c] sm:$0xf] %vm2380_vm12, %v2778_v34  ;;  %v2776_v31 = vpack.c.bf16 %v2229_v16, %v2229_v16 }
 0x212   : > { %2406 = vst.msk [vmem:[%s4140_s20 + $0x64] sm:$0xf] %vm2380_vm12, %v2792_v48 }
 0x213   : > { %2390 = vst.msk [vmem:[%s4140_s20 + $0x24] sm:$0xf] %vm2380_vm12, %v2776_v31 }
 0x241   : > { %v2860_v23 = vpop.f32.mrf.mxu1 }
 0x242   : > { %v2844_v50 = vpop.f32.mrf.mxu0  ;;  %v2214_v39 = vadd.f32 %v2860_v23, %v4131_v15 }
 0x243   : > { %v2150_v7 = vadd.f32 %v2844_v50, %v4131_v15  ;;  %v2205_v63 = vpop.f32.mrf.mxu1 }
 0x244   : > { %v2250_v12 = vmax.f32 %v2214_v39, 0.0  ;;  %v2141_v6 = vpop.f32.mrf.mxu0  ;;  %v2206_v5 = vadd.f32 %v4131_v15, %v2205_v63 }
 0x245   : > { %v2234_v2 = vmax.f32 %v2150_v7, 0.0  ;;  %v2142_v32 = vadd.f32 %v4131_v15, %v2141_v6  ;;  %v2861_v14 = vpop.f32.mrf.mxu1 }
 0x246   : > { %v2797_v42 = vpack.c.bf16 %v2250_v12, %v2250_v12  ;;  %v2248_v61 = vmax.f32 %v2206_v5, 0.0  ;;  %v2845_v54 = vpop.f32.mrf.mxu0  ;;  %v2217_v57 = vadd.f32 %v2861_v14, %v4131_v15 }
 0x247   : > { %v2781_v35 = vpack.c.bf16 %v2234_v2, %v2234_v2  ;;  %v2232_v53 = vmax.f32 %v2142_v32, 0.0  ;;  %v2153_v3 = vadd.f32 %v2845_v54, %v4131_v15  ;;  %v2208_v8 = vpop.f32.mrf.mxu1 }
 0x248   : > { %2411 = vst.msk [vmem:[%s4140_s20 + $0x78] sm:$0xf] %vm2380_vm12, %v2797_v42  ;;  %v2795_v46 = vpack.c.bf16 %v2248_v61, %v2248_v61  ;;  %v2251_v45 = vmax.f32 %v2217_v57, 0.0  ;;  %v2144_v10 = vpop.f32.mrf.mxu0  ;;  %v2209_v21 = vadd.f32 %v4131_v15, %v2208_v8 }
 0x249   : > { %2395 = vst.msk [vmem:[%s4140_s20 + $0x38] sm:$0xf] %vm2380_vm12, %v2781_v35  ;;  %v2779_v43 = vpack.c.bf16 %v2232_v53, %v2232_v53  ;;  %v2235_v26 = vmax.f32 %v2153_v3, 0.0  ;;  %v2145_v13 = vadd.f32 %v4131_v15, %v2144_v10 }
 0x24a   : > { %2409 = vst.msk [vmem:[%s4140_s20 + $0x70] sm:$0xf] %vm2380_vm12, %v2795_v46  ;;  %v2798_v41 = vpack.c.bf16 %v2251_v45, %v2251_v45  ;;  %v2249_v1 = vmax.f32 %v2209_v21, 0.0 }
 0x24b   : > { %2393 = vst.msk [vmem:[%s4140_s20 + $0x30] sm:$0xf] %vm2380_vm12, %v2779_v43  ;;  %v2782_v17 = vpack.c.bf16 %v2235_v26, %v2235_v26  ;;  %v2233_v29 = vmax.f32 %v2145_v13, 0.0 }
 0x24c   : > { %2412 = vst.msk [vmem:[%s4140_s20 + $0x7c] sm:$0xf] %vm2380_vm12, %v2798_v41  ;;  %v2796_v44 = vpack.c.bf16 %v2249_v1, %v2249_v1 }
 0x24d   : > { %2396 = vst.msk [vmem:[%s4140_s20 + $0x3c] sm:$0xf] %vm2380_vm12, %v2782_v17  ;;  %v2780_v0 = vpack.c.bf16 %v2233_v29, %v2233_v29 }
 0x24e   : > { %2410 = vst.msk [vmem:[%s4140_s20 + $0x74] sm:$0xf] %vm2380_vm12, %v2796_v44 }
 0x24f   : > { %2394 = vst.msk [vmem:[%s4140_s20 + $0x34] sm:$0xf] %vm2380_vm12, %v2780_v0 }
 0x250 PF: > { %s13_s14 = sadd.s32 1, %s3042_s14   ;;  %s4248_s12 = smov %s3038_s13 }
 0x251   : > { %p10_p5 = scmp.ge.s32.totalorder %s13_s14, 4   ;;  %s4249_s13 = smov %s4251_s15 }
 0x253   :  { %12 = sbr.rel (!%p10_p5) target bundleno = 2 (0x2), region = 65 }

// kernel: vggnet_forward.6
= control target key start
LH: loop header
LB: loop body
LE: loop exit
PB: predicated region body
PF: predicated region fallthrough
CT: control target
= control target key end

     0   :  { %s3735_s12 = smov 0   ;;  %s3737_s13 = smov 0   ;;  %s4824_s0 = inlined_call_operand.vmem [shape: bf16[2,18,18,64], index: 0, kind: input, shape index: {}]   ;;  %s4825_s1 = inlined_call_operand.vmem [shape: bf16[576,64], index: 1, kind: input, shape index: {}]   ;;  %s4826_s2 = inlined_call_operand.vmem [shape: f32[1,64], index: 2, kind: input, shape index: {}]   ;;  %s4827_s3 = inlined_call_operand.vmem [shape: bf16[2,8,16,64], index: 3, kind: output, shape index: {}]  }
   0x1   :  { %s3739_s14 = smov 0  }
   0x2 LB: > { %s25_s15 = sadd.s32 1, %s3708_s13  ;;  %p2868_p0 = scmp.ge.s32.totalorder %s3712_s14, 1  ;;  %s3712_s14 = sphi %s3739_s14, %s13_s14   ;;  %s3708_s13 = sphi %s3737_s13, %s4871_s13   ;;  %s3704_s12 = sphi %s3735_s12, %s4870_s12  }
   0x3   : > { %p27_p1 = scmp.ge.s32.totalorder %s25_s15, 2  ;;  %p151_p2 = scmp.lt.s32.totalorder %s3712_s14, 3 }
   0x5   : > { %s4873_s15 = smov (%p27_p1, %s25_s15), 0  ;;  %p152_p3 = pnand %p2868_p0, %p151_p2 }
   0x7   : > { %155 = sbr.rel (%p152_p3) target bundleno = 507 (0x1fb), region = 32 }
   0xc   : > { %p180_p4 = scmp.lt.s32.totalorder %s3704_s12, 1  ;;  %v3544_v0 = vld [vmem:[%s4825_s1 + $0x78] sm:$0xff]   ;;  %v3549_v2 = vld [vmem:[%s4825_s1 + $0x70] sm:$0xff]   ;;  %v3554_v4 = vld [vmem:[%s4825_s1 + $0x68] sm:$0xff]   ;;  %vm481_vm0 = vsmask.f32 7424 }
   0xd   : > { %3436 = vmatprep.subr.bf16.mxu1 %v3544_v0  ;;  %3152 = vmatprep.subr.bf16.mxu0 %v3544_v0  ;;  %v3545_v1 = vld [vmem:[%s4825_s1 + $0x38] sm:$0xff]   ;;  %v3550_v3 = vld [vmem:[%s4825_s1 + $0x30] sm:$0xff]   ;;  %v3555_v5 = vld [vmem:[%s4825_s1 + $0x28] sm:$0xff]   ;;  %s3714_s5 = smov 64   ;;  %vm706_vm1 = vcmask 1046528   ;;  %vm1587_vm2 = vcmask 523264  }
   0xe   : > { %s4875_s12 = smov (!%p180_p4, %s3704_s12), 1  ;;  %3444 = vmatpush3.bf16.msra.mxu1 %v3545_v1  ;;  %3153 = vmatpush3.bf16.msra.mxu0 %v3545_v1  ;;  %vm2750_vm3 = vcmask 519168  }
   0xf   : > { %s3452_s22 = smul.u32 216, %s4875_s12  ;;  %3437 = vmatprep.subr.bf16.mxu1 %v3549_v2  ;;  %3154 = vmatprep.subr.bf16.mxu0 %v3549_v2  ;;  %s3135_s28 = sshll.u32 %s4875_s12, 6 }
  0x10   : > { %s4679_s4 = scalar_lea.vmem %s4827_s3, %s3135_s28 }
  0x11   : > { %s3774_s29 = scalar_lea.vmem %s4824_s0, %s3452_s22 }
  0x12   : > { %v3478_v6 = vld [vmem:[%s3774_s29 + $0x9c] sm:$0xff]   ;;  %v3781_v7 = vld [vmem:[%s3774_s29 + $0xc] sm:$0xff]   ;;  %3445 = vmatpush3.bf16.msra.mxu1 %v3550_v3  ;;  %3155 = vmatpush3.bf16.msra.mxu0 %v3550_v3  ;;  %v3481_v9 = vld [vmem:[%s3774_s29 + $0x98] ss:$0 sps:$4 sm:$0x11]  }
  0x13   : > { %859 = vrot.lane.b32.xlu0 %v3478_v6, %s3714_s5  ;;  %3438 = vmatprep.subr.bf16.mxu1 %v3554_v4  ;;  %v3480_v8 = vld [vmem:[%s3774_s29 + $0x90] sm:$0xff]   ;;  %v3482_v10 = vld [vmem:[%s3774_s29] sm:$0xff]   ;;  %v634_v13 = vshll.u32 %v3481_v9, 16  ;;  %v3483_v14 = vld [vmem:[%s3774_s29 + $0x8] ss:$0 sps:$4 sm:$0x11]  }
  0x14   : > { %835 = vrot.lane.b32.xlu1 %v3781_v7, %s3714_s5  ;;  %3156 = vmatprep.subr.bf16.mxu0 %v3554_v4  ;;  %v627_v11 = vshrl.u32 %v3480_v8, 16  ;;  %v629_v12 = vshll.u32 %v3480_v8, 16  ;;  %v483_v15 = vshrl.u32 %v3482_v10, 16  ;;  %v485_v16 = vshll.u32 %v3482_v10, 16  ;;  %v3485_v21 = vld [vmem:[%s3774_s29 + $0x9c] sm:$0xff]   ;;  %v3488_v28 = vld [vmem:[%s3774_s29 + $0xc] sm:$0xff]  }
  0x15   : > { %v636_v18 = vrot.slane %v634_v13, 1  ;;  %v490_v19 = vshll.u32 %v3483_v14, 16  ;;  %v3486_v24 = vld [vmem:[%s3774_s29 + $0xa4] ss:$0 sps:$4 sm:$0x11]   ;;  %v639_v26 = vshrl.u32 %v3485_v21, 16 }
  0x16   : > { %3446 = vmatpush3.bf16.msra.mxu1 %v3555_v5  ;;  %3157 = vmatpush3.bf16.msra.mxu0 %v3555_v5  ;;  %v631_v17 = vrot.slane %v629_v12, 1  ;;  %v487_v20 = vrot.slane %v485_v16, 1  ;;  %v641_v27 = vshll.u32 %v3485_v21, 16  ;;  %v1107_v29 = vrot.slane %v3781_v7, 1  ;;  %v3484_v31 = vld [vmem:[%s3774_s29 + $0xa8] sm:$0xff]   ;;  %v3802_v41 = vld [vmem:[%s3774_s29 + $0x18] sm:$0xff]  }
  0x17   : > { %v492_v23 = vrot.slane %v490_v19, 1  ;;  %v646_v32 = vshll.u32 %v3486_v24, 16  ;;  %v3489_v35 = vld [vmem:[%s3774_s29 + $0x14] ss:$0 sps:$4 sm:$0x11]   ;;  %v495_v37 = vshrl.u32 %v3488_v28, 16 }
  0x18   : > { %v632_v22 = vor.u32 %v631_v17, %v627_v11  ;;  %v488_v25 = vor.u32 %v487_v20, %v483_v15  ;;  %v643_v34 = vrot.slane %v641_v27, 1  ;;  %v497_v38 = vshll.u32 %v3488_v28, 16  ;;  %v3491_v39 = vld [vmem:[%s3774_s29 + $0xa8] sm:$0xff]   ;;  %v3492_v47 = vld [vmem:[%s3774_s29 + $0xb0] ss:$0 sps:$4 sm:$0x11]  }
  0x19   : > { %v648_v36 = vrot.slane %v646_v32, 1  ;;  %v502_v42 = vshll.u32 %v3489_v35, 16  ;;  %v651_v44 = vshrl.u32 %v3491_v39, 16  ;;  %v653_v48 = vshll.u32 %v3491_v39, 16  ;;  %v3494_v49 = vld [vmem:[%s3774_s29 + $0x18] sm:$0xff]   ;;  %v3820_v5 = vld [vmem:[%s3774_s29 + $0x24] sm:$0xff]  }
  0x1a   : > { %v637_v30 = vsel %vm481_vm0, %v632_v22, %v636_v18  ;;  %v493_v33 = vsel %vm481_vm0, %v488_v25, %v492_v23  ;;  %v644_v40 = vor.u32 %v643_v34, %v639_v26  ;;  %v499_v43 = vrot.slane %v497_v38, 1  ;;  %v3490_v54 = vld [vmem:[%s3774_s29 + $0xb4] sm:$0xff]   ;;  %v3495_v55 = vld [vmem:[%s3774_s29 + $0x20] ss:$0 sps:$4 sm:$0x11]   ;;  %v3500_v9 = vld [vmem:[%s3774_s29 + $0x24] sm:$0xff]  }
  0x1b   : > { %698 = vrot.lane.b32.xlu0 %v637_v30, %s3714_s5  ;;  %674 = vrot.lane.b32.xlu1 %v493_v33, %s3714_s5  ;;  %v504_v46 = vrot.slane %v502_v42, 1  ;;  %v655_v51 = vrot.slane %v653_v48, 1  ;;  %v658_v52 = vshll.u32 %v3492_v47, 16  ;;  %v507_v56 = vshrl.u32 %v3494_v49, 16  ;;  %v3497_v60 = vld [vmem:[%s3774_s29 + $0xb4] sm:$0xff]   ;;  %v3496_v13 = vld [vmem:[%s3774_s29 + $0xc0] sm:$0xff]  }
  0x1c   : > { %v649_v45 = vsel %vm481_vm0, %v644_v40, %v648_v36  ;;  %v500_v50 = vor.u32 %v499_v43, %v495_v37  ;;  %v509_v57 = vshll.u32 %v3494_v49, 16  ;;  %v514_v62 = vshll.u32 %v3495_v55, 16  ;;  %v3498_v0 = vld [vmem:[%s3774_s29 + $0xbc] ss:$0 sps:$4 sm:$0x11]   ;;  %v3835_v25 = vld [vmem:[%s3774_s29 + $0x30] sm:$0xff]  }
  0x1d   : > { %v656_v58 = vor.u32 %v655_v51, %v651_v44  ;;  %v660_v59 = vrot.slane %v658_v52, 1  ;;  %v663_v1 = vshrl.u32 %v3497_v60, 16  ;;  %v665_v4 = vshll.u32 %v3497_v60, 16  ;;  %v3501_v12 = vld [vmem:[%s3774_s29 + $0x2c] ss:$0 sps:$4 sm:$0x11]  }
  0x1e   : > { %v505_v53 = vsel %vm481_vm0, %v500_v50, %v504_v46  ;;  %v511_v61 = vrot.slane %v509_v57, 1  ;;  %v516_v3 = vrot.slane %v514_v62, 1  ;;  %v670_v6 = vshll.u32 %v3498_v0, 16  ;;  %v3502_v17 = vld [vmem:[%s3774_s29 + $0x18] sm:$0xff]   ;;  %v3506_v33 = vld [vmem:[%s3774_s29 + $0x30] sm:$0xff]   ;;  %v3508_v36 = vld [vmem:[%s3774_s29 + $0x24] sm:$0xff]  }
  0x1f   : > { %861 = vrot.lane.b32.xlu0 %v3484_v31, %s3714_s5  ;;  %700 = vrot.lane.b32.xlu1 %v649_v45, %s3714_s5  ;;  %v661_v63 = vsel %vm481_vm0, %v656_v58, %v660_v59  ;;  %v667_v8 = vrot.slane %v665_v4, 1  ;;  %v519_v15 = vshrl.u32 %v3500_v9, 16  ;;  %v521_v16 = vshll.u32 %v3500_v9, 16  ;;  %v3503_v19 = vld [vmem:[%s3774_s29 + $0x20] ss:$0 sps:$4 sm:$0x11]  }
  0x20   : > { %v512_v2 = vor.u32 %v511_v61, %v507_v56  ;;  %v672_v11 = vrot.slane %v670_v6, 1  ;;  %v526_v18 = vshll.u32 %v3501_v12, 16  ;;  %v1316_v21 = vshrl.u32 %v3502_v17, 16  ;;  %v3504_v23 = vld [vmem:[%s3774_s29 + $0x14] ss:$0 sps:$4 sm:$0x11]  }
  0x21   : > { %v668_v14 = vor.u32 %v667_v8, %v663_v1  ;;  %v523_v20 = vrot.slane %v521_v16, 1  ;;  %v1318_v22 = vshll.u32 %v3502_v17, 16  ;;  %v1323_v27 = vshll.u32 %v3503_v19, 16  ;;  %v3507_v35 = vld [vmem:[%s3774_s29 + $0x38] ss:$0 sps:$4 sm:$0x11]  }
  0x22   : > { %v517_v10 = vsel %vm481_vm0, %v512_v2, %v516_v3  ;;  %v528_v26 = vrot.slane %v526_v18, 1  ;;  %v1108_v31 = vrot.slane %v3504_v23, 1  ;;  %v531_v38 = vshrl.u32 %v3506_v33, 16  ;;  %v3509_v42 = vld [vmem:[%s3774_s29 + $0x2c] ss:$0 sps:$4 sm:$0x11]  }
  0x23   : > { %837 = vrot.lane.b32.xlu0 %v3802_v41, %s3714_s5  ;;  %676 = vrot.lane.b32.xlu1 %v505_v53, %s3714_s5  ;;  %v673_v24 = vsel %vm481_vm0, %v668_v14, %v672_v11  ;;  %v524_v28 = vor.u32 %v523_v20, %v519_v15  ;;  %v1320_v30 = vrot.slane %v1318_v22, 1  ;;  %v1325_v32 = vrot.slane %v1323_v27, 1  ;;  %v3510_v45 = vld [vmem:[%s3774_s29 + $0x20] ss:$0 sps:$4 sm:$0x11]   ;;  %v3514_v56 = vld [vmem:[%s3774_s29 + $0x30] sm:$0xff]  }
  0x24   : > { %v533_v39 = vshll.u32 %v3506_v33, 16  ;;  %v538_v40 = vshll.u32 %v3507_v35, 16  ;;  %v1330_v43 = vshll.u32 %v3508_v36, 16  ;;  %v1328_v47 = vshrl.u32 %v3508_v36, 16  ;;  %v3853_v51 = vld [vmem:[%s3774_s29 + $0x3c] sm:$0xff]   ;;  %v3518_v3 = vld [vmem:[%s3774_s29 + $0x48] sm:$0xff]  }
  0x25   : > { %v1321_v34 = vor.u32 %v1320_v30, %v1316_v21  ;;  %v529_v37 = vsel %vm481_vm0, %v524_v28, %v528_v26  ;;  %v1335_v49 = vshll.u32 %v3509_v42, 16  ;;  %v1109_v50 = vsel %vm706_vm1, %v1107_v29, %v1108_v31  ;;  %v3513_v59 = vld [vmem:[%s3774_s29 + $0x44] ss:$0 sps:$4 sm:$0x11]   ;;  %v3520_v17 = vld [vmem:[%s3774_s29 + $0x3c] sm:$0xff]   ;;  %v3524_v26 = vld [vmem:[%s3774_s29 + $0x54] sm:$0xff]  }
  0x26   : > { %v535_v44 = vrot.slane %v533_v39, 1  ;;  %v1332_v48 = vrot.slane %v1330_v43, 1  ;;  %v540_v53 = vrot.slane %v538_v40, 1  ;;  %v1110_v55 = vrot.slane %v3802_v41, 1  ;;  %v3526_v33 = vld [vmem:[%s3774_s29 + $0x48] sm:$0xff]   ;;  %v3891_v39 = vld [vmem:[%s3774_s29 + $0x54] sm:$0xff]  }
  0x27   : > { %863 = vrot.lane.b32.xlu0 %v3490_v54, %s3714_s5  ;;  %702 = vrot.lane.b32.xlu1 %v661_v63, %s3714_s5  ;;  %v1326_v46 = vsel %vm481_vm0, %v1321_v34, %v1325_v32  ;;  %v3512_v54 = vld [vmem:[%s3774_s29 + $0x3c] sm:$0xff]   ;;  %v1337_v57 = vrot.slane %v1335_v49, 1  ;;  %v1111_v58 = vrot.slane %v3510_v45, 1  ;;  %v550_v63 = vshll.u32 %v3513_v59, 16 }
  0x28   : > { %v536_v52 = vor.u32 %v535_v44, %v531_v38  ;;  %v545_v60 = vshll.u32 %v3512_v54, 16  ;;  %v1333_v7 = vor.u32 %v1332_v48, %v1328_v47  ;;  %v543_v61 = vshrl.u32 %v3512_v54, 16  ;;  %v3515_v41 = vld [vmem:[%s3774_s29 + $0x38] ss:$0 sps:$4 sm:$0x11]   ;;  %v3530_v54 = vld [vmem:[%s3774_s29 + $0x60] sm:$0xff]  }
  0x29   : > { %v1340_v0 = vshrl.u32 %v3514_v56, 16  ;;  %v1342_v1 = vshll.u32 %v3514_v56, 16  ;;  %v3516_v2 = vld [vmem:[%s3774_s29 + $0x2c] ss:$0 sps:$4 sm:$0x11]   ;;  %v1347_v8 = vshll.u32 %v3515_v41, 16  ;;  %v1112_v9 = vsel %vm706_vm1, %v1110_v55, %v1111_v58 }
  0x2a   : > { %v541_v29 = vsel %vm481_vm0, %v536_v52, %v540_v53  ;;  %v547_v62 = vrot.slane %v545_v60, 1  ;;  %v1338_v4 = vsel %vm481_vm0, %v1333_v7, %v1337_v57  ;;  %v552_v12 = vrot.slane %v550_v63, 1  ;;  %v3519_v14 = vld [vmem:[%s3774_s29 + $0x50] ss:$0 sps:$4 sm:$0x11]   ;;  %v3532_v55 = vld [vmem:[%s3774_s29 + $0x54] sm:$0xff]  }
  0x2b   : > { %839 = vrot.lane.b32.xlu0 %v3820_v5, %s3714_s5  ;;  %678 = vrot.lane.b32.xlu1 %v517_v10, %s3714_s5  ;;  %v1344_v6 = vrot.slane %v1342_v1, 1  ;;  %v3871_v10 = vld [vmem:[%s3774_s29 + $0x48] sm:$0xff]   ;;  %v557_v15 = vshll.u32 %v3518_v3, 16  ;;  %v1114_v16 = vrot.slane %v3516_v2, 1  ;;  %v1349_v19 = vrot.slane %v1347_v8, 1 }
  0x2c   : > { %v548_v11 = vor.u32 %v547_v62, %v543_v61  ;;  %v555_v20 = vshrl.u32 %v3518_v3, 16  ;;  %v3521_v22 = vld [vmem:[%s3774_s29 + $0x44] ss:$0 sps:$4 sm:$0x11]   ;;  %v1352_v27 = vshrl.u32 %v3520_v17, 16  ;;  %v569_v38 = vshll.u32 %v3524_v26, 16 }
  0x2d   : > { %v1345_v18 = vor.u32 %v1344_v6, %v1340_v0  ;;  %v559_v21 = vrot.slane %v557_v15, 1  ;;  %v1359_v28 = vshll.u32 %v3521_v22, 16  ;;  %v3522_v30 = vld [vmem:[%s3774_s29 + $0x38] ss:$0 sps:$4 sm:$0x11]   ;;  %v1116_v42 = vrot.slane %v3835_v25, 1 }
  0x2e   : > { %v553_v23 = vsel %vm481_vm0, %v548_v11, %v552_v12  ;;  %v3527_v45 = vld [vmem:[%s3774_s29 + $0x50] ss:$0 sps:$4 sm:$0x11]   ;;  %v1117_v48 = vrot.slane %v3522_v30, 1  ;;  %v567_v49 = vshrl.u32 %v3524_v26, 16  ;;  %v1364_v52 = vshrl.u32 %v3526_v33, 16 }
  0x2f   : > { %865 = vrot.lane.b32.xlu0 %v3496_v13, %s3714_s5  ;;  %704 = vrot.lane.b32.xlu1 %v673_v24, %s3714_s5  ;;  %v1113_v13 = vrot.slane %v3820_v5, 1  ;;  %v562_v24 = vshll.u32 %v3519_v14, 16  ;;  %v1354_v5 = vshll.u32 %v3520_v17, 16  ;;  %v1350_v31 = vsel %vm481_vm0, %v1345_v18, %v1349_v19  ;;  %v3528_v53 = vld [vmem:[%s3774_s29 + $0x44] ss:$0 sps:$4 sm:$0x11]  }
  0x30   : > { %v560_v35 = vor.u32 %v559_v21, %v555_v20  ;;  %v1361_v40 = vrot.slane %v1359_v28, 1  ;;  %v1371_v58 = vshll.u32 %v3527_v45, 16  ;;  %v3531_v59 = vld [vmem:[%s3774_s29 + $0x68] ss:$0 sps:$4 sm:$0x11]   ;;  %v581_v60 = vshll.u32 %v3530_v54, 16 }
  0x31   : > { %v1356_v32 = vrot.slane %v1354_v5, 1  ;;  %v1115_v34 = vsel %vm706_vm1, %v1113_v13, %v1114_v16  ;;  %v564_v36 = vrot.slane %v562_v24, 1  ;;  %v1118_v7 = vsel %vm706_vm1, %v1116_v42, %v1117_v48  ;;  %v3907_v61 = vld [vmem:[%s3774_s29 + $0x60] sm:$0xff]   ;;  %v3533_v63 = vld [vmem:[%s3774_s29 + $0x5c] ss:$0 sps:$4 sm:$0x11]  }
  0x32   : > { %v1119_v62 = vrot.slane %v3853_v51, 1  ;;  %v1378_v41 = vshll.u32 %v3532_v55, 16  ;;  %v1373_v1 = vrot.slane %v1371_v58, 1  ;;  %v1120_v2 = vrot.slane %v3528_v53, 1  ;;  %v3538_v14 = vld [vmem:[%s3774_s29 + $0x60] sm:$0xff]   ;;  %v3924_v21 = vld [vmem:[%s3774_s29 + $0x6c] sm:$0xff]  }
  0x33   : > { %841 = vrot.lane.b32.xlu0 %v3835_v25, %s3714_s5  ;;  %680 = vrot.lane.b32.xlu1 %v529_v37, %s3714_s5  ;;  %v3525_v37 = vld [vmem:[%s3774_s29 + $0x5c] ss:$0 sps:$4 sm:$0x11]   ;;  %v1357_v44 = vor.u32 %v1356_v32, %v1352_v27  ;;  %v565_v47 = vsel %vm481_vm0, %v560_v35, %v564_v36  ;;  %v583_v6 = vrot.slane %v581_v60, 1  ;;  %v586_v8 = vshll.u32 %v3531_v59, 16 }
  0x34   : > { %v574_v43 = vshll.u32 %v3525_v37, 16  ;;  %v1380_v11 = vrot.slane %v1378_v41, 1  ;;  %v1383_v12 = vshll.u32 %v3533_v63, 16  ;;  %v3534_v13 = vld [vmem:[%s3774_s29 + $0x50] ss:$0 sps:$4 sm:$0x11]   ;;  %v1121_v16 = vsel %vm706_vm1, %v1119_v62, %v1120_v2 }
  0x35   : > { %v1362_v56 = vsel %vm481_vm0, %v1357_v44, %v1361_v40  ;;  %v588_v18 = vrot.slane %v586_v8, 1  ;;  %v3537_v19 = vld [vmem:[%s3774_s29 + $0x74] ss:$0 sps:$4 sm:$0x11]   ;;  %v1122_v24 = vrot.slane %v3871_v10, 1  ;;  %v1123_v5 = vrot.slane %v3534_v13, 1 }
  0x36   : > { %v576_v25 = vrot.slane %v574_v43, 1  ;;  %v3539_v22 = vld [vmem:[%s3774_s29 + $0x68] ss:$0 sps:$4 sm:$0x11]   ;;  %v1390_v28 = vshll.u32 %v3538_v14, 16  ;;  %v3943_v48 = vld [vmem:[%s3774_s29 + $0x78] sm:$0xff]  }
  0x37   : > { %1507 = vrot.lane.b32.xlu0 %v1326_v46, %s3714_s5  ;;  %1155 = vrot.lane.b32.xlu1 %v1109_v50, %s3714_s5  ;;  %v1366_v46 = vshll.u32 %v3526_v33, 16  ;;  %v571_v50 = vrot.slane %v569_v38, 1  ;;  %v3540_v30 = vld [vmem:[%s3774_s29 + $0x5c] ss:$0 sps:$4 sm:$0x11]   ;;  %v1395_v35 = vshll.u32 %v3539_v22, 16  ;;  %v1124_v44 = vsel %vm706_vm1, %v1122_v24, %v1123_v5 }
  0x38   : > { %v3543_v36 = vld [vmem:[%s3774_s29 + $0x80] ss:$0 sps:$4 sm:$0x11]   ;;  %v1388_v38 = vshrl.u32 %v3538_v14, 16  ;;  %v1392_v40 = vrot.slane %v1390_v28, 1  ;;  %v1128_v58 = vrot.slane %v3907_v61, 1 }
  0x39   : > { %v1368_v57 = vrot.slane %v1366_v46, 1  ;;  %v3547_v43 = vld [vmem:[%s3774_s29 + $0x74] ss:$0 sps:$4 sm:$0x11]   ;;  %v610_v53 = vshll.u32 %v3543_v36, 16  ;;  %v3959_v62 = vld [vmem:[%s3774_s29 + $0x78] sm:$0xff]  }
  0x3a   : > { %v1407_v60 = vshll.u32 %v3547_v43, 16  ;;  %v1412_v13 = vshrl.u32 %v3959_v62, 16  ;;  %v1414_v14 = vshll.u32 %v3959_v62, 16  ;;  %v3564_v24 = vld [vmem:[%s3774_s29 + $0x84] sm:$0xff]  }
  0x3b   : > { %843 = vrot.lane.b32.xlu0 %v3853_v51, %s3714_s5  ;;  %682 = vrot.lane.b32.xlu1 %v541_v29, %s3714_s5  ;;  %v572_v29 = vor.u32 %v571_v50, %v567_v49  ;;  %v1369_v0 = vor.u32 %v1368_v57, %v1364_v52  ;;  %v3536_v51 = vld [vmem:[%s3774_s29 + $0x6c] sm:$0xff]   ;;  %v1397_v49 = vrot.slane %v1395_v35, 1  ;;  %v1126_v50 = vrot.slane %v3540_v30, 1 }
  0x3c   : > { %v593_v20 = vshll.u32 %v3536_v51, 16  ;;  %v591_v26 = vshrl.u32 %v3536_v51, 16  ;;  %v612_v63 = vrot.slane %v610_v53, 1  ;;  %v1409_v8 = vrot.slane %v1407_v60, 1  ;;  %v3568_v36 = vld [vmem:[%s4825_s1 + $0x48] sm:$0xff]   ;;  %v3575_v60 = vld [vmem:[%s4825_s1 + $0xf8] sm:$0xff]  }
  0x3d   : > { %v577_v3 = vsel %vm481_vm0, %v572_v29, %v576_v25  ;;  %v1374_v15 = vsel %vm481_vm0, %v1369_v0, %v1373_v1  ;;  %v3565_v5 = vld [vmem:[%s3774_s29 + $0x8c] ss:$0 sps:$4 sm:$0x11]   ;;  %v1416_v28 = vrot.slane %v1414_v14, 1  ;;  %v1424_v35 = vshrl.u32 %v3564_v24, 16 }
  0x3e   : > { %v595_v33 = vrot.slane %v593_v20, 1  ;;  %v3563_v20 = vld [vmem:[%s4825_s1 + $0x50] sm:$0xff]  }
  0x3f   : > { %1509 = vrot.lane.b32.xlu0 %v1338_v4, %s3714_s5  ;;  %1157 = vrot.lane.b32.xlu1 %v1112_v9, %s3714_s5  ;;  %v579_v4 = vshrl.u32 %v3530_v54, 16  ;;  %v1376_v9 = vshrl.u32 %v3532_v55, 16  ;;  %v3946_v54 = vld [vmem:[%s3774_s29 + $0x84] sm:$0xff]   ;;  %v1417_v43 = vor.u32 %v1416_v28, %v1412_v13  ;;  %v4082_v28 = vld [vmem:[%s3774_s29 + $0xb0] ss:$0 sps:$4 sm:$0x11]  }
  0x40   : > { %v596_v45 = vor.u32 %v595_v33, %v591_v26  ;;  %v3548_v55 = vld [vmem:[%s3774_s29 + $0x68] ss:$0 sps:$4 sm:$0x11]   ;;  %v617_v29 = vshll.u32 %v3946_v54, 16  ;;  %v3566_v26 = vld [vmem:[%s4825_s1 + $0x10] sm:$0xff]  }
  0x41   : > { %v584_v17 = vor.u32 %v583_v6, %v579_v4  ;;  %v1381_v27 = vor.u32 %v1380_v11, %v1376_v9  ;;  %v1129_v51 = vrot.slane %v3548_v55, 1  ;;  %v3971_v9 = vld [vmem:[%s3774_s29 + $0x84] sm:$0xff]   ;;  %v615_v11 = vshrl.u32 %v3946_v54, 16 }
  0x43   : > { %845 = vrot.lane.b32.xlu0 %v3871_v10, %s3714_s5  ;;  %684 = vrot.lane.b32.xlu1 %v553_v23, %s3714_s5  ;;  %v1385_v23 = vrot.slane %v1383_v12, 1  ;;  %v589_v32 = vsel %vm481_vm0, %v584_v17, %v588_v18  ;;  %v3546_v10 = vld [vmem:[%s3774_s29 + $0x6c] sm:$0xff]   ;;  %v619_v12 = vrot.slane %v617_v29, 1  ;;  %v1130_v30 = vsel %vm706_vm1, %v1128_v58, %v1129_v51 }
  0x44   : > { %v1402_v25 = vshll.u32 %v3546_v10, 16  ;;  %v1400_v41 = vshrl.u32 %v3546_v10, 16 }
  0x45   : > { %v1386_v37 = vsel %vm481_vm0, %v1381_v27, %v1385_v23  ;;  %v1131_v23 = vrot.slane %v3924_v21, 1 }
  0x46   : > { %v1404_v0 = vrot.slane %v1402_v25, 1 }
  0x47   : > { %1511 = vrot.lane.b32.xlu0 %v1350_v31, %s3714_s5  ;;  %1159 = vrot.lane.b32.xlu1 %v1115_v34, %s3714_s5  ;;  %v3542_v31 = vld [vmem:[%s3774_s29 + $0x78] sm:$0xff]   ;;  %v598_v34 = vshll.u32 %v3537_v19, 16 }
  0x48   : > { %v605_v42 = vshll.u32 %v3542_v31, 16  ;;  %v603_v52 = vshrl.u32 %v3542_v31, 16  ;;  %v3562_v19 = vld [vmem:[%s4825_s1 + $0x18] sm:$0xff]   ;;  %v4000_v31 = vld [vmem:[%s3774_s29 + $0x90] sm:$0xff]  }
  0x49   : > { %v600_v46 = vrot.slane %v598_v34, 1  ;;  %v4003_v34 = vld [vmem:[%s3774_s29 + $0x74] ss:$0 sps:$4 sm:$0x11]  }
  0x4a   : > { %v607_v57 = vrot.slane %v605_v42, 1  ;;  %v3570_v42 = vld [vmem:[%s4825_s1 + $0x40] sm:$0xff]  }
  0x4b   : > { %847 = vrot.lane.b32.xlu0 %v3891_v39, %s3714_s5  ;;  %686 = vrot.lane.b32.xlu1 %v565_v47, %s3714_s5  ;;  %v1125_v47 = vrot.slane %v3891_v39, 1  ;;  %v1393_v39 = vor.u32 %v1392_v40, %v1388_v38  ;;  %v601_v59 = vsel %vm481_vm0, %v596_v45, %v600_v46  ;;  %v4010_v38 = vld [vmem:[%s3774_s29 + $0x80] ss:$0 sps:$4 sm:$0x11]   ;;  %v3569_v40 = vld [vmem:[%s4825_s1 + $0x8] sm:$0xff]   ;;  %v1132_v45 = vrot.slane %v4003_v34, 1 }
  0x4c   : > { %v608_v6 = vor.u32 %v607_v57, %v603_v52  ;;  %v3571_v46 = vld [vmem:[%s3774_s29 + $0x90] sm:$0xff]   ;;  %v1134_v57 = vrot.slane %v3943_v48, 1  ;;  %v1135_v58 = vrot.slane %v4010_v38, 1 }
  0x4d   : > { %v1398_v1 = vsel %vm481_vm0, %v1393_v39, %v1397_v49  ;;  %v1127_v4 = vsel %vm706_vm1, %v1125_v47, %v1126_v50  ;;  %v3572_v47 = vld [vmem:[%s3774_s29 + $0x98] ss:$0 sps:$4 sm:$0x11]   ;;  %v3573_v49 = vld [vmem:[%s4825_s1] sm:$0xff]   ;;  %v1436_v52 = vshrl.u32 %v3571_v46, 16  ;;  %v1438_v53 = vshll.u32 %v3571_v46, 16 }
  0x4e   : > { %v613_v22 = vsel %vm481_vm0, %v608_v6, %v612_v63  ;;  %v1443_v55 = vshll.u32 %v3572_v47, 16  ;;  %v1133_v39 = vsel %vm706_vm1, %v1131_v23, %v1132_v45  ;;  %v3579_v6 = vld [vmem:[%s3774_s29 + $0xa4] ss:$0 sps:$4 sm:$0x11]  }
  0x4f   : > { %1513 = vrot.lane.b32.xlu0 %v1362_v56, %s3714_s5  ;;  %1161 = vrot.lane.b32.xlu1 %v1118_v7, %s3714_s5  ;;  %v3556_v56 = vld [vmem:[%s4825_s1 + $0x60] sm:$0xff]   ;;  %v3553_v7 = vld [vmem:[%s3774_s29 + $0x8c] ss:$0 sps:$4 sm:$0x11]  }
  0x50   : > { %3439 = vmatprep.subr.bf16.mxu1 %v3556_v56  ;;  %3158 = vmatprep.subr.bf16.mxu0 %v3556_v56  ;;  %v622_v2 = vshll.u32 %v3553_v7, 16  ;;  %v4031_v56 = vld [vmem:[%s3774_s29 + $0x8c] ss:$0 sps:$4 sm:$0x11]   ;;  %v4041_v7 = vld [vmem:[%s3774_s29 + $0x90] sm:$0xff]  }
  0x51   : > { %v743_v29 = vrot.slane %v4041_v7, 1 }
  0x52   : > { %v624_v17 = vrot.slane %v622_v2, 1  ;;  %v4055_v2 = vld [vmem:[%s3774_s29 + $0x9c] sm:$0xff]  }
  0x53   : > { %849 = vrot.lane.b32.xlu0 %v3907_v61, %s3714_s5  ;;  %688 = vrot.lane.b32.xlu1 %v577_v3, %s3714_s5  ;;  %v3559_v61 = vld [vmem:[%s4825_s1 + $0x20] sm:$0xff]   ;;  %v1450_v51 = vshll.u32 %v4055_v2, 16 }
  0x54   : > { %v3558_v3 = vld [vmem:[%s3774_s29 + $0x80] ss:$0 sps:$4 sm:$0x11]   ;;  %3447 = vmatpush3.bf16.msra.mxu1 %v3559_v61  ;;  %3159 = vmatpush3.bf16.msra.mxu0 %v3559_v61  ;;  %v1136_v61 = vsel %vm706_vm1, %v1134_v57, %v1135_v58 }
  0x55   : > { %v1419_v18 = vshll.u32 %v3558_v3, 16  ;;  %v3611_v3 = vld [vmem:[%s3774_s29 + $0x98] ss:$0 sps:$4 sm:$0x11]   ;;  %v1452_v14 = vrot.slane %v1450_v51, 1 }
  0x57   : > { %1515 = vrot.lane.b32.xlu0 %v1374_v15, %s3714_s5  ;;  %1163 = vrot.lane.b32.xlu1 %v1121_v16, %s3714_s5  ;;  %v3561_v15 = vld [vmem:[%s4825_s1 + $0x58] sm:$0xff]   ;;  %v1405_v16 = vor.u32 %v1404_v0, %v1400_v41  ;;  %v1421_v33 = vrot.slane %v1419_v18, 1  ;;  %v1445_v41 = vrot.slane %v1443_v55, 1  ;;  %v3613_v18 = vld [vmem:[%s3774_s29 + $0x8] ss:$0 sps:$4 sm:$0x11]  }
  0x58   : > { %3440 = vmatprep.subr.bf16.mxu1 %v3561_v15  ;;  %3160 = vmatprep.subr.bf16.mxu0 %v3561_v15  ;;  %v4050_v0 = vld [vmem:[%s4825_s1 + $0x118] sm:$0xff]  }
  0x59   : > { %3448 = vmatpush3.bf16.msra.mxu1 %v3562_v19  ;;  %3161 = vmatpush3.bf16.msra.mxu0 %v3562_v19  ;;  %v1410_v27 = vsel %vm481_vm0, %v1405_v16, %v1409_v8  ;;  %v1422_v54 = vsel %vm481_vm0, %v1417_v43, %v1421_v33  ;;  %v1448_v8 = vshrl.u32 %v4055_v2, 16  ;;  %v4068_v15 = vld [vmem:[%s3774_s29 + $0x98] ss:$0 sps:$4 sm:$0x11]   ;;  %v3612_v16 = vld [vmem:[%s3774_s29] sm:$0xff]   ;;  %v708_v19 = vrot.slane %v3613_v18, 1 }
  0x5a   : > { %3441 = vmatprep.subr.bf16.mxu1 %v3563_v20  ;;  %3162 = vmatprep.subr.bf16.mxu0 %v3563_v20  ;;  %v1141_v23 = vrot.slane %v4068_v15, 1  ;;  %v1467_v33 = vshll.u32 %v4082_v28, 16  ;;  %v4141_v18 = vld [vmem:[%s3774_s29 + $0xc0] sm:$0xff]  }
  0x5b   : > { %851 = vrot.lane.b32.xlu0 %v3924_v21, %s3714_s5  ;;  %690 = vrot.lane.b32.xlu1 %v589_v32, %s3714_s5  ;;  %v1426_v21 = vshll.u32 %v3564_v24, 16  ;;  %v620_v32 = vor.u32 %v619_v12, %v615_v11  ;;  %v1455_v11 = vshll.u32 %v3579_v6, 16  ;;  %v1140_v12 = vrot.slane %v4000_v31, 1 }
  0x5d   : > { %3449 = vmatpush3.bf16.msra.mxu1 %v3566_v26  ;;  %3163 = vmatpush3.bf16.msra.mxu0 %v3566_v26  ;;  %v1428_v10 = vrot.slane %v1426_v21, 1  ;;  %v1457_v20 = vrot.slane %v1455_v11, 1  ;;  %v1142_v26 = vsel %vm706_vm1, %v1140_v12, %v1141_v23  ;;  %v3618_v11 = vld [vmem:[%s3774_s29 + $0xc] sm:$0xff]  }
  0x5e   : > { %3442 = vmatprep.subr.bf16.mxu1 %v3568_v36  ;;  %3164 = vmatprep.subr.bf16.mxu0 %v3568_v36  ;;  %v710_v12 = vrot.slane %v3618_v11, 1 }
  0x5f   : > { %1517 = vrot.lane.b32.xlu0 %v1386_v37, %s3714_s5  ;;  %1165 = vrot.lane.b32.xlu1 %v1124_v44, %s3714_s5  ;;  %v1431_v37 = vshll.u32 %v3565_v5, 16  ;;  %v625_v44 = vsel %vm481_vm0, %v620_v32, %v624_v17  ;;  %v1429_v25 = vor.u32 %v1428_v10, %v1424_v35  ;;  %v707_v17 = vrot.slane %v3612_v16, 1  ;;  %v4092_v10 = vld [vmem:[%s3774_s29 + $0xa4] ss:$0 sps:$4 sm:$0x11]  }
  0x60   : > { %v1144_v45 = vrot.slane %v4092_v10, 1 }
  0x61   : > { %3450 = vmatpush3.bf16.msra.mxu1 %v3569_v40  ;;  %3165 = vmatpush3.bf16.msra.mxu0 %v3569_v40  ;;  %v1433_v50 = vrot.slane %v1431_v37, 1  ;;  %v709_v21 = vsel %vm706_vm1, %v707_v17, %v708_v19  ;;  %v4095_v37 = vld [vmem:[%s3774_s29 + $0x9c] sm:$0xff]   ;;  %v4144_v19 = vld [vmem:[%s3774_s29 + $0xc8] ss:$0 sps:$4 sm:$0x11]  }
  0x62   : > { %3443 = vmatprep.subr.bf16.mxu1 %v3570_v42  ;;  %3166 = vmatprep.subr.bf16.mxu0 %v3570_v42  ;;  %v1143_v40 = vrot.slane %v4095_v37, 1 }
  0x63   : > { %853 = vrot.lane.b32.xlu0 %v3943_v48, %s3714_s5  ;;  %692 = vrot.lane.b32.xlu1 %v601_v59, %s3714_s5  ;;  %v1440_v59 = vrot.slane %v1438_v53, 1  ;;  %v1137_v48 = vrot.slane %v3971_v9, 1  ;;  %v1434_v62 = vsel %vm481_vm0, %v1429_v25, %v1433_v50  ;;  %v3615_v50 = vld [vmem:[%s3774_s29 + $0x9c] sm:$0xff]  }
  0x64   : > { %v1145_v47 = vsel %vm706_vm1, %v1143_v40, %v1144_v45  ;;  %v4170_v45 = vld [vmem:[%s3774_s29 + $0x18] sm:$0xff]  }
  0x65   : > { %3451 = vmatpush3.bf16.msra.mxu1 %v3573_v49  ;;  %3167 = vmatpush3.bf16.msra.mxu0 %v3573_v49  ;;  %v1441_v63 = vor.u32 %v1440_v59, %v1436_v52  ;;  %v4102_v49 = vld [vmem:[%s3774_s29 + $0xb4] sm:$0xff]   ;;  %v746_v52 = vrot.slane %v3615_v50, 1 }
  0x66   : > { %3264 = vmatprep.subr.bf16.mxu1 %v3575_v60  ;;  %3396 = vmatprep.subr.bf16.mxu0 %v4050_v0  ;;  %v1472_v25 = vshrl.u32 %v4102_v49, 16  ;;  %v1474_v55 = vshll.u32 %v4102_v49, 16  ;;  %v3576_v59 = vld [vmem:[%s4825_s1 + $0xb8] sm:$0xff]  }
  0x67   : > { %1519 = vrot.lane.b32.xlu0 %v1398_v1, %s3714_s5  ;;  %1167 = vrot.lane.b32.xlu1 %v1127_v4, %s3714_s5  ;;  %v1138_v1 = vrot.slane %v4031_v56, 1  ;;  %v744_v4 = vrot.slane %v3611_v3, 1 }
  0x68   : > { %v1476_v60 = vrot.slane %v1474_v55, 1 }
  0x69   : > { %v1139_v13 = vsel %vm706_vm1, %v1137_v48, %v1138_v1  ;;  %v745_v24 = vsel %vm706_vm1, %v743_v29, %v744_v4  ;;  %v4119_v29 = vld [vmem:[%s3774_s29 + $0xb0] ss:$0 sps:$4 sm:$0x11]   ;;  %v4122_v48 = vld [vmem:[%s3774_s29 + $0xa8] sm:$0xff]  }
  0x6a   : > { %v3581_v4 = vld [vmem:[%s4825_s1 + $0xb0] sm:$0xff]   ;;  %v1477_v6 = vor.u32 %v1476_v60, %v1472_v25 }
  0x6b   : > { %855 = vrot.lane.b32.xlu0 %v3971_v9, %s3714_s5  ;;  %694 = vrot.lane.b32.xlu1 %v613_v22, %s3714_s5  ;;  %v1446_v9 = vsel %vm481_vm0, %v1441_v63, %v1445_v41  ;;  %v1453_v22 = vor.u32 %v1452_v14, %v1448_v8  ;;  %v3580_v41 = vld [vmem:[%s4825_s1 + $0xf0] sm:$0xff]   ;;  %v1147_v8 = vrot.slane %v4119_v29, 1 }
  0x6d   : > { %v1458_v5 = vsel %vm481_vm0, %v1453_v22, %v1457_v20 }
  0x6f   : > { %1521 = vrot.lane.b32.xlu0 %v1410_v27, %s3714_s5  ;;  %1169 = vrot.lane.b32.xlu1 %v1130_v30, %s3714_s5  ;;  %v4079_v27 = vld [vmem:[%s3774_s29 + $0xa8] sm:$0xff]  }
  0x70   : > { %v1462_v32 = vshll.u32 %v4079_v27, 16 }
  0x72   : > { %v1464_v43 = vrot.slane %v1462_v32, 1  ;;  %v3621_v32 = vld [vmem:[%s3774_s29 + $0xb0] ss:$0 sps:$4 sm:$0x11]  }
  0x73   : > { %857 = vrot.lane.b32.xlu0 %v4000_v31, %s3714_s5  ;;  %696 = vrot.lane.b32.xlu1 %v625_v44, %s3714_s5  ;;  %v1460_v31 = vshrl.u32 %v4079_v27, 16  ;;  %v1469_v44 = vrot.slane %v1467_v33, 1  ;;  %v750_v33 = vrot.slane %v3621_v32, 1 }
  0x75   : > { %v1465_v46 = vor.u32 %v1464_v43, %v1460_v31 }
  0x77   : > { %1523 = vrot.lane.b32.xlu0 %v1422_v54, %s3714_s5  ;;  %1171 = vrot.lane.b32.xlu1 %v1133_v39, %s3714_s5  ;;  %v1470_v53 = vsel %vm481_vm0, %v1465_v46, %v1469_v44  ;;  %v4108_v54 = vld [vmem:[%s3774_s29 + $0xbc] ss:$0 sps:$4 sm:$0x11]   ;;  %v3616_v39 = vld [vmem:[%s3774_s29 + $0xa4] ss:$0 sps:$4 sm:$0x11]  }
  0x78   : > { %v747_v57 = vrot.slane %v3616_v39, 1  ;;  %v1479_v58 = vshll.u32 %v4108_v54, 16  ;;  %v3587_v44 = vld [vmem:[%s4825_s1 + $0xe0] sm:$0xff]   ;;  %v713_v46 = vrot.slane %v4170_v45, 1 }
  0x79   : > { %v3588_v39 = vld [vmem:[%s4825_s1 + $0xa0] sm:$0xff]  }
  0x7b   : > { %1525 = vrot.lane.b32.xlu0 %v1434_v62, %s3714_s5  ;;  %1173 = vrot.lane.b32.xlu1 %v1136_v61, %s3714_s5  ;;  %v1146_v62 = vrot.slane %v4122_v48, 1  ;;  %v1481_v61 = vrot.slane %v1479_v58, 1  ;;  %v4183_v58 = vld [vmem:[%s3774_s29 + $0xbc] ss:$0 sps:$4 sm:$0x11]  }
  0x7d   : > { %v1148_v17 = vsel %vm706_vm1, %v1146_v62, %v1147_v8  ;;  %v4201_v8 = vld [vmem:[%s3774_s29 + $0xb4] sm:$0xff]  }
  0x7f   : > { %1527 = vrot.lane.b32.xlu0 %v1446_v9, %s3714_s5  ;;  %1175 = vrot.lane.b32.xlu1 %v1139_v13, %s3714_s5  ;;  %v748_v9 = vsel %vm706_vm1, %v746_v52, %v747_v57  ;;  %v3619_v13 = vld [vmem:[%s3774_s29 + $0x14] ss:$0 sps:$4 sm:$0x11]  }
  0x80   : > { %v711_v14 = vrot.slane %v3619_v13, 1  ;;  %v4175_v52 = vld [vmem:[%s3774_s29 + $0xb4] sm:$0xff]  }
  0x83   : > { %1529 = vrot.lane.b32.xlu0 %v1458_v5, %s3714_s5  ;;  %1177 = vrot.lane.b32.xlu1 %v1142_v26, %s3714_s5  ;;  %v1486_v5 = vshll.u32 %v4141_v18, 16  ;;  %v1491_v26 = vshll.u32 %v4144_v19, 16 }
  0x85   : > { %v860_v30 = vpop.permute.xlu0 %859  ;;  %v1488_v40 = vrot.slane %v1486_v5, 1  ;;  %v3608_v5 = vld [vmem:[%s4825_s1 + $0x108] sm:$0xff]  }
  0x86   : > { %v836_v35 = vpop.permute.xlu1 %835  ;;  %v1686_v36 = vsel %vm1587_vm2, %v745_v24, %v860_v30  ;;  %v1484_v24 = vshrl.u32 %v4141_v18, 16  ;;  %v3620_v30 = vld [vmem:[%s3774_s29 + $0xa8] sm:$0xff]  }
  0x87   : > { %2283 = vmatprep.mubr.bf16.mxu1 %v1686_v36  ;;  %v1638_v42 = vsel %vm1587_vm2, %v709_v21, %v836_v35  ;;  %1179 = vrot.lane.b32.xlu1 %v1145_v47, %s3714_s5  ;;  %v712_v21 = vsel %vm706_vm1, %v710_v12, %v711_v14  ;;  %v749_v31 = vrot.slane %v3620_v30, 1  ;;  %v3584_v36 = vld [vmem:[%s4825_s1 + $0xa8] sm:$0xff]   ;;  %v3623_v47 = vld [vmem:[%s3774_s29 + $0x20] ss:$0 sps:$4 sm:$0x11]  }
  0x88   : > { %2187 = vmatprep.mubr.bf16.mxu0 %v1638_v42  ;;  %1531 = vrot.lane.b32.xlu0 %v1470_v53, %s3714_s5  ;;  %v1493_v42 = vrot.slane %v1491_v26, 1  ;;  %v1149_v53 = vrot.slane %v4175_v52, 1  ;;  %v1489_v57 = vor.u32 %v1488_v40, %v1484_v24  ;;  %v4207_v12 = vld [vmem:[%s3774_s29 + $0xc8] ss:$0 sps:$4 sm:$0x11]  }
  0x89   : > { %v751_v62 = vsel %vm706_vm1, %v749_v31, %v750_v33  ;;  %v1153_v24 = vrot.slane %v4207_v12, 1  ;;  %v3594_v33 = vld [vmem:[%s4825_s1 + $0xd0] sm:$0xff]  }
  0x8b   : > { %1181 = vrot.lane.b32.xlu1 %v1148_v17, %s3714_s5 }
  0x8d   : > { %v699_v63 = vpop.permute.xlu0 %698  ;;  %v675_v1 = vpop.permute.xlu1 %674 }
  0x8e   : > { %v1625_v3 = vsel %vm1587_vm2, %v4041_v7, %v699_v63  ;;  %v1589_v51 = vsel %vm1587_vm2, %v3612_v16, %v675_v1  ;;  %v1482_v7 = vsel %vm481_vm0, %v1477_v6, %v1481_v61  ;;  %v3583_v16 = vld [vmem:[%s4825_s1 + $0xe8] sm:$0xff]   ;;  %v1494_v63 = vsel %vm481_vm0, %v1489_v57, %v1493_v42  ;;  %v4193_v61 = vld [vmem:[%s3774_s29 + $0xd4] ss:$0 sps:$4 sm:$0x11]   ;;  %v3590_v6 = vld [vmem:[%s4825_s1 + $0xd8] sm:$0xff]  }
  0x8f   : > { %2284 = vmatmul.mubr.bf16.vlgmr.msra.gmra.mxu1 %v1625_v3  ;;  %2188 = vmatmul.mubr.bf16.vlgmr.msra.gmra.mxu0 %v1589_v51  ;;  %v752_v51 = vrot.slane %v4201_v8, 1 }
  0x90   : > { %3265 = vmatpush3.bf16.msra.mxu1 %v3576_v59  ;;  %3397 = vmatpush3.bf16.msra.mxu0 %v4050_v0  ;;  %v3602_v0 = vld [vmem:[%s4825_s1 + $0x110] sm:$0xff]  }
  0x91   : > { %v862_v20 = vpop.permute.xlu0 %861  ;;  %3266 = vmatprep.subr.bf16.mxu1 %v3580_v41  ;;  %v701_v22 = vpop.permute.xlu1 %700  ;;  %1533 = vrot.lane.b32.xlu0 %v1482_v7, %s3714_s5  ;;  %v4186_v59 = vld [vmem:[%s3774_s29 + $0xcc] sm:$0xff]   ;;  %v1150_v41 = vrot.slane %v4183_v58, 1 }
  0x92   : > { %v1690_v23 = vsel %vm1587_vm2, %v748_v9, %v862_v20  ;;  %v1628_v35 = vsel %vm1587_vm2, %v3615_v50, %v701_v22  ;;  %3398 = vmatprep.subr.bf16.mxu0 %v3602_v0  ;;  %v714_v50 = vrot.slane %v3623_v47, 1  ;;  %v1496_v1 = vshrl.u32 %v4186_v59, 16  ;;  %v3626_v9 = vld [vmem:[%s3774_s29 + $0xbc] ss:$0 sps:$4 sm:$0x11]   ;;  %v4215_v22 = vld [vmem:[%s3774_s29 + $0xc0] sm:$0xff]  }
  0x93   : > { %2291 = vmatprep.mubr.bf16.mxu1 %v1690_v23  ;;  %v1498_v3 = vshll.u32 %v4186_v59, 16  ;;  %v1151_v7 = vsel %vm706_vm1, %v1149_v53, %v1150_v41  ;;  %v1503_v20 = vshll.u32 %v4193_v61, 16  ;;  %v1152_v23 = vrot.slane %v4215_v22, 1  ;;  %v3629_v47 = vld [vmem:[%s3774_s29 + $0x24] sm:$0xff]  }
  0x94   : > { %3267 = vmatpush3.bf16.msra.mxu1 %v3581_v4  ;;  %3399 = vmatpush3.bf16.msra.mxu0 %v3602_v0  ;;  %v3591_v0 = vld [vmem:[%s4825_s1 + $0x98] sm:$0xff]   ;;  %v3630_v53 = vld [vmem:[%s3774_s29 + $0x2c] ss:$0 sps:$4 sm:$0x11]  }
  0x95   : > { %v838_v43 = vpop.permute.xlu0 %837  ;;  %3268 = vmatprep.subr.bf16.mxu1 %v3583_v16  ;;  %v677_v25 = vpop.permute.xlu1 %676  ;;  %1535 = vrot.lane.b32.xlu0 %v1494_v63, %s3714_s5  ;;  %v1500_v17 = vrot.slane %v1498_v3, 1  ;;  %v715_v16 = vsel %vm706_vm1, %v713_v46, %v714_v50  ;;  %v1505_v31 = vrot.slane %v1503_v20, 1  ;;  %v716_v50 = vrot.slane %v3629_v47, 1  ;;  %v3631_v63 = vld [vmem:[%s3774_s29 + $0x14] ss:$0 sps:$4 sm:$0x11]  }
  0x96   : > { %v1642_v55 = vsel %vm1587_vm2, %v712_v21, %v838_v43  ;;  %v1592_v60 = vsel %vm1587_vm2, %v3618_v11, %v677_v25  ;;  %v753_v11 = vrot.slane %v3626_v9, 1  ;;  %1183 = vrot.lane.b32.xlu1 %v1151_v7, %s3714_s5  ;;  %3400 = vmatprep.subr.bf16.mxu0 %v3608_v5  ;;  %v717_v25 = vrot.slane %v3630_v53, 1  ;;  %v3632_v7 = vld [vmem:[%s3774_s29 + $0x18] sm:$0xff]   ;;  %v3637_v53 = vld [vmem:[%s3774_s29 + $0x24] sm:$0xff]  }
  0x97   : > { %2195 = vmatprep.mubr.bf16.mxu0 %v1642_v55  ;;  %2292 = vmatmul.mubr.bf16.gmra.mxu1 %v1628_v35  ;;  %v1501_v21 = vor.u32 %v1500_v17, %v1496_v1  ;;  %v3628_v35 = vld [vmem:[%s3774_s29 + $0xc] sm:$0xff]   ;;  %v1154_v55 = vsel %vm706_vm1, %v1152_v23, %v1153_v24  ;;  %v923_v41 = vshll.u32 %v3631_v63, 16  ;;  %v930_v17 = vshll.u32 %v3632_v7, 16 }
  0x98   : > { %3269 = vmatpush3.bf16.msra.mxu1 %v3584_v36  ;;  %2196 = vmatmul.mubr.bf16.gmra.mxu0 %v1592_v60  ;;  %v918_v36 = vshll.u32 %v3628_v35, 16  ;;  %v754_v42 = vsel %vm706_vm1, %v752_v51, %v753_v11  ;;  %v3597_v60 = vld [vmem:[%s4825_s1 + $0xc8] sm:$0xff]   ;;  %v3601_v11 = vld [vmem:[%s4825_s1 + $0xc0] sm:$0xff]   ;;  %v3633_v23 = vld [vmem:[%s3774_s29 + $0x30] sm:$0xff]  }
  0x99   : > { %v864_v4 = vpop.permute.xlu0 %863  ;;  %3270 = vmatprep.subr.bf16.mxu1 %v3587_v44  ;;  %v703_v13 = vpop.permute.xlu1 %702  ;;  %v1506_v43 = vsel %vm481_vm0, %v1501_v21, %v1505_v31  ;;  %3401 = vmatpush3.bf16.msra.mxu0 %v3608_v5  ;;  %v3609_v44 = vld [vmem:[%s4825_s1 + $0x100] sm:$0xff]   ;;  %v3598_v51 = vld [vmem:[%s4825_s1 + $0x88] sm:$0xff]   ;;  %v719_v24 = vrot.slane %v3633_v23, 1  ;;  %v3634_v5 = vld [vmem:[%s3774_s29 + $0x38] ss:$0 sps:$4 sm:$0x11]  }
  0x9a   : > { %v1694_v14 = vsel %vm1587_vm2, %v751_v62, %v864_v4  ;;  %v1631_v26 = vsel %vm1587_vm2, %v3620_v30, %v703_v13  ;;  %v916_v62 = vshrl.u32 %v3628_v35, 16  ;;  %1537 = vrot.lane.b32.xlu0 %v1506_v43, %s3714_s5  ;;  %1185 = vrot.lane.b32.xlu1 %v1154_v55, %s3714_s5  ;;  %v718_v4 = vsel %vm706_vm1, %v716_v50, %v717_v25  ;;  %v3635_v35 = vld [vmem:[%s3774_s29 + $0x20] ss:$0 sps:$4 sm:$0x11]  }
  0x9b   : > { %2299 = vmatprep.mubr.bf16.mxu1 %v1694_v14  ;;  %3402 = vmatprep.subr.bf16.mxu0 %v3609_v44  ;;  %v925_v14 = vrot.slane %v923_v41, 1  ;;  %v942_v25 = vshll.u32 %v3637_v53, 16 }
  0x9c   : > { %3271 = vmatpush3.bf16.msra.mxu1 %v3588_v39  ;;  %v3595_v39 = vld [vmem:[%s4825_s1 + $0x90] sm:$0xff]  }
  0x9d   : > { %v840_v32 = vpop.permute.xlu0 %839  ;;  %3272 = vmatprep.subr.bf16.mxu1 %v3590_v6  ;;  %v679_v40 = vpop.permute.xlu1 %678  ;;  %3403 = vmatpush3.bf16.msra.mxu0 %v3609_v44 }
  0x9e   : > { %v1646_v30 = vsel %vm1587_vm2, %v715_v16, %v840_v32  ;;  %v1595_v46 = vsel %vm1587_vm2, %v4170_v45, %v679_v40  ;;  %v920_v45 = vrot.slane %v918_v36, 1  ;;  %v928_v32 = vshrl.u32 %v3632_v7, 16 }
  0x9f   : > { %2203 = vmatprep.mubr.bf16.mxu0 %v1646_v30  ;;  %2300 = vmatmul.mubr.bf16.gmra.mxu1 %v1631_v26  ;;  %v720_v26 = vrot.slane %v3634_v5, 1  ;;  %v935_v36 = vshll.u32 %v3635_v35, 16  ;;  %v4271_v30 = vld [vmem:[%s3774_s29 + $0x18] sm:$0xff]  }
  0xa0   : > { %3273 = vmatpush3.bf16.msra.mxu1 %v3591_v0  ;;  %2204 = vmatmul.mubr.bf16.gmra.mxu0 %v1595_v46  ;;  %v921_v13 = vor.u32 %v920_v45, %v916_v62  ;;  %v3603_v0 = vld [vmem:[%s4825_s1 + $0x80] sm:$0xff]  }
  0xa1   : > { %v866_v57 = vpop.permute.xlu0 %865  ;;  %3274 = vmatprep.subr.bf16.mxu1 %v3594_v33  ;;  %v705_v1 = vpop.permute.xlu1 %704  ;;  %v932_v33 = vrot.slane %v930_v17, 1  ;;  %v721_v43 = vsel %vm706_vm1, %v719_v24, %v720_v26  ;;  %v937_v50 = vrot.slane %v935_v36, 1  ;;  %v3639_v45 = vld [vmem:[%s3774_s29 + $0x44] ss:$0 sps:$4 sm:$0x11]  }
  0xa2   : > { %v1698_v3 = vsel %vm1587_vm2, %v754_v42, %v866_v57  ;;  %v1634_v6 = vsel %vm1587_vm2, %v4201_v8, %v705_v1  ;;  %v926_v31 = vsel %vm481_vm0, %v921_v13, %v925_v14  ;;  %v723_v63 = vrot.slane %v3639_v45, 1 }
  0xa3   : > { %2307 = vmatprep.mubr.bf16.mxu1 %v1698_v3  ;;  %v940_v3 = vshrl.u32 %v3637_v53, 16 }
  0xa4   : > { %3275 = vmatpush3.bf16.msra.mxu1 %v3595_v39 }
  0xa5   : > { %v842_v9 = vpop.permute.xlu0 %841  ;;  %3276 = vmatprep.subr.bf16.mxu1 %v3597_v60  ;;  %v681_v20 = vpop.permute.xlu1 %680  ;;  %v3638_v60 = vld [vmem:[%s3774_s29 + $0x3c] sm:$0xff]  }
  0xa6   : > { %v1650_v16 = vsel %vm1587_vm2, %v718_v4, %v842_v9  ;;  %v1598_v8 = vsel %vm1587_vm2, %v3629_v47, %v681_v20  ;;  %v933_v47 = vor.u32 %v932_v33, %v928_v32  ;;  %v722_v62 = vrot.slane %v3638_v60, 1 }
  0xa7   : > { %2211 = vmatprep.mubr.bf16.mxu0 %v1650_v16  ;;  %2308 = vmatmul.mubr.bf16.gmra.mxu1 %v1634_v6  ;;  %v944_v4 = vrot.slane %v942_v25, 1  ;;  %v3640_v6 = vld [vmem:[%s3774_s29 + $0x2c] ss:$0 sps:$4 sm:$0x11]  }
  0xa8   : > { %3277 = vmatpush3.bf16.msra.mxu1 %v3598_v51  ;;  %2212 = vmatmul.mubr.bf16.gmra.mxu0 %v1598_v8  ;;  %v938_v1 = vsel %vm481_vm0, %v933_v47, %v937_v50  ;;  %v947_v51 = vshll.u32 %v3640_v6, 16  ;;  %v724_v14 = vsel %vm706_vm1, %v722_v62, %v723_v63  ;;  %v3642_v8 = vld [vmem:[%s3774_s29 + $0x30] sm:$0xff]  }
  0xa9   : > { %v1508_v21 = vpop.permute.xlu0 %1507  ;;  %3278 = vmatprep.subr.bf16.mxu1 %v3601_v11  ;;  %v1156_v40 = vpop.permute.xlu1 %1155  ;;  %v4285_v11 = vld [vmem:[%s3774_s29 + $0x24] sm:$0xff]   ;;  %v945_v20 = vor.u32 %v944_v4, %v940_v3  ;;  %v952_v36 = vshrl.u32 %v3642_v8, 16  ;;  %v3649_v3 = vld [vmem:[%s3774_s29 + $0x5c] ss:$0 sps:$4 sm:$0x11]  }
  0xaa   : > { %v1765_v42 = vsel %vm1587_vm2, %v4271_v30, %v1508_v21  ;;  %v1702_v44 = vsel %vm1587_vm2, %v926_v31, %v1156_v40  ;;  %v949_v16 = vrot.slane %v947_v51, 1  ;;  %v3644_v31 = vld [vmem:[%s3774_s29 + $0x50] ss:$0 sps:$4 sm:$0x11]   ;;  %v729_v4 = vrot.slane %v3649_v3, 1 }
  0xab   : > { %2348 = vmatprep.mubr.bf16.mxu1 %v1765_v42  ;;  %v726_v32 = vrot.slane %v3644_v31, 1  ;;  %v3645_v42 = vld [vmem:[%s3774_s29 + $0x38] ss:$0 sps:$4 sm:$0x11]  }
  0xac   : > { %3279 = vmatpush3.bf16.msra.mxu1 %v3603_v0  ;;  %v3643_v0 = vld [vmem:[%s3774_s29 + $0x48] sm:$0xff]   ;;  %v950_v35 = vsel %vm481_vm0, %v945_v20, %v949_v16  ;;  %v4313_v20 = vld [vmem:[%s3774_s29 + $0x3c] sm:$0xff]  }
  0xad   : > { %v844_v46 = vpop.permute.xlu0 %843  ;;  %v683_v55 = vpop.permute.xlu1 %682  ;;  %v725_v21 = vrot.slane %v3643_v0, 1 }
  0xae   : > { %v1654_v39 = vsel %vm1587_vm2, %v721_v43, %v844_v46  ;;  %v1601_v57 = vsel %vm1587_vm2, %v3633_v23, %v683_v55  ;;  %v954_v23 = vshll.u32 %v3642_v8, 16  ;;  %v959_v43 = vshll.u32 %v3645_v42, 16  ;;  %v4299_v46 = vld [vmem:[%s3774_s29 + $0x30] sm:$0xff]  }
  0xaf   : > { %2219 = vmatprep.mubr.bf16.mxu0 %v1654_v39  ;;  %2349 = vmatmul.mubr.bf16.vlgmr.msra.gmra.mxu1 %v1702_v44  ;;  %v727_v50 = vsel %vm706_vm1, %v725_v21, %v726_v32 }
  0xb0   : > { %2220 = vmatmul.mubr.bf16.gmra.mxu0 %v1601_v57  ;;  %v956_v40 = vrot.slane %v954_v23, 1  ;;  %v961_v39 = vrot.slane %v959_v43, 1  ;;  %v3647_v57 = vld [vmem:[%s3774_s29 + $0x3c] sm:$0xff]  }
  0xb1   : > { %v1510_v41 = vpop.permute.xlu0 %1509  ;;  %v1158_v9 = vpop.permute.xlu1 %1157 }
  0xb2   : > { %v1768_v13 = vsel %vm1587_vm2, %v4285_v11, %v1510_v41  ;;  %v1706_v7 = vsel %vm1587_vm2, %v938_v1, %v1158_v9  ;;  %v957_v55 = vor.u32 %v956_v40, %v952_v36  ;;  %v3648_v41 = vld [vmem:[%s3774_s29 + $0x54] sm:$0xff]   ;;  %v964_v9 = vshrl.u32 %v3647_v57, 16  ;;  %v3654_v40 = vld [vmem:[%s3774_s29 + $0x68] ss:$0 sps:$4 sm:$0x11]  }
  0xb3   : > { %2356 = vmatprep.mubr.bf16.mxu1 %v1768_v13  ;;  %v728_v1 = vrot.slane %v3648_v41, 1  ;;  %v732_v42 = vrot.slane %v3654_v40, 1  ;;  %v3662_v40 = vld [vmem:[%s3774_s29 + $0x60] sm:$0xff]  }
  0xb4   : > { %v962_v51 = vsel %vm481_vm0, %v957_v55, %v961_v39  ;;  %v4327_v39 = vld [vmem:[%s3774_s29 + $0x48] sm:$0xff]  }
  0xb5   : > { %v846_v17 = vpop.permute.xlu0 %845  ;;  %v685_v24 = vpop.permute.xlu1 %684  ;;  %v730_v8 = vsel %vm706_vm1, %v728_v1, %v729_v4  ;;  %v3657_v1 = vld [vmem:[%s3774_s29 + $0x54] sm:$0xff]  }
  0xb6   : > { %v1658_v5 = vsel %vm1587_vm2, %v724_v14, %v846_v17  ;;  %v1604_v26 = vsel %vm1587_vm2, %v3638_v60, %v685_v24  ;;  %v966_v60 = vshll.u32 %v3647_v57, 16  ;;  %v3650_v14 = vld [vmem:[%s3774_s29 + $0x44] ss:$0 sps:$4 sm:$0x11]   ;;  %v990_v3 = vshll.u32 %v3657_v1, 16 }
  0xb7   : > { %2227 = vmatprep.mubr.bf16.mxu0 %v1658_v5  ;;  %2357 = vmatmul.mubr.bf16.gmra.mxu1 %v1706_v7  ;;  %v971_v7 = vshll.u32 %v3650_v14, 16  ;;  %v3659_v14 = vld [vmem:[%s3774_s29 + $0x74] ss:$0 sps:$4 sm:$0x11]  }
  0xb8   : > { %2228 = vmatmul.mubr.bf16.gmra.mxu0 %v1604_v26  ;;  %v968_v13 = vrot.slane %v966_v60, 1 }
  0xb9   : > { %v1512_v33 = vpop.permute.xlu0 %1511  ;;  %v1160_v44 = vpop.permute.xlu1 %1159  ;;  %v973_v26 = vrot.slane %v971_v7, 1  ;;  %v735_v7 = vrot.slane %v3659_v14, 1 }
  0xba   : > { %v1771_v47 = vsel %vm1587_vm2, %v4299_v46, %v1512_v33  ;;  %v1710_v53 = vsel %vm1587_vm2, %v950_v35, %v1160_v44  ;;  %v969_v5 = vor.u32 %v968_v13, %v964_v9  ;;  %v3653_v35 = vld [vmem:[%s3774_s29 + $0x60] sm:$0xff]   ;;  %v3658_v9 = vld [vmem:[%s3774_s29 + $0x6c] sm:$0xff]  }
  0xbb   : > { %2364 = vmatprep.mubr.bf16.mxu1 %v1771_v47  ;;  %v731_v36 = vrot.slane %v3653_v35, 1  ;;  %v734_v13 = vrot.slane %v3658_v9, 1 }
  0xbc   : > { %v974_v44 = vsel %vm481_vm0, %v969_v5, %v973_v26 }
  0xbd   : > { %v848_v25 = vpop.permute.xlu0 %847  ;;  %v687_v62 = vpop.permute.xlu1 %686  ;;  %v733_v60 = vsel %vm706_vm1, %v731_v36, %v732_v42  ;;  %v1002_v42 = vshll.u32 %v3662_v40, 16 }
  0xbe   : > { %v1662_v45 = vsel %vm1587_vm2, %v727_v50, %v848_v25  ;;  %v1607_v63 = vsel %vm1587_vm2, %v3643_v0, %v687_v62  ;;  %v3652_v0 = vld [vmem:[%s3774_s29 + $0x48] sm:$0xff]  }
  0xbf   : > { %2235 = vmatprep.mubr.bf16.mxu0 %v1662_v45  ;;  %2365 = vmatmul.mubr.bf16.gmra.mxu1 %v1710_v53  ;;  %v978_v21 = vshll.u32 %v3652_v0, 16  ;;  %v976_v47 = vshrl.u32 %v3652_v0, 16  ;;  %v3655_v53 = vld [vmem:[%s3774_s29 + $0x50] ss:$0 sps:$4 sm:$0x11]   ;;  %v4341_v0 = vld [vmem:[%s3774_s29 + $0x54] sm:$0xff]  }
  0xc0   : > { %2236 = vmatmul.mubr.bf16.gmra.mxu0 %v1607_v63  ;;  %v983_v25 = vshll.u32 %v3655_v53, 16 }
  0xc1   : > { %v1514_v6 = vpop.permute.xlu0 %1513  ;;  %v1162_v17 = vpop.permute.xlu1 %1161  ;;  %v980_v50 = vrot.slane %v978_v21, 1 }
  0xc2   : > { %v1774_v16 = vsel %vm1587_vm2, %v4313_v20, %v1514_v6  ;;  %v1714_v23 = vsel %vm1587_vm2, %v962_v51, %v1162_v17 }
  0xc3   : > { %2372 = vmatprep.mubr.bf16.mxu1 %v1774_v16  ;;  %v981_v63 = vor.u32 %v980_v50, %v976_v47  ;;  %v3663_v50 = vld [vmem:[%s3774_s29 + $0x78] sm:$0xff]  }
  0xc4   : > { %v737_v53 = vrot.slane %v3663_v50, 1 }
  0xc5   : > { %v850_v24 = vpop.permute.xlu0 %849  ;;  %v689_v31 = vpop.permute.xlu1 %688 }
  0xc6   : > { %v1666_v32 = vsel %vm1587_vm2, %v730_v8, %v850_v24  ;;  %v1610_v33 = vsel %vm1587_vm2, %v3648_v41, %v689_v31  ;;  %v985_v41 = vrot.slane %v983_v25, 1  ;;  %v988_v8 = vshrl.u32 %v3657_v1, 16  ;;  %v3660_v24 = vld [vmem:[%s3774_s29 + $0x5c] ss:$0 sps:$4 sm:$0x11]  }
  0xc7   : > { %2243 = vmatprep.mubr.bf16.mxu0 %v1666_v32  ;;  %2373 = vmatmul.mubr.bf16.gmra.mxu1 %v1714_v23  ;;  %v992_v23 = vrot.slane %v990_v3, 1  ;;  %v995_v5 = vshll.u32 %v3660_v24, 16  ;;  %v736_v31 = vsel %vm706_vm1, %v734_v13, %v735_v7  ;;  %v3664_v25 = vld [vmem:[%s3774_s29 + $0x80] ss:$0 sps:$4 sm:$0x11]   ;;  %v3667_v7 = vld [vmem:[%s3774_s29 + $0x6c] sm:$0xff]  }
  0xc8   : > { %2244 = vmatmul.mubr.bf16.gmra.mxu0 %v1610_v33  ;;  %v986_v16 = vsel %vm481_vm0, %v981_v63, %v985_v41  ;;  %v3665_v63 = vld [vmem:[%s3774_s29 + $0x68] ss:$0 sps:$4 sm:$0x11]   ;;  %v4355_v3 = vld [vmem:[%s3774_s29 + $0x60] sm:$0xff]  }
  0xc9   : > { %v1516_v43 = vpop.permute.xlu0 %1515  ;;  %v1164_v55 = vpop.permute.xlu1 %1163  ;;  %v997_v36 = vrot.slane %v995_v5, 1  ;;  %v1007_v41 = vshll.u32 %v3665_v63, 16  ;;  %v3668_v24 = vld [vmem:[%s3774_s29 + $0x84] sm:$0xff]  }
  0xca   : > { %v1777_v57 = vsel %vm1587_vm2, %v4327_v39, %v1516_v43  ;;  %v1718_v62 = vsel %vm1587_vm2, %v974_v44, %v1164_v55  ;;  %v738_v55 = vrot.slane %v3664_v25, 1  ;;  %v740_v5 = vrot.slane %v3668_v24, 1 }
  0xcb   : > { %2380 = vmatprep.mubr.bf16.mxu1 %v1777_v57  ;;  %v1009_v14 = vrot.slane %v1007_v41, 1 }
  0xcd   : > { %v852_v45 = vpop.permute.xlu0 %851  ;;  %v691_v4 = vpop.permute.xlu1 %690 }
  0xce   : > { %v1670_v6 = vsel %vm1587_vm2, %v733_v60, %v852_v45  ;;  %v1613_v51 = vsel %vm1587_vm2, %v3653_v35, %v691_v4  ;;  %v993_v35 = vor.u32 %v992_v23, %v988_v8  ;;  %v1004_v45 = vrot.slane %v1002_v42, 1  ;;  %v4369_v42 = vld [vmem:[%s3774_s29 + $0x6c] sm:$0xff]  }
  0xcf   : > { %2251 = vmatprep.mubr.bf16.mxu0 %v1670_v6  ;;  %2381 = vmatmul.mubr.bf16.gmra.mxu1 %v1718_v62  ;;  %v1000_v62 = vshrl.u32 %v3662_v40, 16  ;;  %v739_v6 = vsel %vm706_vm1, %v737_v53, %v738_v55 }
  0xd0   : > { %2252 = vmatmul.mubr.bf16.gmra.mxu0 %v1613_v51  ;;  %v998_v60 = vsel %vm481_vm0, %v993_v35, %v997_v36  ;;  %v1019_v36 = vshll.u32 %v4003_v34, 16  ;;  %v3672_v34 = vld [vmem:[%s3774_s29 + $0x78] sm:$0xff]  }
  0xd1   : > { %v1518_v17 = vpop.permute.xlu0 %1517  ;;  %v1166_v26 = vpop.permute.xlu1 %1165  ;;  %v1005_v13 = vor.u32 %v1004_v45, %v1000_v62  ;;  %v1026_v62 = vshll.u32 %v3672_v34, 16 }
  0xd2   : > { %v1780_v21 = vsel %vm1587_vm2, %v4341_v0, %v1518_v17  ;;  %v1722_v32 = vsel %vm1587_vm2, %v986_v16, %v1166_v26  ;;  %v1014_v17 = vshll.u32 %v3667_v7, 16  ;;  %v3669_v26 = vld [vmem:[%s3774_s29 + $0x8c] ss:$0 sps:$4 sm:$0x11]  }
  0xd3   : > { %2388 = vmatprep.mubr.bf16.mxu1 %v1780_v21  ;;  %v741_v21 = vrot.slane %v3669_v26, 1 }
  0xd4   : > { %v1016_v35 = vrot.slane %v1014_v17, 1 }
  0xd5   : > { %v854_v33 = vpop.permute.xlu0 %853  ;;  %v693_v43 = vpop.permute.xlu1 %692  ;;  %v742_v53 = vsel %vm706_vm1, %v740_v5, %v741_v21 }
  0xd6   : > { %v1674_v44 = vsel %vm1587_vm2, %v736_v31, %v854_v33  ;;  %v1616_v47 = vsel %vm1587_vm2, %v3658_v9, %v693_v43  ;;  %v1012_v33 = vshrl.u32 %v3667_v7, 16  ;;  %v1031_v7 = vshll.u32 %v4010_v38, 16  ;;  %v3676_v38 = vld [vmem:[%s3774_s29 + $0x84] sm:$0xff]  }
  0xd7   : > { %2259 = vmatprep.mubr.bf16.mxu0 %v1674_v44  ;;  %2389 = vmatmul.mubr.bf16.gmra.mxu1 %v1722_v32  ;;  %v1010_v32 = vsel %vm481_vm0, %v1005_v13, %v1009_v14  ;;  %v1539_v44 = vrot.slane %v4271_v30, 1  ;;  %v1024_v13 = vshrl.u32 %v3672_v34, 16  ;;  %v1028_v14 = vrot.slane %v1026_v62, 1  ;;  %v3679_v34 = vld [vmem:[%s3774_s29 + $0x50] ss:$0 sps:$4 sm:$0x11]  }
  0xd8   : > { %2260 = vmatmul.mubr.bf16.gmra.mxu0 %v1616_v47  ;;  %v3671_v47 = vld [vmem:[%s3774_s29 + $0x20] ss:$0 sps:$4 sm:$0x11]   ;;  %v1552_v62 = vrot.slane %v3679_v34, 1 }
  0xd9   : > { %v1520_v57 = vpop.permute.xlu0 %1519  ;;  %v1168_v1 = vpop.permute.xlu1 %1167 }
  0xda   : > { %v1783_v4 = vsel %vm1587_vm2, %v4355_v3, %v1520_v57  ;;  %v1726_v51 = vsel %vm1587_vm2, %v998_v60, %v1168_v1  ;;  %v1017_v57 = vor.u32 %v1016_v35, %v1012_v33  ;;  %v1021_v60 = vrot.slane %v1019_v36, 1  ;;  %v3673_v1 = vld [vmem:[%s3774_s29 + $0x2c] ss:$0 sps:$4 sm:$0x11]   ;;  %v4397_v35 = vld [vmem:[%s3774_s29 + $0x84] sm:$0xff]  }
  0xdb   : > { %2396 = vmatprep.mubr.bf16.mxu1 %v1783_v4  ;;  %v1543_v4 = vrot.slane %v3673_v1, 1  ;;  %v1038_v33 = vshll.u32 %v3676_v38, 16 }
  0xdd   : > { %v856_v9 = vpop.permute.xlu0 %855  ;;  %v695_v16 = vpop.permute.xlu1 %694 }
  0xde   : > { %v1678_v8 = vsel %vm1587_vm2, %v739_v6, %v856_v9  ;;  %v1619_v23 = vsel %vm1587_vm2, %v3663_v50, %v695_v16  ;;  %v1540_v50 = vrot.slane %v3671_v47, 1  ;;  %v1542_v6 = vrot.slane %v4285_v11, 1  ;;  %v4387_v16 = vld [vmem:[%s3774_s29 + $0x78] sm:$0xff]  }
  0xdf   : > { %2267 = vmatprep.mubr.bf16.mxu0 %v1678_v8  ;;  %2397 = vmatmul.mubr.bf16.gmra.mxu1 %v1726_v51  ;;  %v1022_v9 = vsel %vm481_vm0, %v1017_v57, %v1021_v60  ;;  %v3675_v11 = vld [vmem:[%s3774_s29 + $0x38] ss:$0 sps:$4 sm:$0x11]   ;;  %v1551_v60 = vrot.slane %v4327_v39, 1  ;;  %v1554_v39 = vrot.slane %v4341_v0, 1 }
  0xe0   : > { %2268 = vmatmul.mubr.bf16.gmra.mxu0 %v1619_v23  ;;  %v1541_v41 = vsel %vm706_vm1, %v1539_v44, %v1540_v50  ;;  %v1545_v23 = vrot.slane %v4299_v46, 1  ;;  %v1544_v26 = vsel %vm706_vm1, %v1542_v6, %v1543_v4  ;;  %v3681_v4 = vld [vmem:[%s3774_s29 + $0x90] sm:$0xff]  }
  0xe1   : > { %v1522_v31 = vpop.permute.xlu0 %1521  ;;  %v1170_v40 = vpop.permute.xlu1 %1169  ;;  %v1050_v6 = vshll.u32 %v3681_v4, 16 }
  0xe2   : > { %v1786_v43 = vsel %vm1587_vm2, %v4369_v42, %v1522_v31  ;;  %v1730_v25 = vsel %vm1587_vm2, %v1010_v32, %v1170_v40  ;;  %v1029_v31 = vor.u32 %v1028_v14, %v1024_v13  ;;  %v1033_v32 = vrot.slane %v1031_v7, 1 }
  0xe3   : > { %2404 = vmatprep.mubr.bf16.mxu1 %v1786_v43  ;;  %v1548_v40 = vrot.slane %v4313_v20, 1  ;;  %v3678_v43 = vld [vmem:[%s3774_s29 + $0x44] ss:$0 sps:$4 sm:$0x11]   ;;  %v1048_v7 = vshrl.u32 %v3681_v4, 16  ;;  %v1079_v4 = vshll.u32 %v4119_v29, 16 }
  0xe4   : > { %v1549_v44 = vrot.slane %v3678_v43, 1  ;;  %v1034_v50 = vsel %vm481_vm0, %v1029_v31, %v1033_v32  ;;  %v3688_v29 = vld [vmem:[%s3774_s29 + $0x9c] sm:$0xff]  }
  0xe5   : > { %v858_v55 = vpop.permute.xlu0 %857  ;;  %v697_v45 = vpop.permute.xlu1 %696 }
  0xe6   : > { %v1682_v63 = vsel %vm1587_vm2, %v742_v53, %v858_v55  ;;  %v1622_v30 = vsel %vm1587_vm2, %v3668_v24, %v697_v45  ;;  %v1546_v24 = vrot.slane %v3675_v11, 1  ;;  %v1036_v53 = vshrl.u32 %v3676_v38, 16 }
  0xe7   : > { %2275 = vmatprep.mubr.bf16.mxu0 %v1682_v63  ;;  %2405 = vmatmul.mubr.bf16.gmra.mxu1 %v1730_v25  ;;  %v1040_v25 = vrot.slane %v1038_v33, 1  ;;  %v1043_v55 = vshll.u32 %v4031_v56, 16  ;;  %v1550_v45 = vsel %vm706_vm1, %v1548_v40, %v1549_v44  ;;  %v4413_v63 = vld [vmem:[%s3774_s29 + $0x90] sm:$0xff]   ;;  %v1553_v56 = vsel %vm706_vm1, %v1551_v60, %v1552_v62  ;;  %v3686_v62 = vld [vmem:[%s3774_s29 + $0x8c] ss:$0 sps:$4 sm:$0x11]  }
  0xe8   : > { %2276 = vmatmul.mubr.bf16.gmra.mxu0 %v1622_v30  ;;  %v1547_v46 = vsel %vm706_vm1, %v1545_v23, %v1546_v24  ;;  %v1557_v11 = vrot.slane %v4355_v3, 1  ;;  %v3683_v24 = vld [vmem:[%s3774_s29 + $0x68] ss:$0 sps:$4 sm:$0x11]   ;;  %v1062_v38 = vshll.u32 %v4095_v37, 16  ;;  %v1560_v3 = vrot.slane %v4369_v42, 1 }
  0xe9   : > { %v1524_v51 = vpop.permute.xlu0 %1523  ;;  %3404 = vmatprep.mubr.msk.bf16.mxu0 %vm1587_vm2, %v1541_v41  ;;  %v1172_v17 = vpop.permute.xlu1 %1171  ;;  %v1041_v30 = vor.u32 %v1040_v25, %v1036_v53  ;;  %v1045_v1 = vrot.slane %v1043_v55, 1  ;;  %v3684_v33 = vld [vmem:[%s3774_s29 + $0x74] ss:$0 sps:$4 sm:$0x11]   ;;  %v1067_v44 = vshll.u32 %v4092_v10, 16 }
  0xea   : > { %v1789_v8 = vsel %vm1587_vm2, %v4387_v16, %v1524_v51  ;;  %v1734_v5 = vsel %vm1587_vm2, %v1022_v9, %v1172_v17  ;;  %v3682_v51 = vld [vmem:[%s3774_s29 + $0x5c] ss:$0 sps:$4 sm:$0x11]   ;;  %v1052_v17 = vrot.slane %v1050_v6, 1  ;;  %v1064_v43 = vrot.slane %v1062_v38, 1 }
  0xeb   : > { %2412 = vmatprep.mubr.bf16.mxu1 %v1789_v8  ;;  %v1555_v9 = vrot.slane %v3682_v51, 1  ;;  %v1046_v14 = vsel %vm481_vm0, %v1041_v30, %v1045_v1  ;;  %v1055_v8 = vshll.u32 %v4068_v15, 16  ;;  %v3685_v53 = vld [vmem:[%s3774_s29 + $0x80] ss:$0 sps:$4 sm:$0x11]   ;;  %v1069_v34 = vrot.slane %v1067_v44, 1 }
  0xec   : > { %v1053_v31 = vor.u32 %v1052_v17, %v1048_v7  ;;  %v1564_v25 = vrot.slane %v3685_v53, 1  ;;  %v1072_v30 = vshrl.u32 %v4122_v48, 16  ;;  %v1081_v7 = vrot.slane %v1079_v4, 1 }
  0xed   : > { %v1526_v21 = vpop.permute.xlu0 %1525  ;;  %v1174_v47 = vpop.permute.xlu1 %1173  ;;  %v1556_v0 = vsel %vm706_vm1, %v1554_v39, %v1555_v9  ;;  %v1057_v32 = vrot.slane %v1055_v8, 1  ;;  %v3687_v39 = vld [vmem:[%s3774_s29 + $0x98] ss:$0 sps:$4 sm:$0x11]   ;;  %v1103_v44 = vshll.u32 %v4207_v12, 16  ;;  %v1582_v53 = vrot.slane %v4144_v19, 1 }
  0xee   : > { %v1792_v36 = vsel %vm1587_vm2, %v4397_v35, %v1526_v21  ;;  %v1738_v20 = vsel %vm1587_vm2, %v1034_v50, %v1174_v47  ;;  %v1563_v50 = vrot.slane %v4387_v16, 1  ;;  %v1566_v16 = vrot.slane %v4397_v35, 1  ;;  %v3689_v8 = vld [vmem:[%s3774_s29 + $0xa4] ss:$0 sps:$4 sm:$0x11]  }
  0xef   : > { %2413 = vmatmul.mubr.bf16.gmra.mxu1 %v1734_v5  ;;  %v1558_v5 = vrot.slane %v3683_v24, 1  ;;  %v1058_v40 = vsel %vm481_vm0, %v1053_v31, %v1057_v32  ;;  %v1570_v51 = vrot.slane %v3687_v39, 1  ;;  %v1575_v31 = vrot.slane %v4079_v27, 1 }
  0xf0   : > { %3405 = vmatmul.mubr.msk.bf16.vlgmr.msra.gmra.mxu0 %vm1587_vm2, %v1544_v26  ;;  %2420 = vmatprep.mubr.bf16.mxu1 %v1792_v36  ;;  %v1561_v36 = vrot.slane %v3684_v33, 1  ;;  %v1565_v10 = vsel %vm706_vm1, %v1563_v50, %v1564_v25  ;;  %v1576_v32 = vrot.slane %v4082_v28, 1  ;;  %v1579_v28 = vrot.slane %v4108_v54, 1 }
  0xf1   : > { %3408 = vmatprep.mubr.msk.bf16.mxu0 %vm1587_vm2, %v1547_v46  ;;  %v1528_v57 = vpop.permute.xlu0 %1527  ;;  %v1176_v13 = vpop.permute.xlu1 %1175  ;;  %v1559_v15 = vsel %vm706_vm1, %v1557_v11, %v1558_v5  ;;  %v1084_v5 = vshrl.u32 %v4175_v52, 16  ;;  %v1581_v50 = vrot.slane %v4141_v18, 1  ;;  %v1584_v19 = vrot.slane %v4186_v59, 1 }
  0xf2   : > { %v1795_v41 = vsel %vm1587_vm2, %v4413_v63, %v1528_v57  ;;  %v1742_v26 = vsel %vm1587_vm2, %v1046_v14, %v1176_v13  ;;  %v1562_v55 = vsel %vm706_vm1, %v1560_v3, %v1561_v36 }
  0xf5   : > { %v1530_v23 = vpop.permute.xlu0 %1529  ;;  %v1178_v46 = vpop.permute.xlu1 %1177 }
  0xf6   : > { %v1798_v21 = vsel %vm1587_vm2, %v4055_v2, %v1530_v23  ;;  %v1060_v2 = vshrl.u32 %v4095_v37, 16  ;;  %v1746_v42 = vsel %vm1587_vm2, %v1058_v40, %v1178_v46  ;;  %v1074_v37 = vshll.u32 %v4122_v48, 16 }
  0xf7   : > { %2421 = vmatmul.mubr.bf16.gmra.mxu1 %v1738_v20  ;;  %v1567_v20 = vrot.slane %v3686_v62, 1  ;;  %v1086_v48 = vshll.u32 %v4175_v52, 16  ;;  %v1573_v23 = vrot.slane %v3689_v8, 1  ;;  %v1098_v46 = vshll.u32 %v4215_v22, 16 }
  0xf8   : > { %3409 = vmatmul.mubr.msk.bf16.gmra.mxu0 %vm1587_vm2, %v1550_v45  ;;  %2428 = vmatprep.mubr.bf16.mxu1 %v1795_v41  ;;  %v1065_v60 = vor.u32 %v1064_v43, %v1060_v2  ;;  %v1076_v1 = vrot.slane %v1074_v37, 1  ;;  %v1577_v52 = vsel %vm706_vm1, %v1575_v31, %v1576_v32  ;;  %v1096_v2 = vshrl.u32 %v4215_v22, 16 }
  0xf9   : > { %3412 = vmatprep.mubr.msk.bf16.mxu0 %vm1587_vm2, %v1553_v56  ;;  %v1180_v45 = vpop.permute.xlu1 %1179  ;;  %v1569_v56 = vrot.slane %v4413_v63, 1  ;;  %v1568_v9 = vsel %vm706_vm1, %v1566_v16, %v1567_v20  ;;  %v1572_v63 = vrot.slane %v3688_v29, 1  ;;  %v1100_v43 = vrot.slane %v1098_v46, 1 }
  0xfa   : > { %v1532_v47 = vpop.permute.xlu0 %1531  ;;  %v1070_v41 = vsel %vm481_vm0, %v1065_v60, %v1069_v34  ;;  %v1077_v14 = vor.u32 %v1076_v1, %v1072_v30  ;;  %v1585_v22 = vrot.slane %v4193_v61, 1 }
  0xfb   : > { %v1801_v57 = vsel %vm1587_vm2, %v4079_v27, %v1532_v47  ;;  %v1750_v35 = vsel %vm1587_vm2, %v1070_v41, %v1180_v45  ;;  %v1571_v17 = vsel %vm706_vm1, %v1569_v56, %v1570_v51  ;;  %v1578_v27 = vrot.slane %v4102_v49, 1 }
  0xfc   : > { %v1082_v24 = vsel %vm481_vm0, %v1077_v14, %v1081_v7  ;;  %v1586_v34 = vsel %vm706_vm1, %v1584_v19, %v1585_v22 }
  0xfd   : > { %v1182_v11 = vpop.permute.xlu1 %1181 }
  0xfe   : > { %v1754_v38 = vsel %vm1587_vm2, %v1082_v24, %v1182_v11 }
  0xff   : > { %2429 = vmatmul.mubr.bf16.gmra.mxu1 %v1742_v26  ;;  %v1088_v26 = vrot.slane %v1086_v48, 1 }
 0x100   : > { %3413 = vmatmul.mubr.msk.bf16.gmra.mxu0 %vm1587_vm2, %v1556_v0  ;;  %2436 = vmatprep.mubr.bf16.mxu1 %v1798_v21  ;;  %v1091_v0 = vshll.u32 %v4183_v58, 16 }
 0x101   : > { %3416 = vmatprep.mubr.msk.bf16.mxu0 %vm1587_vm2, %v1559_v15  ;;  %v1574_v15 = vsel %vm706_vm1, %v1572_v63, %v1573_v23  ;;  %v1089_v33 = vor.u32 %v1088_v26, %v1084_v5 }
 0x102   : > { %v1093_v36 = vrot.slane %v1091_v0, 1 }
 0x103   : > { %v1534_v6 = vpop.permute.xlu0 %1533 }
 0x104   : > { %v1804_v13 = vsel %vm1587_vm2, %v4102_v49, %v1534_v6  ;;  %v1094_v40 = vsel %vm481_vm0, %v1089_v33, %v1093_v36  ;;  %v1580_v49 = vsel %vm706_vm1, %v1578_v27, %v1579_v28 }
 0x107   : > { %2437 = vmatmul.mubr.bf16.gmra.mxu1 %v1746_v42  ;;  %v1536_v21 = vpop.permute.xlu0 %1535  ;;  %v1101_v42 = vor.u32 %v1100_v43, %v1096_v2 }
 0x108   : > { %3417 = vmatmul.mubr.msk.bf16.gmra.mxu0 %vm1587_vm2, %v1562_v55  ;;  %2444 = vmatprep.mubr.bf16.mxu1 %v1801_v57  ;;  %v1807_v3 = vsel %vm1587_vm2, %v4141_v18, %v1536_v21  ;;  %v1184_v58 = vpop.permute.xlu1 %1183  ;;  %v1105_v55 = vrot.slane %v1103_v44, 1  ;;  %v1583_v57 = vsel %vm706_vm1, %v1581_v50, %v1582_v53 }
 0x109   : > { %3420 = vmatprep.mubr.msk.bf16.mxu0 %vm1587_vm2, %v1565_v10  ;;  %v1758_v25 = vsel %vm1587_vm2, %v1094_v40, %v1184_v58 }
 0x10a   : > { %v1106_v18 = vsel %vm481_vm0, %v1101_v42, %v1105_v55 }
 0x10c   : > { %v1538_v47 = vpop.permute.xlu0 %1537  ;;  %v1186_v12 = vpop.permute.xlu1 %1185 }
 0x10d   : > { %v1810_v54 = vsel %vm1587_vm2, %v4186_v59, %v1538_v47  ;;  %v1762_v60 = vsel %vm1587_vm2, %v1106_v18, %v1186_v12 }
 0x10f   : > { %2445 = vmatmul.mubr.bf16.gmra.mxu1 %v1750_v35 }
 0x110   : > { %3421 = vmatmul.mubr.msk.bf16.gmra.mxu0 %vm1587_vm2, %v1568_v9  ;;  %2452 = vmatprep.mubr.bf16.mxu1 %v1804_v13 }
 0x111   : > { %3424 = vmatprep.mubr.msk.bf16.mxu0 %vm1587_vm2, %v1571_v17 }
 0x117   : > { %2453 = vmatmul.mubr.bf16.gmra.mxu1 %v1754_v38 }
 0x118   : > { %3425 = vmatmul.mubr.msk.bf16.gmra.mxu0 %vm1587_vm2, %v1574_v15  ;;  %2460 = vmatprep.mubr.bf16.mxu1 %v1807_v3 }
 0x119   : > { %3428 = vmatprep.mubr.msk.bf16.mxu0 %vm1587_vm2, %v1577_v52 }
 0x11f   : > { %2461 = vmatmul.mubr.bf16.gmra.mxu1 %v1758_v25 }
 0x120   : > { %3429 = vmatmul.mubr.msk.bf16.gmra.mxu0 %vm1587_vm2, %v1580_v49  ;;  %2468 = vmatprep.mubr.bf16.mxu1 %v1810_v54 }
 0x121   : > { %3432 = vmatprep.mubr.msk.bf16.mxu0 %vm1587_vm2, %v1583_v57 }
 0x127   : > { %2469 = vmatmul.mubr.bf16.gmra.mxu1 %v1762_v60 }
 0x128   : > { %3433 = vmatmul.mubr.msk.bf16.gmra.mxu0 %vm1587_vm2, %v1586_v34 }
 0x14f   : > { %v3240_v37 = vpop.f32.mrf.mxu1  ;;  %v3168_v10 = vpop.f32.mrf.mxu0 }
 0x151   : > { %v3241_v16 = vpop.f32.mrf.mxu1  ;;  %v3169_v62 = vpop.f32.mrf.mxu0 }
 0x152   : > { %v4500_v20 = vadd.f32 %v3241_v16, %v3240_v37  ;;  %v4502_v45 = vadd.f32 %v3169_v62, %v3168_v10 }
 0x153   : > { %v3243_v41 = vpop.f32.mrf.mxu1  ;;  %v3171_v30 = vpop.f32.mrf.mxu0 }
 0x154   : > { %4828 = vst [vmem:[#allocation2_spill] sm:$0xff] %v4500_v20 }
 0x155   : > { %v3244_v59 = vpop.f32.mrf.mxu1  ;;  %v3172_v1 = vpop.f32.mrf.mxu0 }
 0x156   : > { %v4504_v61 = vadd.f32 %v3244_v59, %v3243_v41  ;;  %v4506_v4 = vadd.f32 %v3172_v1, %v3171_v30 }
 0x157   : > { %v3246_v6 = vpop.f32.mrf.mxu1 }
 0x158   : > { %4829 = vst [vmem:[#allocation3_spill] sm:$0xff] %v4504_v61  ;;  %v3174_v56 = vpop.f32.mrf.mxu0 }
 0x159   : > { %v3247_v39 = vpop.f32.mrf.mxu1 }
 0x15a   : > { %v4508_v51 = vadd.f32 %v3247_v39, %v3246_v6  ;;  %v3175_v35 = vpop.f32.mrf.mxu0 }
 0x15b   : > { %v4510_v9 = vadd.f32 %v3175_v35, %v3174_v56  ;;  %v3249_v13 = vpop.f32.mrf.mxu1 }
 0x15c   : > { %4830 = vst [vmem:[#allocation4_spill] sm:$0xff] %v4508_v51  ;;  %v3177_v14 = vpop.f32.mrf.mxu0 }
 0x15d   : > { %v3250_v7 = vpop.f32.mrf.mxu1 }
 0x15e   : > { %v4512_v48 = vadd.f32 %v3250_v7, %v3249_v13  ;;  %v3178_v17 = vpop.f32.mrf.mxu0 }
 0x15f   : > { %v4514_v29 = vadd.f32 %v3178_v17, %v3177_v14  ;;  %v3252_v63 = vpop.f32.mrf.mxu1 }
 0x160   : > { %4831 = vst [vmem:[#allocation5_spill] sm:$0xff] %v4512_v48  ;;  %v3180_v8 = vpop.f32.mrf.mxu0 }
 0x161   : > { %v3253_v23 = vpop.f32.mrf.mxu1 }
 0x162   : > { %v4516_v11 = vadd.f32 %v3253_v23, %v3252_v63  ;;  %v3181_v24 = vpop.f32.mrf.mxu0 }
 0x163   : > { %v4518_v5 = vadd.f32 %v3181_v24, %v3180_v8  ;;  %v3255_v26 = vpop.f32.mrf.mxu1 }
 0x164   : > { %4832 = vst [vmem:[#allocation6_spill] sm:$0xff] %v4516_v11  ;;  %v3183_v0 = vpop.f32.mrf.mxu0 }
 0x165   : > { %v3256_v21 = vpop.f32.mrf.mxu1 }
 0x166   : > { %v4520_v31 = vadd.f32 %v3256_v21, %v3255_v26  ;;  %v3184_v32 = vpop.f32.mrf.mxu0 }
 0x167   : > { %v4522_v38 = vadd.f32 %v3184_v32, %v3183_v0  ;;  %v3258_v15 = vpop.f32.mrf.mxu1 }
 0x168   : > { %4833 = vst [vmem:[#allocation7_spill] sm:$0xff] %v4520_v31  ;;  %v3186_v3 = vpop.f32.mrf.mxu0 }
 0x169   : > { %v3259_v33 = vpop.f32.mrf.mxu1 }
 0x16a   : > { %v4524_v36 = vadd.f32 %v3259_v33, %v3258_v15  ;;  %v3187_v46 = vpop.f32.mrf.mxu0 }
 0x16b   : > { %v4526_v52 = vadd.f32 %v3187_v46, %v3186_v3  ;;  %v3261_v27 = vpop.f32.mrf.mxu1 }
 0x16c   : > { %4834 = vst [vmem:[#allocation8_spill] sm:$0xff] %v4524_v36  ;;  %v3189_v28 = vpop.f32.mrf.mxu0 }
 0x16d   : > { %v3262_v58 = vpop.f32.mrf.mxu1 }
 0x16e   : > { %v4528_v40 = vadd.f32 %v3262_v58, %v3261_v27  ;;  %v3190_v2 = vpop.f32.mrf.mxu0 }
 0x16f   : > { %v4530_v43 = vadd.f32 %v3190_v2, %v3189_v28  ;;  %v4532_v44 = vpop.f32.mrf.mxu1 }
 0x170   : > { %4835 = vst [vmem:[#allocation9_spill] sm:$0xff] %v4528_v40  ;;  %v3192_v47 = vpop.f32.mrf.mxu0 }
 0x171   : > { %v4534_v50 = vpop.f32.mrf.mxu1 }
 0x172   : > { %v3193_v53 = vpop.f32.mrf.mxu0 }
 0x173   : > { %v4536_v25 = vadd.f32 %v3193_v53, %v3192_v47  ;;  %v4538_v49 = vpop.f32.mrf.mxu1 }
 0x174   : > { %v3195_v54 = vpop.f32.mrf.mxu0 }
 0x175   : > { %v4540_v42 = vpop.f32.mrf.mxu1 }
 0x176   : > { %v3196_v55 = vpop.f32.mrf.mxu0 }
 0x177   : > { %v4542_v57 = vadd.f32 %v3196_v55, %v3195_v54  ;;  %v3286_v12 = vpop.f32.mrf.mxu1 }
 0x178   : > { %v3198_v18 = vpop.f32.mrf.mxu0 }
 0x179   : > { %v3287_v19 = vpop.f32.mrf.mxu1 }
 0x17a   : > { %v3199_v22 = vpop.f32.mrf.mxu0  ;;  %v3288_v20 = vadd.f32 %v3287_v19, %v3286_v12 }
 0x17b   : > { %v4544_v60 = vadd.f32 %v3199_v22, %v3198_v18  ;;  %v3289_v34 = vpop.f32.mrf.mxu1 }
 0x17c   : > { %v3201_v37 = vpop.f32.mrf.mxu0 }
 0x17d   : > { %v3290_v10 = vpop.f32.mrf.mxu1 }
 0x17e   : > { %v3202_v16 = vpop.f32.mrf.mxu0  ;;  %v3291_v19 = vadd.f32 %v3290_v10, %v3289_v34 }
 0x17f   : > { %v4546_v62 = vadd.f32 %v3202_v16, %v3201_v37  ;;  %v4548_v41 = vpop.f32.mrf.mxu1 }
 0x180   : > { %v3204_v30 = vpop.f32.mrf.mxu0 }
 0x181   : > { %v4550_v59 = vpop.f32.mrf.mxu1 }
 0x182   : > { %v3205_v1 = vpop.f32.mrf.mxu0 }
 0x183   : > { %v4552_v6 = vadd.f32 %v3205_v1, %v3204_v30  ;;  %v4554_v56 = vpop.f32.mrf.mxu1 }
 0x184   : > { %v3207_v39 = vpop.f32.mrf.mxu0 }
 0x185   : > { %v4556_v35 = vpop.f32.mrf.mxu1 }
 0x186   : > { %v3208_v13 = vpop.f32.mrf.mxu0 }
 0x187   : > { %v4558_v14 = vadd.f32 %v3208_v13, %v3207_v39  ;;  %v3298_v7 = vpop.f32.mrf.mxu1 }
 0x188   : > { %v4560_v17 = vpop.f32.mrf.mxu0 }
 0x189   : > { %v3299_v63 = vpop.f32.mrf.mxu1 }
 0x18a   : > { %v4562_v8 = vpop.f32.mrf.mxu0  ;;  %v3300_v34 = vadd.f32 %v3299_v63, %v3298_v7 }
 0x18b   : > { %v4564_v23 = vpop.f32.mrf.mxu1 }
 0x18c   : > { %v4566_v24 = vpop.f32.mrf.mxu0 }
 0x18d   : > { %v4568_v26 = vpop.f32.mrf.mxu1 }
 0x18e   : > { %v4570_v0 = vpop.f32.mrf.mxu0  ;;  %v3303_v63 = vadd.f32 %v4568_v26, %v4564_v23 }
 0x18f   : > { %v4572_v21 = vpop.f32.mrf.mxu1 }
 0x190   : > { %v4574_v32 = vpop.f32.mrf.mxu0 }
 0x191   : > { %v4576_v15 = vpop.f32.mrf.mxu1 }
 0x192   : > { %v4578_v3 = vpop.f32.mrf.mxu0 }
 0x193   : > { %v4580_v33 = vpop.f32.mrf.mxu1 }
 0x194   : > { %v4582_v46 = vpop.f32.mrf.mxu0 }
 0x195   : > { %4836 = vst [vmem:[#allocation10_spill] sm:$0xff] %v4582_v46  ;;  %v4584_v27 = vpop.f32.mrf.mxu1 }
 0x196   : > { %v4586_v28 = vpop.f32.mrf.mxu0 }
 0x197   : > { %4837 = vst [vmem:[#allocation11_spill] sm:$0xff] %v4586_v28  ;;  %v4588_v58 = vpop.f32.mrf.mxu1 }
 0x198   : > { %v4590_v2 = vpop.f32.mrf.mxu0 }
 0x199   : > { %v4592_v47 = vpop.f32.mrf.mxu1 }
 0x19a   : > { %v4594_v53 = vpop.f32.mrf.mxu0 }
 0x19b   : > { %v4596_v54 = vpop.f32.mrf.mxu1 }
 0x19c   : > { %v4598_v55 = vpop.f32.mrf.mxu0 }
 0x19d   : > { %4838 = vst [vmem:[#allocation12_spill] sm:$0xff] %v4598_v55  ;;  %v4600_v18 = vpop.f32.mrf.mxu1 }
 0x19e   : > { %v4602_v22 = vpop.f32.mrf.mxu0 }
 0x19f   : > { %4839 = vst [vmem:[#allocation13_spill] sm:$0xff] %v4602_v22  ;;  %v4604_v37 = vpop.f32.mrf.mxu1 }
 0x1a0   : > { %v4606_v16 = vpop.f32.mrf.mxu0 }
 0x1a1   : > { %4840 = vst [vmem:[#allocation14_spill] sm:$0xff] %v4606_v16  ;;  %v4608_v30 = vpop.f32.mrf.mxu1  ;;  %v3282_v16 = vadd.f32 %v4534_v50, %v4532_v44 }
 0x1a2   : > { %v4610_v1 = vpop.f32.mrf.mxu0 }
 0x1a3   : > { %4841 = vst [vmem:[#allocation15_spill] sm:$0xff] %v4610_v1  ;;  %v4612_v39 = vpop.f32.mrf.mxu1  ;;  %v4633_v1 = vld [vmem:[%s4826_s2] ss:$0 sm:$0xff] }
 0x1a4   : > { %v4614_v13 = vpop.f32.mrf.mxu0  ;;  %v2190_v12 = vadd.f32 %v4502_v45, %v4633_v1  ;;  %v2193_v45 = vadd.f32 %v4506_v4, %v4633_v1  ;;  %v2206_v4 = vadd.f32 %v4518_v5, %v4633_v1 }
 0x1a5   : > { %4842 = vst [vmem:[#allocation16_spill] sm:$0xff] %v4614_v13  ;;  %v4616_v40 = vpop.f32.mrf.mxu1 }
 0x1a6   : > { %v4618_v31 = vpop.f32.mrf.mxu0  ;;  %v2351_v55 = vadd.f32 %v3282_v16, %v2190_v12 }
 0x1a7   : > { %4843 = vst [vmem:[#allocation17_spill] sm:$0xff] %v4618_v31  ;;  %v4620_v36 = vpop.f32.mrf.mxu1  ;;  %v2198_v31 = vadd.f32 %v4510_v9, %v4633_v1  ;;  %v3285_v9 = vadd.f32 %v4540_v42, %v4538_v49 }
 0x1a8   : > { %v4622_v11 = vpop.f32.mrf.mxu0 }
 0x1a9   : > { %4844 = vst [vmem:[#allocation18_spill] sm:$0xff] %v4622_v11  ;;  %v4624_v61 = vpop.f32.mrf.mxu1  ;;  %v2359_v46 = vadd.f32 %v3288_v20, %v2198_v31  ;;  %v2214_v31 = vadd.f32 %v4526_v52, %v4633_v1  ;;  %v2354_v12 = vadd.f32 %v3285_v9, %v2193_v45 }
 0x1aa   : > { %v4626_v48 = vpop.f32.mrf.mxu0 }
 0x1ab   : > { %4845 = vst [vmem:[#allocation19_spill] sm:$0xff] %v4626_v48  ;;  %v4628_v51 = vpop.f32.mrf.mxu1 }
 0x1ac   : > { %v4635_v13 = vpop.f32.mrf.mxu0 }
 0x1ad   : > { %4846 = vst [vmem:[#allocation20_spill] sm:$0xff] %v4635_v13  ;;  %v4641_v11 = vpop.f32.mrf.mxu1  ;;  %v2201_v13 = vadd.f32 %v4514_v29, %v4633_v1  ;;  %v3294_v29 = vadd.f32 %v4550_v59, %v4548_v41  ;;  %v2375_v41 = vadd.f32 %v3300_v34, %v2214_v31  ;;  %v2217_v59 = vadd.f32 %v4530_v43, %v4633_v1 }
 0x1ae   : > { %v4643_v28 = vpop.f32.mrf.mxu0  ;;  %v2209_v43 = vadd.f32 %v4522_v38, %v4633_v1 }
 0x1af   : > { %4847 = vst [vmem:[#allocation21_spill] sm:$0xff] %v4643_v28  ;;  %v4647_v48 = vpop.f32.mrf.mxu1  ;;  %v2362_v20 = vadd.f32 %v3291_v19, %v2201_v13  ;;  %v3297_v13 = vadd.f32 %v4556_v35, %v4554_v56  ;;  %v2367_v23 = vadd.f32 %v3294_v29, %v2206_v4  ;;  %v3312_v56 = vadd.f32 %v4592_v47, %v4588_v58 }
 0x1b0   : > { %4848 = vst [vmem:[#allocation22_spill] sm:$0xff] %v4647_v48  ;;  %v3406_v22 = vpop.f32.mrf.mxu0  ;;  %v2378_v31 = vadd.f32 %v3303_v63, %v2217_v59  ;;  %v2230_v29 = vadd.f32 %v4544_v60, %v4633_v1  ;;  %v2222_v4 = vadd.f32 %v4536_v25, %v4633_v1  ;;  %v3315_v63 = vadd.f32 %v4600_v18, %v4596_v54 }
 0x1b1   : > { %v2520_v44 = vadd.f32 %v3406_v22, %v2359_v46  ;;  %v4653_v50 = vpop.f32.mrf.mxu1  ;;  %v2370_v38 = vadd.f32 %v3297_v13, %v2209_v43  ;;  %v3309_v25 = vadd.f32 %v4584_v27, %v4580_v33  ;;  %v3215_v43 = vadd.f32 %v4570_v0, %v4566_v24 }
 0x1b2   : > { %v2511_v28 = vpop.f32.mrf.mxu0 }
 0x1b3   : > { %v2512_v10 = vadd.f32 %v2511_v28, %v2351_v55  ;;  %v4657_v48 = vpop.f32.mrf.mxu1  ;;  %v2640_v42 = vmax.f32 %v2520_v44, 0.0 }
 0x1b4   : > { %v3407_v49 = vpop.f32.mrf.mxu0 }
 0x1b5   : > { %v2638_v46 = vmax.f32 %v2512_v10, 0.0  ;;  %v2523_v22 = vadd.f32 %v3407_v49, %v2362_v20  ;;  %v4664_v16 = vpop.f32.mrf.mxu1  ;;  %v3306_v49 = vadd.f32 %v4576_v15, %v4572_v21  ;;  %v2391_v15 = vadd.f32 %v3312_v56, %v2230_v29 }
 0x1b6   : > { %v2514_v7 = vpop.f32.mrf.mxu0  ;;  %v2238_v29 = vadd.f32 %v4552_v6, %v4633_v1 }
 0x1b7   : > { %v2670_v28 = vmax.f32 %v2638_v46, %v2640_v42  ;;  %v2515_v52 = vadd.f32 %v2514_v7, %v2354_v12  ;;  %v4670_v55 = vpop.f32.mrf.mxu1  ;;  %v2641_v19 = vmax.f32 %v2523_v22, 0.0  ;;  %v2383_v13 = vadd.f32 %v3306_v49, %v2222_v4 }
 0x1b8   : > { %v3410_v5 = vpop.f32.mrf.mxu0 }
 0x1b9   : > { %v3136_v26 = vpack.c.bf16 %v2670_v28, %v2670_v28  ;;  %v2639_v9 = vmax.f32 %v2515_v52, 0.0  ;;  %v2536_v44 = vadd.f32 %v3410_v5, %v2375_v41  ;;  %v4681_v45 = vpop.f32.mrf.mxu1  ;;  %v2233_v52 = vadd.f32 %v4546_v62, %v4633_v1 }
 0x1ba   : > { %v2527_v34 = vpop.f32.mrf.mxu0  ;;  %v3212_v41 = vadd.f32 %v4562_v8, %v4560_v17  ;;  %v3324_v62 = vadd.f32 %v4624_v61, %v4620_v36 }
 0x1bb   : > { %2751 = vst.msk [vmem:[%s4679_s4] sm:$0xf] %vm2750_vm3, %v3136_v26  ;;  %v2671_v35 = vmax.f32 %v2639_v9, %v2641_v19  ;;  %v2528_v10 = vadd.f32 %v2527_v34, %v2367_v23  ;;  %v4689_v20 = vpop.f32.mrf.mxu1  ;;  %v2644_v22 = vmax.f32 %v2536_v44, 0.0  ;;  %v2225_v19 = vadd.f32 %v4542_v57, %v4633_v1 }
 0x1bc   : > { %v3411_v42 = vpop.f32.mrf.mxu0  ;;  %v2394_v27 = vadd.f32 %v3315_v63, %v2233_v52  ;;  %v2246_v44 = vadd.f32 %v3212_v41, %v4633_v1  ;;  %v3318_v57 = vadd.f32 %v4608_v30, %v4604_v37  ;;  %v2241_v63 = vadd.f32 %v4558_v14, %v4633_v1  ;;  %v4849_v41 = vld [vmem:[#allocation12_spill] sm:$0xff]  ;;  %v4851_v14 = vld [vmem:[#allocation22_spill] sm:$0xff] }
 0x1bd   : > { %v3137_v46 = vpack.c.bf16 %v2671_v35, %v2671_v35  ;;  %v2642_v12 = vmax.f32 %v2528_v10, 0.0  ;;  %v2539_v58 = vadd.f32 %v3411_v42, %v2378_v31  ;;  %v4695_v47 = vpop.f32.mrf.mxu1  ;;  %v2386_v56 = vadd.f32 %v3309_v25, %v2225_v19  ;;  %v4850_v25 = vld [vmem:[#allocation13_spill] sm:$0xff]  ;;  %v4852_v19 = vld [vmem:[#allocation10_spill] sm:$0xff] }
 0x1be   : > { %v2530_v7 = vpop.f32.mrf.mxu0  ;;  %v3327_v42 = vadd.f32 %v4641_v11, %v4628_v51  ;;  %v2407_v30 = vadd.f32 %v3324_v62, %v2246_v44 }
 0x1bf   : > { %2752 = vst.msk [vmem:[%s4679_s4 + $0x4] sm:$0xf] %vm2750_vm3, %v3137_v46  ;;  %v2672_v60 = vmax.f32 %v2642_v12, %v2644_v22  ;;  %v2531_v28 = vadd.f32 %v2530_v7, %v2370_v38  ;;  %v4703_v21 = vpop.f32.mrf.mxu1  ;;  %v2645_v18 = vmax.f32 %v2539_v58, 0.0  ;;  %v2249_v38 = vadd.f32 %v3215_v43, %v4633_v1 }
 0x1c0   : > { %v3414_v59 = vpop.f32.mrf.mxu0  ;;  %v3224_v46 = vadd.f32 %v4594_v53, %v4590_v2  ;;  %v3321_v22 = vadd.f32 %v4616_v40, %v4612_v39  ;;  %v2399_v12 = vadd.f32 %v3318_v57, %v2238_v29  ;;  %v3336_v2 = vadd.f32 %v4681_v45, %v4670_v55 }
 0x1c1   : > { %v3138_v54 = vpack.c.bf16 %v2672_v60, %v2672_v60  ;;  %v2643_v5 = vmax.f32 %v2531_v28, 0.0  ;;  %v2552_v23 = vadd.f32 %v3414_v59, %v2391_v15  ;;  %v4711_v26 = vpop.f32.mrf.mxu1  ;;  %v3218_v60 = vadd.f32 %v4578_v3, %v4574_v32 }
 0x1c2   : > { %v2543_v9 = vpop.f32.mrf.mxu0  ;;  %v2410_v15 = vadd.f32 %v3327_v42, %v2249_v38  ;;  %v2262_v52 = vadd.f32 %v3224_v46, %v4633_v1  ;;  %v3227_v59 = vadd.f32 %v4850_v25, %v4849_v41  ;;  %v2402_v3 = vadd.f32 %v3321_v22, %v2241_v63  ;;  %v4861_v41 = vld [vmem:[#allocation17_spill] sm:$0xff] }
 0x1c3   : > { %2753 = vst.msk [vmem:[%s4679_s4 + $0x8] sm:$0xf] %vm2750_vm3, %v3138_v54  ;;  %v2673_v17 = vmax.f32 %v2643_v5, %v2645_v18  ;;  %v2544_v8 = vadd.f32 %v2543_v9, %v2383_v13  ;;  %v4719_v33 = vpop.f32.mrf.mxu1  ;;  %v2648_v61 = vmax.f32 %v2552_v23, 0.0  ;;  %v3330_v13 = vadd.f32 %v4653_v50, %v4851_v14  ;;  %v4853_v9 = vld [vmem:[#allocation11_spill] sm:$0xff] }
 0x1c4   : > { %v3415_v34 = vpop.f32.mrf.mxu0  ;;  %v2254_v23 = vadd.f32 %v3218_v60, %v4633_v1  ;;  %v3221_v62 = vadd.f32 %v4853_v9, %v4852_v19  ;;  %v2423_v43 = vadd.f32 %v3336_v2, %v2262_v52  ;;  %v2265_v57 = vadd.f32 %v3227_v59, %v4633_v1  ;;  %v4860_v52 = vld [vmem:[#allocation16_spill] sm:$0xff] }
 0x1c5   : > { %v3139_v35 = vpack.c.bf16 %v2673_v17, %v2673_v17  ;;  %v2646_v36 = vmax.f32 %v2544_v8, 0.0  ;;  %v2555_v10 = vadd.f32 %v3415_v34, %v2394_v27  ;;  %v4726_v31 = vpop.f32.mrf.mxu1  ;;  %v3339_v8 = vadd.f32 %v4695_v47, %v4689_v20  ;;  %v4854_v34 = vld [vmem:[#allocation18_spill] sm:$0xff] }
 0x1c6   : > { %v2546_v49 = vpop.f32.mrf.mxu0  ;;  %v3342_v63 = vadd.f32 %v4711_v26, %v4703_v21  ;;  %v3233_v25 = vadd.f32 %v4861_v41, %v4860_v52 }
 0x1c7   : > { %2754 = vst.msk [vmem:[%s4679_s4 + $0xc] sm:$0xf] %vm2750_vm3, %v3139_v35  ;;  %v2674_v24 = vmax.f32 %v2646_v36, %v2648_v61  ;;  %v2547_v0 = vadd.f32 %v2546_v49, %v2386_v56  ;;  %v3346_v37 = vpop.f32.mrf.mxu1  ;;  %v2649_v4 = vmax.f32 %v2555_v10, 0.0  ;;  %v4855_v56 = vld [vmem:[#allocation19_spill] sm:$0xff]  ;;  %v3333_v61 = vadd.f32 %v4664_v16, %v4657_v48 }
 0x1c8   : > { %v3418_v6 = vpop.f32.mrf.mxu0  ;;  %v3236_v35 = vadd.f32 %v4855_v56, %v4854_v34  ;;  %v2415_v10 = vadd.f32 %v3330_v13, %v2254_v23  ;;  %v2426_v48 = vadd.f32 %v3339_v8, %v2265_v57 }
 0x1c9   : > { %v3140_v58 = vpack.c.bf16 %v2674_v24, %v2674_v24  ;;  %v2647_v51 = vmax.f32 %v2547_v0, 0.0  ;;  %v2568_v11 = vadd.f32 %v3418_v6, %v2407_v30  ;;  %v3347_v7 = vpop.f32.mrf.mxu1  ;;  %v2257_v24 = vadd.f32 %v3221_v62, %v4633_v1  ;;  %v4856_v0 = vld [vmem:[#allocation14_spill] sm:$0xff]  ;;  %v4857_v30 = vld [vmem:[#allocation15_spill] sm:$0xff] }
 0x1ca   : > { %v2559_v28 = vpop.f32.mrf.mxu0  ;;  %v3230_v38 = vadd.f32 %v4857_v30, %v4856_v0  ;;  %v3348_v22 = vadd.f32 %v3347_v7, %v3346_v37  ;;  %v2278_v16 = vadd.f32 %v3236_v35, %v4633_v1 }
 0x1cb   : > { %2755 = vst.msk [vmem:[%s4679_s4 + $0x10] sm:$0xf] %vm2750_vm3, %v3140_v58  ;;  %v2675_v40 = vmax.f32 %v2647_v51, %v2649_v4  ;;  %v2560_v53 = vadd.f32 %v2559_v28, %v2399_v12  ;;  %v3349_v39 = vpop.f32.mrf.mxu1  ;;  %v2652_v18 = vmax.f32 %v2568_v11, 0.0  ;;  %v4858_v4 = vld [vmem:[#allocation20_spill] sm:$0xff]  ;;  %v4859_v51 = vld [vmem:[#allocation21_spill] sm:$0xff]  ;;  %v2418_v28 = vadd.f32 %v3333_v61, %v2257_v24 }
 0x1cc   : > { %v3419_v32 = vpop.f32.mrf.mxu0  ;;  %v3239_v11 = vadd.f32 %v4859_v51, %v4858_v4  ;;  %v2439_v26 = vadd.f32 %v3348_v22, %v2278_v16 }
 0x1cd   : > { %v3141_v54 = vpack.c.bf16 %v2675_v40, %v2675_v40  ;;  %v2650_v55 = vmax.f32 %v2560_v53, 0.0  ;;  %v2571_v45 = vadd.f32 %v3419_v32, %v2410_v15  ;;  %v3350_v5 = vpop.f32.mrf.mxu1  ;;  %v2270_v15 = vadd.f32 %v3230_v38, %v4633_v1 }
 0x1ce   : > { %v2562_v17 = vpop.f32.mrf.mxu0  ;;  %v3351_v14 = vadd.f32 %v3350_v5, %v3349_v39  ;;  %v2273_v39 = vadd.f32 %v3233_v25, %v4633_v1 }
 0x1cf   : > { %2756 = vst.msk [vmem:[%s4679_s4 + $0x14] sm:$0xf] %vm2750_vm3, %v3141_v54  ;;  %v2676_v27 = vmax.f32 %v2650_v55, %v2652_v18  ;;  %v2563_v50 = vadd.f32 %v2562_v17, %v2402_v3  ;;  %v3352_v44 = vpop.f32.mrf.mxu1  ;;  %v2653_v49 = vmax.f32 %v2571_v45, 0.0  ;;  %v2281_v3 = vadd.f32 %v3239_v11, %v4633_v1 }
 0x1d0   : > { %v3422_v36 = vpop.f32.mrf.mxu0  ;;  %v3345_v54 = vadd.f32 %v4726_v31, %v4719_v33  ;;  %v2431_v55 = vadd.f32 %v3342_v63, %v2270_v15  ;;  %v4862_v33 = vld [vmem:[#allocation4_spill] sm:$0xff]  ;;  %v4865_v63 = vld [vmem:[#allocation3_spill] sm:$0xff] }
 0x1d1   : > { %v3142_v29 = vpack.c.bf16 %v2676_v27, %v2676_v27  ;;  %v2651_v20 = vmax.f32 %v2563_v50, 0.0  ;;  %v2584_v47 = vadd.f32 %v3422_v36, %v2423_v43  ;;  %v3353_v42 = vpop.f32.mrf.mxu1  ;;  %v2442_v43 = vadd.f32 %v3351_v14, %v2281_v3  ;;  %v4866_v3 = vld [vmem:[#allocation6_spill] sm:$0xff] }
 0x1d2   : > { %v2575_v46 = vpop.f32.mrf.mxu0  ;;  %v2294_v31 = vadd.f32 %v4862_v33, %v4633_v1  ;;  %v3354_v57 = vadd.f32 %v3353_v42, %v3352_v44  ;;  %v2434_v56 = vadd.f32 %v3345_v54, %v2273_v39  ;;  %v4864_v44 = vld [vmem:[#allocation5_spill] sm:$0xff]  ;;  %v2302_v54 = vadd.f32 %v4866_v3, %v4633_v1 }
 0x1d3   : > { %2757 = vst.msk [vmem:[%s4679_s4 + $0x18] sm:$0xf] %vm2750_vm3, %v3142_v29  ;;  %v2677_v6 = vmax.f32 %v2651_v20, %v2653_v49  ;;  %v2576_v12 = vadd.f32 %v2575_v46, %v2415_v10  ;;  %v3355_v58 = vpop.f32.mrf.mxu1  ;;  %v2656_v40 = vmax.f32 %v2584_v47, 0.0  ;;  %v4863_v49 = vld [vmem:[#allocation2_spill] sm:$0xff]  ;;  %v2297_v42 = vadd.f32 %v4864_v44, %v4633_v1 }
 0x1d4   : > { %v3423_v60 = vpop.f32.mrf.mxu0  ;;  %v2286_v20 = vadd.f32 %v4863_v49, %v4633_v1 }
 0x1d5   : > { %v3143_v2 = vpack.c.bf16 %v2677_v6, %v2677_v6  ;;  %v2654_v37 = vmax.f32 %v2576_v12, 0.0  ;;  %v2587_v7 = vadd.f32 %v3423_v60, %v2426_v48  ;;  %v3356_v53 = vpop.f32.mrf.mxu1  ;;  %v2289_v60 = vadd.f32 %v4865_v63, %v4633_v1 }
 0x1d6   : > { %v2578_v59 = vpop.f32.mrf.mxu0  ;;  %v3357_v22 = vadd.f32 %v3356_v53, %v3355_v58  ;;  %v2447_v12 = vadd.f32 %v3354_v57, %v2286_v20 }
 0x1d7   : > { %2758 = vst.msk [vmem:[%s4679_s4 + $0x1c] sm:$0xf] %vm2750_vm3, %v3143_v2  ;;  %v2678_v13 = vmax.f32 %v2654_v37, %v2656_v40  ;;  %v2579_v32 = vadd.f32 %v2578_v59, %v2418_v28  ;;  %v3358_v21 = vpop.f32.mrf.mxu1  ;;  %v2657_v23 = vmax.f32 %v2587_v7, 0.0 }
 0x1d8   : > { %v3426_v18 = vpop.f32.mrf.mxu0  ;;  %v2450_v58 = vadd.f32 %v3357_v22, %v2289_v60 }
 0x1d9   : > { %v3144_v45 = vpack.c.bf16 %v2678_v13, %v2678_v13  ;;  %v2655_v19 = vmax.f32 %v2579_v32, 0.0  ;;  %v2600_v9 = vadd.f32 %v3426_v18, %v2439_v26  ;;  %v3359_v62 = vpop.f32.mrf.mxu1 }
 0x1da   : > { %v2591_v5 = vpop.f32.mrf.mxu0  ;;  %v3360_v8 = vadd.f32 %v3359_v62, %v3358_v21 }
 0x1db   : > { %2759 = vst.msk [vmem:[%s4679_s4 + $0x20] sm:$0xf] %vm2750_vm3, %v3144_v45  ;;  %v2679_v17 = vmax.f32 %v2655_v19, %v2657_v23  ;;  %v2592_v27 = vadd.f32 %v2591_v5, %v2431_v55  ;;  %v3361_v50 = vpop.f32.mrf.mxu1  ;;  %v2660_v61 = vmax.f32 %v2600_v9, 0.0  ;;  %v4867_v9 = vld [vmem:[#allocation8_spill] sm:$0xff] }
 0x1dc   : > { %v3427_v34 = vpop.f32.mrf.mxu0  ;;  %v2455_v46 = vadd.f32 %v3360_v8, %v2294_v31  ;;  %v2310_v62 = vadd.f32 %v4867_v9, %v4633_v1 }
 0x1dd   : > { %v3145_v35 = vpack.c.bf16 %v2679_v17, %v2679_v17  ;;  %v2658_v36 = vmax.f32 %v2592_v27, 0.0  ;;  %v2603_v10 = vadd.f32 %v3427_v34, %v2442_v43  ;;  %v3362_v29 = vpop.f32.mrf.mxu1  ;;  %v4868_v43 = vld [vmem:[#allocation7_spill] sm:$0xff] }
 0x1de   : > { %v2594_v47 = vpop.f32.mrf.mxu0  ;;  %v3363_v0 = vadd.f32 %v3362_v29, %v3361_v50  ;;  %v2305_v33 = vadd.f32 %v4868_v43, %v4633_v1 }
 0x1df   : > { %2760 = vst.msk [vmem:[%s4679_s4 + $0x24] sm:$0xf] %vm2750_vm3, %v3145_v35  ;;  %v2680_v24 = vmax.f32 %v2658_v36, %v2660_v61  ;;  %v2595_v30 = vadd.f32 %v2594_v47, %v2434_v56  ;;  %v3364_v38 = vpop.f32.mrf.mxu1  ;;  %v2661_v16 = vmax.f32 %v2603_v10, 0.0  ;;  %v4869_v61 = vld [vmem:[#allocation9_spill] sm:$0xff] }
 0x1e0   : > { %v3430_v6 = vpop.f32.mrf.mxu0  ;;  %v2458_v7 = vadd.f32 %v3363_v0, %v2297_v42  ;;  %v2313_v36 = vadd.f32 %v4869_v61, %v4633_v1 }
 0x1e1   : > { %v3146_v48 = vpack.c.bf16 %v2680_v24, %v2680_v24  ;;  %v2659_v4 = vmax.f32 %v2595_v30, 0.0  ;;  %v2616_v51 = vadd.f32 %v3430_v6, %v2455_v46  ;;  %v3365_v11 = vpop.f32.mrf.mxu1 }
 0x1e2   : > { %v2607_v28 = vpop.f32.mrf.mxu0  ;;  %v3366_v14 = vadd.f32 %v3365_v11, %v3364_v38 }
 0x1e3   : > { %2761 = vst.msk [vmem:[%s4679_s4 + $0x28] sm:$0xf] %vm2750_vm3, %v3146_v48  ;;  %v2681_v2 = vmax.f32 %v2659_v4, %v2661_v16  ;;  %v2608_v40 = vadd.f32 %v2607_v28, %v2447_v12  ;;  %v3367_v37 = vpop.f32.mrf.mxu1  ;;  %v2664_v52 = vmax.f32 %v2616_v51, 0.0 }
 0x1e4   : > { %v3431_v15 = vpop.f32.mrf.mxu0  ;;  %v2463_v17 = vadd.f32 %v3366_v14, %v2302_v54 }
 0x1e5   : > { %v3147_v53 = vpack.c.bf16 %v2681_v2, %v2681_v2  ;;  %v2662_v41 = vmax.f32 %v2608_v40, 0.0  ;;  %v2619_v25 = vadd.f32 %v3431_v15, %v2458_v7  ;;  %v3368_v59 = vpop.f32.mrf.mxu1 }
 0x1e6   : > { %v2610_v13 = vpop.f32.mrf.mxu0  ;;  %v3369_v39 = vadd.f32 %v3368_v59, %v3367_v37 }
 0x1e7   : > { %2762 = vst.msk [vmem:[%s4679_s4 + $0x2c] sm:$0xf] %vm2750_vm3, %v3147_v53  ;;  %v2682_v32 = vmax.f32 %v2662_v41, %v2664_v52  ;;  %v2611_v21 = vadd.f32 %v2610_v13, %v2450_v58  ;;  %v3370_v26 = vpop.f32.mrf.mxu1  ;;  %v2665_v45 = vmax.f32 %v2619_v25, 0.0 }
 0x1e8   : > { %v3434_v18 = vpop.f32.mrf.mxu0  ;;  %v2466_v49 = vadd.f32 %v3369_v39, %v2305_v33 }
 0x1e9   : > { %v3148_v55 = vpack.c.bf16 %v2682_v32, %v2682_v32  ;;  %v2663_v23 = vmax.f32 %v2611_v21, 0.0  ;;  %v3371_v19 = vpop.f32.mrf.mxu1 }
 0x1ea   : > { %v3372_v5 = vadd.f32 %v3371_v19, %v3370_v26  ;;  %v2623_v8 = vpop.f32.mrf.mxu0 }
 0x1eb   : > { %2763 = vst.msk [vmem:[%s4679_s4 + $0x30] sm:$0xf] %vm2750_vm3, %v3148_v55  ;;  %v2683_v27 = vmax.f32 %v2663_v23, %v2665_v45  ;;  %v3373_v50 = vpop.f32.mrf.mxu1  ;;  %v2624_v57 = vadd.f32 %v2623_v8, %v2463_v17 }
 0x1ec   : > { %v2471_v31 = vadd.f32 %v3372_v5, %v2310_v62  ;;  %v3435_v34 = vpop.f32.mrf.mxu0 }
 0x1ed   : > { %v3149_v56 = vpack.c.bf16 %v2683_v27, %v2683_v27  ;;  %v3374_v35 = vpop.f32.mrf.mxu1  ;;  %v2666_v47 = vmax.f32 %v2624_v57, 0.0 }
 0x1ee   : > { %v2632_v10 = vadd.f32 %v3434_v18, %v2471_v31  ;;  %v3375_v29 = vadd.f32 %v3374_v35, %v3373_v50  ;;  %v2626_v20 = vpop.f32.mrf.mxu0 }
 0x1ef   : > { %2764 = vst.msk [vmem:[%s4679_s4 + $0x34] sm:$0xf] %vm2750_vm3, %v3149_v56  ;;  %v2627_v30 = vadd.f32 %v2626_v20, %v2466_v49 }
 0x1f0   : > { %v2668_v24 = vmax.f32 %v2632_v10, 0.0  ;;  %v2474_v0 = vadd.f32 %v3375_v29, %v2313_v36 }
 0x1f1   : > { %v2667_v42 = vmax.f32 %v2627_v30, 0.0 }
 0x1f2   : > { %v2684_v38 = vmax.f32 %v2666_v47, %v2668_v24  ;;  %v2635_v46 = vadd.f32 %v3435_v34, %v2474_v0 }
 0x1f4   : > { %v3150_v44 = vpack.c.bf16 %v2684_v38, %v2684_v38  ;;  %v2669_v22 = vmax.f32 %v2635_v46, 0.0 }
 0x1f6   : > { %2765 = vst.msk [vmem:[%s4679_s4 + $0x38] sm:$0xf] %vm2750_vm3, %v3150_v44  ;;  %v2685_v6 = vmax.f32 %v2667_v42, %v2669_v22 }
 0x1f8   : > { %v3151_v1 = vpack.c.bf16 %v2685_v6, %v2685_v6 }
 0x1fa   : > { %2766 = vst.msk [vmem:[%s4679_s4 + $0x3c] sm:$0xf] %vm2750_vm3, %v3151_v1 }
 0x1fb PF: > { %s13_s14 = sadd.s32 1, %s3712_s14   ;;  %s4870_s12 = smov %s3708_s13 }
 0x1fc   : > { %p10_p5 = scmp.ge.s32.totalorder %s13_s14, 4   ;;  %s4871_s13 = smov %s4873_s15 }
 0x1fe   :  { %12 = sbr.rel (!%p10_p5) target bundleno = 2 (0x2), region = 65 }

// kernel: vggnet_forward.8
= control target key start
LH: loop header
LB: loop body
LE: loop exit
PB: predicated region body
PF: predicated region fallthrough
CT: control target
= control target key end

     0   :  { %s1871_s12 = smov 0   ;;  %s1873_s13 = smov 0   ;;  %s2339_s0 = inlined_call_operand.vmem [shape: bf16[2,10,10,64], index: 0, kind: input, shape index: {}]   ;;  %s2340_s1 = inlined_call_operand.vmem [shape: bf16[576,128], index: 1, kind: input, shape index: {}]   ;;  %s2341_s2 = inlined_call_operand.vmem [shape: f32[1,128], index: 2, kind: input, shape index: {}]   ;;  %s2342_s3 = inlined_call_operand.vmem [shape: bf16[2,8,8,128], index: 3, kind: output, shape index: {}]  }
   0x1   :  { %s1875_s14 = smov 0  }
   0x2 LB: > { %s25_s15 = sadd.s32 1, %s1844_s13  ;;  %p1465_p0 = scmp.ge.s32.totalorder %s1848_s14, 1  ;;  %s1848_s14 = sphi %s1875_s14, %s13_s14   ;;  %s1844_s13 = sphi %s1873_s13, %s2344_s13   ;;  %s1840_s12 = sphi %s1871_s12, %s2343_s12  }
   0x3   : > { %p27_p1 = scmp.ge.s32.totalorder %s25_s15, 2  ;;  %p151_p2 = scmp.lt.s32.totalorder %s1848_s14, 3 }
   0x5   : > { %s2346_s15 = smov (%p27_p1, %s25_s15), 0  ;;  %p152_p3 = pnand %p1465_p0, %p151_p2 }
   0x6   : > { %p179_p4 = scmp.lt.s32.totalorder (!%p152_p3), %s1840_s12, 1  ;;  %s1850_s5 = smov (!%p152_p3), 64  }
   0x7   : > { %155 = sbr.rel (%p152_p3) target bundleno = 411 (0x19b), region = 32 }
   0xc   : > { %v1790_v0 = vld [vmem:[%s2340_s1 + $0xf8] sm:$0xff]   ;;  %s2348_s12 = smov (!%p179_p4, %s1840_s12), 1  ;;  %v1794_v4 = vld [vmem:[%s2340_s1 + $0xf0] sm:$0xff]   ;;  %v1798_v38 = vld [vmem:[%s2340_s1 + $0xe8] sm:$0xff]   ;;  %vm639_vm0 = vcmask 523264  }
   0xd   : > { %v1791_v1 = vld [vmem:[%s2340_s1 + $0xb8] sm:$0xff]   ;;  %1660 = vmatprep.subr.bf16.mxu1 %v1790_v0  ;;  %s1732_s22 = smul.u32 80, %s2348_s12  ;;  %v1795_v5 = vld [vmem:[%s2340_s1 + $0xb0] sm:$0xff]   ;;  %v1799_v48 = vld [vmem:[%s2340_s1 + $0xa8] sm:$0xff]   ;;  %s1596_s28 = sshll.u32 %s2348_s12, 5 }
   0xe   : > { %v1792_v2 = vld [vmem:[%s2340_s1 + $0x78] sm:$0xff]   ;;  %1661 = vmatpush3.bf16.msra.mxu1 %v1791_v1  ;;  %v1796_v22 = vld [vmem:[%s2340_s1 + $0x70] sm:$0xff]   ;;  %s192_s6 = scalar_lea.vmem %s2342_s3, %s1596_s28 }
   0xf   : > { %v1793_v3 = vld [vmem:[%s2340_s1 + $0x38] sm:$0xff]   ;;  %1620 = vmatprep.subr.bf16.mxu0 %v1792_v2  ;;  %s1910_s29 = scalar_lea.vmem %s2339_s0, %s1732_s22  ;;  %1662 = vmatprep.subr.bf16.mxu1 %v1794_v4  ;;  %v1797_v27 = vld [vmem:[%s2340_s1 + $0x30] sm:$0xff]   ;;  %v1800_v2 = vld [vmem:[%s2340_s1 + $0x68] sm:$0xff]  }
  0x10   : > { %1621 = vmatpush3.bf16.msra.mxu0 %v1793_v3  ;;  %v1916_v6 = vld [vmem:[%s1910_s29 + $0x20] sm:$0xf]  ;;  %v1469_v7 = vld [vmem:[%s1910_s29 + $0x8] sm:$0xf]  ;;  %v1471_v10 = vld [vmem:[%s1910_s29 + $0x10] sm:$0xf] }
  0x11   : > { %v1512_v8 = vcombine.low %v1916_v6, %v1916_v6  ;;  %v1509_v9 = vcombine.low %v1469_v7, %v1469_v7  ;;  %v1472_v11 = vld [vmem:[%s1910_s29 + $0x14] sm:$0x1]  ;;  %v1470_v12 = vld [vmem:[%s1910_s29 + $0xc] sm:$0x1]  ;;  %v1927_v14 = vld [vmem:[%s1910_s29 + $0x10] sm:$0xf]  ;;  %v1510_v16 = vcombine.low %v1471_v10, %v1471_v10  ;;  %1622 = vmatprep.subr.bf16.mxu0 %v1796_v22 }
  0x12   : > { %1663 = vmatpush3.bf16.msra.mxu1 %v1795_v5  ;;  %v1924_v13 = vcombine.low %v1471_v10, %v1472_v11  ;;  %v1486_v15 = vld [vmem:[%s1910_s29 + $0x14] sm:$0x1]  ;;  %v1936_v18 = vld [vmem:[%s1910_s29 + $0x18] sm:$0xf]  ;;  %v1488_v21 = vld [vmem:[%s1910_s29 + $0x1c] sm:$0x1]  ;;  %v1957_v28 = vcombine.low %v1469_v7, %v1470_v12 }
  0x13   : > { %405 = vrot.lane.b32.xlu1 %v1512_v8, %s1850_s5  ;;  %399 = vrot.lane.b32.xlu0 %v1509_v9, %s1850_s5  ;;  %v1933_v17 = vcombine.low %v1927_v14, %v1486_v15  ;;  %v1939_v19 = vld [vmem:[%s1910_s29 + $0x18] sm:$0xf]  ;;  %v1952_v26 = vld [vmem:[%s1910_s29 + $0x8] sm:$0xf]  ;;  %v1511_v29 = vcombine.low %v1936_v18, %v1936_v18 }
  0x14   : > { %v496_v20 = vrot.slane %v1924_v13, 1  ;;  %v1949_v25 = vcombine.low %v1939_v19, %v1488_v21  ;;  %v202_v30 = vld [vmem:[%s1910_s29 + $0xc] sm:$0x1]  ;;  %v1963_v31 = vld [vmem:[%s1910_s29] sm:$0xf]  ;;  %1623 = vmatpush3.bf16.msra.mxu0 %v1797_v27  ;;  %1664 = vmatprep.subr.bf16.mxu1 %v1798_v38  ;;  %v495_v55 = vrot.slane %v1957_v28, 1 }
  0x15   : > { %v560_v23 = vshrl.u32 %v1933_v17, 16  ;;  %v562_v24 = vshll.u32 %v1933_v17, 16  ;;  %v200_v32 = vld [vmem:[%s1910_s29 + $0x4] sm:$0x1]  ;;  %v1971_v36 = vcombine.low %v1952_v26, %v202_v30  ;;  %v1974_v37 = vld [vmem:[%s1910_s29 + $0x28] sm:$0xf]  ;;  %1624 = vmatprep.subr.bf16.mxu0 %v1800_v2 }
  0x16   : > { %v567_v34 = vshrl.u32 %v1949_v25, 16  ;;  %v569_v35 = vshll.u32 %v1949_v25, 16  ;;  %v1980_v39 = vcombine.low %v1963_v31, %v200_v32  ;;  %v1492_v40 = vld [vmem:[%s1910_s29 + $0x2c] sm:$0x1]  ;;  %v1984_v41 = vld [vmem:[%s1910_s29 + $0x20] sm:$0xf]  ;;  %1665 = vmatpush3.bf16.msra.mxu1 %v1799_v48 }
  0x17   : > { %505 = vrot.lane.b32.xlu1 %v496_v20, %s1850_s5  ;;  %401 = vrot.lane.b32.xlu0 %v1510_v16, %s1850_s5  ;;  %v564_v33 = vrot.slane %v562_v24, 1  ;;  %v1490_v42 = vld [vmem:[%s1910_s29 + $0x24] sm:$0x1]  ;;  %v303_v45 = vshrl.u32 %v1971_v36, 16  ;;  %v305_v46 = vshll.u32 %v1971_v36, 16  ;;  %v1528_v51 = vcombine.low %v1974_v37, %v1492_v40  ;;  %v1801_v8 = vld [vmem:[%s2340_s1 + $0x28] sm:$0xff]  }
  0x18   : > { %v571_v44 = vrot.slane %v569_v35, 1  ;;  %v1990_v47 = vld [vmem:[%s1910_s29 + $0x18] sm:$0xf]  ;;  %v296_v49 = vshrl.u32 %v1980_v39, 16  ;;  %v298_v50 = vshll.u32 %v1980_v39, 16  ;;  %v1527_v52 = vcombine.low %v1984_v41, %v1490_v42  ;;  %v1802_v15 = vld [vmem:[%s2340_s1 + $0xe0] sm:$0xff]   ;;  %1625 = vmatpush3.bf16.msra.mxu0 %v1801_v8 }
  0x19   : > { %v565_v43 = vor.u32 %v564_v33, %v560_v23  ;;  %v206_v53 = vld [vmem:[%s1910_s29 + $0x1c] sm:$0x1]  ;;  %v307_v56 = vrot.slane %v305_v46, 1  ;;  %v2007_v58 = vld [vmem:[%s1910_s29 + $0x10] sm:$0xf]  ;;  %v583_v60 = vshll.u32 %v1528_v51, 16  ;;  %1666 = vmatprep.subr.bf16.mxu1 %v1802_v15 }
  0x1a   : > { %v572_v54 = vor.u32 %v571_v44, %v567_v34  ;;  %v2004_v57 = vcombine.low %v1990_v47, %v206_v53  ;;  %v300_v59 = vrot.slane %v298_v50, 1  ;;  %v634_v61 = vrot.slane %v1528_v51, 1  ;;  %v204_v62 = vld [vmem:[%s1910_s29 + $0x14] sm:$0x1]  ;;  %v1476_v16 = vld [vmem:[%s1910_s29 + $0x24] sm:$0x1] }
  0x1b   : > { %615 = vrot.lane.b32.xlu1 %v565_v43, %s1850_s5  ;;  %403 = vrot.lane.b32.xlu0 %v1511_v29, %s1850_s5  ;;  %v581_v63 = vshrl.u32 %v1528_v51, 16  ;;  %v576_v0 = vshll.u32 %v1527_v52, 16  ;;  %v633_v1 = vrot.slane %v1527_v52, 1  ;;  %v308_v3 = vor.u32 %v307_v56, %v303_v45  ;;  %v1474_v21 = vld [vmem:[%s1910_s29 + $0x1c] sm:$0x1]  ;;  %v1803_v40 = vld [vmem:[%s2340_s1 + $0xa0] sm:$0xff]  }
  0x1c   : > { %v301_v4 = vor.u32 %v300_v59, %v296_v49  ;;  %v585_v5 = vrot.slane %v583_v60, 1  ;;  %v574_v7 = vshrl.u32 %v1527_v52, 16  ;;  %v319_v11 = vshll.u32 %v2004_v57, 16  ;;  %v2032_v24 = vld [vmem:[%s1910_s29 + $0x38] sm:$0xf]  ;;  %1667 = vmatpush3.bf16.msra.mxu1 %v1803_v40 }
  0x1d   : > { %v578_v9 = vrot.slane %v576_v0, 1  ;;  %v2018_v10 = vcombine.low %v633_v1, %v634_v61  ;;  %v2022_v12 = vcombine.low %v2007_v58, %v204_v62  ;;  %v317_v23 = vshrl.u32 %v2004_v57, 16  ;;  %v1496_v33 = vld [vmem:[%s1910_s29 + $0x3c] sm:$0x1]  ;;  %v2039_v34 = vld [vmem:[%s1910_s29 + $0x30] sm:$0xf] }
  0x1e   : > { %v586_v22 = vor.u32 %v585_v5, %v581_v63  ;;  %v321_v29 = vrot.slane %v319_v11, 1  ;;  %v1494_v35 = vld [vmem:[%s1910_s29 + $0x34] sm:$0x1]  ;;  %v2043_v38 = vld [vmem:[%s1910_s29 + $0x28] sm:$0xf]  ;;  %v2049_v42 = vcombine.low %v1916_v6, %v1476_v16  ;;  %v2052_v43 = vcombine.low %v1936_v18, %v1474_v21 }
  0x1f   : > { %617 = vrot.lane.b32.xlu1 %v572_v54, %s1850_s5  ;;  %503 = vrot.lane.b32.xlu0 %v495_v55, %s1850_s5  ;;  %v312_v20 = vshll.u32 %v2022_v12, 16  ;;  %v579_v27 = vor.u32 %v578_v9, %v574_v7  ;;  %v310_v30 = vshrl.u32 %v2022_v12, 16  ;;  %v2055_v44 = vcombine.low %v2032_v24, %v1496_v33  ;;  %v210_v45 = vld [vmem:[%s1910_s29 + $0x2c] sm:$0x1]  ;;  %v2059_v46 = vld [vmem:[%s1910_s29 + $0x48] sm:$0xf] }
  0x20   : > { %v1500_v48 = vld [vmem:[%s1910_s29 + $0x4c] sm:$0x1]  ;;  %v322_v49 = vor.u32 %v321_v29, %v317_v23  ;;  %v2065_v6 = vcombine.low %v2039_v34, %v1494_v35  ;;  %v2068_v51 = vld [vmem:[%s1910_s29 + $0x40] sm:$0xf]  ;;  %v1498_v18 = vld [vmem:[%s1910_s29 + $0x44] sm:$0x1]  ;;  %v2085_v61 = vcombine.low %v2043_v38, %v210_v45 }
  0x21   : > { %v314_v32 = vrot.slane %v312_v20, 1  ;;  %v2072_v52 = vld [vmem:[%s1910_s29 + $0x20] sm:$0xf]  ;;  %v208_v53 = vld [vmem:[%s1910_s29 + $0x24] sm:$0x1]  ;;  %v2079_v55 = vcombine.low %v2059_v46, %v1500_v48  ;;  %v498_v56 = vrot.slane %v2049_v42, 1  ;;  %v2088_v62 = vcombine.low %v2068_v51, %v1498_v18 }
  0x22   : > { %v1804_v54 = vld [vmem:[%s2340_s1 + $0x60] sm:$0xff]   ;;  %v1479_v59 = vld [vmem:[%s1910_s29 + $0x30] sm:$0xf]  ;;  %v597_v60 = vshll.u32 %v2055_v44, 16  ;;  %v497_v63 = vrot.slane %v2052_v43, 1  ;;  %v590_v0 = vshll.u32 %v2065_v6, 16  ;;  %v2095_v1 = vcombine.low %v2072_v52, %v208_v53 }
  0x23   : > { %353 = vrot.lane.b32.xlu1 %v308_v3, %s1850_s5  ;;  %351 = vrot.lane.b32.xlu0 %v301_v4, %s1850_s5  ;;  %v315_v50 = vor.u32 %v314_v32, %v310_v30  ;;  %v638_v2 = vrot.slane %v2079_v55, 1  ;;  %v1477_v3 = vld [vmem:[%s1910_s29 + $0x28] sm:$0xf]  ;;  %v637_v4 = vrot.slane %v2088_v62, 1  ;;  %v595_v5 = vshrl.u32 %v2055_v44, 16  ;;  %v1805_v30 = vld [vmem:[%s2340_s1 + $0x20] sm:$0xff]  }
  0x24   : > { %1626 = vmatprep.subr.bf16.mxu0 %v1804_v54  ;;  %v588_v7 = vshrl.u32 %v2065_v6, 16  ;;  %v331_v8 = vshrl.u32 %v2085_v61, 16  ;;  %v599_v9 = vrot.slane %v597_v60, 1  ;;  %v333_v11 = vshll.u32 %v2085_v61, 16  ;;  %v1480_v23 = vld [vmem:[%s1910_s29 + $0x34] sm:$0x1] }
  0x25   : > { %v2104_v15 = vcombine.low %v637_v4, %v638_v2  ;;  %v1514_v16 = vcombine.low %v1479_v59, %v1479_v59  ;;  %v1513_v20 = vcombine.low %v1477_v3, %v1477_v3  ;;  %v592_v21 = vrot.slane %v590_v0, 1  ;;  %v2118_v45 = vld [vmem:[%s1910_s29 + $0x38] sm:$0xf]  ;;  %v214_v48 = vld [vmem:[%s1910_s29 + $0x3c] sm:$0x1]  ;;  %1627 = vmatpush3.bf16.msra.mxu0 %v1805_v30  ;;  %v1810_v2 = vld [vmem:[%s2340_s1 + $0xd0] sm:$0xff]  }
  0x26   : > { %v324_v29 = vshrl.u32 %v2095_v1, 16  ;;  %v600_v32 = vor.u32 %v599_v9, %v595_v5  ;;  %v335_v35 = vrot.slane %v333_v11, 1  ;;  %v1807_v18 = vld [vmem:[%s2340_s1 + $0x98] sm:$0xff]   ;;  %v2130_v53 = vld [vmem:[%s1910_s29 + $0x30] sm:$0xf]  ;;  %v611_v9 = vshll.u32 %v2079_v55, 16 }
  0x27   : > { %621 = vrot.lane.b32.xlu1 %v586_v22, %s1850_s5  ;;  %619 = vrot.lane.b32.xlu0 %v579_v27, %s1850_s5  ;;  %v326_v22 = vshll.u32 %v2095_v1, 16  ;;  %v1478_v27 = vld [vmem:[%s1910_s29 + $0x2c] sm:$0x1]  ;;  %v593_v33 = vor.u32 %v592_v21, %v588_v7  ;;  %v212_v54 = vld [vmem:[%s1910_s29 + $0x34] sm:$0x1]  ;;  %v604_v21 = vshll.u32 %v2088_v62, 16 }
  0x28   : > { %v2136_v60 = vcombine.low %v1477_v3, %v1478_v27  ;;  %v1809_v0 = vld [vmem:[%s2340_s1 + $0x18] sm:$0xff]   ;;  %v2148_v3 = vcombine.low %v2118_v45, %v214_v48  ;;  %v1811_v5 = vld [vmem:[%s2340_s1 + $0x90] sm:$0xff]   ;;  %v1483_v7 = vld [vmem:[%s1910_s29 + $0x40] sm:$0xf]  ;;  %v602_v27 = vshrl.u32 %v2088_v62, 16 }
  0x29   : > { %v328_v40 = vrot.slane %v326_v22, 1  ;;  %v1812_v11 = vld [vmem:[%s2340_s1 + $0x50] sm:$0xff]   ;;  %v2165_v22 = vcombine.low %v2130_v53, %v212_v54  ;;  %v1815_v30 = vld [vmem:[%s2340_s1 + $0x88] sm:$0xff]  }
  0x2a   : > { %v1816_v62 = vld [vmem:[%s2340_s1 + $0x48] sm:$0xff]   ;;  %v345_v54 = vshrl.u32 %v2148_v3, 16 }
  0x2b   : > { %357 = vrot.lane.b32.xlu1 %v322_v49, %s1850_s5  ;;  %355 = vrot.lane.b32.xlu0 %v315_v50, %s1850_s5  ;;  %v1806_v49 = vld [vmem:[%s2340_s1 + $0xd8] sm:$0xff]   ;;  %v2124_v50 = vcombine.low %v1479_v59, %v1480_v23  ;;  %v336_v59 = vor.u32 %v335_v35, %v331_v8  ;;  %v1813_v23 = vld [vmem:[%s2340_s1 + $0x10] sm:$0xff]   ;;  %v340_v48 = vshll.u32 %v2165_v22, 16 }
  0x2c   : > { %1668 = vmatprep.subr.bf16.mxu1 %v1806_v49  ;;  %v1481_v8 = vld [vmem:[%s1910_s29 + $0x38] sm:$0xf]  ;;  %v1817_v49 = vld [vmem:[%s2340_s1 + $0x8] sm:$0xff]  }
  0x2d   : > { %1669 = vmatpush3.bf16.msra.mxu1 %v1807_v18  ;;  %v500_v4 = vrot.slane %v2124_v50, 1  ;;  %v1515_v35 = vcombine.low %v1481_v8, %v1481_v8  ;;  %v1484_v18 = vld [vmem:[%s1910_s29 + $0x44] sm:$0x1] }
  0x2e   : > { %1670 = vmatprep.subr.bf16.mxu1 %v1810_v2 }
  0x2f   : > { %509 = vrot.lane.b32.xlu1 %v498_v56, %s1850_s5  ;;  %507 = vrot.lane.b32.xlu0 %v497_v63, %s1850_s5  ;;  %v1808_v56 = vld [vmem:[%s2340_s1 + $0x58] sm:$0xff]   ;;  %v329_v63 = vor.u32 %v328_v40, %v324_v29  ;;  %v1814_v29 = vld [vmem:[%s2340_s1 + $0xc8] sm:$0xff]   ;;  %v606_v40 = vrot.slane %v604_v21, 1  ;;  %v631_v21 = vrot.slane %v1933_v17, 1 }
  0x30   : > { %1628 = vmatprep.subr.bf16.mxu0 %v1808_v56  ;;  %v1818_v56 = vld [vmem:[%s2340_s1 + $0xc0] sm:$0xff]  }
  0x31   : > { %1629 = vmatpush3.bf16.msra.mxu0 %v1809_v0  ;;  %1671 = vmatpush3.bf16.msra.mxu1 %v1811_v5  ;;  %v1819_v0 = vld [vmem:[%s2340_s1 + $0x80] sm:$0xff]  }
  0x32   : > { %1630 = vmatprep.subr.bf16.mxu0 %v1812_v11  ;;  %1672 = vmatprep.subr.bf16.mxu1 %v1814_v29  ;;  %v1820_v11 = vld [vmem:[%s2340_s1 + $0x40] sm:$0xff]  }
  0x33   : > { %409 = vrot.lane.b32.xlu1 %v1514_v16, %s1850_s5  ;;  %407 = vrot.lane.b32.xlu0 %v1513_v20, %s1850_s5  ;;  %v499_v16 = vrot.slane %v2136_v60, 1  ;;  %v609_v20 = vshrl.u32 %v2079_v55, 16  ;;  %v347_v55 = vshll.u32 %v2148_v3, 16 }
  0x35   : > { %1631 = vmatpush3.bf16.msra.mxu0 %v1813_v23  ;;  %1673 = vmatpush3.bf16.msra.mxu1 %v1815_v30  ;;  %v349_v5 = vrot.slane %v347_v55, 1  ;;  %v2211_v23 = vcombine.low %v1483_v7, %v1484_v18  ;;  %v370_v18 = vrot.slane %v2004_v57, 1 }
  0x36   : > { %1632 = vmatprep.subr.bf16.mxu0 %v1816_v62  ;;  %1674 = vmatprep.subr.bf16.mxu1 %v1818_v56  ;;  %v447_v56 = vshrl.u32 %v1924_v13, 16 }
  0x37   : > { %625 = vrot.lane.b32.xlu1 %v600_v32, %s1850_s5  ;;  %623 = vrot.lane.b32.xlu0 %v593_v33, %s1850_s5  ;;  %v613_v32 = vrot.slane %v611_v9, 1  ;;  %v1516_v33 = vcombine.low %v1483_v7, %v1483_v7  ;;  %v342_v9 = vrot.slane %v340_v48, 1  ;;  %v350_v55 = vor.u32 %v349_v5, %v345_v54 }
  0x38   : > { %v635_v7 = vrot.slane %v2065_v6, 1  ;;  %v442_v6 = vshll.u32 %v1957_v28, 16  ;;  %v368_v48 = vrot.slane %v1971_v36, 1 }
  0x39   : > { %1633 = vmatpush3.bf16.msra.mxu0 %v1817_v49  ;;  %v614_v2 = vor.u32 %v613_v32, %v609_v20  ;;  %1675 = vmatpush3.bf16.msra.mxu1 %v1819_v0  ;;  %v2209_v20 = vld [vmem:[%s2340_s1 + $0x118] sm:$0xff]   ;;  %v636_v32 = vrot.slane %v2055_v44, 1  ;;  %v449_v44 = vshll.u32 %v1924_v13, 16  ;;  %v440_v49 = vshrl.u32 %v1957_v28, 16 }
  0x3a   : > { %1634 = vmatprep.subr.bf16.mxu0 %v1820_v11  ;;  %1724 = vmatprep.subr.bf16.mxu1 %v2209_v20  ;;  %v444_v5 = vrot.slane %v442_v6, 1 }
  0x3b   : > { %361 = vrot.lane.b32.xlu1 %v336_v59, %s1850_s5  ;;  %359 = vrot.lane.b32.xlu0 %v329_v63, %s1850_s5  ;;  %v1482_v59 = vld [vmem:[%s1910_s29 + $0x3c] sm:$0x1]  ;;  %v338_v63 = vshrl.u32 %v2165_v22, 16  ;;  %v2228_v62 = vcombine.low %v635_v7, %v636_v32  ;;  %v451_v0 = vrot.slane %v449_v44, 1 }
  0x3c   : > { %v2214_v29 = vcombine.low %v1481_v8, %v1482_v59 }
  0x3d   : > { %v343_v17 = vor.u32 %v342_v9, %v338_v63  ;;  %v369_v63 = vrot.slane %v2022_v12, 1  ;;  %v452_v11 = vor.u32 %v451_v0, %v447_v56  ;;  %v454_v56 = vshrl.u32 %v2052_v43, 16 }
  0x3e   : > { %v501_v8 = vrot.slane %v2214_v29, 1 }
  0x3f   : > { %513 = vrot.lane.b32.xlu1 %v500_v4, %s1850_s5  ;;  %511 = vrot.lane.b32.xlu0 %v499_v16, %s1850_s5  ;;  %v607_v4 = vor.u32 %v606_v40, %v602_v27  ;;  %v1821_v16 = vld [vmem:[%s2340_s1] sm:$0xff]   ;;  %v632_v27 = vrot.slane %v1949_v25, 1  ;;  %v502_v25 = vrot.slane %v2211_v23, 1  ;;  %v367_v40 = vrot.slane %v1980_v39, 1 }
  0x40   : > { %1635 = vmatpush3.bf16.msra.mxu0 %v1821_v16  ;;  %v445_v16 = vor.u32 %v444_v5, %v440_v49 }
  0x41   : > { %1708 = vmatprep.subr.bf16.mxu0 %v2209_v20  ;;  %v2220_v30 = vcombine.low %v631_v21, %v632_v27 }
  0x43   : > { %413 = vrot.lane.b32.xlu1 %v1516_v33, %s1850_s5  ;;  %411 = vrot.lane.b32.xlu0 %v1515_v35, %s1850_s5 }
  0x47   : > { %629 = vrot.lane.b32.xlu1 %v614_v2, %s1850_s5  ;;  %627 = vrot.lane.b32.xlu0 %v607_v4, %s1850_s5 }
  0x4b   : > { %365 = vrot.lane.b32.xlu1 %v350_v55, %s1850_s5  ;;  %363 = vrot.lane.b32.xlu0 %v343_v17, %s1850_s5 }
  0x4f   : > { %517 = vrot.lane.b32.xlu1 %v502_v25, %s1850_s5  ;;  %515 = vrot.lane.b32.xlu0 %v501_v8, %s1850_s5  ;;  %v463_v8 = vshll.u32 %v2049_v42, 16 }
  0x85   : > { %v406_v33 = vpop.permute.xlu1 %405  ;;  %v400_v35 = vpop.permute.xlu0 %399 }
  0x86   : > { %v666_v2 = vsel %vm639_vm0, %v367_v40, %v400_v35  ;;  %v675_v28 = vsel %vm639_vm0, %v370_v18, %v406_v33  ;;  %v456_v40 = vshll.u32 %v2052_v43, 16 }
  0x89   : > { %v506_v54 = vpop.permute.xlu1 %505  ;;  %v402_v59 = vpop.permute.xlu0 %401 }
  0x8a   : > { %v669_v4 = vsel %vm639_vm0, %v368_v48, %v402_v59  ;;  %v693_v12 = vsel %vm639_vm0, %v452_v11, %v506_v54  ;;  %v461_v48 = vshrl.u32 %v2049_v42, 16  ;;  %v458_v59 = vrot.slane %v456_v40, 1  ;;  %v1824_v42 = vld [vmem:[%s2340_s1 + $0x108] sm:$0xff]  }
  0x8b   : > { %v1535_v39 = vcombine.low %v666_v2, %v669_v4 }
  0x8c   : > { %v459_v4 = vor.u32 %v458_v59, %v454_v56  ;;  %v491_v59 = vshll.u32 %v2211_v23, 16 }
  0x8d   : > { %v616_v9 = vpop.permute.xlu1 %615  ;;  %v404_v36 = vpop.permute.xlu0 %403  ;;  %1183 = vmatprep.mubr.bf16.mxu0 %v1535_v39 }
  0x8e   : > { %v672_v57 = vsel %vm639_vm0, %v369_v63, %v404_v36  ;;  %v714_v17 = vsel %vm639_vm0, %v1927_v14, %v616_v9  ;;  %v1823_v14 = vld [vmem:[%s2340_s1 + $0x110] sm:$0xff]  }
  0x8f   : > { %v1540_v13 = vcombine.low %v672_v57, %v675_v28  ;;  %v371_v28 = vrot.slane %v2095_v1, 1 }
  0x91   : > { %v618_v21 = vpop.permute.xlu1 %617  ;;  %v504_v27 = vpop.permute.xlu0 %503 }
  0x92   : > { %v690_v55 = vsel %vm639_vm0, %v445_v16, %v504_v27  ;;  %v717_v7 = vsel %vm639_vm0, %v1939_v19, %v618_v21  ;;  %v477_v27 = vshll.u32 %v2124_v50, 16 }
  0x93   : > { %v1536_v32 = vcombine.low %v690_v55, %v693_v12  ;;  %v1537_v25 = vcombine.low %v714_v17, %v717_v7  ;;  %v470_v12 = vshll.u32 %v2136_v60, 16  ;;  %v475_v17 = vshrl.u32 %v2124_v50, 16 }
  0x94   : > { %v468_v7 = vshrl.u32 %v2136_v60, 16 }
  0x95   : > { %1248 = vmatprep.mubr.bf16.mxu1 %v1537_v25  ;;  %v354_v33 = vpop.permute.xlu1 %353  ;;  %v352_v35 = vpop.permute.xlu0 %351 }
  0x96   : > { %v645_v6 = vsel %vm639_vm0, %v1952_v26, %v354_v33  ;;  %v642_v44 = vsel %vm639_vm0, %v1963_v31, %v352_v35  ;;  %1249 = vmatmul.mubr.bf16.vlgmr.msra.gmra.mxu1 %v1536_v32  ;;  %v465_v26 = vrot.slane %v463_v8, 1  ;;  %v479_v8 = vrot.slane %v477_v27, 1 }
  0x97   : > { %v1534_v19 = vcombine.low %v642_v44, %v645_v6  ;;  %1728 = vmatpush3.bf16.msra.mxu1 %v2209_v20  ;;  %v472_v33 = vrot.slane %v470_v12, 1 }
  0x98   : > { %1725 = vmatprep.subr.bf16.mxu1 %v1823_v14  ;;  %v466_v2 = vor.u32 %v465_v26, %v461_v48  ;;  %v373_v26 = vrot.slane %v2165_v22, 1  ;;  %v482_v22 = vshrl.u32 %v2214_v29, 16 }
  0x99   : > { %v622_v49 = vpop.permute.xlu1 %621  ;;  %1184 = vmatmul.mubr.bf16.vlgmr.msra.gmra.mxu0 %v1534_v19  ;;  %v620_v18 = vpop.permute.xlu0 %619  ;;  %v473_v60 = vor.u32 %v472_v33, %v468_v7 }
  0x9a   : > { %v723_v31 = vsel %vm639_vm0, %v1974_v37, %v622_v49  ;;  %v720_v54 = vsel %vm639_vm0, %v1984_v41, %v620_v18  ;;  %1191 = vmatprep.mubr.bf16.mxu0 %v1540_v13  ;;  %1709 = vmatpush3.bf16.msra.mxu0 %v2209_v20  ;;  %v1825_v20 = vld [vmem:[%s2340_s1 + $0x100] sm:$0xff]   ;;  %v374_v18 = vrot.slane %v2148_v3, 1  ;;  %v489_v3 = vshrl.u32 %v2211_v23, 16 }
  0x9b   : > { %v1542_v63 = vcombine.low %v720_v54, %v723_v31  ;;  %1710 = vmatprep.subr.bf16.mxu0 %v1823_v14  ;;  %1729 = vmatpush3.bf16.msra.mxu1 %v1823_v14 }
  0x9c   : > { %1726 = vmatprep.subr.bf16.mxu1 %v1824_v42 }
  0x9d   : > { %v358_v0 = vpop.permute.xlu1 %357  ;;  %1256 = vmatprep.mubr.bf16.mxu1 %v1542_v63  ;;  %v356_v37 = vpop.permute.xlu0 %355 }
  0x9e   : > { %v651_v41 = vsel %vm639_vm0, %v1990_v47, %v358_v0  ;;  %v648_v43 = vsel %vm639_vm0, %v2007_v58, %v356_v37  ;;  %1711 = vmatpush3.bf16.msra.mxu0 %v1823_v14  ;;  %v372_v58 = vrot.slane %v2085_v61, 1  ;;  %v480_v14 = vor.u32 %v479_v8, %v475_v17 }
  0x9f   : > { %v1539_v5 = vcombine.low %v648_v43, %v651_v41  ;;  %1712 = vmatprep.subr.bf16.mxu0 %v1824_v42  ;;  %1730 = vmatpush3.bf16.msra.mxu1 %v1824_v42 }
  0xa0   : > { %1727 = vmatprep.subr.bf16.mxu1 %v1825_v20 }
  0xa1   : > { %v510_v39 = vpop.permute.xlu1 %509  ;;  %1192 = vmatmul.mubr.bf16.gmra.mxu0 %v1539_v5  ;;  %v508_v9 = vpop.permute.xlu0 %507 }
  0xa2   : > { %v699_v36 = vsel %vm639_vm0, %v466_v2, %v510_v39  ;;  %v696_v47 = vsel %vm639_vm0, %v459_v4, %v508_v9  ;;  %1713 = vmatpush3.bf16.msra.mxu0 %v1824_v42  ;;  %v484_v42 = vshll.u32 %v2214_v29, 16  ;;  %v493_v2 = vrot.slane %v491_v59, 1 }
  0xa3   : > { %v1541_v11 = vcombine.low %v696_v47, %v699_v36  ;;  %1714 = vmatprep.subr.bf16.mxu0 %v1825_v20  ;;  %1731 = vmatpush3.bf16.msra.mxu1 %v1825_v20 }
  0xa4   : > { %v486_v4 = vrot.slane %v484_v42, 1  ;;  %v494_v36 = vor.u32 %v493_v2, %v489_v3 }
  0xa5   : > { %v410_v57 = vpop.permute.xlu1 %409  ;;  %1257 = vmatmul.mubr.bf16.gmra.mxu1 %v1541_v11  ;;  %v408_v16 = vpop.permute.xlu0 %407 }
  0xa6   : > { %v681_v13 = vsel %vm639_vm0, %v372_v58, %v410_v57  ;;  %v678_v21 = vsel %vm639_vm0, %v371_v28, %v408_v16  ;;  %1715 = vmatpush3.bf16.msra.mxu0 %v1825_v20  ;;  %v487_v29 = vor.u32 %v486_v4, %v482_v22 }
  0xa7   : > { %v1545_v55 = vcombine.low %v678_v21, %v681_v13 }
  0xa9   : > { %v626_v61 = vpop.permute.xlu1 %625  ;;  %1199 = vmatprep.mubr.bf16.mxu0 %v1545_v55  ;;  %v624_v1 = vpop.permute.xlu0 %623 }
  0xaa   : > { %v729_v32 = vsel %vm639_vm0, %v2032_v24, %v626_v61  ;;  %v726_v25 = vsel %vm639_vm0, %v2039_v34, %v624_v1 }
  0xab   : > { %v1547_v35 = vcombine.low %v726_v25, %v729_v32 }
  0xad   : > { %v362_v6 = vpop.permute.xlu1 %361  ;;  %1264 = vmatprep.mubr.bf16.mxu1 %v1547_v35  ;;  %v360_v44 = vpop.permute.xlu0 %359 }
  0xae   : > { %v657_v40 = vsel %vm639_vm0, %v2043_v38, %v362_v6  ;;  %v654_v50 = vsel %vm639_vm0, %v2072_v52, %v360_v44 }
  0xaf   : > { %v1544_v19 = vcombine.low %v654_v50, %v657_v40 }
  0xb1   : > { %v514_v48 = vpop.permute.xlu1 %513  ;;  %1200 = vmatmul.mubr.bf16.gmra.mxu0 %v1544_v19  ;;  %v512_v24 = vpop.permute.xlu0 %511  ;;  %v1533_v19 = vld [vmem:[%s2341_s2] ss:$0 sm:$0xff] }
  0xb2   : > { %v705_v34 = vsel %vm639_vm0, %v480_v14, %v514_v48  ;;  %v702_v49 = vsel %vm639_vm0, %v473_v60, %v512_v24 }
  0xb3   : > { %v1546_v31 = vcombine.low %v702_v49, %v705_v34 }
  0xb5   : > { %v414_v54 = vpop.permute.xlu1 %413  ;;  %1265 = vmatmul.mubr.bf16.gmra.mxu1 %v1546_v31  ;;  %v412_v38 = vpop.permute.xlu0 %411 }
  0xb6   : > { %v687_v52 = vsel %vm639_vm0, %v374_v18, %v414_v54  ;;  %v684_v56 = vsel %vm639_vm0, %v373_v26, %v412_v38 }
  0xb7   : > { %v1550_v63 = vcombine.low %v684_v56, %v687_v52 }
  0xb9   : > { %v630_v0 = vpop.permute.xlu1 %629  ;;  %1207 = vmatprep.mubr.bf16.mxu0 %v1550_v63  ;;  %v628_v37 = vpop.permute.xlu0 %627 }
  0xba   : > { %v735_v41 = vsel %vm639_vm0, %v2059_v46, %v630_v0  ;;  %v732_v43 = vsel %vm639_vm0, %v2068_v51, %v628_v37 }
  0xbb   : > { %v1552_v20 = vcombine.low %v732_v43, %v735_v41 }
  0xbd   : > { %v366_v5 = vpop.permute.xlu1 %365  ;;  %1272 = vmatprep.mubr.bf16.mxu1 %v1552_v20  ;;  %v364_v39 = vpop.permute.xlu0 %363 }
  0xbe   : > { %v663_v9 = vsel %vm639_vm0, %v2118_v45, %v366_v5  ;;  %v660_v23 = vsel %vm639_vm0, %v2130_v53, %v364_v39 }
  0xbf   : > { %v1549_v47 = vcombine.low %v660_v23, %v663_v9 }
  0xc1   : > { %v518_v58 = vpop.permute.xlu1 %517  ;;  %1208 = vmatmul.mubr.bf16.gmra.mxu0 %v1549_v47  ;;  %v516_v46 = vpop.permute.xlu0 %515 }
  0xc2   : > { %v711_v51 = vsel %vm639_vm0, %v494_v36, %v518_v58  ;;  %v708_v28 = vsel %vm639_vm0, %v487_v29, %v516_v46  ;;  %1716 = vmatprep.mubr.msk.bf16.mxu0 %vm639_vm0, %v2220_v30 }
  0xc3   : > { %v1551_v11 = vcombine.low %v708_v28, %v711_v51 }
  0xc5   : > { %1273 = vmatmul.mubr.bf16.gmra.mxu1 %v1551_v11 }
  0xc6   : > { %1720 = vmatprep.mubr.msk.bf16.mxu1 %vm639_vm0, %v2228_v62 }
  0xc9   : > { %1717 = vmatmul.mubr.msk.bf16.vlgmr.msra.gmra.mxu0 %vm639_vm0, %v2018_v10 }
  0xcd   : > { %1721 = vmatmul.mubr.msk.bf16.vlgmr.msra.gmra.mxu1 %vm639_vm0, %v2104_v15 }
 0x156   : > { %v1676_v53 = vpop.f32.mrf.mxu1 }
 0x158   : > { %v1677_v13 = vpop.f32.mrf.mxu1 }
 0x159   : > { %v1636_v45 = vpop.f32.mrf.mxu0  ;;  %v1678_v59 = vadd.f32 %v1677_v13, %v1676_v53 }
 0x15a   : > { %v1679_v27 = vpop.f32.mrf.mxu1 }
 0x15b   : > { %v1637_v57 = vpop.f32.mrf.mxu0 }
 0x15c   : > { %v1680_v30 = vpop.f32.mrf.mxu1  ;;  %v1638_v40 = vadd.f32 %v1637_v57, %v1636_v45 }
 0x15d   : > { %v1639_v16 = vpop.f32.mrf.mxu0  ;;  %v1681_v23 = vadd.f32 %v1680_v30, %v1679_v27 }
 0x15e   : > { %v1186_v26 = vadd.f32 %v1638_v40, %v1533_v19 }
 0x15f   : > { %v1640_v21 = vpop.f32.mrf.mxu0 }
 0x160   : > { %v1641_v49 = vadd.f32 %v1640_v21, %v1639_v16  ;;  %v1251_v39 = vadd.f32 %v1678_v59, %v1186_v26 }
 0x161   : > { %v1642_v12 = vpop.f32.mrf.mxu0 }
 0x162   : > { %v1189_v3 = vadd.f32 %v1641_v49, %v1533_v19 }
 0x163   : > { %v1643_v55 = vpop.f32.mrf.mxu0 }
 0x164   : > { %v1644_v50 = vadd.f32 %v1643_v55, %v1642_v12  ;;  %v1254_v16 = vadd.f32 %v1681_v23, %v1189_v3 }
 0x165   : > { %v1682_v61 = vpop.f32.mrf.mxu1  ;;  %v1645_v1 = vpop.f32.mrf.mxu0 }
 0x166   : > { %v1194_v31 = vadd.f32 %v1644_v50, %v1533_v19 }
 0x167   : > { %v1683_v17 = vpop.f32.mrf.mxu1  ;;  %v1646_v62 = vpop.f32.mrf.mxu0 }
 0x168   : > { %v1684_v48 = vadd.f32 %v1683_v17, %v1682_v61  ;;  %v1647_v18 = vadd.f32 %v1646_v62, %v1645_v1 }
 0x169   : > { %v1685_v7 = vpop.f32.mrf.mxu1 }
 0x16a   : > { %v1259_v0 = vadd.f32 %v1684_v48, %v1194_v31  ;;  %v1197_v22 = vadd.f32 %v1647_v18, %v1533_v19 }
 0x16b   : > { %v1686_v10 = vpop.f32.mrf.mxu1 }
 0x16c   : > { %v1687_v52 = vadd.f32 %v1686_v10, %v1685_v7 }
 0x16e   : > { %v1262_v47 = vadd.f32 %v1687_v52, %v1197_v22 }
 0x171   : > { %v1648_v32 = vpop.f32.mrf.mxu0 }
 0x173   : > { %v1649_v25 = vpop.f32.mrf.mxu0 }
 0x174   : > { %v1650_v42 = vadd.f32 %v1649_v25, %v1648_v32 }
 0x175   : > { %v1688_v8 = vpop.f32.mrf.mxu1  ;;  %v1651_v15 = vpop.f32.mrf.mxu0 }
 0x176   : > { %v1202_v58 = vadd.f32 %v1650_v42, %v1533_v19 }
 0x177   : > { %v1689_v33 = vpop.f32.mrf.mxu1  ;;  %v1652_v35 = vpop.f32.mrf.mxu0 }
 0x178   : > { %v1653_v2 = vadd.f32 %v1652_v35, %v1651_v15  ;;  %v1690_v4 = vadd.f32 %v1689_v33, %v1688_v8 }
 0x179   : > { %v1691_v6 = vpop.f32.mrf.mxu1 }
 0x17a   : > { %v1205_v13 = vadd.f32 %v1653_v2, %v1533_v19  ;;  %v1267_v55 = vadd.f32 %v1690_v4, %v1202_v58 }
 0x17b   : > { %v1692_v14 = vpop.f32.mrf.mxu1 }
 0x17c   : > { %v1693_v46 = vadd.f32 %v1692_v14, %v1691_v6 }
 0x17e   : > { %v1270_v32 = vadd.f32 %v1693_v46, %v1205_v13 }
 0x181   : > { %v1654_v44 = vpop.f32.mrf.mxu0 }
 0x183   : > { %v1655_v60 = vpop.f32.mrf.mxu0 }
 0x184   : > { %v1656_v56 = vadd.f32 %v1655_v60, %v1654_v44 }
 0x185   : > { %v1657_v24 = vpop.f32.mrf.mxu0  ;;  %v1694_v34 = vpop.f32.mrf.mxu1 }
 0x186   : > { %v1210_v36 = vadd.f32 %v1656_v56, %v1533_v19 }
 0x187   : > { %v1658_v54 = vpop.f32.mrf.mxu0  ;;  %v1695_v38 = vpop.f32.mrf.mxu1 }
 0x188   : > { %v1659_v41 = vadd.f32 %v1658_v54, %v1657_v24  ;;  %v1696_v43 = vadd.f32 %v1695_v38, %v1694_v34 }
 0x189   : > { %v1697_v63 = vpop.f32.mrf.mxu1  ;;  %v1718_v37 = vpop.f32.mrf.mxu0 }
 0x18a   : > { %v1324_v20 = vadd.f32 %v1718_v37, %v1259_v0  ;;  %v1213_v45 = vadd.f32 %v1659_v41, %v1533_v19  ;;  %v1275_v57 = vadd.f32 %v1696_v43, %v1210_v36 }
 0x18b   : > { %v1698_v5 = vpop.f32.mrf.mxu1  ;;  %v1315_v9 = vpop.f32.mrf.mxu0 }
 0x18c   : > { %v1699_v29 = vadd.f32 %v1698_v5, %v1697_v63  ;;  %v1316_v51 = vadd.f32 %v1315_v9, %v1251_v39  ;;  %v1348_v21 = vmax.f32 %v1324_v20, 0.0 }
 0x18d   : > { %v1719_v28 = vpop.f32.mrf.mxu0  ;;  %v1722_v11 = vpop.f32.mrf.mxu1 }
 0x18e   : > { %v1327_v53 = vadd.f32 %v1719_v28, %v1262_v47  ;;  %v1340_v27 = vadd.f32 %v1722_v11, %v1275_v57  ;;  %v1278_v17 = vadd.f32 %v1699_v29, %v1213_v45  ;;  %v1346_v62 = vmax.f32 %v1316_v51, 0.0 }
 0x18f   : > { %v1318_v12 = vpop.f32.mrf.mxu0  ;;  %v1331_v61 = vpop.f32.mrf.mxu1 }
 0x190   : > { %v1349_v1 = vmax.f32 %v1327_v53, 0.0  ;;  %v1319_v30 = vadd.f32 %v1318_v12, %v1254_v16  ;;  %v1332_v8 = vadd.f32 %v1331_v61, %v1267_v55  ;;  %v1352_v35 = vmax.f32 %v1340_v27, 0.0 }
 0x191   : > { %v1723_v7 = vpop.f32.mrf.mxu1 }
 0x192   : > { %v1605_v10 = vpack.c.bf16 %v1349_v1, %v1348_v21  ;;  %v1347_v25 = vmax.f32 %v1319_v30, 0.0  ;;  %v1343_v15 = vadd.f32 %v1723_v7, %v1278_v17  ;;  %v1350_v50 = vmax.f32 %v1332_v8, 0.0 }
 0x193   : > { %v1334_v33 = vpop.f32.mrf.mxu1 }
 0x194   : > { %1617 = vst [vmem:[%s192_s6 + $0x8] sm:$0xff] %v1605_v10   ;;  %v1600_v6 = vpack.c.bf16 %v1347_v25, %v1346_v62  ;;  %v1353_v44 = vmax.f32 %v1343_v15, 0.0  ;;  %v1335_v40 = vadd.f32 %v1334_v33, %v1270_v32 }
 0x196   : > { %1601 = vst [vmem:[%s192_s6] sm:$0xff] %v1600_v6   ;;  %v1615_v14 = vpack.c.bf16 %v1353_v44, %v1352_v35  ;;  %v1351_v60 = vmax.f32 %v1335_v40, 0.0 }
 0x198   : > { %1619 = vst [vmem:[%s192_s6 + $0x18] sm:$0xff] %v1615_v14   ;;  %v1610_v19 = vpack.c.bf16 %v1351_v60, %v1350_v50 }
 0x19a   : > { %1618 = vst [vmem:[%s192_s6 + $0x10] sm:$0xff] %v1610_v19  }
 0x19b PF: > { %s13_s14 = sadd.s32 1, %s1848_s14   ;;  %s2343_s12 = smov %s1844_s13 }
 0x19c   : > { %p10_p5 = scmp.ge.s32.totalorder %s13_s14, 4   ;;  %s2344_s13 = smov %s2346_s15 }
 0x19e   :  { %12 = sbr.rel (!%p10_p5) target bundleno = 2 (0x2), region = 65 }

// kernel: vggnet_forward.9
= control target key start
LH: loop header
LB: loop body
LE: loop exit
PB: predicated region body
PF: predicated region fallthrough
CT: control target
= control target key end

     0   :  { %8 = vsyncpa [#allocation3], 0  ;;  %s2975_s0 = inlined_call_operand.vmem [shape: bf16[2,10,10,128], index: 0, kind: input, shape index: {}]   ;;  %s2976_s1 = inlined_call_operand.vmem [shape: bf16[1152,128], index: 1, kind: input, shape index: {}]   ;;  %s2977_s2 = inlined_call_operand.vmem [shape: f32[1,128], index: 2, kind: input, shape index: {}]   ;;  %s2978_s3 = inlined_call_operand.hbm [shape: f32[2,8,8,128], index: 3, kind: output, shape index: {}]  }
   0x1   :  { %10 = vsyncpa [#allocation3 + $0x1], 0  ;;  %s2357_s12 = smov 0   ;;  %s2359_s13 = smov 0  }
   0x2   :  { %s2361_s14 = smov 0   ;;  %s2363_s15 = smov 0  }
   0x3   :  { %s2365_s16 = smov 0   ;;  %s2367_s17 = smov 0  }
   0x4 LB: > { %s1700_s18 = sadd.s32 4294967295, %s2332_s17   ;;  %s1701_s19 = sadd.s32 4294967294, %s2332_s17   ;;  %s2332_s17 = sphi %s2367_s17, %s16_s17   ;;  %s2328_s16 = sphi %s2365_s16, %s2989_s16   ;;  %s2324_s15 = sphi %s2363_s15, %s2988_s15   ;;  %s2320_s14 = sphi %s2361_s14, %s2987_s14   ;;  %s2316_s13 = sphi %s2359_s13, %s2986_s13   ;;  %s2312_s12 = sphi %s2357_s12, %s2985_s12  }
   0x5   : > { %s28_s20 = sadd.s32 1, %s2328_s16  ;;  %s105_s21 = sadd.s32 1, %s2320_s14 }
   0x6   : > { %p30_p0 = scmp.ge.s32.totalorder %s28_s20, 2  ;;  %p115_p1 = scmp.ne.s32.totalorder %s2320_s14, %s2316_s13 }
   0x7   : > { %p116_p2 = scmp.eq.s32.totalorder %s1700_s18, 1  ;;  %p121_p3 = scmp.ne.s32.totalorder %s2316_s13, %s2312_s12 }
   0x8   : > { %s2991_s20 = smov (%p30_p0, %s28_s20), 0  ;;  %p122_p5 = scmp.eq.s32.totalorder %s1701_s19, 1 }
   0x9   : > { %p2397_p4 = por %p116_p2, %p115_p1  ;;  %s100_s23 = ssub.s32 %s2328_s16, %s2991_s20 }
   0xa   : > { %p1704_p6 = scmp.ge.s32.totalorder %s2332_s17, 1  ;;  %p103_p7 = scmp.eq.s32.totalorder %s100_s23, 0 }
   0xb   : > { %p2404_p8 = por %p122_p5, %p121_p3  ;;  %p154_p9 = scmp.lt.s32.totalorder %s2332_s17, 3 }
   0xc   : > { %s2410_s25 = scalar_select %p103_p7, %s2320_s14, %s105_s21  }
   0xd   : > { %p155_p10 = pnand %p1704_p6, %p154_p9 }
   0xf   : > { %158 = sbr.rel (%p155_p10) target bundleno = 337 (0x151), region = 32 }
  0x14   : > { %v2148_v0 = vld [vmem:[%s2976_s1 + $0x78] sm:$0xff]   ;;  %v2152_v4 = vld [vmem:[%s2976_s1 + $0x70] sm:$0xff]   ;;  %v2156_v8 = vld [vmem:[%s2976_s1 + $0x68] sm:$0xff]   ;;  %p178_p11 = scmp.lt.s32.totalorder %s2324_s15, 1  ;;  %s1877_s4 = sshll.u32 %s2324_s15, 10 }
  0x15   : > { %v2149_v1 = vld [vmem:[%s2976_s1 + $0xf8] sm:$0xff]   ;;  %1878 = vmatprep.subr.bf16.mxu0 %v2148_v0  ;;  %v2153_v5 = vld [vmem:[%s2976_s1 + $0xf0] sm:$0xff]   ;;  %v2157_v9 = vld [vmem:[%s2976_s1 + $0xe8] sm:$0xff]   ;;  %s2922_s7 = scalar_lea.hbm %s2978_s3, %s1877_s4  ;;  %s2334_s10 = smov [#allocation2]  }
  0x16   : > { %v2150_v2 = vld [vmem:[%s2976_s1 + $0x38] sm:$0xff]   ;;  %1918 = vmatprep.subr.bf16.mxu1 %v2149_v1  ;;  %v2154_v6 = vld [vmem:[%s2976_s1 + $0x30] sm:$0xff]   ;;  %v2158_v10 = vld [vmem:[%s2976_s1 + $0x28] sm:$0xff]   ;;  %s179_s9 = scalar_select %p178_p11, %s2324_s15, 1 }
  0x17   : > { %v2151_v3 = vld [vmem:[%s2976_s1 + $0xb8] sm:$0xff]   ;;  %1879 = vmatpush3.bf16.msra.mxu0 %v2150_v2  ;;  %v2155_v7 = vld [vmem:[%s2976_s1 + $0xb0] sm:$0xff]   ;;  %v2159_v11 = vld [vmem:[%s2976_s1 + $0xa8] sm:$0xff]  }
  0x18   : > { %1919 = vmatpush3.bf16.msra.mxu1 %v2151_v3  ;;  %1880 = vmatprep.subr.bf16.mxu0 %v2152_v4  ;;  %v2160_v12 = vld [vmem:[%s2976_s1 + $0x60] sm:$0xff]   ;;  %v2164_v16 = vld [vmem:[%s2976_s1 + $0x58] sm:$0xff]   ;;  %v2168_v20 = vld [vmem:[%s2976_s1 + $0x50] sm:$0xff]   ;;  %s2090_s28 = smul.u32 80, %s179_s9  ;;  %s2260_s9 = sshll.u32 %s2334_s10, 4  ;;  %s2261_s9 = int_to_ptr.vmem [resolvable:$false] %s2260_s9 }
  0x19   : > { %1920 = vmatprep.subr.bf16.mxu1 %v2153_v5  ;;  %v2161_v13 = vld [vmem:[%s2976_s1 + $0xe0] sm:$0xff]   ;;  %v2165_v17 = vld [vmem:[%s2976_s1 + $0xd8] sm:$0xff]   ;;  %v2169_v21 = vld [vmem:[%s2976_s1 + $0xd0] sm:$0xff]   ;;  %s2262_s11 = scalar_lea.vmem %s2261_s9, 2048 }
  0x1a   : > { %v2162_v14 = vld [vmem:[%s2976_s1 + $0x20] sm:$0xff]   ;;  %v2166_v18 = vld [vmem:[%s2976_s1 + $0x18] sm:$0xff]   ;;  %v2170_v22 = vld [vmem:[%s2976_s1 + $0x10] sm:$0xff]   ;;  %s2507_s18 = scalar_lea.vmem %s2975_s0, %s2090_s28  ;;  %s175_s28 = sand.u32 1, %s2316_s13  }
  0x1b   : > { %1881 = vmatpush3.bf16.msra.mxu0 %v2154_v6  ;;  %v2163_v15 = vld [vmem:[%s2976_s1 + $0xa0] sm:$0xff]   ;;  %v2167_v19 = vld [vmem:[%s2976_s1 + $0x98] sm:$0xff]   ;;  %v2171_v23 = vld [vmem:[%s2976_s1 + $0x90] sm:$0xff]   ;;  %s1705_s29 = sshll.u32 %s175_s28, 6  ;;  %s2930_s15 = scalar_lea.sflag [#allocation3], %s175_s28 }
  0x1c   : > { %1921 = vmatpush3.bf16.msra.mxu1 %v2155_v7  ;;  %1882 = vmatprep.subr.bf16.mxu0 %v2156_v8  ;;  %v2172_v24 = vld [vmem:[%s2976_s1 + $0x48] sm:$0xff]   ;;  %v2176_v28 = vld [vmem:[%s2976_s1 + $0x40] sm:$0xff]   ;;  %v1709_v39 = vld [vmem:[%s2507_s18 + $0x10] sm:$0xf]  ;;  %s2907_s30 = scalar_lea.vmem [#allocation2], %s1705_s29 }
  0x1d   : > { %1922 = vmatprep.subr.bf16.mxu1 %v2157_v9  ;;  %v2173_v25 = vld [vmem:[%s2976_s1 + $0xc8] sm:$0xff]   ;;  %v2177_v29 = vld [vmem:[%s2976_s1 + $0xc0] sm:$0xff]   ;;  %v2186_v43 = vld [vmem:[%s2976_s1 + $0x178] sm:$0xff]   ;;  %s1617_s5 = sshll.u32 %s2907_s30, 4  ;;  %s2924_s5 = int_to_ptr.vmem [resolvable:$true] %s1617_s5 }
  0x1e   : > { %v2174_v26 = vld [vmem:[%s2976_s1 + $0x8] sm:$0xff]   ;;  %v2178_v30 = vld [vmem:[%s2976_s1] sm:$0xff]   ;;  %v2187_v44 = vld [vmem:[%s2976_s1 + $0x1f8] sm:$0xff]   ;;  %s2256_s8 = scalar_lea.vmem %s2924_s5, 1024  ;;  %p2263_p1 = scmp.lt.s32.totalorder %s2924_s5, %s2261_s9 }
  0x1f   : > { %1883 = vmatpush3.bf16.msra.mxu0 %v2158_v10  ;;  %v2175_v27 = vld [vmem:[%s2976_s1 + $0x88] sm:$0xff]   ;;  %v2179_v31 = vld [vmem:[%s2976_s1 + $0x80] sm:$0xff]   ;;  %v2189_v52 = vld [vmem:[%s2976_s1 + $0x1b8] sm:$0xff]   ;;  %p2257_p12 = scmp.ne.s32.totalorder %s2924_s5, %s2256_s8  ;;  %p2264_p2 = scmp.lt.s32.totalorder %s2262_s11, %s2256_s8 }
  0x20   : > { %1923 = vmatpush3.bf16.msra.mxu1 %v2159_v11  ;;  %1884 = vmatprep.subr.bf16.mxu0 %v2160_v12  ;;  %v189_v32 = vld [vmem:[%s2507_s18] sm:$0xf]  ;;  %v190_v33 = vld [vmem:[%s2507_s18 + $0x4] sm:$0x1]  ;;  %v191_v34 = vld [vmem:[%s2507_s18 + $0x8] sm:$0xf] }
  0x21   : > { %1924 = vmatprep.subr.bf16.mxu1 %v2161_v13  ;;  %v192_v35 = vld [vmem:[%s2507_s18 + $0xc] sm:$0x1]  ;;  %v1739_v36 = vcombine.low %v189_v32, %v190_v33  ;;  %v1707_v37 = vld [vmem:[%s2507_s18 + $0x8] sm:$0xf]  ;;  %v1764_v55 = vcombine.low %v189_v32, %v191_v34  ;;  %v2188_v56 = vld [vmem:[%s2976_s1 + $0x138] sm:$0xff]   ;;  %p2258_p13 = pnand %p2257_p12, %p2397_p4  ;;  %p2265_p3 = por %p2264_p2, %p2263_p1 }
  0x22   : > { %v1740_v38 = vcombine.low %v191_v34, %v192_v35  ;;  %v1767_v42 = vcombine.low %v1707_v37, %v1709_v39  ;;  %v1708_v58 = vld [vmem:[%s2507_s18 + $0xc] sm:$0x1]  ;;  %v2191_v59 = vld [vmem:[%s2976_s1 + $0x1f0] sm:$0xff]   ;;  %v195_v0 = vld [vmem:[%s2507_s18 + $0x18] sm:$0xf] }
  0x23   : > { %1885 = vmatpush3.bf16.msra.mxu0 %v2162_v14  ;;  %v286_v40 = vshrl.u32 %v1739_v36, 16  ;;  %v288_v41 = vshll.u32 %v1739_v36, 16  ;;  %v341_v48 = vrot.slane %v1739_v36, 1  ;;  %v2190_v60 = vld [vmem:[%s2976_s1 + $0x170] sm:$0xff]   ;;  %v196_v1 = vld [vmem:[%s2507_s18 + $0x1c] sm:$0x1]  ;;  %v2557_v8 = vcombine.low %v1707_v37, %v1708_v58  ;;  %p2259_p0 = pneg %p2258_p13 }
  0x24   : > { %1925 = vmatpush3.bf16.msra.mxu1 %v2163_v15  ;;  %1886 = vmatprep.subr.bf16.mxu0 %v2164_v16  ;;  %v293_v45 = vshrl.u32 %v1740_v38, 16  ;;  %v295_v46 = vshll.u32 %v1740_v38, 16  ;;  %v342_v50 = vrot.slane %v1740_v38, 1  ;;  %v2193_v61 = vld [vmem:[%s2976_s1 + $0x1b0] sm:$0xff]   ;;  %v2548_v3 = vld [vmem:[%s2507_s18 + $0x18] sm:$0xf]  ;;  %v1742_v6 = vcombine.low %v195_v0, %v196_v1 }
  0x25   : > { %1926 = vmatprep.subr.bf16.mxu1 %v2165_v17  ;;  %v290_v47 = vrot.slane %v288_v41, 1  ;;  %1357 = vmatprep.mubr.bf16.mxu1 %v1767_v42  ;;  %v193_v62 = vld [vmem:[%s2507_s18 + $0x10] sm:$0xf]  ;;  %v194_v63 = vld [vmem:[%s2507_s18 + $0x14] sm:$0x1]  ;;  %v2200_v15 = vld [vmem:[%s2976_s1 + $0x168] sm:$0xff]   ;;  %p2266_p5 = pnand %p2265_p3, %p2259_p0 }
  0x26   : > { %v297_v49 = vrot.slane %v295_v46, 1  ;;  %v1766_v54 = vcombine.low %v341_v48, %v342_v50  ;;  %v1741_v2 = vcombine.low %v193_v62, %v194_v63  ;;  %v1710_v4 = vld [vmem:[%s2507_s18 + $0x14] sm:$0x1]  ;;  %v2555_v7 = vld [vmem:[%s2507_s18 + $0x20] sm:$0xf]  ;;  %v307_v11 = vshrl.u32 %v1742_v6, 16 }
  0x27   : > { %1887 = vmatpush3.bf16.msra.mxu0 %v2166_v18  ;;  %v291_v51 = vor.u32 %v290_v47, %v286_v40  ;;  %v2192_v5 = vld [vmem:[%s2976_s1 + $0x130] sm:$0xff]   ;;  %v309_v12 = vshll.u32 %v1742_v6, 16  ;;  %v1776_v13 = vcombine.low %v2548_v3, %v2555_v7  ;;  %v2564_v16 = vcombine.low %v1709_v39, %v1710_v4  ;;  %v2206_v33 = vld [vmem:[%s2976_s1 + $0x120] sm:$0xff]   ;;  %v199_v38 = vld [vmem:[%s2507_s18 + $0x28] sm:$0xf] }
  0x28   : > { %1927 = vmatpush3.bf16.msra.mxu1 %v2167_v19  ;;  %1888 = vmatprep.subr.bf16.mxu0 %v2168_v20  ;;  %v298_v53 = vor.u32 %v297_v49, %v293_v45  ;;  %v300_v9 = vshrl.u32 %v1741_v2, 16  ;;  %v302_v10 = vshll.u32 %v1741_v2, 16  ;;  %v343_v14 = vrot.slane %v1741_v2, 1  ;;  %v2201_v19 = vld [vmem:[%s2976_s1 + $0x1e8] sm:$0xff]   ;;  %v2207_v35 = vld [vmem:[%s2976_s1 + $0x1a0] sm:$0xff]   ;;  %v2217_v1 = vld [vmem:[%s2976_s1 + $0x198] sm:$0xff]  }
  0x29   : > { %1928 = vmatprep.subr.bf16.mxu1 %v2169_v21  ;;  %v344_v18 = vrot.slane %v1742_v6, 1  ;;  %v2202_v20 = vld [vmem:[%s2976_s1 + $0x128] sm:$0xff]   ;;  %v311_v21 = vrot.slane %v309_v12, 1  ;;  %v397_v34 = vshrl.u32 %v2564_v16, 16  ;;  %v197_v36 = vld [vmem:[%s2507_s18 + $0x20] sm:$0xf] }
  0x2a   : > { %v1765_v57 = vcombine.low %v291_v51, %v298_v53  ;;  %v304_v17 = vrot.slane %v302_v10, 1  ;;  %v198_v37 = vld [vmem:[%s2507_s18 + $0x24] sm:$0x1]  ;;  %v200_v39 = vld [vmem:[%s2507_s18 + $0x2c] sm:$0x1]  ;;  %v2214_v53 = vld [vmem:[%s2976_s1 + $0x158] sm:$0xff]   ;;  %v1782_v4 = vcombine.low %v197_v36, %v199_v38 }
  0x2b   : > { %1889 = vmatpush3.bf16.msra.mxu0 %v2170_v22  ;;  %v2203_v22 = vld [vmem:[%s2976_s1 + $0x1a8] sm:$0xff]   ;;  %v1743_v42 = vcombine.low %v197_v36, %v198_v37  ;;  %v2603_v45 = vld [vmem:[%s2507_s18 + $0x30] sm:$0xf]  ;;  %v1712_v46 = vld [vmem:[%s2507_s18 + $0x1c] sm:$0x1]  ;;  %v446_v2 = vrot.slane %v2564_v16, 1 }
  0x2c   : > { %1929 = vmatpush3.bf16.msra.mxu1 %v2171_v23  ;;  %1890 = vmatprep.subr.bf16.mxu0 %v2172_v24  ;;  %v305_v23 = vor.u32 %v304_v17, %v300_v9  ;;  %v1775_v24 = vcombine.low %v343_v14, %v344_v18  ;;  %v1714_v48 = vld [vmem:[%s2507_s18 + $0x24] sm:$0x1]  ;;  %v201_v14 = vld [vmem:[%s2507_s18 + $0x30] sm:$0xf]  ;;  %v203_v18 = vld [vmem:[%s2507_s18 + $0x38] sm:$0xf] }
  0x2d   : > { %1930 = vmatprep.subr.bf16.mxu1 %v2173_v25  ;;  %1292 = vmatprep.mubr.bf16.mxu0 %v1765_v57  ;;  %v392_v25 = vshll.u32 %v2557_v8, 16  ;;  %v314_v49 = vshrl.u32 %v1743_v42, 16  ;;  %v316_v50 = vshll.u32 %v1743_v42, 16  ;;  %v2616_v57 = vcombine.low %v2548_v3, %v1712_v46  ;;  %v2228_v36 = vld [vmem:[%s2976_s1 + $0x148] sm:$0xff]  }
  0x2e   : > { %v2627_v3 = vcombine.low %v2555_v7, %v1714_v48  ;;  %v2219_v7 = vld [vmem:[%s2976_s1 + $0x1d0] sm:$0xff]   ;;  %v2231_v46 = vld [vmem:[%s2976_s1 + $0x188] sm:$0xff]  }
  0x2f   : > { %1891 = vmatpush3.bf16.msra.mxu0 %v2174_v26  ;;  %v312_v26 = vor.u32 %v311_v21, %v307_v11  ;;  %v2595_v40 = vrot.slane %v392_v25, 1  ;;  %v318_v58 = vrot.slane %v316_v50, 1  ;;  %v447_v6 = vrot.slane %v2616_v57, 1  ;;  %v2220_v11 = vld [vmem:[%s2976_s1 + $0x110] sm:$0xff]   ;;  %v2650_v21 = vld [vmem:[%s2507_s18 + $0x38] sm:$0xf] }
  0x30   : > { %1931 = vmatpush3.bf16.msra.mxu1 %v2175_v27  ;;  %1892 = vmatprep.subr.bf16.mxu0 %v2176_v28  ;;  %v2204_v27 = vld [vmem:[%s2976_s1 + $0x160] sm:$0xff]   ;;  %v399_v28 = vshll.u32 %v2564_v16, 16  ;;  %v406_v10 = vshll.u32 %v2616_v57, 16  ;;  %v448_v12 = vrot.slane %v2627_v3, 1  ;;  %v404_v17 = vshrl.u32 %v2616_v57, 16  ;;  %v2719_v16 = vld [vmem:[%s2976_s1 + $0x238] sm:$0xff]  }
  0x31   : > { %1932 = vmatprep.subr.bf16.mxu1 %v2177_v29  ;;  %v1773_v29 = vcombine.low %v193_v62, %v195_v0  ;;  %v1774_v32 = vcombine.low %v305_v23, %v312_v26  ;;  %v445_v62 = vrot.slane %v2557_v8, 1  ;;  %v319_v63 = vor.u32 %v318_v58, %v314_v49  ;;  %v2234_v58 = vld [vmem:[%s2976_s1 + $0x100] sm:$0xff]  }
  0x32   : > { %v2597_v41 = vrot.slane %v399_v28, 1  ;;  %v2656_v25 = vrot.slane %v406_v10, 1  ;;  %v413_v26 = vshll.u32 %v2627_v3, 16 }
  0x33   : > { %1893 = vmatpush3.bf16.msra.mxu0 %v2178_v30  ;;  %v2205_v30 = vld [vmem:[%s2976_s1 + $0x1e0] sm:$0xff]  }
  0x34   : > { %1933 = vmatpush3.bf16.msra.mxu1 %v2179_v31  ;;  %1958 = vmatprep.subr.bf16.mxu0 %v2186_v43  ;;  %v390_v31 = vshrl.u32 %v2557_v8, 16  ;;  %v1744_v43 = vcombine.low %v199_v38, %v200_v39  ;;  %v2229_v39 = vld [vmem:[%s2976_s1 + $0x1c8] sm:$0xff]  }
  0x35   : > { %1998 = vmatprep.subr.bf16.mxu1 %v2187_v44  ;;  %v2600_v44 = vld [vmem:[%s2507_s18 + $0x28] sm:$0xf] }
  0x36   : > { %1293 = vmatmul.mubr.bf16.vlgmr.msra.gmra.mxu0 %v1764_v55  ;;  %v1785_v47 = vcombine.low %v2600_v44, %v2603_v45  ;;  %v321_v51 = vshrl.u32 %v1744_v43, 16  ;;  %v345_v55 = vrot.slane %v1743_v42, 1  ;;  %v2230_v42 = vld [vmem:[%s2976_s1 + $0x108] sm:$0xff]  }
  0x37   : > { %1358 = vmatmul.mubr.bf16.vlgmr.msra.gmra.mxu1 %v1766_v54  ;;  %1959 = vmatpush3.bf16.msra.mxu0 %v2188_v56  ;;  %v2215_v54 = vld [vmem:[%s2976_s1 + $0x1d8] sm:$0xff]   ;;  %v346_v56 = vrot.slane %v1744_v43, 1 }
  0x38   : > { %1999 = vmatpush3.bf16.msra.mxu1 %v2189_v52  ;;  %1960 = vmatprep.subr.bf16.mxu0 %v2190_v60  ;;  %v323_v52 = vshll.u32 %v1744_v43, 16 }
  0x39   : > { %2000 = vmatprep.subr.bf16.mxu1 %v2191_v59  ;;  %1365 = vmatprep.mubr.bf16.mxu1 %v1776_v13  ;;  %v1784_v60 = vcombine.low %v345_v55, %v346_v56  ;;  %v2221_v13 = vld [vmem:[%s2976_s1 + $0x190] sm:$0xff]  }
  0x3a   : > { %1300 = vmatprep.mubr.bf16.mxu0 %v1774_v32  ;;  %v325_v59 = vrot.slane %v323_v52, 1  ;;  %v411_v52 = vshrl.u32 %v2627_v3, 16 }
  0x3b   : > { %1961 = vmatpush3.bf16.msra.mxu0 %v2192_v5  ;;  %v2218_v5 = vld [vmem:[%s2976_s1 + $0x150] sm:$0xff]  }
  0x3c   : > { %2001 = vmatpush3.bf16.msra.mxu1 %v2193_v61  ;;  %1962 = vmatprep.subr.bf16.mxu0 %v2200_v15  ;;  %v2216_v61 = vld [vmem:[%s2976_s1 + $0x118] sm:$0xff]   ;;  %v326_v0 = vor.u32 %v325_v59, %v321_v51  ;;  %v202_v15 = vld [vmem:[%s2507_s18 + $0x34] sm:$0x1]  ;;  %v2232_v51 = vld [vmem:[%s2976_s1 + $0x140] sm:$0xff]   ;;  %v415_v59 = vrot.slane %v413_v26, 1  ;;  %v1778_v26 = vcombine.low %v447_v6, %v448_v12 }
  0x3d   : > { %2002 = vmatprep.subr.bf16.mxu1 %v2201_v19  ;;  %v204_v19 = vld [vmem:[%s2507_s18 + $0x3c] sm:$0x1] }
  0x3e   : > { %1301 = vmatmul.mubr.bf16.gmra.mxu0 %v1773_v29  ;;  %v1783_v9 = vcombine.low %v319_v63, %v326_v0  ;;  %v1746_v23 = vcombine.low %v203_v18, %v204_v19  ;;  %v1718_v29 = vld [vmem:[%s2507_s18 + $0x34] sm:$0x1]  ;;  %v395_v0 = vor.u32 %v2595_v40, %v390_v31 }
  0x3f   : > { %1366 = vmatmul.mubr.bf16.gmra.mxu1 %v1775_v24  ;;  %1963 = vmatpush3.bf16.msra.mxu0 %v2202_v20  ;;  %v1745_v20 = vcombine.low %v201_v14, %v202_v15  ;;  %v2654_v24 = vld [vmem:[%s2507_s18 + $0x40] sm:$0xf]  ;;  %v2735_v15 = vld [vmem:[%s2507_s18 + $0x28] sm:$0xf] }
  0x40   : > { %2003 = vmatpush3.bf16.msra.mxu1 %v2203_v22  ;;  %1964 = vmatprep.subr.bf16.mxu0 %v2204_v27  ;;  %v1716_v22 = vld [vmem:[%s2507_s18 + $0x2c] sm:$0x1]  ;;  %v337_v32 = vshll.u32 %v1746_v23, 16  ;;  %v348_v38 = vrot.slane %v1746_v23, 1 }
  0x41   : > { %2004 = vmatprep.subr.bf16.mxu1 %v2205_v30  ;;  %1373 = vmatprep.mubr.bf16.mxu1 %v1785_v47  ;;  %v328_v27 = vshrl.u32 %v1745_v20, 16  ;;  %v330_v28 = vshll.u32 %v1745_v20, 16  ;;  %v335_v30 = vshrl.u32 %v1746_v23, 16  ;;  %v2675_v47 = vcombine.low %v2600_v44, %v1716_v22  ;;  %v2233_v44 = vld [vmem:[%s2976_s1 + $0x1c0] sm:$0xff]  }
  0x42   : > { %1308 = vmatprep.mubr.bf16.mxu0 %v1783_v9  ;;  %v339_v43 = vrot.slane %v337_v32, 1 }
  0x43   : > { %1965 = vmatpush3.bf16.msra.mxu0 %v2206_v33  ;;  %v1794_v33 = vcombine.low %v2650_v21, %v2654_v24  ;;  %v332_v37 = vrot.slane %v330_v28, 1  ;;  %v449_v55 = vrot.slane %v2675_v47, 1  ;;  %v418_v31 = vshrl.u32 %v2675_v47, 16 }
  0x44   : > { %2005 = vmatpush3.bf16.msra.mxu1 %v2207_v35  ;;  %1966 = vmatprep.subr.bf16.mxu0 %v2214_v53  ;;  %v347_v35 = vrot.slane %v1745_v20, 1  ;;  %v340_v50 = vor.u32 %v339_v43, %v335_v30  ;;  %v2682_v53 = vcombine.low %v2603_v45, %v1718_v29  ;;  %v1769_v45 = vcombine.low %v445_v62, %v446_v2  ;;  %v1724_v62 = vld [vmem:[%s2507_s18 + $0x14] sm:$0x1]  ;;  %v1725_v2 = vld [vmem:[%s2507_s18 + $0x18] sm:$0xf] }
  0x45   : > { %2006 = vmatprep.subr.bf16.mxu1 %v2215_v54  ;;  %v333_v48 = vor.u32 %v332_v37, %v328_v27  ;;  %v1791_v54 = vcombine.low %v201_v14, %v203_v18  ;;  %v1728_v14 = vld [vmem:[%s2507_s18 + $0x24] sm:$0x1]  ;;  %v1730_v18 = vld [vmem:[%s2507_s18 + $0x2c] sm:$0x1]  ;;  %v1720_v29 = vld [vmem:[%s2507_s18 + $0x3c] sm:$0x1] }
  0x46   : > { %1309 = vmatmul.mubr.bf16.gmra.mxu0 %v1782_v4  ;;  %v1793_v49 = vcombine.low %v347_v35, %v348_v38  ;;  %v450_v63 = vrot.slane %v2682_v53, 1  ;;  %v1726_v4 = vld [vmem:[%s2507_s18 + $0x1c] sm:$0x1]  ;;  %v425_v40 = vshrl.u32 %v2682_v53, 16  ;;  %v2742_v23 = vcombine.low %v2735_v15, %v1730_v18  ;;  %v2756_v37 = vld [vmem:[%s2507_s18 + $0x30] sm:$0xf] }
  0x47   : > { %1374 = vmatmul.mubr.bf16.gmra.mxu1 %v1784_v60  ;;  %1967 = vmatpush3.bf16.msra.mxu0 %v2216_v61  ;;  %v1792_v56 = vcombine.low %v333_v48, %v340_v50  ;;  %v2235_v60 = vld [vmem:[%s2976_s1 + $0x180] sm:$0xff]   ;;  %v2699_v61 = vld [vmem:[%s2507_s18 + $0x10] sm:$0xf]  ;;  %v2714_v8 = vcombine.low %v1725_v2, %v1726_v4  ;;  %v427_v28 = vshll.u32 %v2682_v53, 16  ;;  %v1732_v43 = vld [vmem:[%s2507_s18 + $0x34] sm:$0x1]  ;;  %v416_v50 = vor.u32 %v415_v59, %v411_v52 }
  0x48   : > { %2007 = vmatpush3.bf16.msra.mxu1 %v2217_v1  ;;  %1968 = vmatprep.subr.bf16.mxu0 %v2218_v5  ;;  %v402_v1 = vor.u32 %v2597_v41, %v397_v34  ;;  %v2712_v5 = vcombine.low %v2699_v61, %v1724_v62  ;;  %v420_v34 = vshll.u32 %v2675_v47, 16  ;;  %v1722_v38 = vld [vmem:[%s2507_s18 + $0x44] sm:$0x1]  ;;  %v1770_v6 = vcombine.low %v2699_v61, %v1725_v2  ;;  %v2249_v53 = vld [vmem:[%s2976_s1 + $0x218] sm:$0xff]  }
  0x49   : > { %2008 = vmatprep.subr.bf16.mxu1 %v2219_v7  ;;  %1381 = vmatprep.mubr.bf16.mxu1 %v1794_v33  ;;  %v501_v7 = vshrl.u32 %v2714_v8, 16  ;;  %v503_v10 = vshll.u32 %v2714_v8, 16  ;;  %v2240_v33 = vld [vmem:[%s2976_s1 + $0x230] sm:$0xff]   ;;  %v515_v12 = vshrl.u32 %v2742_v23, 16  ;;  %v1754_v62 = vcombine.low %v2654_v24, %v1722_v38 }
  0x4a   : > { %1316 = vmatprep.mubr.bf16.mxu0 %v1792_v56  ;;  %v494_v41 = vshrl.u32 %v2712_v5, 16  ;;  %v496_v9 = vshll.u32 %v2712_v5, 16  ;;  %v422_v27 = vrot.slane %v420_v34, 1  ;;  %v1738_v34 = vld [vmem:[%s2507_s18 + $0x4c] sm:$0x1] }
  0x4b   : > { %1969 = vmatpush3.bf16.msra.mxu0 %v2220_v11  ;;  %v2731_v11 = vld [vmem:[%s2507_s18 + $0x20] sm:$0xf]  ;;  %v505_v20 = vrot.slane %v503_v10, 1  ;;  %v441_v47 = vshll.u32 %v1754_v62, 16 }
  0x4c   : > { %2009 = vmatpush3.bf16.msra.mxu1 %v2221_v13  ;;  %1970 = vmatprep.subr.bf16.mxu0 %v2228_v36  ;;  %v1768_v13 = vcombine.low %v395_v0, %v402_v1  ;;  %v498_v19 = vrot.slane %v496_v9, 1  ;;  %v2739_v22 = vcombine.low %v2731_v11, %v1728_v14  ;;  %v1736_v0 = vld [vmem:[%s2507_s18 + $0x44] sm:$0x1]  ;;  %v2794_v1 = vld [vmem:[%s2507_s18 + $0x48] sm:$0xf]  ;;  %v1787_v9 = vcombine.low %v449_v55, %v450_v63 }
  0x4d   : > { %2010 = vmatprep.subr.bf16.mxu1 %v2229_v39  ;;  %v506_v32 = vor.u32 %v505_v20, %v501_v7  ;;  %v517_v39 = vshll.u32 %v2742_v23, 16  ;;  %v2807_v10 = vcombine.low %v2794_v1, %v1738_v34  ;;  %v1779_v24 = vcombine.low %v2731_v11, %v2735_v15 }
  0x4e   : > { %1317 = vmatmul.mubr.bf16.gmra.mxu0 %v1791_v54  ;;  %v499_v30 = vor.u32 %v498_v19, %v494_v41  ;;  %v508_v35 = vshrl.u32 %v2739_v22, 16  ;;  %v510_v36 = vshll.u32 %v2739_v22, 16  ;;  %v1734_v54 = vld [vmem:[%s2507_s18 + $0x3c] sm:$0x1]  ;;  %v423_v14 = vor.u32 %v422_v27, %v418_v31 }
  0x4f   : > { %1971 = vmatpush3.bf16.msra.mxu0 %v2230_v42  ;;  %1382 = vmatmul.mubr.bf16.gmra.mxu1 %v1793_v49  ;;  %v409_v42 = vor.u32 %v2656_v25, %v404_v17  ;;  %v519_v57 = vrot.slane %v517_v39, 1  ;;  %v429_v25 = vrot.slane %v427_v28, 1  ;;  %v545_v19 = vshll.u32 %v2807_v10, 16 }
  0x50   : > { %2011 = vmatpush3.bf16.msra.mxu1 %v2231_v46  ;;  %1972 = vmatprep.subr.bf16.mxu0 %v2232_v51  ;;  %v2767_v46 = vld [vmem:[%s2507_s18 + $0x38] sm:$0xf]  ;;  %v1771_v48 = vcombine.low %v499_v30, %v506_v32  ;;  %v512_v49 = vrot.slane %v510_v36, 1  ;;  %v2244_v51 = vld [vmem:[%s2976_s1 + $0x228] sm:$0xff]   ;;  %v452_v28 = vrot.slane %v1754_v62, 1  ;;  %v439_v32 = vshrl.u32 %v1754_v62, 16 }
  0x51   : > { %2012 = vmatprep.subr.bf16.mxu1 %v2233_v44  ;;  %1422 = vmatprep.mubr.bf16.mxu0 %v1769_v45  ;;  %v2776_v44 = vcombine.low %v2756_v37, %v1732_v43  ;;  %v2780_v17 = vcombine.low %v2767_v46, %v1734_v54  ;;  %v2788_v45 = vcombine.low %v2650_v21, %v1720_v29  ;;  %v547_v27 = vrot.slane %v545_v19, 1 }
  0x52   : > { %1487 = vmatprep.mubr.bf16.mxu1 %v1771_v48  ;;  %v513_v3 = vor.u32 %v512_v49, %v508_v35  ;;  %v520_v59 = vor.u32 %v519_v57, %v515_v12  ;;  %v1777_v2 = vcombine.low %v409_v42, %v416_v50  ;;  %v430_v63 = vor.u32 %v429_v25, %v425_v40  ;;  %v2254_v49 = vld [vmem:[%s2976_s1 + $0x208] sm:$0xff]   ;;  %v2255_v57 = vld [vmem:[%s2976_s1 + $0x200] sm:$0xff]  }
  0x53   : > { %1973 = vmatpush3.bf16.msra.mxu0 %v2234_v58  ;;  %v522_v52 = vshrl.u32 %v2776_v44, 16  ;;  %v524_v56 = vshll.u32 %v2776_v44, 16  ;;  %v2785_v58 = vld [vmem:[%s2507_s18 + $0x40] sm:$0xf]  ;;  %v531_v61 = vshll.u32 %v2780_v17, 16  ;;  %v434_v11 = vshll.u32 %v2788_v45, 16 }
  0x54   : > { %2013 = vmatpush3.bf16.msra.mxu1 %v2235_v60  ;;  %2050 = vmatprep.subr.bf16.mxu0 %v2719_v16  ;;  %v529_v60 = vshrl.u32 %v2780_v17, 16  ;;  %v2800_v41 = vcombine.low %v2785_v58, %v1736_v0  ;;  %v1780_v21 = vcombine.low %v513_v3, %v520_v59  ;;  %v451_v40 = vrot.slane %v2788_v45, 1 }
  0x55   : > { %2074 = vmatprep.subr.bf16.mxu1 %v2719_v16  ;;  %v526_v4 = vrot.slane %v524_v56, 1  ;;  %v533_v7 = vrot.slane %v531_v61, 1  ;;  %v1786_v29 = vcombine.low %v423_v14, %v430_v63  ;;  %v432_v30 = vshrl.u32 %v2788_v45, 16 }
  0x56   : > { %1423 = vmatmul.mubr.bf16.vlgmr.msra.gmra.mxu0 %v1768_v13  ;;  %v538_v18 = vshll.u32 %v2800_v41, 16  ;;  %v536_v15 = vshrl.u32 %v2800_v41, 16  ;;  %v436_v36 = vrot.slane %v434_v11, 1  ;;  %v443_v38 = vrot.slane %v441_v47, 1 }
  0x57   : > { %2051 = vmatpush3.bf16.msra.mxu0 %v2719_v16  ;;  %1430 = vmatprep.mubr.bf16.mxu0 %v1778_v26  ;;  %v527_v13 = vor.u32 %v526_v4, %v522_v52  ;;  %v534_v55 = vor.u32 %v533_v7, %v529_v60  ;;  %v543_v26 = vshrl.u32 %v2807_v10, 16  ;;  %v1796_v12 = vcombine.low %v451_v40, %v452_v28 }
  0x58   : > { %2052 = vmatprep.subr.bf16.mxu0 %v2240_v33  ;;  %1488 = vmatmul.mubr.bf16.vlgmr.msra.gmra.mxu1 %v1770_v6  ;;  %v540_v20 = vrot.slane %v538_v18, 1  ;;  %v2250_v6 = vld [vmem:[%s2976_s1 + $0x210] sm:$0xff]   ;;  %v1788_v39 = vcombine.low %v2756_v37, %v2767_v46  ;;  %v437_v43 = vor.u32 %v436_v36, %v432_v30  ;;  %v444_v48 = vor.u32 %v443_v38, %v439_v32 }
  0x59   : > { %2082 = vmatpush3.bf16.msra.mxu1 %v2719_v16  ;;  %v2245_v16 = vld [vmem:[%s2976_s1 + $0x220] sm:$0xff]   ;;  %1495 = vmatprep.mubr.bf16.mxu1 %v1780_v21  ;;  %v1789_v31 = vcombine.low %v527_v13, %v534_v55  ;;  %v548_v35 = vor.u32 %v547_v27, %v543_v26  ;;  %v549_v50 = vrot.slane %v2712_v5, 1  ;;  %v553_v46 = vrot.slane %v2776_v44, 1 }
  0x5a   : > { %2075 = vmatprep.subr.bf16.mxu1 %v2240_v33  ;;  %v1795_v37 = vcombine.low %v437_v43, %v444_v48  ;;  %v554_v54 = vrot.slane %v2780_v17, 1  ;;  %v1797_v5 = vcombine.low %v2785_v58, %v2794_v1  ;;  %v551_v3 = vrot.slane %v2739_v22, 1 }
  0x5b   : > { %2053 = vmatpush3.bf16.msra.mxu0 %v2240_v33  ;;  %v552_v44 = vrot.slane %v2742_v23, 1  ;;  %v555_v17 = vrot.slane %v2800_v41, 1  ;;  %v556_v52 = vrot.slane %v2807_v10, 1 }
  0x5c   : > { %2054 = vmatprep.subr.bf16.mxu0 %v2244_v51 }
  0x5d   : > { %2083 = vmatpush3.bf16.msra.mxu1 %v2240_v33  ;;  %v541_v33 = vor.u32 %v540_v20, %v536_v15  ;;  %v1781_v56 = vcombine.low %v551_v3, %v552_v44  ;;  %v1799_v58 = vcombine.low %v555_v17, %v556_v52 }
  0x5e   : > { %1431 = vmatmul.mubr.bf16.gmra.mxu0 %v1777_v2  ;;  %2076 = vmatprep.subr.bf16.mxu1 %v2244_v51 }
  0x5f   : > { %2055 = vmatpush3.bf16.msra.mxu0 %v2244_v51  ;;  %1438 = vmatprep.mubr.bf16.mxu0 %v1787_v9  ;;  %v1798_v42 = vcombine.low %v541_v33, %v548_v35 }
  0x60   : > { %2056 = vmatprep.subr.bf16.mxu0 %v2245_v16  ;;  %1496 = vmatmul.mubr.bf16.gmra.mxu1 %v1779_v24 }
  0x61   : > { %2084 = vmatpush3.bf16.msra.mxu1 %v2244_v51  ;;  %1503 = vmatprep.mubr.bf16.mxu1 %v1789_v31  ;;  %v550_v51 = vrot.slane %v2714_v8, 1  ;;  %v1790_v8 = vcombine.low %v553_v46, %v554_v54  ;;  %v1763_v46 = vld [vmem:[%s2977_s2] ss:$0 sm:$0xff] }
  0x62   : > { %2077 = vmatprep.subr.bf16.mxu1 %v2245_v16 }
  0x63   : > { %2057 = vmatpush3.bf16.msra.mxu0 %v2245_v16  ;;  %v1772_v25 = vcombine.low %v549_v50, %v550_v51 }
  0x64   : > { %2058 = vmatprep.subr.bf16.mxu0 %v2249_v53 }
  0x65   : > { %2085 = vmatpush3.bf16.msra.mxu1 %v2245_v16 }
  0x66   : > { %1439 = vmatmul.mubr.bf16.gmra.mxu0 %v1786_v29  ;;  %2078 = vmatprep.subr.bf16.mxu1 %v2249_v53 }
  0x67   : > { %2059 = vmatpush3.bf16.msra.mxu0 %v2249_v53  ;;  %1446 = vmatprep.mubr.bf16.mxu0 %v1796_v12 }
  0x68   : > { %2060 = vmatprep.subr.bf16.mxu0 %v2250_v6  ;;  %1504 = vmatmul.mubr.bf16.gmra.mxu1 %v1788_v39 }
  0x69   : > { %2086 = vmatpush3.bf16.msra.mxu1 %v2249_v53  ;;  %1511 = vmatprep.mubr.bf16.mxu1 %v1798_v42 }
  0x6a   : > { %2079 = vmatprep.subr.bf16.mxu1 %v2250_v6 }
  0x6b   : > { %2061 = vmatpush3.bf16.msra.mxu0 %v2250_v6 }
  0x6c   : > { %2062 = vmatprep.subr.bf16.mxu0 %v2254_v49 }
  0x6d   : > { %2087 = vmatpush3.bf16.msra.mxu1 %v2250_v6 }
  0x6e   : > { %1447 = vmatmul.mubr.bf16.gmra.mxu0 %v1795_v37  ;;  %2080 = vmatprep.subr.bf16.mxu1 %v2254_v49 }
  0x6f   : > { %2063 = vmatpush3.bf16.msra.mxu0 %v2254_v49  ;;  %2066 = vmatprep.mubr.bf16.mxu0 %v1772_v25 }
  0x70   : > { %2064 = vmatprep.subr.bf16.mxu0 %v2255_v57  ;;  %1512 = vmatmul.mubr.bf16.gmra.mxu1 %v1797_v5 }
  0x71   : > { %2088 = vmatpush3.bf16.msra.mxu1 %v2254_v49  ;;  %2070 = vmatprep.mubr.bf16.mxu1 %v1790_v8 }
  0x72   : > { %2081 = vmatprep.subr.bf16.mxu1 %v2255_v57 }
  0x73   : > { %2065 = vmatpush3.bf16.msra.mxu0 %v2255_v57 }
  0x75   : > { %2089 = vmatpush3.bf16.msra.mxu1 %v2255_v57 }
  0x76   : > { %2067 = vmatmul.mubr.bf16.vlgmr.msra.gmra.mxu0 %v1781_v56 }
  0x78   : > { %2071 = vmatmul.mubr.bf16.vlgmr.msra.gmra.mxu1 %v1799_v58 }
  0xf6   : > { %v1894_v45 = vpop.f32.mrf.mxu0 }
  0xf7   : > { %v1934_v22 = vpop.f32.mrf.mxu1 }
  0xf8   : > { %v1895_v60 = vpop.f32.mrf.mxu0 }
  0xf9   : > { %v1935_v23 = vpop.f32.mrf.mxu1  ;;  %v1896_v49 = vadd.f32 %v1895_v60, %v1894_v45 }
  0xfa   : > { %v1897_v61 = vpop.f32.mrf.mxu0  ;;  %v1936_v56 = vadd.f32 %v1935_v23, %v1934_v22 }
  0xfb   : > { %v2849_v59 = vpop.f32.mrf.mxu1  ;;  %v1295_v3 = vadd.f32 %v1896_v49, %v1763_v46 }
  0xfc   : > { %v1898_v1 = vpop.f32.mrf.mxu0 }
  0xfd   : > { %v1938_v0 = vpop.f32.mrf.mxu1  ;;  %v1899_v50 = vadd.f32 %v1898_v1, %v1897_v61 }
  0xfe   : > { %v1900_v4 = vpop.f32.mrf.mxu0  ;;  %v1939_v61 = vadd.f32 %v1938_v0, %v2849_v59 }
  0xff   : > { %v1940_v62 = vpop.f32.mrf.mxu1  ;;  %v1298_v44 = vadd.f32 %v1899_v50, %v1763_v46 }
 0x100   : > { %v1901_v41 = vpop.f32.mrf.mxu0 }
 0x101   : > { %v1941_v2 = vpop.f32.mrf.mxu1  ;;  %v1902_v51 = vadd.f32 %v1901_v41, %v1900_v4  ;;  %v1363_v49 = vadd.f32 %v1939_v61, %v1298_v44 }
 0x102   : > { %v1903_v9 = vpop.f32.mrf.mxu0  ;;  %v1942_v1 = vadd.f32 %v1941_v2, %v1940_v62 }
 0x103   : > { %v2851_v34 = vpop.f32.mrf.mxu1  ;;  %v1303_v17 = vadd.f32 %v1902_v51, %v1763_v46 }
 0x104   : > { %v1904_v7 = vpop.f32.mrf.mxu0 }
 0x105   : > { %v2853_v21 = vpop.f32.mrf.mxu1  ;;  %v1905_v5 = vadd.f32 %v1904_v7, %v1903_v9  ;;  %v1360_v7 = vadd.f32 %v1936_v56, %v1295_v3  ;;  %v1368_v50 = vadd.f32 %v1942_v1, %v1303_v17 }
 0x106   : > { %v1906_v16 = vpop.f32.mrf.mxu0  ;;  %v1945_v22 = vadd.f32 %v2853_v21, %v2851_v34 }
 0x107   : > { %v2855_v10 = vpop.f32.mrf.mxu1 }
 0x108   : > { %v1907_v14 = vpop.f32.mrf.mxu0 }
 0x109   : > { %v2857_v24 = vpop.f32.mrf.mxu1  ;;  %v1908_v58 = vadd.f32 %v1907_v14, %v1906_v16 }
 0x10a   : > { %v1909_v18 = vpop.f32.mrf.mxu0  ;;  %v1948_v59 = vadd.f32 %v2857_v24, %v2855_v10 }
 0x10b   : > { %v2859_v13 = vpop.f32.mrf.mxu1  ;;  %v1311_v16 = vadd.f32 %v1908_v58, %v1763_v46 }
 0x10c   : > { %v1910_v63 = vpop.f32.mrf.mxu0 }
 0x10d   : > { %v2861_v55 = vpop.f32.mrf.mxu1  ;;  %v1911_v0 = vadd.f32 %v1910_v63, %v1909_v18  ;;  %v1376_v51 = vadd.f32 %v1948_v59, %v1311_v16 }
 0x10e   : > { %v1912_v15 = vpop.f32.mrf.mxu0 }
 0x10f   : > { %v1952_v19 = vpop.f32.mrf.mxu1 }
 0x110   : > { %v1913_v20 = vpop.f32.mrf.mxu0 }
 0x111   : > { %v1953_v11 = vpop.f32.mrf.mxu1  ;;  %v1914_v54 = vadd.f32 %v1913_v20, %v1912_v15  ;;  %v1306_v15 = vadd.f32 %v1905_v5, %v1763_v46 }
 0x112   : > { %v1915_v47 = vpop.f32.mrf.mxu0  ;;  %v1954_v20 = vadd.f32 %v1953_v11, %v1952_v19 }
 0x113   : > { %v2863_v26 = vpop.f32.mrf.mxu1  ;;  %v1319_v45 = vadd.f32 %v1914_v54, %v1763_v46 }
 0x114   : > { %v1916_v31 = vpop.f32.mrf.mxu0 }
 0x115   : > { %v2865_v27 = vpop.f32.mrf.mxu1  ;;  %v1917_v4 = vadd.f32 %v1916_v31, %v1915_v47  ;;  %v1384_v62 = vadd.f32 %v1954_v20, %v1319_v45 }
 0x116   : > { %v1974_v53 = vpop.f32.mrf.mxu0  ;;  %v1957_v10 = vadd.f32 %v2865_v27, %v2863_v26 }
 0x117   : > { %v1322_v14 = vadd.f32 %v1917_v4, %v1763_v46 }
 0x118   : > { %v1975_v40 = vpop.f32.mrf.mxu0  ;;  %v2867_v28 = vpop.f32.mrf.mxu1 }
 0x11a   : > { %v1977_v29 = vpop.f32.mrf.mxu0  ;;  %v2869_v30 = vpop.f32.mrf.mxu1 }
 0x11c   : > { %v1978_v32 = vpop.f32.mrf.mxu0  ;;  %v2871_v33 = vpop.f32.mrf.mxu1 }
 0x11d   : > { %2981 = vst [vmem:[#allocation5_spill] sm:$0xff] %v2871_v33  ;;  %v1976_v33 = vadd.f32 %v1975_v40, %v1974_v53  ;;  %v1371_v53 = vadd.f32 %v1945_v22, %v1306_v15  ;;  %v1951_v40 = vadd.f32 %v2861_v55, %v2859_v13  ;;  %v1979_v24 = vadd.f32 %v1978_v32, %v1977_v29 }
 0x11e   : > { %v1980_v35 = vpop.f32.mrf.mxu0  ;;  %v2873_v36 = vpop.f32.mrf.mxu1  ;;  %v1387_v13 = vadd.f32 %v1957_v10, %v1322_v14 }
 0x11f   : > { %2982 = vst [vmem:[#allocation6_spill] sm:$0xff] %v2873_v36  ;;  %v1425_v34 = vadd.f32 %v1976_v33, %v1360_v7 }
 0x120   : > { %v1981_v38 = vpop.f32.mrf.mxu0  ;;  %v2020_v6 = vpop.f32.mrf.mxu1 }
 0x121   : > { %v1982_v41 = vadd.f32 %v1981_v38, %v1980_v35 }
 0x122   : > { %v1983_v12 = vpop.f32.mrf.mxu0  ;;  %v2021_v39 = vpop.f32.mrf.mxu1 }
 0x123   : > { %v1433_v19 = vadd.f32 %v1982_v41, %v1368_v50  ;;  %v2022_v18 = vadd.f32 %v2021_v39, %v2020_v6  ;;  %v1428_v6 = vadd.f32 %v1979_v24, %v1363_v49 }
 0x124   : > { %v1984_v42 = vpop.f32.mrf.mxu0  ;;  %v2875_v43 = vpop.f32.mrf.mxu1  ;;  %v2983_v45 = vld [vmem:[#allocation5_spill] sm:$0xff] }
 0x125   : > { %v1985_v11 = vadd.f32 %v1984_v42, %v1983_v12  ;;  %v1314_v12 = vadd.f32 %v1911_v0, %v1763_v46  ;;  %v2016_v42 = vadd.f32 %v2869_v30, %v2867_v28 }
 0x126   : > { %v1986_v48 = vpop.f32.mrf.mxu0  ;;  %v2877_v37 = vpop.f32.mrf.mxu1  ;;  %v2984_v61 = vld [vmem:[#allocation6_spill] sm:$0xff] }
 0x127   : > { %v1436_v55 = vadd.f32 %v1985_v11, %v1371_v53  ;;  %v1490_v32 = vadd.f32 %v2016_v42, %v1425_v34  ;;  %v2025_v39 = vadd.f32 %v2877_v37, %v2875_v43  ;;  %v1379_v44 = vadd.f32 %v1951_v40, %v1314_v12 }
 0x128   : > { %v1987_v57 = vpop.f32.mrf.mxu0  ;;  %v2882_v25 = vpop.f32.mrf.mxu1  ;;  %v2019_v1 = vadd.f32 %v2984_v61, %v2983_v45 }
 0x129   : > { %v1988_v21 = vadd.f32 %v1987_v57, %v1986_v48  ;;  %v1498_v57 = vadd.f32 %v2022_v18, %v1433_v19  ;;  %v1501_v41 = vadd.f32 %v2025_v39, %v1436_v55 }
 0x12a   : > { %v1989_v8 = vpop.f32.mrf.mxu0  ;;  %v2027_v52 = vpop.f32.mrf.mxu1  ;;  %v1493_v49 = vadd.f32 %v2019_v1, %v1428_v6 }
 0x12b   : > { %v1441_v3 = vadd.f32 %v1988_v21, %v1376_v51  ;;  %v2028_v17 = vadd.f32 %v2027_v52, %v2882_v25 }
 0x12c   : > { %v1990_v60 = vpop.f32.mrf.mxu0  ;;  %v2885_v36 = vpop.f32.mrf.mxu1 }
 0x12d   : > { %v1991_v26 = vadd.f32 %v1990_v60, %v1989_v8 }
 0x12e   : > { %v1992_v9 = vpop.f32.mrf.mxu0  ;;  %v2889_v23 = vpop.f32.mrf.mxu1 }
 0x12f   : > { %v1444_v15 = vadd.f32 %v1991_v26, %v1379_v44  ;;  %v2031_v50 = vadd.f32 %v2889_v23, %v2885_v36 }
 0x130   : > { %v1993_v2 = vpop.f32.mrf.mxu0  ;;  %v2032_v47 = vpop.f32.mrf.mxu1 }
 0x131   : > { %v1994_v31 = vadd.f32 %v1993_v2, %v1992_v9  ;;  %v1506_v9 = vadd.f32 %v2028_v17, %v1441_v3  ;;  %v1509_v11 = vadd.f32 %v2031_v50, %v1444_v15 }
 0x132   : > { %v1995_v35 = vpop.f32.mrf.mxu0  ;;  %v2033_v38 = vpop.f32.mrf.mxu1 }
 0x133   : > { %v1449_v63 = vadd.f32 %v1994_v31, %v1384_v62  ;;  %v2034_v54 = vadd.f32 %v2033_v38, %v2032_v47 }
 0x134   : > { %v1996_v5 = vpop.f32.mrf.mxu0  ;;  %v2035_v33 = vpop.f32.mrf.mxu1 }
 0x135   : > { %v1997_v48 = vadd.f32 %v1996_v5, %v1995_v35  ;;  %v1514_v29 = vadd.f32 %v2034_v54, %v1449_v63 }
 0x136   : > { %v2068_v27 = vpop.f32.mrf.mxu0  ;;  %v2036_v28 = vpop.f32.mrf.mxu1 }
 0x137   : > { %v1452_v46 = vadd.f32 %v1997_v48, %v1387_v13  ;;  %v1563_v30 = vadd.f32 %v2068_v27, %v1498_v57  ;;  %v2037_v56 = vadd.f32 %v2036_v28, %v2035_v33 }
 0x138   : > { %v1554_v58 = vpop.f32.mrf.mxu0  ;;  %v2072_v8 = vpop.f32.mrf.mxu1 }
 0x139   : > { %v1587_v4 = vmax.f32 %v1563_v30, 0.0  ;;  %v1555_v60 = vadd.f32 %v1554_v58, %v1490_v32  ;;  %v1579_v20 = vadd.f32 %v2072_v8, %v1514_v29  ;;  %v1517_v43 = vadd.f32 %v2037_v56, %v1452_v46 }
 0x13a   : > { %v2069_v7 = vpop.f32.mrf.mxu0  ;;  %v1570_v25 = vpop.f32.mrf.mxu1 }
 0x13b   : > { %1595 = vst [vmem:[%s2907_s30 + $0x10] sm:$0xff] %v1587_v4  ;;  %v1585_v37 = vmax.f32 %v1555_v60, 0.0  ;;  %v1566_v52 = vadd.f32 %v2069_v7, %v1501_v41  ;;  %v1591_v22 = vmax.f32 %v1579_v20, 0.0  ;;  %v1571_v16 = vadd.f32 %v1570_v25, %v1506_v9 }
 0x13c   : > { %v1557_v59 = vpop.f32.mrf.mxu0  ;;  %v2073_v62 = vpop.f32.mrf.mxu1 }
 0x13d   : > { %1593 = vst [vmem:[%s2907_s30] sm:$0xff] %v1585_v37  ;;  %v1588_v0 = vmax.f32 %v1566_v52, 0.0  ;;  %v1558_v2 = vadd.f32 %v1557_v59, %v1493_v49  ;;  %1599 = vst [vmem:[%s2907_s30 + $0x30] sm:$0xff] %v1591_v22  ;;  %v1589_v14 = vmax.f32 %v1571_v16, 0.0  ;;  %v1582_v19 = vadd.f32 %v2073_v62, %v1517_v43 }
 0x13e   : > { %v1573_v23 = vpop.f32.mrf.mxu1 }
 0x13f   : > { %1596 = vst [vmem:[%s2907_s30 + $0x18] sm:$0xff] %v1588_v0  ;;  %v1586_v36 = vmax.f32 %v1558_v2, 0.0  ;;  %1597 = vst [vmem:[%s2907_s30 + $0x20] sm:$0xff] %v1589_v14  ;;  %v1592_v47 = vmax.f32 %v1582_v19, 0.0  ;;  %v1574_v31 = vadd.f32 %v1573_v23, %v1509_v11 }
 0x141   : > { %1594 = vst [vmem:[%s2907_s30 + $0x8] sm:$0xff] %v1586_v36  ;;  %1600 = vst [vmem:[%s2907_s30 + $0x38] sm:$0xff] %v1592_v47  ;;  %v1590_v53 = vmax.f32 %v1574_v31, 0.0 }
 0x143   : > { %1598 = vst [vmem:[%s2907_s30 + $0x28] sm:$0xff] %v1590_v53 }
 0x144   : > { %2269 = shalt.err (!%p2266_p5)
}
 0x145   : > { %s2270_s19 = scalar_lea.hbm %s2922_s7, 1024  ;;  %s2274_s26 = scalar_lea.hbm %s2978_s3, 2048 }
 0x146   : > { %p2271_p6 = scmp.ne.s32.totalorder %s2922_s7, %s2270_s19  ;;  %p2275_p10 = scmp.lt.s32.totalorder %s2922_s7, %s2978_s3 }
 0x147   : > { %p2276_p11 = scmp.lt.s32.totalorder %s2274_s26, %s2270_s19 }
 0x148   : > { %p2272_p7 = pnand %p2271_p6, %p2397_p4 }
 0x149   : > { %p2277_p12 = por %p2276_p11, %p2275_p10 }
 0x14a   : > { %p2273_p9 = pneg %p2272_p7 }
 0x14c   : > { %p2278_p13 = pnand %p2277_p12, %p2273_p9 }
 0x14e   : > { %2281 = shalt.err (!%p2278_p13)
}
 0x14f   : > { %s2335_s29 = smov 128   ;;  %s2336_s30 = smov 8  }
 0x150   : > { %2091 = dma.vmem_to_hbm [thread:$0]  (%p2397_p4), %s2924_s5, 1024, %s2922_s7, %s2930_s15, %s2335_s29, %s2335_s29, %s2336_s30  }
 0x151 PF: > { %p2097_p0 = scmp.ge.s32.totalorder %s2332_s17, 2  ;;  %s1632_s4 = sand.u32 1, %s2312_s12  }
 0x152   : > { %s1633_s18 = scalar_lea.sflag [#allocation3], %s1632_s4 }
 0x153   : > { %p2094_p1 = pnand %p2097_p0, %p2404_p8 }
 0x155   : > { %p2095_p2 = pneg %p2094_p1 }
 0x157   : > { %2307 = dma.done.wait (%p2095_p2), %s1633_s18, 1024  }
 0x158   : > { %2309 = vsyncadd (%p2095_p2), %s1633_s18, 4294966272  ;;  %s16_s17 = sadd.s32 1, %s2332_s17   ;;  %s2985_s12 = smov %s2316_s13 }
 0x159   : > { %p13_p3 = scmp.ge.s32.totalorder %s16_s17, 4   ;;  %s2986_s13 = smov %s2320_s14 }
 0x15a   : > { %s2987_s14 = smov %s2410_s25  ;;  %s2988_s15 = smov %s2328_s16 }
 0x15b   : > { %s2989_s16 = smov %s2991_s20  ;;  %15 = sbr.rel (!%p13_p3) target bundleno = 4 (0x4), region = 70 }
 0x160   :  { %1638 = vsyncpa [#allocation3], 1 }
 0x161   :  { %1640 = vsyncpa [#allocation3 + $0x1], 1 }

</bundles_post_ra>
